<compile_context>
chip_gen: v6e
topology: v6e:2x2x1
jax: 0.10.0
libtpu: 0.0.40
codegen_flags: <defaults>
</compile_context>

<pallas_src>
import numpy as np
import jax
import jax.numpy as jnp
from jax.experimental import pallas as pl
from jax.experimental.pallas import tpu as pltpu


# ------------------------------ fused kernel --------------------------------
def _dqn_kernel(p1_ref, w1_ref, b1_ref, w2_ref, b2_ref, w3_ref, b3_ref,
                wfc1_ref, bfc1_ref, wfc2_ref, bfc2_ref,
                out_ref,
                a1_ref, p2_ref, a2_ref, p3_ref, a3_ref, fcin_ref):
    f32 = jnp.float32

    # ---- conv1: one whole-image GEMM on the host-built im2col matrix --------
    # p1_ref[0]: (104, 1024), row = 10*hb + wb over the 10x10 2x2-block grid of
    # conv1's 20x20 output; cols = (ph, pw, ki, kj, ic).  w1_ref is the 4-way
    # block-diagonal conv1 weight, so the GEMM output is already a 2x2
    # space-to-depth image: a1[10*hb+wb, 32*(2*ph+pw)+oc] = conv1out[2hb+ph, 2wb+pw, oc].
    a1 = jnp.dot(p1_ref[0], w1_ref[...], preferred_element_type=f32)
    a1_ref[...] = jnp.maximum(a1 + b1_ref[...], 0.0)            # (104, 128)

    # ---- conv2: 4x4 stride 2 == 2x2 stride-1 conv on the s2d image ----------
    # Flat 10-wide layout => the whole im2col matrix is 4 contiguous shifted
    # copies of a1 (shift = 10*kbi + kbj).  Valid output rows: p = 10*oh2+ow2,
    # oh2,ow2 in 0..8 (p <= 88); padded tail rows are zeroed and never read.
    p2_ref[pl.ds(88, 8), :] = jnp.zeros((8, 512), f32)
    for k, shift in enumerate((0, 1, 10, 11)):                  # (kbi, kbj) row-major
        p2_ref[pl.ds(0, 89), pl.ds(128 * k, 128)] = a1_ref[pl.ds(shift, 89), :]
    a2 = jnp.dot(p2_ref[...], w2_ref[...], preferred_element_type=f32)
    a2_ref[...] = jnp.maximum(a2 + b2_ref[...], 0.0)            # (96, 64), row = 10*oh2+ow2

    # ---- conv3: 3x3 stride 1, same shifted-copy im2col trick (9 copies) -----
    # Valid output rows: q = 10*oh3 + ow3, oh3,ow3 in 0..6 (q <= 66).
    p3_ref[pl.ds(64, 8), :] = jnp.zeros((8, 576), f32)
    for k, shift in enumerate((0, 1, 2, 10, 11, 12, 20, 21, 22)):   # (ki, kj) row-major
        p3_ref[pl.ds(0, 67), pl.ds(64 * k, 64)] = a2_ref[pl.ds(shift, 67), :]
    a3 = jnp.dot(p3_ref[...], w3_ref[...], preferred_element_type=f32)
    a3_ref[...] = jnp.maximum(a3 + b3_ref[...], 0.0)            # (72, 64), row = 10*oh3+ow3

    # ---- flatten the 49 valid conv3 rows to a lane-dense (1, 3136) fc1 input -
    # Sublane->lane movement: kept as explicit 64-lane stores (a value reshape
    # (49,64)->(1,3136) is not a guaranteed-supported Mosaic relayout).
    for oh in range(7):
        for ow in range(7):
            fcin_ref[:, pl.ds(64 * (7 * oh + ow), 64)] = a3_ref[pl.ds(10 * oh + ow, 1), :]

    # ---- fc1 (bf16 weight, f32 accumulation) + ReLU, then lane-padded fc2 ----
    h1 = jnp.dot(fcin_ref[...].astype(jnp.bfloat16), wfc1_ref[...],
                 preferred_element_type=f32)
    h1 = jnp.maximum(h1 + bfc1_ref[...], 0.0)                   # (1, 512)
    out_ref[0] = jnp.dot(h1, wfc2_ref[...], preferred_element_type=f32) + bfc2_ref[...]


# ------------------------------ host wrapper ---------------------------------
def _conv1_im2col_s2d(x):
    """(B,4,84,84) NCHW -> (B,104,1024) conv1 im2col, space-to-depth row order."""
    B = x.shape[0]
    xn = jnp.transpose(x.astype(jnp.float32), (0, 2, 3, 1))          # (B,84,84,4)
    rows = []
    for ki in range(8):
        xh = xn[:, ki:ki + 77:4, :, :]                               # rows 4*oh+ki -> (B,20,84,4)
        cols = [xh[:, :, kj:kj + 77:4, :] for kj in range(8)]        # (B,20,20,4) each
        rows.append(jnp.stack(cols, axis=3))                         # (B,20,20,8,4)
    patches = jnp.stack(rows, axis=3)                                # (B,20,20,8,8,4) (oh,ow,ki,kj,ic)
    p = patches.reshape(B, 10, 2, 10, 2, 256)                        # (b,hb,ph,wb,pw,256)
    p1 = p.transpose(0, 1, 3, 2, 4, 5).reshape(B, 100, 1024)         # row=(hb,wb), col=(ph,pw,ki,kj,ic)
    return jnp.pad(p1, ((0, 0), (0, 4), (0, 0)))                     # pad rows 100 -> 104


def dqn_forward(kparams, x, n_actions):
    """Fused DQN forward.  x: (B, 4, 84, 84) NCHW float32 -> (B, n_actions)."""
    B = x.shape[0]
    p1 = _conv1_im2col_s2d(x)

    out = pl.pallas_call(
        _dqn_kernel,
        out_shape=jax.ShapeDtypeStruct((B, 1, 128), jnp.float32),
        grid=(B,),                                    # batch axis; parallel on v7x megacore
        in_specs=[
            pl.BlockSpec((1, 104, 1024), lambda b: (b, 0, 0)),   # conv1 im2col (per image)
            pl.BlockSpec((1024, 128), lambda b: (0, 0)),         # conv1 w (4x block-diag)
            pl.BlockSpec((1, 128), lambda b: (0, 0)),            # conv1 b (x4)
            pl.BlockSpec((512, 64), lambda b: (0, 0)),           # conv2 w (s2d row order)
            pl.BlockSpec((1, 64), lambda b: (0, 0)),             # conv2 b
            pl.BlockSpec((576, 64), lambda b: (0, 0)),           # conv3 w (HWIO flat)
            pl.BlockSpec((1, 64), lambda b: (0, 0)),             # conv3 b
            pl.BlockSpec((3136, 512), lambda b: (0, 0)),         # fc1 w (bf16, resident)
            pl.BlockSpec((1, 512), lambda b: (0, 0)),            # fc1 b
            pl.BlockSpec((512, 128), lambda b: (0, 0)),          # fc2 w (lane-padded)
            pl.BlockSpec((1, 128), lambda b: (0, 0)),            # fc2 b (lane-padded)
        ],
        out_specs=pl.BlockSpec((1, 1, 128), lambda b: (b, 0, 0)),
        scratch_shapes=[
            pltpu.VMEM((104, 128), jnp.float32),     # conv1 out (s2d, flat 10-wide)
            pltpu.VMEM((96, 512), jnp.float32),      # conv2 im2col
            pltpu.VMEM((96, 64), jnp.float32),       # conv2 out (flat 10-wide)
            pltpu.VMEM((72, 576), jnp.float32),      # conv3 im2col
            pltpu.VMEM((72, 64), jnp.float32),       # conv3 out (flat 10-wide)
            pltpu.VMEM((1, 3136), jnp.float32),      # flattened fc1 input
        ],
        compiler_params=pltpu.CompilerParams(
            dimension_semantics=("parallel",),
            vmem_limit_bytes=32 * 1024 * 1024,       # working set ~9 MiB; legal on v5e/v6e/v7x
        ),
    )(p1,
      kparams["w1"], kparams["b1"], kparams["w2"], kparams["b2"],
      kparams["w3"], kparams["b3"], kparams["wfc1"], kparams["bfc1"],
      kparams["wfc2"], kparams["bfc2"])
    return out[:, 0, :n_actions]


# ------------------------- params (PyTorch layout) ----------------------------
def init_dqn_params(key, n_actions):
    """Deterministic PyTorch-style uniform(-1/sqrt(fan_in), 1/sqrt(fan_in)) init."""
    def uni(k, shape, fan_in):
        bound = 1.0 / np.sqrt(fan_in)
        return jax.random.uniform(k, shape, jnp.float32, -bound, bound)

    ks = jax.random.split(key, 10)
    p = {}
    p["conv1_w"] = uni(ks[0], (32, 4, 8, 8), 4 * 8 * 8)
    p["conv1_b"] = uni(ks[1], (32,), 4 * 8 * 8)
    p["conv2_w"] = uni(ks[2], (64, 32, 4, 4), 32 * 4 * 4)
    p["conv2_b"] = uni(ks[3], (64,), 32 * 4 * 4)
    p["conv3_w"] = uni(ks[4], (64, 64, 3, 3), 64 * 3 * 3)
    p["conv3_b"] = uni(ks[5], (64,), 64 * 3 * 3)
    p["fc1_w"] = uni(ks[6], (3136, 512), 3136)      # stored as (in, out)
    p["fc1_b"] = uni(ks[7], (512,), 3136)
    p["fc2_w"] = uni(ks[8], (512, n_actions), 512)
    p["fc2_b"] = uni(ks[9], (n_actions,), 512)
    return p


def prepare_params(p):
    """One-time layout/dtype preparation of PyTorch-layout params for the kernel."""
    f32 = jnp.float32
    # conv1: HWIO flatten (256,32), then 4-way block-diagonal duplication so the
    # GEMM emits a 2x2 space-to-depth layout (128 output lanes).
    w1p = jnp.asarray(p["conv1_w"], f32).transpose(2, 3, 1, 0).reshape(256, 32)
    w1 = jnp.zeros((1024, 128), f32)
    for t in range(4):
        w1 = w1.at[256 * t:256 * (t + 1), 32 * t:32 * (t + 1)].set(w1p)
    b1 = jnp.tile(jnp.asarray(p["conv1_b"], f32), 4).reshape(1, 128)
    # conv2: reorder rows to (kbi, kbj, kpi, kpj, ic) to match the space-to-depth
    # "2x2 stride-1" formulation used in the kernel.
    w2h = jnp.asarray(p["conv2_w"], f32).transpose(2, 3, 1, 0)       # (ki,kj,ic,oc)
    w2 = (w2h.reshape(2, 2, 2, 2, 32, 64)                            # (kbi,kpi,kbj,kpj,ic,oc)
          .transpose(0, 2, 1, 3, 4, 5).reshape(512, 64))
    b2 = jnp.asarray(p["conv2_b"], f32).reshape(1, 64)
    w3 = jnp.asarray(p["conv3_w"], f32).transpose(2, 3, 1, 0).reshape(576, 64)
    b3 = jnp.asarray(p["conv3_b"], f32).reshape(1, 64)
    # fc1: PyTorch flatten order is (C,H,W); permute rows to the kernel's (H,W,C)
    # flatten order, store in bf16 (halves the only non-trivial weight stream).
    wfc1 = (jnp.asarray(p["fc1_w"], f32).reshape(64, 7, 7, 512)
            .transpose(1, 2, 0, 3).reshape(3136, 512).astype(jnp.bfloat16))
    bfc1 = jnp.asarray(p["fc1_b"], f32).reshape(1, 512)
    # fc2: pad output lanes n_actions -> 128 (dense output store; sliced in wrapper).
    n_act = p["fc2_w"].shape[1]
    wfc2 = jnp.zeros((512, 128), f32).at[:, :n_act].set(jnp.asarray(p["fc2_w"], f32))
    bfc2 = jnp.zeros((1, 128), f32).at[:, :n_act].set(jnp.asarray(p["fc2_b"], f32).reshape(1, -1))
    return dict(w1=w1, b1=b1, w2=w2, b2=b2, w3=w3, b3=b3,
                wfc1=wfc1, bfc1=bfc1, wfc2=wfc2, bfc2=bfc2)


# TODO(synk): act() (epsilon-greedy with python RNG / step counter) is host-side
# control flow, not part of the forward hot path; only forward() is kernelized.


# ------------------------------ reference check ------------------------------
def dqn_forward_ref(params, x):
    def conv(x, w, b, stride):
        y = jax.lax.conv_general_dilated(
            x, w, window_strides=(stride, stride), padding="VALID",
            dimension_numbers=("NCHW", "OIHW", "NCHW"))
        return jax.nn.relu(y + b.reshape(1, -1, 1, 1))
    x = conv(x, params["conv1_w"], params["conv1_b"], 4)
    x = conv(x, params["conv2_w"], params["conv2_b"], 2)
    x = conv(x, params["conv3_w"], params["conv3_b"], 1)
    x = x.reshape(x.shape[0], -1)
    x = jax.nn.relu(x @ params["fc1_w"] + params["fc1_b"])
    return x @ params["fc2_w"] + params["fc2_b"]


if __name__ == "__main__":
    B, N_ACTIONS = 2, 2
    key = jax.random.PRNGKey(0)
    k_param, k_x = jax.random.split(key)

    params = init_dqn_params(k_param, N_ACTIONS)
    x = jax.random.uniform(k_x, (B, 4, 84, 84), jnp.float32)   # NCHW frames in [0, 1)

    kparams = prepare_params(params)                  # one-time layout/dtype prep
    fwd = jax.jit(dqn_forward, static_argnames=("n_actions",))
    q = jax.block_until_ready(fwd(kparams, x, n_actions=N_ACTIONS))
    q_ref = jax.block_until_ready(dqn_forward_ref(params, x))

    assert q.shape == (B, N_ACTIONS), q.shape
    np.testing.assert_allclose(np.asarray(q), np.asarray(q_ref), rtol=1e-3, atol=1e-3)
    print("KERNEL_OK")
</pallas_src>

<mosaic_0001>
module attributes {stable_mosaic.version = 11 : i64} {
  func.func @_dqn_kernel(%arg0: i32, %arg1: memref<1x104x1024xf32, #tpu.memory_space<vmem>>, %arg2: memref<1024x128xf32, #tpu.memory_space<vmem>>, %arg3: memref<1x128xf32, #tpu.memory_space<vmem>>, %arg4: memref<512x64xf32, #tpu.memory_space<vmem>>, %arg5: memref<1x64xf32, #tpu.memory_space<vmem>>, %arg6: memref<576x64xf32, #tpu.memory_space<vmem>>, %arg7: memref<1x64xf32, #tpu.memory_space<vmem>>, %arg8: memref<3136x512xbf16, #tpu.memory_space<vmem>>, %arg9: memref<1x512xf32, #tpu.memory_space<vmem>>, %arg10: memref<512x128xf32, #tpu.memory_space<vmem>>, %arg11: memref<1x128xf32, #tpu.memory_space<vmem>>, %arg12: memref<1x1x128xf32, #tpu.memory_space<vmem>>, %arg13: memref<104x128xf32, #tpu.memory_space<vmem>>, %arg14: memref<96x512xf32, #tpu.memory_space<vmem>>, %arg15: memref<96x64xf32, #tpu.memory_space<vmem>>, %arg16: memref<72x576xf32, #tpu.memory_space<vmem>>, %arg17: memref<72x64xf32, #tpu.memory_space<vmem>>, %arg18: memref<1x3136xf32, #tpu.memory_space<vmem>>) attributes {dimension_semantics = [#tpu.dimension_semantics<parallel>], iteration_bounds = array<i64: 2>, scalar_prefetch = 0 : i64, scratch_operands = 6 : i64, tpu.core_type = #tpu.core_type<tc>, window_params = [{transform_indices = @transform_0, window_bounds = array<i64: 1, 104, 1024>}, {pipeline_mode = #tpu.pipeline_mode<synchronous>, transform_indices = @transform_1, window_bounds = array<i64: 1024, 128>}, {pipeline_mode = #tpu.pipeline_mode<synchronous>, transform_indices = @transform_2, window_bounds = array<i64: 1, 128>}, {pipeline_mode = #tpu.pipeline_mode<synchronous>, transform_indices = @transform_3, window_bounds = array<i64: 512, 64>}, {pipeline_mode = #tpu.pipeline_mode<synchronous>, transform_indices = @transform_4, window_bounds = array<i64: 1, 64>}, {pipeline_mode = #tpu.pipeline_mode<synchronous>, transform_indices = @transform_5, window_bounds = array<i64: 576, 64>}, {pipeline_mode = #tpu.pipeline_mode<synchronous>, transform_indices = @transform_6, window_bounds = array<i64: 1, 64>}, {pipeline_mode = #tpu.pipeline_mode<synchronous>, transform_indices = @transform_7, window_bounds = array<i64: 3136, 512>}, {pipeline_mode = #tpu.pipeline_mode<synchronous>, transform_indices = @transform_8, window_bounds = array<i64: 1, 512>}, {pipeline_mode = #tpu.pipeline_mode<synchronous>, transform_indices = @transform_9, window_bounds = array<i64: 512, 128>}, {pipeline_mode = #tpu.pipeline_mode<synchronous>, transform_indices = @transform_10, window_bounds = array<i64: 1, 128>}, {transform_indices = @transform_11, window_bounds = array<i64: 1, 1, 128>}]} {
    %c0 = arith.constant 0 : index
    %c0_0 = arith.constant 0 : index
    %c0_1 = arith.constant 0 : index
    %0 = vector.load %arg1[%c0, %c0_0, %c0_1] : memref<1x104x1024xf32, #tpu.memory_space<vmem>>, vector<1x104x1024xf32>
    %1 = vector.shape_cast %0 : vector<1x104x1024xf32> to vector<104x1024xf32>
    %c0_2 = arith.constant 0 : index
    %c0_3 = arith.constant 0 : index
    %2 = vector.load %arg2[%c0_2, %c0_3] : memref<1024x128xf32, #tpu.memory_space<vmem>>, vector<1024x128xf32>
    %cst = arith.constant dense<0.000000e+00> : vector<104x128xf32>
    %3 = tpu.matmul %1, %2, %cst {dimension_numbers = #tpu.dot_dimension_numbers<[1], [0], [0], [1], [0, 0, 1, 1], [], []>} : vector<104x1024xf32>, vector<1024x128xf32>, vector<104x128xf32> -> vector<104x128xf32>
    %c0_4 = arith.constant 0 : index
    %c0_5 = arith.constant 0 : index
    %4 = vector.load %arg3[%c0_4, %c0_5] : memref<1x128xf32, #tpu.memory_space<vmem>>, vector<1x128xf32>
    %5 = vector.broadcast %4 : vector<1x128xf32> to vector<104x128xf32>
    %6 = arith.addf %3, %5 : vector<104x128xf32>
    %cst_6 = arith.constant 0.000000e+00 : f32
    %7 = vector.broadcast %cst_6 : f32 to vector<104x128xf32>
    %8 = arith.maximumf %6, %7 : vector<104x128xf32>
    %c0_7 = arith.constant 0 : index
    %c0_8 = arith.constant 0 : index
    %9 = vector.load %arg13[%c0_7, %c0_8] : memref<104x128xf32, #tpu.memory_space<vmem>>, vector<104x128xf32>
    tpu.vector_store %arg13[%c0_7, %c0_8], %8 {strides = array<i32>} : memref<104x128xf32, #tpu.memory_space<vmem>>, vector<104x128xf32>,
    %cst_9 = arith.constant 0.000000e+00 : f32
    %10 = vector.broadcast %cst_9 : f32 to vector<8x512xf32>
    %c88 = arith.constant 88 : index
    %c0_10 = arith.constant 0 : index
    %11 = vector.load %arg14[%c88, %c0_10] : memref<96x512xf32, #tpu.memory_space<vmem>>, vector<8x512xf32>
    tpu.vector_store %arg14[%c88, %c0_10], %10 {strides = array<i32>} : memref<96x512xf32, #tpu.memory_space<vmem>>, vector<8x512xf32>,
    %c0_11 = arith.constant 0 : index
    %c0_12 = arith.constant 0 : index
    %12 = vector.load %arg13[%c0_11, %c0_12] : memref<104x128xf32, #tpu.memory_space<vmem>>, vector<89x128xf32>
    %c0_13 = arith.constant 0 : index
    %c0_14 = arith.constant 0 : index
    %13 = vector.load %arg14[%c0_13, %c0_14] : memref<96x512xf32, #tpu.memory_space<vmem>>, vector<89x128xf32>
    tpu.vector_store %arg14[%c0_13, %c0_14], %12 {strides = array<i32>} : memref<96x512xf32, #tpu.memory_space<vmem>>, vector<89x128xf32>,
    %c1 = arith.constant 1 : index
    %c0_15 = arith.constant 0 : index
    %14 = vector.load %arg13[%c1, %c0_15] : memref<104x128xf32, #tpu.memory_space<vmem>>, vector<89x128xf32>
    %c0_16 = arith.constant 0 : index
    %c128 = arith.constant 128 : index
    %15 = vector.load %arg14[%c0_16, %c128] : memref<96x512xf32, #tpu.memory_space<vmem>>, vector<89x128xf32>
    tpu.vector_store %arg14[%c0_16, %c128], %14 {strides = array<i32>} : memref<96x512xf32, #tpu.memory_space<vmem>>, vector<89x128xf32>,
    %c10 = arith.constant 10 : index
    %c0_17 = arith.constant 0 : index
    %16 = vector.load %arg13[%c10, %c0_17] : memref<104x128xf32, #tpu.memory_space<vmem>>, vector<89x128xf32>
    %c0_18 = arith.constant 0 : index
    %c256 = arith.constant 256 : index
    %17 = vector.load %arg14[%c0_18, %c256] : memref<96x512xf32, #tpu.memory_space<vmem>>, vector<89x128xf32>
    tpu.vector_store %arg14[%c0_18, %c256], %16 {strides = array<i32>} : memref<96x512xf32, #tpu.memory_space<vmem>>, vector<89x128xf32>,
    %c11 = arith.constant 11 : index
    %c0_19 = arith.constant 0 : index
    %18 = vector.load %arg13[%c11, %c0_19] : memref<104x128xf32, #tpu.memory_space<vmem>>, vector<89x128xf32>
    %c0_20 = arith.constant 0 : index
    %c384 = arith.constant 384 : index
    %19 = vector.load %arg14[%c0_20, %c384] : memref<96x512xf32, #tpu.memory_space<vmem>>, vector<89x128xf32>
    tpu.vector_store %arg14[%c0_20, %c384], %18 {strides = array<i32>} : memref<96x512xf32, #tpu.memory_space<vmem>>, vector<89x128xf32>,
    %c0_21 = arith.constant 0 : index
    %c0_22 = arith.constant 0 : index
    %20 = vector.load %arg14[%c0_21, %c0_22] : memref<96x512xf32, #tpu.memory_space<vmem>>, vector<96x512xf32>
    %c0_23 = arith.constant 0 : index
    %c0_24 = arith.constant 0 : index
    %21 = vector.load %arg4[%c0_23, %c0_24] : memref<512x64xf32, #tpu.memory_space<vmem>>, vector<512x64xf32>
    %cst_25 = arith.constant dense<0.000000e+00> : vector<96x64xf32>
    %22 = tpu.matmul %20, %21, %cst_25 {dimension_numbers = #tpu.dot_dimension_numbers<[1], [0], [0], [1], [0, 0, 1, 1], [], []>} : vector<96x512xf32>, vector<512x64xf32>, vector<96x64xf32> -> vector<96x64xf32>
    %c0_26 = arith.constant 0 : index
    %c0_27 = arith.constant 0 : index
    %23 = vector.load %arg5[%c0_26, %c0_27] : memref<1x64xf32, #tpu.memory_space<vmem>>, vector<1x64xf32>
    %24 = vector.broadcast %23 : vector<1x64xf32> to vector<96x64xf32>
    %25 = arith.addf %22, %24 : vector<96x64xf32>
    %cst_28 = arith.constant 0.000000e+00 : f32
    %26 = vector.broadcast %cst_28 : f32 to vector<96x64xf32>
    %27 = arith.maximumf %25, %26 : vector<96x64xf32>
    %c0_29 = arith.constant 0 : index
    %c0_30 = arith.constant 0 : index
    %28 = vector.load %arg15[%c0_29, %c0_30] : memref<96x64xf32, #tpu.memory_space<vmem>>, vector<96x64xf32>
    tpu.vector_store %arg15[%c0_29, %c0_30], %27 {strides = array<i32>} : memref<96x64xf32, #tpu.memory_space<vmem>>, vector<96x64xf32>,
    %cst_31 = arith.constant 0.000000e+00 : f32
    %29 = vector.broadcast %cst_31 : f32 to vector<8x576xf32>
    %c64 = arith.constant 64 : index
    %c0_32 = arith.constant 0 : index
    %30 = vector.load %arg16[%c64, %c0_32] : memref<72x576xf32, #tpu.memory_space<vmem>>, vector<8x576xf32>
    tpu.vector_store %arg16[%c64, %c0_32], %29 {strides = array<i32>} : memref<72x576xf32, #tpu.memory_space<vmem>>, vector<8x576xf32>,
    %c0_33 = arith.constant 0 : index
    %c0_34 = arith.constant 0 : index
    %31 = vector.load %arg15[%c0_33, %c0_34] : memref<96x64xf32, #tpu.memory_space<vmem>>, vector<67x64xf32>
    %c0_35 = arith.constant 0 : index
    %c0_36 = arith.constant 0 : index
    %32 = vector.load %arg16[%c0_35, %c0_36] : memref<72x576xf32, #tpu.memory_space<vmem>>, vector<67x64xf32>
    tpu.vector_store %arg16[%c0_35, %c0_36], %31 {strides = array<i32>} : memref<72x576xf32, #tpu.memory_space<vmem>>, vector<67x64xf32>,
    %c1_37 = arith.constant 1 : index
    %c0_38 = arith.constant 0 : index
    %33 = vector.load %arg15[%c1_37, %c0_38] : memref<96x64xf32, #tpu.memory_space<vmem>>, vector<67x64xf32>
    %c0_39 = arith.constant 0 : index
    %c64_40 = arith.constant 64 : index
    %34 = vector.load %arg16[%c0_39, %c64_40] : memref<72x576xf32, #tpu.memory_space<vmem>>, vector<67x64xf32>
    tpu.vector_store %arg16[%c0_39, %c64_40], %33 {strides = array<i32>} : memref<72x576xf32, #tpu.memory_space<vmem>>, vector<67x64xf32>,
    %c2 = arith.constant 2 : index
    %c0_41 = arith.constant 0 : index
    %35 = vector.load %arg15[%c2, %c0_41] : memref<96x64xf32, #tpu.memory_space<vmem>>, vector<67x64xf32>
    %c0_42 = arith.constant 0 : index
    %c128_43 = arith.constant 128 : index
    %36 = vector.load %arg16[%c0_42, %c128_43] : memref<72x576xf32, #tpu.memory_space<vmem>>, vector<67x64xf32>
    tpu.vector_store %arg16[%c0_42, %c128_43], %35 {strides = array<i32>} : memref<72x576xf32, #tpu.memory_space<vmem>>, vector<67x64xf32>,
    %c10_44 = arith.constant 10 : index
    %c0_45 = arith.constant 0 : index
    %37 = vector.load %arg15[%c10_44, %c0_45] : memref<96x64xf32, #tpu.memory_space<vmem>>, vector<67x64xf32>
    %c0_46 = arith.constant 0 : index
    %c192 = arith.constant 192 : index
    %38 = vector.load %arg16[%c0_46, %c192] : memref<72x576xf32, #tpu.memory_space<vmem>>, vector<67x64xf32>
    tpu.vector_store %arg16[%c0_46, %c192], %37 {strides = array<i32>} : memref<72x576xf32, #tpu.memory_space<vmem>>, vector<67x64xf32>,
    %c11_47 = arith.constant 11 : index
    %c0_48 = arith.constant 0 : index
    %39 = vector.load %arg15[%c11_47, %c0_48] : memref<96x64xf32, #tpu.memory_space<vmem>>, vector<67x64xf32>
    %c0_49 = arith.constant 0 : index
    %c256_50 = arith.constant 256 : index
    %40 = vector.load %arg16[%c0_49, %c256_50] : memref<72x576xf32, #tpu.memory_space<vmem>>, vector<67x64xf32>
    tpu.vector_store %arg16[%c0_49, %c256_50], %39 {strides = array<i32>} : memref<72x576xf32, #tpu.memory_space<vmem>>, vector<67x64xf32>,
    %c12 = arith.constant 12 : index
    %c0_51 = arith.constant 0 : index
    %41 = vector.load %arg15[%c12, %c0_51] : memref<96x64xf32, #tpu.memory_space<vmem>>, vector<67x64xf32>
    %c0_52 = arith.constant 0 : index
    %c320 = arith.constant 320 : index
    %42 = vector.load %arg16[%c0_52, %c320] : memref<72x576xf32, #tpu.memory_space<vmem>>, vector<67x64xf32>
    tpu.vector_store %arg16[%c0_52, %c320], %41 {strides = array<i32>} : memref<72x576xf32, #tpu.memory_space<vmem>>, vector<67x64xf32>,
    %c20 = arith.constant 20 : index
    %c0_53 = arith.constant 0 : index
    %43 = vector.load %arg15[%c20, %c0_53] : memref<96x64xf32, #tpu.memory_space<vmem>>, vector<67x64xf32>
    %c0_54 = arith.constant 0 : index
    %c384_55 = arith.constant 384 : index
    %44 = vector.load %arg16[%c0_54, %c384_55] : memref<72x576xf32, #tpu.memory_space<vmem>>, vector<67x64xf32>
    tpu.vector_store %arg16[%c0_54, %c384_55], %43 {strides = array<i32>} : memref<72x576xf32, #tpu.memory_space<vmem>>, vector<67x64xf32>,
    %c21 = arith.constant 21 : index
    %c0_56 = arith.constant 0 : index
    %45 = vector.load %arg15[%c21, %c0_56] : memref<96x64xf32, #tpu.memory_space<vmem>>, vector<67x64xf32>
    %c0_57 = arith.constant 0 : index
    %c448 = arith.constant 448 : index
    %46 = vector.load %arg16[%c0_57, %c448] : memref<72x576xf32, #tpu.memory_space<vmem>>, vector<67x64xf32>
    tpu.vector_store %arg16[%c0_57, %c448], %45 {strides = array<i32>} : memref<72x576xf32, #tpu.memory_space<vmem>>, vector<67x64xf32>,
    %c22 = arith.constant 22 : index
    %c0_58 = arith.constant 0 : index
    %47 = vector.load %arg15[%c22, %c0_58] : memref<96x64xf32, #tpu.memory_space<vmem>>, vector<67x64xf32>
    %c0_59 = arith.constant 0 : index
    %c512 = arith.constant 512 : index
    %48 = vector.load %arg16[%c0_59, %c512] : memref<72x576xf32, #tpu.memory_space<vmem>>, vector<67x64xf32>
    tpu.vector_store %arg16[%c0_59, %c512], %47 {strides = array<i32>} : memref<72x576xf32, #tpu.memory_space<vmem>>, vector<67x64xf32>,
    %c0_60 = arith.constant 0 : index
    %c0_61 = arith.constant 0 : index
    %49 = vector.load %arg16[%c0_60, %c0_61] : memref<72x576xf32, #tpu.memory_space<vmem>>, vector<72x576xf32>
    %c0_62 = arith.constant 0 : index
    %c0_63 = arith.constant 0 : index
    %50 = vector.load %arg6[%c0_62, %c0_63] : memref<576x64xf32, #tpu.memory_space<vmem>>, vector<576x64xf32>
    %cst_64 = arith.constant dense<0.000000e+00> : vector<72x64xf32>
    %51 = tpu.matmul %49, %50, %cst_64 {dimension_numbers = #tpu.dot_dimension_numbers<[1], [0], [0], [1], [0, 0, 1, 1], [], []>} : vector<72x576xf32>, vector<576x64xf32>, vector<72x64xf32> -> vector<72x64xf32>
    %c0_65 = arith.constant 0 : index
    %c0_66 = arith.constant 0 : index
    %52 = vector.load %arg7[%c0_65, %c0_66] : memref<1x64xf32, #tpu.memory_space<vmem>>, vector<1x64xf32>
    %53 = vector.broadcast %52 : vector<1x64xf32> to vector<72x64xf32>
    %54 = arith.addf %51, %53 : vector<72x64xf32>
    %cst_67 = arith.constant 0.000000e+00 : f32
    %55 = vector.broadcast %cst_67 : f32 to vector<72x64xf32>
    %56 = arith.maximumf %54, %55 : vector<72x64xf32>
    %c0_68 = arith.constant 0 : index
    %c0_69 = arith.constant 0 : index
    %57 = vector.load %arg17[%c0_68, %c0_69] : memref<72x64xf32, #tpu.memory_space<vmem>>, vector<72x64xf32>
    tpu.vector_store %arg17[%c0_68, %c0_69], %56 {strides = array<i32>} : memref<72x64xf32, #tpu.memory_space<vmem>>, vector<72x64xf32>,
    %c0_70 = arith.constant 0 : index
    %c0_71 = arith.constant 0 : index
    %58 = vector.load %arg17[%c0_70, %c0_71] : memref<72x64xf32, #tpu.memory_space<vmem>>, vector<1x64xf32>
    %c0_72 = arith.constant 0 : index
    %c0_73 = arith.constant 0 : index
    %59 = vector.load %arg18[%c0_72, %c0_73] : memref<1x3136xf32, #tpu.memory_space<vmem>>, vector<1x64xf32>
    tpu.vector_store %arg18[%c0_72, %c0_73], %58 {strides = array<i32>} : memref<1x3136xf32, #tpu.memory_space<vmem>>, vector<1x64xf32>,
    %c1_74 = arith.constant 1 : index
    %c0_75 = arith.constant 0 : index
    %60 = vector.load %arg17[%c1_74, %c0_75] : memref<72x64xf32, #tpu.memory_space<vmem>>, vector<1x64xf32>
    %c0_76 = arith.constant 0 : index
    %c64_77 = arith.constant 64 : index
    %61 = vector.load %arg18[%c0_76, %c64_77] : memref<1x3136xf32, #tpu.memory_space<vmem>>, vector<1x64xf32>
    tpu.vector_store %arg18[%c0_76, %c64_77], %60 {strides = array<i32>} : memref<1x3136xf32, #tpu.memory_space<vmem>>, vector<1x64xf32>,
    %c2_78 = arith.constant 2 : index
    %c0_79 = arith.constant 0 : index
    %62 = vector.load %arg17[%c2_78, %c0_79] : memref<72x64xf32, #tpu.memory_space<vmem>>, vector<1x64xf32>
    %c0_80 = arith.constant 0 : index
    %c128_81 = arith.constant 128 : index
    %63 = vector.load %arg18[%c0_80, %c128_81] : memref<1x3136xf32, #tpu.memory_space<vmem>>, vector<1x64xf32>
    tpu.vector_store %arg18[%c0_80, %c128_81], %62 {strides = array<i32>} : memref<1x3136xf32, #tpu.memory_space<vmem>>, vector<1x64xf32>,
    %c3 = arith.constant 3 : index
    %c0_82 = arith.constant 0 : index
    %64 = vector.load %arg17[%c3, %c0_82] : memref<72x64xf32, #tpu.memory_space<vmem>>, vector<1x64xf32>
    %c0_83 = arith.constant 0 : index
    %c192_84 = arith.constant 192 : index
    %65 = vector.load %arg18[%c0_83, %c192_84] : memref<1x3136xf32, #tpu.memory_space<vmem>>, vector<1x64xf32>
    tpu.vector_store %arg18[%c0_83, %c192_84], %64 {strides = array<i32>} : memref<1x3136xf32, #tpu.memory_space<vmem>>, vector<1x64xf32>,
    %c4 = arith.constant 4 : index
    %c0_85 = arith.constant 0 : index
    %66 = vector.load %arg17[%c4, %c0_85] : memref<72x64xf32, #tpu.memory_space<vmem>>, vector<1x64xf32>
    %c0_86 = arith.constant 0 : index
    %c256_87 = arith.constant 256 : index
    %67 = vector.load %arg18[%c0_86, %c256_87] : memref<1x3136xf32, #tpu.memory_space<vmem>>, vector<1x64xf32>
    tpu.vector_store %arg18[%c0_86, %c256_87], %66 {strides = array<i32>} : memref<1x3136xf32, #tpu.memory_space<vmem>>, vector<1x64xf32>,
    %c5 = arith.constant 5 : index
    %c0_88 = arith.constant 0 : index
    %68 = vector.load %arg17[%c5, %c0_88] : memref<72x64xf32, #tpu.memory_space<vmem>>, vector<1x64xf32>
    %c0_89 = arith.constant 0 : index
    %c320_90 = arith.constant 320 : index
    %69 = vector.load %arg18[%c0_89, %c320_90] : memref<1x3136xf32, #tpu.memory_space<vmem>>, vector<1x64xf32>
    tpu.vector_store %arg18[%c0_89, %c320_90], %68 {strides = array<i32>} : memref<1x3136xf32, #tpu.memory_space<vmem>>, vector<1x64xf32>,
    %c6 = arith.constant 6 : index
    %c0_91 = arith.constant 0 : index
    %70 = vector.load %arg17[%c6, %c0_91] : memref<72x64xf32, #tpu.memory_space<vmem>>, vector<1x64xf32>
    %c0_92 = arith.constant 0 : index
    %c384_93 = arith.constant 384 : index
    %71 = vector.load %arg18[%c0_92, %c384_93] : memref<1x3136xf32, #tpu.memory_space<vmem>>, vector<1x64xf32>
    tpu.vector_store %arg18[%c0_92, %c384_93], %70 {strides = array<i32>} : memref<1x3136xf32, #tpu.memory_space<vmem>>, vector<1x64xf32>,
    %c10_94 = arith.constant 10 : index
    %c0_95 = arith.constant 0 : index
    %72 = vector.load %arg17[%c10_94, %c0_95] : memref<72x64xf32, #tpu.memory_space<vmem>>, vector<1x64xf32>
    %c0_96 = arith.constant 0 : index
    %c448_97 = arith.constant 448 : index
    %73 = vector.load %arg18[%c0_96, %c448_97] : memref<1x3136xf32, #tpu.memory_space<vmem>>, vector<1x64xf32>
    tpu.vector_store %arg18[%c0_96, %c448_97], %72 {strides = array<i32>} : memref<1x3136xf32, #tpu.memory_space<vmem>>, vector<1x64xf32>,
    %c11_98 = arith.constant 11 : index
    %c0_99 = arith.constant 0 : index
    %74 = vector.load %arg17[%c11_98, %c0_99] : memref<72x64xf32, #tpu.memory_space<vmem>>, vector<1x64xf32>
    %c0_100 = arith.constant 0 : index
    %c512_101 = arith.constant 512 : index
    %75 = vector.load %arg18[%c0_100, %c512_101] : memref<1x3136xf32, #tpu.memory_space<vmem>>, vector<1x64xf32>
    tpu.vector_store %arg18[%c0_100, %c512_101], %74 {strides = array<i32>} : memref<1x3136xf32, #tpu.memory_space<vmem>>, vector<1x64xf32>,
    %c12_102 = arith.constant 12 : index
    %c0_103 = arith.constant 0 : index
    %76 = vector.load %arg17[%c12_102, %c0_103] : memref<72x64xf32, #tpu.memory_space<vmem>>, vector<1x64xf32>
    %c0_104 = arith.constant 0 : index
    %c576 = arith.constant 576 : index
    %77 = vector.load %arg18[%c0_104, %c576] : memref<1x3136xf32, #tpu.memory_space<vmem>>, vector<1x64xf32>
    tpu.vector_store %arg18[%c0_104, %c576], %76 {strides = array<i32>} : memref<1x3136xf32, #tpu.memory_space<vmem>>, vector<1x64xf32>,
    %c13 = arith.constant 13 : index
    %c0_105 = arith.constant 0 : index
    %78 = vector.load %arg17[%c13, %c0_105] : memref<72x64xf32, #tpu.memory_space<vmem>>, vector<1x64xf32>
    %c0_106 = arith.constant 0 : index
    %c640 = arith.constant 640 : index
    %79 = vector.load %arg18[%c0_106, %c640] : memref<1x3136xf32, #tpu.memory_space<vmem>>, vector<1x64xf32>
    tpu.vector_store %arg18[%c0_106, %c640], %78 {strides = array<i32>} : memref<1x3136xf32, #tpu.memory_space<vmem>>, vector<1x64xf32>,
    %c14 = arith.constant 14 : index
    %c0_107 = arith.constant 0 : index
    %80 = vector.load %arg17[%c14, %c0_107] : memref<72x64xf32, #tpu.memory_space<vmem>>, vector<1x64xf32>
    %c0_108 = arith.constant 0 : index
    %c704 = arith.constant 704 : index
    %81 = vector.load %arg18[%c0_108, %c704] : memref<1x3136xf32, #tpu.memory_space<vmem>>, vector<1x64xf32>
    tpu.vector_store %arg18[%c0_108, %c704], %80 {strides = array<i32>} : memref<1x3136xf32, #tpu.memory_space<vmem>>, vector<1x64xf32>,
    %c15 = arith.constant 15 : index
    %c0_109 = arith.constant 0 : index
    %82 = vector.load %arg17[%c15, %c0_109] : memref<72x64xf32, #tpu.memory_space<vmem>>, vector<1x64xf32>
    %c0_110 = arith.constant 0 : index
    %c768 = arith.constant 768 : index
    %83 = vector.load %arg18[%c0_110, %c768] : memref<1x3136xf32, #tpu.memory_space<vmem>>, vector<1x64xf32>
    tpu.vector_store %arg18[%c0_110, %c768], %82 {strides = array<i32>} : memref<1x3136xf32, #tpu.memory_space<vmem>>, vector<1x64xf32>,
    %c16 = arith.constant 16 : index
    %c0_111 = arith.constant 0 : index
    %84 = vector.load %arg17[%c16, %c0_111] : memref<72x64xf32, #tpu.memory_space<vmem>>, vector<1x64xf32>
    %c0_112 = arith.constant 0 : index
    %c832 = arith.constant 832 : index
    %85 = vector.load %arg18[%c0_112, %c832] : memref<1x3136xf32, #tpu.memory_space<vmem>>, vector<1x64xf32>
    tpu.vector_store %arg18[%c0_112, %c832], %84 {strides = array<i32>} : memref<1x3136xf32, #tpu.memory_space<vmem>>, vector<1x64xf32>,
    %c20_113 = arith.constant 20 : index
    %c0_114 = arith.constant 0 : index
    %86 = vector.load %arg17[%c20_113, %c0_114] : memref<72x64xf32, #tpu.memory_space<vmem>>, vector<1x64xf32>
    %c0_115 = arith.constant 0 : index
    %c896 = arith.constant 896 : index
    %87 = vector.load %arg18[%c0_115, %c896] : memref<1x3136xf32, #tpu.memory_space<vmem>>, vector<1x64xf32>
    tpu.vector_store %arg18[%c0_115, %c896], %86 {strides = array<i32>} : memref<1x3136xf32, #tpu.memory_space<vmem>>, vector<1x64xf32>,
    %c21_116 = arith.constant 21 : index
    %c0_117 = arith.constant 0 : index
    %88 = vector.load %arg17[%c21_116, %c0_117] : memref<72x64xf32, #tpu.memory_space<vmem>>, vector<1x64xf32>
    %c0_118 = arith.constant 0 : index
    %c960 = arith.constant 960 : index
    %89 = vector.load %arg18[%c0_118, %c960] : memref<1x3136xf32, #tpu.memory_space<vmem>>, vector<1x64xf32>
    tpu.vector_store %arg18[%c0_118, %c960], %88 {strides = array<i32>} : memref<1x3136xf32, #tpu.memory_space<vmem>>, vector<1x64xf32>,
    %c22_119 = arith.constant 22 : index
    %c0_120 = arith.constant 0 : index
    %90 = vector.load %arg17[%c22_119, %c0_120] : memref<72x64xf32, #tpu.memory_space<vmem>>, vector<1x64xf32>
    %c0_121 = arith.constant 0 : index
    %c1024 = arith.constant 1024 : index
    %91 = vector.load %arg18[%c0_121, %c1024] : memref<1x3136xf32, #tpu.memory_space<vmem>>, vector<1x64xf32>
    tpu.vector_store %arg18[%c0_121, %c1024], %90 {strides = array<i32>} : memref<1x3136xf32, #tpu.memory_space<vmem>>, vector<1x64xf32>,
    %c23 = arith.constant 23 : index
    %c0_122 = arith.constant 0 : index
    %92 = vector.load %arg17[%c23, %c0_122] : memref<72x64xf32, #tpu.memory_space<vmem>>, vector<1x64xf32>
    %c0_123 = arith.constant 0 : index
    %c1088 = arith.constant 1088 : index
    %93 = vector.load %arg18[%c0_123, %c1088] : memref<1x3136xf32, #tpu.memory_space<vmem>>, vector<1x64xf32>
    tpu.vector_store %arg18[%c0_123, %c1088], %92 {strides = array<i32>} : memref<1x3136xf32, #tpu.memory_space<vmem>>, vector<1x64xf32>,
    %c24 = arith.constant 24 : index
    %c0_124 = arith.constant 0 : index
    %94 = vector.load %arg17[%c24, %c0_124] : memref<72x64xf32, #tpu.memory_space<vmem>>, vector<1x64xf32>
    %c0_125 = arith.constant 0 : index
    %c1152 = arith.constant 1152 : index
    %95 = vector.load %arg18[%c0_125, %c1152] : memref<1x3136xf32, #tpu.memory_space<vmem>>, vector<1x64xf32>
    tpu.vector_store %arg18[%c0_125, %c1152], %94 {strides = array<i32>} : memref<1x3136xf32, #tpu.memory_space<vmem>>, vector<1x64xf32>,
    %c25 = arith.constant 25 : index
    %c0_126 = arith.constant 0 : index
    %96 = vector.load %arg17[%c25, %c0_126] : memref<72x64xf32, #tpu.memory_space<vmem>>, vector<1x64xf32>
    %c0_127 = arith.constant 0 : index
    %c1216 = arith.constant 1216 : index
    %97 = vector.load %arg18[%c0_127, %c1216] : memref<1x3136xf32, #tpu.memory_space<vmem>>, vector<1x64xf32>
    tpu.vector_store %arg18[%c0_127, %c1216], %96 {strides = array<i32>} : memref<1x3136xf32, #tpu.memory_space<vmem>>, vector<1x64xf32>,
    %c26 = arith.constant 26 : index
    %c0_128 = arith.constant 0 : index
    %98 = vector.load %arg17[%c26, %c0_128] : memref<72x64xf32, #tpu.memory_space<vmem>>, vector<1x64xf32>
    %c0_129 = arith.constant 0 : index
    %c1280 = arith.constant 1280 : index
    %99 = vector.load %arg18[%c0_129, %c1280] : memref<1x3136xf32, #tpu.memory_space<vmem>>, vector<1x64xf32>
    tpu.vector_store %arg18[%c0_129, %c1280], %98 {strides = array<i32>} : memref<1x3136xf32, #tpu.memory_space<vmem>>, vector<1x64xf32>,
    %c30 = arith.constant 30 : index
    %c0_130 = arith.constant 0 : index
    %100 = vector.load %arg17[%c30, %c0_130] : memref<72x64xf32, #tpu.memory_space<vmem>>, vector<1x64xf32>
    %c0_131 = arith.constant 0 : index
    %c1344 = arith.constant 1344 : index
    %101 = vector.load %arg18[%c0_131, %c1344] : memref<1x3136xf32, #tpu.memory_space<vmem>>, vector<1x64xf32>
    tpu.vector_store %arg18[%c0_131, %c1344], %100 {strides = array<i32>} : memref<1x3136xf32, #tpu.memory_space<vmem>>, vector<1x64xf32>,
    %c31 = arith.constant 31 : index
    %c0_132 = arith.constant 0 : index
    %102 = vector.load %arg17[%c31, %c0_132] : memref<72x64xf32, #tpu.memory_space<vmem>>, vector<1x64xf32>
    %c0_133 = arith.constant 0 : index
    %c1408 = arith.constant 1408 : index
    %103 = vector.load %arg18[%c0_133, %c1408] : memref<1x3136xf32, #tpu.memory_space<vmem>>, vector<1x64xf32>
    tpu.vector_store %arg18[%c0_133, %c1408], %102 {strides = array<i32>} : memref<1x3136xf32, #tpu.memory_space<vmem>>, vector<1x64xf32>,
    %c32 = arith.constant 32 : index
    %c0_134 = arith.constant 0 : index
    %104 = vector.load %arg17[%c32, %c0_134] : memref<72x64xf32, #tpu.memory_space<vmem>>, vector<1x64xf32>
    %c0_135 = arith.constant 0 : index
    %c1472 = arith.constant 1472 : index
    %105 = vector.load %arg18[%c0_135, %c1472] : memref<1x3136xf32, #tpu.memory_space<vmem>>, vector<1x64xf32>
    tpu.vector_store %arg18[%c0_135, %c1472], %104 {strides = array<i32>} : memref<1x3136xf32, #tpu.memory_space<vmem>>, vector<1x64xf32>,
    %c33 = arith.constant 33 : index
    %c0_136 = arith.constant 0 : index
    %106 = vector.load %arg17[%c33, %c0_136] : memref<72x64xf32, #tpu.memory_space<vmem>>, vector<1x64xf32>
    %c0_137 = arith.constant 0 : index
    %c1536 = arith.constant 1536 : index
    %107 = vector.load %arg18[%c0_137, %c1536] : memref<1x3136xf32, #tpu.memory_space<vmem>>, vector<1x64xf32>
    tpu.vector_store %arg18[%c0_137, %c1536], %106 {strides = array<i32>} : memref<1x3136xf32, #tpu.memory_space<vmem>>, vector<1x64xf32>,
    %c34 = arith.constant 34 : index
    %c0_138 = arith.constant 0 : index
    %108 = vector.load %arg17[%c34, %c0_138] : memref<72x64xf32, #tpu.memory_space<vmem>>, vector<1x64xf32>
    %c0_139 = arith.constant 0 : index
    %c1600 = arith.constant 1600 : index
    %109 = vector.load %arg18[%c0_139, %c1600] : memref<1x3136xf32, #tpu.memory_space<vmem>>, vector<1x64xf32>
    tpu.vector_store %arg18[%c0_139, %c1600], %108 {strides = array<i32>} : memref<1x3136xf32, #tpu.memory_space<vmem>>, vector<1x64xf32>,
    %c35 = arith.constant 35 : index
    %c0_140 = arith.constant 0 : index
    %110 = vector.load %arg17[%c35, %c0_140] : memref<72x64xf32, #tpu.memory_space<vmem>>, vector<1x64xf32>
    %c0_141 = arith.constant 0 : index
    %c1664 = arith.constant 1664 : index
    %111 = vector.load %arg18[%c0_141, %c1664] : memref<1x3136xf32, #tpu.memory_space<vmem>>, vector<1x64xf32>
    tpu.vector_store %arg18[%c0_141, %c1664], %110 {strides = array<i32>} : memref<1x3136xf32, #tpu.memory_space<vmem>>, vector<1x64xf32>,
    %c36 = arith.constant 36 : index
    %c0_142 = arith.constant 0 : index
    %112 = vector.load %arg17[%c36, %c0_142] : memref<72x64xf32, #tpu.memory_space<vmem>>, vector<1x64xf32>
    %c0_143 = arith.constant 0 : index
    %c1728 = arith.constant 1728 : index
    %113 = vector.load %arg18[%c0_143, %c1728] : memref<1x3136xf32, #tpu.memory_space<vmem>>, vector<1x64xf32>
    tpu.vector_store %arg18[%c0_143, %c1728], %112 {strides = array<i32>} : memref<1x3136xf32, #tpu.memory_space<vmem>>, vector<1x64xf32>,
    %c40 = arith.constant 40 : index
    %c0_144 = arith.constant 0 : index
    %114 = vector.load %arg17[%c40, %c0_144] : memref<72x64xf32, #tpu.memory_space<vmem>>, vector<1x64xf32>
    %c0_145 = arith.constant 0 : index
    %c1792 = arith.constant 1792 : index
    %115 = vector.load %arg18[%c0_145, %c1792] : memref<1x3136xf32, #tpu.memory_space<vmem>>, vector<1x64xf32>
    tpu.vector_store %arg18[%c0_145, %c1792], %114 {strides = array<i32>} : memref<1x3136xf32, #tpu.memory_space<vmem>>, vector<1x64xf32>,
    %c41 = arith.constant 41 : index
    %c0_146 = arith.constant 0 : index
    %116 = vector.load %arg17[%c41, %c0_146] : memref<72x64xf32, #tpu.memory_space<vmem>>, vector<1x64xf32>
    %c0_147 = arith.constant 0 : index
    %c1856 = arith.constant 1856 : index
    %117 = vector.load %arg18[%c0_147, %c1856] : memref<1x3136xf32, #tpu.memory_space<vmem>>, vector<1x64xf32>
    tpu.vector_store %arg18[%c0_147, %c1856], %116 {strides = array<i32>} : memref<1x3136xf32, #tpu.memory_space<vmem>>, vector<1x64xf32>,
    %c42 = arith.constant 42 : index
    %c0_148 = arith.constant 0 : index
    %118 = vector.load %arg17[%c42, %c0_148] : memref<72x64xf32, #tpu.memory_space<vmem>>, vector<1x64xf32>
    %c0_149 = arith.constant 0 : index
    %c1920 = arith.constant 1920 : index
    %119 = vector.load %arg18[%c0_149, %c1920] : memref<1x3136xf32, #tpu.memory_space<vmem>>, vector<1x64xf32>
    tpu.vector_store %arg18[%c0_149, %c1920], %118 {strides = array<i32>} : memref<1x3136xf32, #tpu.memory_space<vmem>>, vector<1x64xf32>,
    %c43 = arith.constant 43 : index
    %c0_150 = arith.constant 0 : index
    %120 = vector.load %arg17[%c43, %c0_150] : memref<72x64xf32, #tpu.memory_space<vmem>>, vector<1x64xf32>
    %c0_151 = arith.constant 0 : index
    %c1984 = arith.constant 1984 : index
    %121 = vector.load %arg18[%c0_151, %c1984] : memref<1x3136xf32, #tpu.memory_space<vmem>>, vector<1x64xf32>
    tpu.vector_store %arg18[%c0_151, %c1984], %120 {strides = array<i32>} : memref<1x3136xf32, #tpu.memory_space<vmem>>, vector<1x64xf32>,
    %c44 = arith.constant 44 : index
    %c0_152 = arith.constant 0 : index
    %122 = vector.load %arg17[%c44, %c0_152] : memref<72x64xf32, #tpu.memory_space<vmem>>, vector<1x64xf32>
    %c0_153 = arith.constant 0 : index
    %c2048 = arith.constant 2048 : index
    %123 = vector.load %arg18[%c0_153, %c2048] : memref<1x3136xf32, #tpu.memory_space<vmem>>, vector<1x64xf32>
    tpu.vector_store %arg18[%c0_153, %c2048], %122 {strides = array<i32>} : memref<1x3136xf32, #tpu.memory_space<vmem>>, vector<1x64xf32>,
    %c45 = arith.constant 45 : index
    %c0_154 = arith.constant 0 : index
    %124 = vector.load %arg17[%c45, %c0_154] : memref<72x64xf32, #tpu.memory_space<vmem>>, vector<1x64xf32>
    %c0_155 = arith.constant 0 : index
    %c2112 = arith.constant 2112 : index
    %125 = vector.load %arg18[%c0_155, %c2112] : memref<1x3136xf32, #tpu.memory_space<vmem>>, vector<1x64xf32>
    tpu.vector_store %arg18[%c0_155, %c2112], %124 {strides = array<i32>} : memref<1x3136xf32, #tpu.memory_space<vmem>>, vector<1x64xf32>,
    %c46 = arith.constant 46 : index
    %c0_156 = arith.constant 0 : index
    %126 = vector.load %arg17[%c46, %c0_156] : memref<72x64xf32, #tpu.memory_space<vmem>>, vector<1x64xf32>
    %c0_157 = arith.constant 0 : index
    %c2176 = arith.constant 2176 : index
    %127 = vector.load %arg18[%c0_157, %c2176] : memref<1x3136xf32, #tpu.memory_space<vmem>>, vector<1x64xf32>
    tpu.vector_store %arg18[%c0_157, %c2176], %126 {strides = array<i32>} : memref<1x3136xf32, #tpu.memory_space<vmem>>, vector<1x64xf32>,
    %c50 = arith.constant 50 : index
    %c0_158 = arith.constant 0 : index
    %128 = vector.load %arg17[%c50, %c0_158] : memref<72x64xf32, #tpu.memory_space<vmem>>, vector<1x64xf32>
    %c0_159 = arith.constant 0 : index
    %c2240 = arith.constant 2240 : index
    %129 = vector.load %arg18[%c0_159, %c2240] : memref<1x3136xf32, #tpu.memory_space<vmem>>, vector<1x64xf32>
    tpu.vector_store %arg18[%c0_159, %c2240], %128 {strides = array<i32>} : memref<1x3136xf32, #tpu.memory_space<vmem>>, vector<1x64xf32>,
    %c51 = arith.constant 51 : index
    %c0_160 = arith.constant 0 : index
    %130 = vector.load %arg17[%c51, %c0_160] : memref<72x64xf32, #tpu.memory_space<vmem>>, vector<1x64xf32>
    %c0_161 = arith.constant 0 : index
    %c2304 = arith.constant 2304 : index
    %131 = vector.load %arg18[%c0_161, %c2304] : memref<1x3136xf32, #tpu.memory_space<vmem>>, vector<1x64xf32>
    tpu.vector_store %arg18[%c0_161, %c2304], %130 {strides = array<i32>} : memref<1x3136xf32, #tpu.memory_space<vmem>>, vector<1x64xf32>,
    %c52 = arith.constant 52 : index
    %c0_162 = arith.constant 0 : index
    %132 = vector.load %arg17[%c52, %c0_162] : memref<72x64xf32, #tpu.memory_space<vmem>>, vector<1x64xf32>
    %c0_163 = arith.constant 0 : index
    %c2368 = arith.constant 2368 : index
    %133 = vector.load %arg18[%c0_163, %c2368] : memref<1x3136xf32, #tpu.memory_space<vmem>>, vector<1x64xf32>
    tpu.vector_store %arg18[%c0_163, %c2368], %132 {strides = array<i32>} : memref<1x3136xf32, #tpu.memory_space<vmem>>, vector<1x64xf32>,
    %c53 = arith.constant 53 : index
    %c0_164 = arith.constant 0 : index
    %134 = vector.load %arg17[%c53, %c0_164] : memref<72x64xf32, #tpu.memory_space<vmem>>, vector<1x64xf32>
    %c0_165 = arith.constant 0 : index
    %c2432 = arith.constant 2432 : index
    %135 = vector.load %arg18[%c0_165, %c2432] : memref<1x3136xf32, #tpu.memory_space<vmem>>, vector<1x64xf32>
    tpu.vector_store %arg18[%c0_165, %c2432], %134 {strides = array<i32>} : memref<1x3136xf32, #tpu.memory_space<vmem>>, vector<1x64xf32>,
    %c54 = arith.constant 54 : index
    %c0_166 = arith.constant 0 : index
    %136 = vector.load %arg17[%c54, %c0_166] : memref<72x64xf32, #tpu.memory_space<vmem>>, vector<1x64xf32>
    %c0_167 = arith.constant 0 : index
    %c2496 = arith.constant 2496 : index
    %137 = vector.load %arg18[%c0_167, %c2496] : memref<1x3136xf32, #tpu.memory_space<vmem>>, vector<1x64xf32>
    tpu.vector_store %arg18[%c0_167, %c2496], %136 {strides = array<i32>} : memref<1x3136xf32, #tpu.memory_space<vmem>>, vector<1x64xf32>,
    %c55 = arith.constant 55 : index
    %c0_168 = arith.constant 0 : index
    %138 = vector.load %arg17[%c55, %c0_168] : memref<72x64xf32, #tpu.memory_space<vmem>>, vector<1x64xf32>
    %c0_169 = arith.constant 0 : index
    %c2560 = arith.constant 2560 : index
    %139 = vector.load %arg18[%c0_169, %c2560] : memref<1x3136xf32, #tpu.memory_space<vmem>>, vector<1x64xf32>
    tpu.vector_store %arg18[%c0_169, %c2560], %138 {strides = array<i32>} : memref<1x3136xf32, #tpu.memory_space<vmem>>, vector<1x64xf32>,
    %c56 = arith.constant 56 : index
    %c0_170 = arith.constant 0 : index
    %140 = vector.load %arg17[%c56, %c0_170] : memref<72x64xf32, #tpu.memory_space<vmem>>, vector<1x64xf32>
    %c0_171 = arith.constant 0 : index
    %c2624 = arith.constant 2624 : index
    %141 = vector.load %arg18[%c0_171, %c2624] : memref<1x3136xf32, #tpu.memory_space<vmem>>, vector<1x64xf32>
    tpu.vector_store %arg18[%c0_171, %c2624], %140 {strides = array<i32>} : memref<1x3136xf32, #tpu.memory_space<vmem>>, vector<1x64xf32>,
    %c60 = arith.constant 60 : index
    %c0_172 = arith.constant 0 : index
    %142 = vector.load %arg17[%c60, %c0_172] : memref<72x64xf32, #tpu.memory_space<vmem>>, vector<1x64xf32>
    %c0_173 = arith.constant 0 : index
    %c2688 = arith.constant 2688 : index
    %143 = vector.load %arg18[%c0_173, %c2688] : memref<1x3136xf32, #tpu.memory_space<vmem>>, vector<1x64xf32>
    tpu.vector_store %arg18[%c0_173, %c2688], %142 {strides = array<i32>} : memref<1x3136xf32, #tpu.memory_space<vmem>>, vector<1x64xf32>,
    %c61 = arith.constant 61 : index
    %c0_174 = arith.constant 0 : index
    %144 = vector.load %arg17[%c61, %c0_174] : memref<72x64xf32, #tpu.memory_space<vmem>>, vector<1x64xf32>
    %c0_175 = arith.constant 0 : index
    %c2752 = arith.constant 2752 : index
    %145 = vector.load %arg18[%c0_175, %c2752] : memref<1x3136xf32, #tpu.memory_space<vmem>>, vector<1x64xf32>
    tpu.vector_store %arg18[%c0_175, %c2752], %144 {strides = array<i32>} : memref<1x3136xf32, #tpu.memory_space<vmem>>, vector<1x64xf32>,
    %c62 = arith.constant 62 : index
    %c0_176 = arith.constant 0 : index
    %146 = vector.load %arg17[%c62, %c0_176] : memref<72x64xf32, #tpu.memory_space<vmem>>, vector<1x64xf32>
    %c0_177 = arith.constant 0 : index
    %c2816 = arith.constant 2816 : index
    %147 = vector.load %arg18[%c0_177, %c2816] : memref<1x3136xf32, #tpu.memory_space<vmem>>, vector<1x64xf32>
    tpu.vector_store %arg18[%c0_177, %c2816], %146 {strides = array<i32>} : memref<1x3136xf32, #tpu.memory_space<vmem>>, vector<1x64xf32>,
    %c63 = arith.constant 63 : index
    %c0_178 = arith.constant 0 : index
    %148 = vector.load %arg17[%c63, %c0_178] : memref<72x64xf32, #tpu.memory_space<vmem>>, vector<1x64xf32>
    %c0_179 = arith.constant 0 : index
    %c2880 = arith.constant 2880 : index
    %149 = vector.load %arg18[%c0_179, %c2880] : memref<1x3136xf32, #tpu.memory_space<vmem>>, vector<1x64xf32>
    tpu.vector_store %arg18[%c0_179, %c2880], %148 {strides = array<i32>} : memref<1x3136xf32, #tpu.memory_space<vmem>>, vector<1x64xf32>,
    %c64_180 = arith.constant 64 : index
    %c0_181 = arith.constant 0 : index
    %150 = vector.load %arg17[%c64_180, %c0_181] : memref<72x64xf32, #tpu.memory_space<vmem>>, vector<1x64xf32>
    %c0_182 = arith.constant 0 : index
    %c2944 = arith.constant 2944 : index
    %151 = vector.load %arg18[%c0_182, %c2944] : memref<1x3136xf32, #tpu.memory_space<vmem>>, vector<1x64xf32>
    tpu.vector_store %arg18[%c0_182, %c2944], %150 {strides = array<i32>} : memref<1x3136xf32, #tpu.memory_space<vmem>>, vector<1x64xf32>,
    %c65 = arith.constant 65 : index
    %c0_183 = arith.constant 0 : index
    %152 = vector.load %arg17[%c65, %c0_183] : memref<72x64xf32, #tpu.memory_space<vmem>>, vector<1x64xf32>
    %c0_184 = arith.constant 0 : index
    %c3008 = arith.constant 3008 : index
    %153 = vector.load %arg18[%c0_184, %c3008] : memref<1x3136xf32, #tpu.memory_space<vmem>>, vector<1x64xf32>
    tpu.vector_store %arg18[%c0_184, %c3008], %152 {strides = array<i32>} : memref<1x3136xf32, #tpu.memory_space<vmem>>, vector<1x64xf32>,
    %c66 = arith.constant 66 : index
    %c0_185 = arith.constant 0 : index
    %154 = vector.load %arg17[%c66, %c0_185] : memref<72x64xf32, #tpu.memory_space<vmem>>, vector<1x64xf32>
    %c0_186 = arith.constant 0 : index
    %c3072 = arith.constant 3072 : index
    %155 = vector.load %arg18[%c0_186, %c3072] : memref<1x3136xf32, #tpu.memory_space<vmem>>, vector<1x64xf32>
    tpu.vector_store %arg18[%c0_186, %c3072], %154 {strides = array<i32>} : memref<1x3136xf32, #tpu.memory_space<vmem>>, vector<1x64xf32>,
    %c0_187 = arith.constant 0 : index
    %c0_188 = arith.constant 0 : index
    %156 = vector.load %arg18[%c0_187, %c0_188] : memref<1x3136xf32, #tpu.memory_space<vmem>>, vector<1x3136xf32>
    %157 = arith.truncf %156 : vector<1x3136xf32> to vector<1x3136xbf16>
    %c0_189 = arith.constant 0 : index
    %c0_190 = arith.constant 0 : index
    %158 = vector.load %arg8[%c0_189, %c0_190] : memref<3136x512xbf16, #tpu.memory_space<vmem>>, vector<3136x512xbf16>
    %cst_191 = arith.constant dense<0.000000e+00> : vector<1x512xf32>
    %159 = tpu.matmul %157, %158, %cst_191 {dimension_numbers = #tpu.dot_dimension_numbers<[1], [0], [0], [1], [0, 0, 1, 1], [], []>} : vector<1x3136xbf16>, vector<3136x512xbf16>, vector<1x512xf32> -> vector<1x512xf32>
    %c0_192 = arith.constant 0 : index
    %c0_193 = arith.constant 0 : index
    %160 = vector.load %arg9[%c0_192, %c0_193] : memref<1x512xf32, #tpu.memory_space<vmem>>, vector<1x512xf32>
    %161 = arith.addf %159, %160 : vector<1x512xf32>
    %cst_194 = arith.constant 0.000000e+00 : f32
    %162 = vector.broadcast %cst_194 : f32 to vector<1x512xf32>
    %163 = arith.maximumf %161, %162 : vector<1x512xf32>
    %c0_195 = arith.constant 0 : index
    %c0_196 = arith.constant 0 : index
    %164 = vector.load %arg10[%c0_195, %c0_196] : memref<512x128xf32, #tpu.memory_space<vmem>>, vector<512x128xf32>
    %cst_197 = arith.constant dense<0.000000e+00> : vector<1x128xf32>
    %165 = tpu.matmul %163, %164, %cst_197 {dimension_numbers = #tpu.dot_dimension_numbers<[1], [0], [0], [1], [0, 0, 1, 1], [], []>} : vector<1x512xf32>, vector<512x128xf32>, vector<1x128xf32> -> vector<1x128xf32>
    %c0_198 = arith.constant 0 : index
    %c0_199 = arith.constant 0 : index
    %166 = vector.load %arg11[%c0_198, %c0_199] : memref<1x128xf32, #tpu.memory_space<vmem>>, vector<1x128xf32>
    %167 = arith.addf %165, %166 : vector<1x128xf32>
    %c0_200 = arith.constant 0 : index
    %c0_201 = arith.constant 0 : index
    %c0_202 = arith.constant 0 : index
    %168 = vector.load %arg12[%c0_200, %c0_201, %c0_202] : memref<1x1x128xf32, #tpu.memory_space<vmem>>, vector<1x1x128xf32>
    %169 = vector.shape_cast %168 : vector<1x1x128xf32> to vector<1x128xf32>
    %170 = vector.shape_cast %167 : vector<1x128xf32> to vector<1x1x128xf32>
    tpu.vector_store %arg12[%c0_200, %c0_201, %c0_202], %170 {strides = array<i32>} : memref<1x1x128xf32, #tpu.memory_space<vmem>>, vector<1x1x128xf32>,
    return
  }
  func.func @transform_0(%arg0: i32) -> (i32, i32, i32) {
    %c0_i32 = arith.constant 0 : i32
    %c0_i32_0 = arith.constant 0 : i32
    %c0_i32_1 = arith.constant 0 : i32
    return %arg0, %c0_i32, %c0_i32_0 : i32, i32, i32
  }
  func.func @transform_1(%arg0: i32) -> (i32, i32) {
    %c0_i32 = arith.constant 0 : i32
    %c0_i32_0 = arith.constant 0 : i32
    %c0_i32_1 = arith.constant 0 : i32
    return %c0_i32, %c0_i32_0 : i32, i32
  }
  func.func @transform_2(%arg0: i32) -> (i32, i32) {
    %c0_i32 = arith.constant 0 : i32
    %c0_i32_0 = arith.constant 0 : i32
    %c0_i32_1 = arith.constant 0 : i32
    return %c0_i32, %c0_i32_0 : i32, i32
  }
  func.func @transform_3(%arg0: i32) -> (i32, i32) {
    %c0_i32 = arith.constant 0 : i32
    %c0_i32_0 = arith.constant 0 : i32
    %c0_i32_1 = arith.constant 0 : i32
    return %c0_i32, %c0_i32_0 : i32, i32
  }
  func.func @transform_4(%arg0: i32) -> (i32, i32) {
    %c0_i32 = arith.constant 0 : i32
    %c0_i32_0 = arith.constant 0 : i32
    %c0_i32_1 = arith.constant 0 : i32
    return %c0_i32, %c0_i32_0 : i32, i32
  }
  func.func @transform_5(%arg0: i32) -> (i32, i32) {
    %c0_i32 = arith.constant 0 : i32
    %c0_i32_0 = arith.constant 0 : i32
    %c0_i32_1 = arith.constant 0 : i32
    return %c0_i32, %c0_i32_0 : i32, i32
  }
  func.func @transform_6(%arg0: i32) -> (i32, i32) {
    %c0_i32 = arith.constant 0 : i32
    %c0_i32_0 = arith.constant 0 : i32
    %c0_i32_1 = arith.constant 0 : i32
    return %c0_i32, %c0_i32_0 : i32, i32
  }
  func.func @transform_7(%arg0: i32) -> (i32, i32) {
    %c0_i32 = arith.constant 0 : i32
    %c0_i32_0 = arith.constant 0 : i32
    %c0_i32_1 = arith.constant 0 : i32
    return %c0_i32, %c0_i32_0 : i32, i32
  }
  func.func @transform_8(%arg0: i32) -> (i32, i32) {
    %c0_i32 = arith.constant 0 : i32
    %c0_i32_0 = arith.constant 0 : i32
    %c0_i32_1 = arith.constant 0 : i32
    return %c0_i32, %c0_i32_0 : i32, i32
  }
  func.func @transform_9(%arg0: i32) -> (i32, i32) {
    %c0_i32 = arith.constant 0 : i32
    %c0_i32_0 = arith.constant 0 : i32
    %c0_i32_1 = arith.constant 0 : i32
    return %c0_i32, %c0_i32_0 : i32, i32
  }
  func.func @transform_10(%arg0: i32) -> (i32, i32) {
    %c0_i32 = arith.constant 0 : i32
    %c0_i32_0 = arith.constant 0 : i32
    %c0_i32_1 = arith.constant 0 : i32
    return %c0_i32, %c0_i32_0 : i32, i32
  }
  func.func @transform_11(%arg0: i32) -> (i32, i32, i32) {
    %c0_i32 = arith.constant 0 : i32
    %c0_i32_0 = arith.constant 0 : i32
    %c0_i32_1 = arith.constant 0 : i32
    return %arg0, %c0_i32, %c0_i32_0 : i32, i32, i32
  }
}

</mosaic_0001>

<bundles_post_ra>
// kernel: dqn_forward.1
= control target key start
LH: loop header
LB: loop body
LE: loop exit
PB: predicated region body
PF: predicated region fallthrough
CT: control target
= control target key end

     0   :  { %16 = vsyncpa [#allocation9], 0  ;;  %s16522_s0 = inlined_call_operand.vmem [shape: f32[2,104,1024], index: 0, kind: input, shape index: {}]   ;;  %s16523_s1 = inlined_call_operand.vmem [shape: f32[1024,128], index: 1, kind: input, shape index: {}]   ;;  %s16524_s2 = inlined_call_operand.vmem [shape: f32[1,128], index: 2, kind: input, shape index: {}]   ;;  %s16525_s3 = inlined_call_operand.vmem [shape: f32[512,64], index: 3, kind: input, shape index: {}]   ;;  %s16526_s4 = inlined_call_operand.vmem [shape: f32[1,64], index: 4, kind: input, shape index: {}]   ;;  %s16527_s5 = inlined_call_operand.vmem [shape: f32[576,64], index: 5, kind: input, shape index: {}]   ;;  %s16528_s6 = inlined_call_operand.vmem [shape: f32[1,64], index: 6, kind: input, shape index: {}]   ;;  %s16529_s7 = inlined_call_operand.vmem [shape: bf16[3136,512], index: 7, kind: input, shape index: {}]   ;;  %s16530_s8 = inlined_call_operand.vmem [shape: f32[1,512], index: 8, kind: input, shape index: {}]   ;;  %s16531_s9 = inlined_call_operand.vmem [shape: f32[512,128], index: 9, kind: input, shape index: {}]   ;;  %s16532_s10 = inlined_call_operand.vmem [shape: f32[1,128], index: 10, kind: input, shape index: {}]   ;;  %s16533_s11 = inlined_call_operand.hbm [shape: f32[2,1,128], index: 11, kind: output, shape index: {}]  }
   0x1   :  { %18 = vsyncpa [#allocation9 + $0x1], 0  ;;  %s12095_s17 = smov 0   ;;  %s12097_s18 = smov 0  }
   0x2   :  { %s12099_s19 = smov 0   ;;  %s12101_s20 = smov 0  }
   0x3 LB: > { %16535 = sst [smem:[#allocation11_spill]] %s12023_s19  ;;  %s12116_s21 = sadd.s32 4294967295, %s12027_s20   ;;  %s12027_s20 = sphi %s12101_s20, %s16559_s20   ;;  %s12023_s19 = sphi %s12099_s19, %s16556_s19   ;;  %s12019_s18 = sphi %s12097_s18, %s16558_s18   ;;  %s12015_s17 = sphi %s12095_s17, %s16557_s17  }
   0x4   : > { %s9245_s22 = sadd.s32 4294967294, %s12027_s20   ;;  %s12120_s23 = sadd.s32 1, %s12027_s20  }
   0x5   : > { %s267_s24 = sadd.s32 1, %s12023_s19  ;;  %s264_s25 = ssub.s32 %s12027_s20, %s12120_s23 }
   0x6   : > { %p277_p0 = scmp.ne.s32.totalorder %s12023_s19, %s12019_s18  ;;  %p265_p1 = scmp.eq.s32.totalorder %s264_s25, 0 }
   0x7   : > { %p278_p2 = scmp.eq.s32.totalorder %s12116_s21, 1  ;;  %p283_p3 = scmp.ne.s32.totalorder %s12019_s18, %s12015_s17 }
   0x8   : > { %p284_p4 = scmp.eq.s32.totalorder %s9245_s22, 1  ;;  %p9248_p7 = scmp.ge.s32.totalorder %s12027_s20, 1 }
   0x9   : > { %s12131_s26 = scalar_select %p265_p1, %s12023_s19, %s267_s24  }
   0xa   : > { %p12133_p5 = por %p278_p2, %p277_p0  ;;  %p12137_p6 = por %p284_p4, %p283_p3 }
   0xb   : > { %16536 = sst [smem:[#allocation12_spill]] %s12131_s26  ;;  %p340_p8 = scmp.lt.s32.totalorder %s12027_s20, 3 }
   0xd   : > { %p341_p9 = pnand %p9248_p7, %p340_p8 }
   0xf   : > { %344 = sbr.rel (%p341_p9) target bundleno = 2213 (0x8a5), region = 64 }
  0x14   : > { %v520_v0 = vld [vmem:[%s16523_s1 + $0xf8] sm:$0xff]  ;;  %v519_v3 = vld [vmem:[%s16523_s1 + $0xf0] sm:$0xff]  ;;  %v518_v7 = vld [vmem:[%s16523_s1 + $0xe8] sm:$0xff]  ;;  %p379_p10 = scmp.lt.s32.totalorder %s12116_s21, 1  ;;  %vm1651_vm0 = vcmask 523264   ;;  %vm1686_vm1 = vcmask 518144  }
  0x15   : > { %v504_v1 = vld [vmem:[%s16523_s1 + $0x78] sm:$0xff]  ;;  %10076 = vmatprep.subr.mxu0 %v520_v0  ;;  %v503_v5 = vld [vmem:[%s16523_s1 + $0x70] sm:$0xff]  ;;  %v502_v9 = vld [vmem:[%s16523_s1 + $0x68] sm:$0xff]  ;;  %vm1733_vm2 = vcmask 1048064   ;;  %vm1742_vm3 = vcmask 1042944   ;;  %vm12031_vm4 = vmmov 0  }
  0x16   : > { %v552_v2 = vld [vmem:[%s16523_s1 + $0x1f8] sm:$0xff]  ;;  %10077 = vmatpush3.msra.mxu0 %v504_v1  ;;  %v551_v6 = vld [vmem:[%s16523_s1 + $0x1f0] sm:$0xff]  ;;  %v550_v10 = vld [vmem:[%s16523_s1 + $0x1e8] sm:$0xff]  ;;  %s12267_s29 = scalar_select %p379_p10, %s12116_s21, 1 }
  0x17   : > { %10147 = vmatprep.subr.mxu1 %v552_v2  ;;  %v536_v4 = vld [vmem:[%s16523_s1 + $0x178] sm:$0xff]  ;;  %v535_v8 = vld [vmem:[%s16523_s1 + $0x170] sm:$0xff]  ;;  %10078 = vmatprep.subr.mxu0 %v519_v3  ;;  %v517_v11 = vld [vmem:[%s16523_s1 + $0xe0] sm:$0xff]  ;;  %s377_s24 = sand.u32 1, %s12019_s18   ;;  %s10073_s30 = sshll.u32 %s12116_s21, 4 }
  0x18   : > { %10148 = vmatpush3.msra.mxu1 %v536_v4  ;;  %10079 = vmatpush3.msra.mxu0 %v503_v5  ;;  %v534_v12 = vld [vmem:[%s16523_s1 + $0x168] sm:$0xff]  ;;  %v549_v13 = vld [vmem:[%s16523_s1 + $0x1e0] sm:$0xff]  ;;  %v516_v16 = vld [vmem:[%s16523_s1 + $0xd8] sm:$0xff]  ;;  %s10744_s22 = smul.u32 832, %s12267_s29  ;;  %s9188_s14 = scalar_lea.hbm %s16533_s11, %s10073_s30 }
  0x19   : > { %10149 = vmatprep.subr.mxu1 %v551_v6  ;;  %10080 = vmatprep.subr.mxu0 %v518_v7  ;;  %v501_v14 = vld [vmem:[%s16523_s1 + $0x60] sm:$0xff]  ;;  %v548_v17 = vld [vmem:[%s16523_s1 + $0x1d8] sm:$0xff]  ;;  %v515_v20 = vld [vmem:[%s16523_s1 + $0xd0] sm:$0xff]  ;;  %s9178_s15 = scalar_lea.sflag [#allocation9], %s377_s24  ;;  %s12034_s16 = smov [#allocation8]  }
  0x1a   : > { %10150 = vmatpush3.msra.mxu1 %v535_v8  ;;  %v533_v15 = vld [vmem:[%s16523_s1 + $0x160] sm:$0xff]  ;;  %10081 = vmatpush3.msra.mxu0 %v502_v9  ;;  %v500_v18 = vld [vmem:[%s16523_s1 + $0x58] sm:$0xff]  ;;  %v547_v21 = vld [vmem:[%s16523_s1 + $0x1d0] sm:$0xff]  ;;  %s12321_s19 = scalar_lea.vmem %s16522_s0, %s10744_s22  ;;  %s11971_s26 = sshll.u32 %s12034_s16, 4  ;;  %s11972_s26 = int_to_ptr.vmem [resolvable:$false] %s11971_s26 }
  0x1b   : > { %10151 = vmatprep.subr.mxu1 %v550_v10  ;;  %10082 = vmatprep.subr.mxu0 %v517_v11  ;;  %v532_v19 = vld [vmem:[%s16523_s1 + $0x158] sm:$0xff]  ;;  %v499_v22 = vld [vmem:[%s16523_s1 + $0x50] sm:$0xff]  ;;  %v514_v24 = vld [vmem:[%s16523_s1 + $0xc8] sm:$0xff]  ;;  %s11973_s21 = scalar_lea.vmem %s11972_s26, 32 }
  0x1c   : > { %10152 = vmatpush3.msra.mxu1 %v534_v12  ;;  %10083 = vmatpush3.msra.mxu0 %v501_v14  ;;  %v531_v23 = vld [vmem:[%s16523_s1 + $0x150] sm:$0xff]  ;;  %v546_v25 = vld [vmem:[%s16523_s1 + $0x1c8] sm:$0xff]  ;;  %v513_v28 = vld [vmem:[%s16523_s1 + $0xc0] sm:$0xff] }
  0x1d   : > { %10153 = vmatprep.subr.mxu1 %v549_v13  ;;  %10084 = vmatprep.subr.mxu0 %v516_v16  ;;  %v498_v26 = vld [vmem:[%s16523_s1 + $0x48] sm:$0xff]  ;;  %v545_v29 = vld [vmem:[%s16523_s1 + $0x1c0] sm:$0xff]  ;;  %v512_v32 = vld [vmem:[%s16523_s1 + $0xb8] sm:$0xff] }
  0x1e   : > { %10154 = vmatpush3.msra.mxu1 %v533_v15  ;;  %10085 = vmatpush3.msra.mxu0 %v500_v18  ;;  %v530_v27 = vld [vmem:[%s16523_s1 + $0x148] sm:$0xff]  ;;  %v497_v30 = vld [vmem:[%s16523_s1 + $0x40] sm:$0xff]  ;;  %v544_v33 = vld [vmem:[%s16523_s1 + $0x1b8] sm:$0xff] }
  0x1f   : > { %10155 = vmatprep.subr.mxu1 %v548_v17  ;;  %10086 = vmatprep.subr.mxu0 %v515_v20  ;;  %v529_v31 = vld [vmem:[%s16523_s1 + $0x140] sm:$0xff]  ;;  %v496_v34 = vld [vmem:[%s16523_s1 + $0x38] sm:$0xff]  ;;  %v511_v36 = vld [vmem:[%s16523_s1 + $0xb0] sm:$0xff] }
  0x20   : > { %10156 = vmatpush3.msra.mxu1 %v532_v19  ;;  %10087 = vmatpush3.msra.mxu0 %v499_v22  ;;  %v528_v35 = vld [vmem:[%s16523_s1 + $0x138] sm:$0xff]  ;;  %v543_v37 = vld [vmem:[%s16523_s1 + $0x1b0] sm:$0xff]  ;;  %v510_v40 = vld [vmem:[%s16523_s1 + $0xa8] sm:$0xff] }
  0x21   : > { %10157 = vmatprep.subr.mxu1 %v547_v21  ;;  %10088 = vmatprep.subr.mxu0 %v514_v24  ;;  %v495_v38 = vld [vmem:[%s16523_s1 + $0x30] sm:$0xff]  ;;  %v542_v41 = vld [vmem:[%s16523_s1 + $0x1a8] sm:$0xff]  ;;  %v509_v44 = vld [vmem:[%s16523_s1 + $0xa0] sm:$0xff] }
  0x22   : > { %10158 = vmatpush3.msra.mxu1 %v531_v23  ;;  %10089 = vmatpush3.msra.mxu0 %v498_v26  ;;  %v527_v39 = vld [vmem:[%s16523_s1 + $0x130] sm:$0xff]  ;;  %v494_v42 = vld [vmem:[%s16523_s1 + $0x28] sm:$0xff]  ;;  %v541_v45 = vld [vmem:[%s16523_s1 + $0x1a0] sm:$0xff] }
  0x23   : > { %10159 = vmatprep.subr.mxu1 %v546_v25  ;;  %10090 = vmatprep.subr.mxu0 %v513_v28  ;;  %v526_v43 = vld [vmem:[%s16523_s1 + $0x128] sm:$0xff]  ;;  %v493_v46 = vld [vmem:[%s16523_s1 + $0x20] sm:$0xff]  ;;  %v508_v48 = vld [vmem:[%s16523_s1 + $0x98] sm:$0xff] }
  0x24   : > { %10160 = vmatpush3.msra.mxu1 %v530_v27  ;;  %10091 = vmatpush3.msra.mxu0 %v497_v30  ;;  %v525_v47 = vld [vmem:[%s16523_s1 + $0x120] sm:$0xff]  ;;  %v540_v49 = vld [vmem:[%s16523_s1 + $0x198] sm:$0xff]  ;;  %v507_v52 = vld [vmem:[%s16523_s1 + $0x90] sm:$0xff] }
  0x25   : > { %10161 = vmatprep.subr.mxu1 %v545_v29  ;;  %10092 = vmatprep.subr.mxu0 %v512_v32  ;;  %v492_v50 = vld [vmem:[%s16523_s1 + $0x18] sm:$0xff]  ;;  %v539_v53 = vld [vmem:[%s16523_s1 + $0x190] sm:$0xff]  ;;  %v506_v56 = vld [vmem:[%s16523_s1 + $0x88] sm:$0xff] }
  0x26   : > { %10162 = vmatpush3.msra.mxu1 %v529_v31  ;;  %10093 = vmatpush3.msra.mxu0 %v496_v34  ;;  %v524_v51 = vld [vmem:[%s16523_s1 + $0x118] sm:$0xff]  ;;  %v491_v54 = vld [vmem:[%s16523_s1 + $0x10] sm:$0xff]  ;;  %v538_v57 = vld [vmem:[%s16523_s1 + $0x188] sm:$0xff] }
  0x27   : > { %10163 = vmatprep.subr.mxu1 %v544_v33  ;;  %10094 = vmatprep.subr.mxu0 %v511_v36  ;;  %v523_v55 = vld [vmem:[%s16523_s1 + $0x110] sm:$0xff]  ;;  %v490_v58 = vld [vmem:[%s16523_s1 + $0x8] sm:$0xff]  ;;  %v505_v60 = vld [vmem:[%s16523_s1 + $0x80] sm:$0xff] }
  0x28   : > { %10164 = vmatpush3.msra.mxu1 %v528_v35  ;;  %10095 = vmatpush3.msra.mxu0 %v495_v38  ;;  %v522_v59 = vld [vmem:[%s16523_s1 + $0x108] sm:$0xff]  ;;  %v489_v62 = vld [vmem:[%s16523_s1] sm:$0xff]  ;;  %v388_v2 = vld [vmem:[%s12321_s19 + $0x18] sm:$0xff] }
  0x29   : > { %10165 = vmatprep.subr.mxu1 %v543_v37  ;;  %10096 = vmatprep.subr.mxu0 %v510_v40  ;;  %v386_v61 = vld [vmem:[%s12321_s19 + $0x8] sm:$0xff]  ;;  %v537_v63 = vld [vmem:[%s16523_s1 + $0x180] sm:$0xff]  ;;  %v584_v3 = vld [vmem:[%s16523_s1 + $0x2f8] sm:$0xff] }
  0x2a   : > { %10166 = vmatpush3.msra.mxu1 %v527_v39  ;;  %10097 = vmatpush3.msra.mxu0 %v494_v42  ;;  %v385_v0 = vld [vmem:[%s12321_s19] sm:$0xff]  ;;  %v387_v4 = vld [vmem:[%s12321_s19 + $0x10] sm:$0xff]  ;;  %v568_v5 = vld [vmem:[%s16523_s1 + $0x278] sm:$0xff] }
  0x2b   : > { %10167 = vmatprep.subr.mxu1 %v542_v41  ;;  %10098 = vmatprep.subr.mxu0 %v509_v44  ;;  %v521_v1 = vld [vmem:[%s16523_s1 + $0x100] sm:$0xff]  ;;  %v616_v6 = vld [vmem:[%s16523_s1 + $0x3f8] sm:$0xff]  ;;  %v394_v7 = vld [vmem:[%s12321_s19 + $0x48] sm:$0xff] }
  0x2c   : > { %10168 = vmatpush3.msra.mxu1 %v526_v43  ;;  %10099 = vmatpush3.msra.mxu0 %v493_v46  ;;  %v600_v8 = vld [vmem:[%s16523_s1 + $0x378] sm:$0xff]  ;;  %v393_v9 = vld [vmem:[%s12321_s19 + $0x40] sm:$0xff]  ;;  %v583_v11 = vld [vmem:[%s16523_s1 + $0x2f0] sm:$0xff] }
  0x2d   : > { %10169 = vmatprep.subr.mxu1 %v541_v45  ;;  %10100 = vmatprep.subr.mxu0 %v508_v48  ;;  %v396_v10 = vld [vmem:[%s12321_s19 + $0x58] sm:$0xff]  ;;  %v395_v12 = vld [vmem:[%s12321_s19 + $0x50] sm:$0xff]  ;;  %v402_v15 = vld [vmem:[%s12321_s19 + $0x88] sm:$0xff] }
  0x2e   : > { %10170 = vmatpush3.msra.mxu1 %v525_v47  ;;  %10101 = vmatpush3.msra.mxu0 %v492_v50  ;;  %v567_v13 = vld [vmem:[%s16523_s1 + $0x270] sm:$0xff]  ;;  %v582_v16 = vld [vmem:[%s16523_s1 + $0x2e8] sm:$0xff]  ;;  %v401_v18 = vld [vmem:[%s12321_s19 + $0x80] sm:$0xff] }
  0x2f   : > { %10171 = vmatprep.subr.mxu1 %v540_v49  ;;  %10102 = vmatprep.subr.mxu0 %v507_v52  ;;  %v615_v14 = vld [vmem:[%s16523_s1 + $0x3f0] sm:$0xff]  ;;  %v404_v19 = vld [vmem:[%s12321_s19 + $0x98] sm:$0xff]  ;;  %v566_v20 = vld [vmem:[%s16523_s1 + $0x268] sm:$0xff] }
  0x30   : > { %10172 = vmatpush3.msra.mxu1 %v524_v51  ;;  %10103 = vmatpush3.msra.mxu0 %v491_v54  ;;  %v599_v17 = vld [vmem:[%s16523_s1 + $0x370] sm:$0xff]  ;;  %v614_v22 = vld [vmem:[%s16523_s1 + $0x3e8] sm:$0xff]  ;;  %v581_v23 = vld [vmem:[%s16523_s1 + $0x2e0] sm:$0xff] }
  0x31   : > { %10173 = vmatprep.subr.mxu1 %v539_v53  ;;  %10104 = vmatprep.subr.mxu0 %v506_v56  ;;  %v403_v21 = vld [vmem:[%s12321_s19 + $0x90] sm:$0xff]  ;;  %v598_v24 = vld [vmem:[%s16523_s1 + $0x368] sm:$0xff]  ;;  %v565_v26 = vld [vmem:[%s16523_s1 + $0x260] sm:$0xff] }
  0x32   : > { %10174 = vmatpush3.msra.mxu1 %v523_v55  ;;  %10105 = vmatpush3.msra.mxu0 %v490_v58  ;;  %v410_v25 = vld [vmem:[%s12321_s19 + $0xc8] sm:$0xff]  ;;  %v412_v27 = vld [vmem:[%s12321_s19 + $0xd8] sm:$0xff]  ;;  %v409_v28 = vld [vmem:[%s12321_s19 + $0xc0] sm:$0xff] }
  0x33   : > { %10175 = vmatprep.subr.mxu1 %v538_v57  ;;  %10106 = vmatprep.subr.mxu0 %v505_v60  ;;  %v613_v29 = vld [vmem:[%s16523_s1 + $0x3e0] sm:$0xff]  ;;  %v411_v30 = vld [vmem:[%s12321_s19 + $0xd0] sm:$0xff]  ;;  %v580_v31 = vld [vmem:[%s16523_s1 + $0x2d8] sm:$0xff] }
  0x34   : > { %10176 = vmatpush3.msra.mxu1 %v522_v59  ;;  %688 = vmatprep.mubr.f32.mxu0 %v386_v61  ;;  %v597_v32 = vld [vmem:[%s16523_s1 + $0x360] sm:$0xff]  ;;  %v564_v33 = vld [vmem:[%s16523_s1 + $0x258] sm:$0xff]  ;;  %v418_v34 = vld [vmem:[%s12321_s19 + $0x108] sm:$0xff] }
  0x35   : > { %10107 = vmatpush3.msra.mxu0 %v489_v62  ;;  %10177 = vmatprep.subr.mxu1 %v537_v63  ;;  %v612_v35 = vld [vmem:[%s16523_s1 + $0x3d8] sm:$0xff]  ;;  %v417_v36 = vld [vmem:[%s12321_s19 + $0x100] sm:$0xff]  ;;  %v579_v39 = vld [vmem:[%s16523_s1 + $0x2d0] sm:$0xff] }
  0x36   : > { %689 = vmatmul.mubr.f32.vlgmr.msra.gmra.mxu0 %v385_v0  ;;  %10178 = vmatpush3.msra.mxu1 %v521_v1  ;;  %v420_v37 = vld [vmem:[%s12321_s19 + $0x118] sm:$0xff]  ;;  %v419_v40 = vld [vmem:[%s12321_s19 + $0x110] sm:$0xff]  ;;  %v426_v42 = vld [vmem:[%s12321_s19 + $0x148] sm:$0xff] }
  0x37   : > { %818 = vmatprep.mubr.f32.mxu1 %v388_v2  ;;  %10218 = vmatprep.subr.mxu0 %v584_v3  ;;  %v596_v38 = vld [vmem:[%s16523_s1 + $0x358] sm:$0xff]  ;;  %v563_v41 = vld [vmem:[%s16523_s1 + $0x250] sm:$0xff]  ;;  %v425_v44 = vld [vmem:[%s12321_s19 + $0x140] sm:$0xff] }
  0x38   : > { %819 = vmatmul.mubr.f32.vlgmr.msra.gmra.mxu1 %v387_v4  ;;  %10219 = vmatpush3.msra.mxu0 %v568_v5  ;;  %v611_v43 = vld [vmem:[%s16523_s1 + $0x3d0] sm:$0xff]  ;;  %v428_v45 = vld [vmem:[%s12321_s19 + $0x158] sm:$0xff]  ;;  %v578_v46 = vld [vmem:[%s16523_s1 + $0x2c8] sm:$0xff] }
  0x39   : > { %10289 = vmatprep.subr.mxu1 %v616_v6  ;;  %693 = vmatprep.mubr.f32.mxu0 %v394_v7  ;;  %v595_v47 = vld [vmem:[%s16523_s1 + $0x350] sm:$0xff]  ;;  %v562_v49 = vld [vmem:[%s16523_s1 + $0x248] sm:$0xff]  ;;  %v577_v52 = vld [vmem:[%s16523_s1 + $0x2c0] sm:$0xff] }
  0x3a   : > { %10290 = vmatpush3.msra.mxu1 %v600_v8  ;;  %694 = vmatmul.mubr.f32.gmra.mxu0 %v393_v9  ;;  %v427_v48 = vld [vmem:[%s12321_s19 + $0x150] sm:$0xff]  ;;  %v610_v50 = vld [vmem:[%s16523_s1 + $0x3c8] sm:$0xff]  ;;  %v433_v54 = vld [vmem:[%s12321_s19 + $0x180] sm:$0xff] }
  0x3b   : > { %823 = vmatprep.mubr.f32.mxu1 %v396_v10  ;;  %10220 = vmatprep.subr.mxu0 %v583_v11  ;;  %v434_v51 = vld [vmem:[%s12321_s19 + $0x188] sm:$0xff]  ;;  %v436_v55 = vld [vmem:[%s12321_s19 + $0x198] sm:$0xff]  ;;  %v561_v56 = vld [vmem:[%s16523_s1 + $0x240] sm:$0xff] }
  0x3c   : > { %824 = vmatmul.mubr.f32.gmra.mxu1 %v395_v12  ;;  %10221 = vmatpush3.msra.mxu0 %v567_v13  ;;  %v594_v53 = vld [vmem:[%s16523_s1 + $0x348] sm:$0xff]  ;;  %v435_v57 = vld [vmem:[%s12321_s19 + $0x190] sm:$0xff]  ;;  %v609_v58 = vld [vmem:[%s16523_s1 + $0x3c0] sm:$0xff] }
  0x3d   : > { %10291 = vmatprep.subr.mxu1 %v615_v14  ;;  %698 = vmatprep.mubr.f32.mxu0 %v402_v15  ;;  %v576_v59 = vld [vmem:[%s16523_s1 + $0x2b8] sm:$0xff]  ;;  %v593_v60 = vld [vmem:[%s16523_s1 + $0x340] sm:$0xff]  ;;  %v442_v61 = vld [vmem:[%s12321_s19 + $0x1c8] sm:$0xff] }
  0x3e   : > { %10222 = vmatprep.subr.mxu0 %v582_v16  ;;  %10292 = vmatpush3.msra.mxu1 %v599_v17  ;;  %v560_v62 = vld [vmem:[%s16523_s1 + $0x238] sm:$0xff]  ;;  %v441_v0 = vld [vmem:[%s12321_s19 + $0x1c0] sm:$0xff]  ;;  %v443_v2 = vld [vmem:[%s12321_s19 + $0x1d0] sm:$0xff] }
  0x3f   : > { %699 = vmatmul.mubr.f32.gmra.mxu0 %v401_v18  ;;  %828 = vmatprep.mubr.f32.mxu1 %v404_v19  ;;  %v444_v63 = vld [vmem:[%s12321_s19 + $0x1d8] sm:$0xff]  ;;  %v575_v3 = vld [vmem:[%s16523_s1 + $0x2b0] sm:$0xff]  ;;  %v450_v5 = vld [vmem:[%s12321_s19 + $0x208] sm:$0xff] }
  0x40   : > { %10223 = vmatpush3.msra.mxu0 %v566_v20  ;;  %829 = vmatmul.mubr.f32.gmra.mxu1 %v403_v21  ;;  %v608_v1 = vld [vmem:[%s16523_s1 + $0x3b8] sm:$0xff]  ;;  %v559_v6 = vld [vmem:[%s16523_s1 + $0x230] sm:$0xff]  ;;  %v449_v8 = vld [vmem:[%s12321_s19 + $0x200] sm:$0xff] }
  0x41   : > { %10293 = vmatprep.subr.mxu1 %v614_v22  ;;  %10224 = vmatprep.subr.mxu0 %v581_v23  ;;  %v592_v4 = vld [vmem:[%s16523_s1 + $0x338] sm:$0xff]  ;;  %v607_v9 = vld [vmem:[%s16523_s1 + $0x3b0] sm:$0xff]  ;;  %v574_v11 = vld [vmem:[%s16523_s1 + $0x2a8] sm:$0xff] }
  0x42   : > { %10294 = vmatpush3.msra.mxu1 %v598_v24  ;;  %703 = vmatprep.mubr.f32.mxu0 %v410_v25  ;;  %v452_v7 = vld [vmem:[%s12321_s19 + $0x218] sm:$0xff]  ;;  %v451_v10 = vld [vmem:[%s12321_s19 + $0x210] sm:$0xff]  ;;  %v558_v13 = vld [vmem:[%s16523_s1 + $0x228] sm:$0xff] }
  0x43   : > { %10225 = vmatpush3.msra.mxu0 %v565_v26  ;;  %833 = vmatprep.mubr.f32.mxu1 %v412_v27  ;;  %v591_v12 = vld [vmem:[%s16523_s1 + $0x330] sm:$0xff]  ;;  %v458_v14 = vld [vmem:[%s12321_s19 + $0x248] sm:$0xff]  ;;  %v457_v16 = vld [vmem:[%s12321_s19 + $0x240] sm:$0xff] }
  0x44   : > { %704 = vmatmul.mubr.f32.gmra.mxu0 %v409_v28  ;;  %10295 = vmatprep.subr.mxu1 %v613_v29  ;;  %v606_v15 = vld [vmem:[%s16523_s1 + $0x3a8] sm:$0xff]  ;;  %v460_v17 = vld [vmem:[%s12321_s19 + $0x258] sm:$0xff]  ;;  %v573_v18 = vld [vmem:[%s16523_s1 + $0x2a0] sm:$0xff] }
  0x45   : > { %834 = vmatmul.mubr.f32.gmra.mxu1 %v411_v30  ;;  %10226 = vmatprep.subr.mxu0 %v580_v31  ;;  %v590_v19 = vld [vmem:[%s16523_s1 + $0x328] sm:$0xff]  ;;  %v459_v20 = vld [vmem:[%s12321_s19 + $0x250] sm:$0xff]  ;;  %v557_v21 = vld [vmem:[%s16523_s1 + $0x220] sm:$0xff] }
  0x46   : > { %10296 = vmatpush3.msra.mxu1 %v597_v32  ;;  %10227 = vmatpush3.msra.mxu0 %v564_v33  ;;  %v605_v22 = vld [vmem:[%s16523_s1 + $0x3a0] sm:$0xff]  ;;  %v466_v23 = vld [vmem:[%s12321_s19 + $0x288] sm:$0xff]  ;;  %v572_v24 = vld [vmem:[%s16523_s1 + $0x298] sm:$0xff] }
  0x47   : > { %708 = vmatprep.mubr.f32.mxu0 %v418_v34  ;;  %10297 = vmatprep.subr.mxu1 %v612_v35  ;;  %v589_v25 = vld [vmem:[%s16523_s1 + $0x320] sm:$0xff]  ;;  %v468_v27 = vld [vmem:[%s12321_s19 + $0x298] sm:$0xff]  ;;  %v467_v29 = vld [vmem:[%s12321_s19 + $0x290] sm:$0xff] }
  0x48   : > { %709 = vmatmul.mubr.f32.gmra.mxu0 %v417_v36  ;;  %838 = vmatprep.mubr.f32.mxu1 %v420_v37  ;;  %v465_v26 = vld [vmem:[%s12321_s19 + $0x280] sm:$0xff]  ;;  %v556_v28 = vld [vmem:[%s16523_s1 + $0x218] sm:$0xff]  ;;  %v474_v32 = vld [vmem:[%s12321_s19 + $0x2c8] sm:$0xff] }
  0x49   : > { %10298 = vmatpush3.msra.mxu1 %v596_v38  ;;  %10228 = vmatprep.subr.mxu0 %v579_v39  ;;  %v604_v30 = vld [vmem:[%s16523_s1 + $0x398] sm:$0xff]  ;;  %v571_v33 = vld [vmem:[%s16523_s1 + $0x290] sm:$0xff]  ;;  %v473_v34 = vld [vmem:[%s12321_s19 + $0x2c0] sm:$0xff] }
  0x4a   : > { %839 = vmatmul.mubr.f32.gmra.mxu1 %v419_v40  ;;  %10229 = vmatpush3.msra.mxu0 %v563_v41  ;;  %v588_v31 = vld [vmem:[%s16523_s1 + $0x318] sm:$0xff]  ;;  %v555_v36 = vld [vmem:[%s16523_s1 + $0x210] sm:$0xff]  ;;  %v570_v39 = vld [vmem:[%s16523_s1 + $0x288] sm:$0xff] }
  0x4b   : > { %713 = vmatprep.mubr.f32.mxu0 %v426_v42  ;;  %10299 = vmatprep.subr.mxu1 %v611_v43  ;;  %v476_v35 = vld [vmem:[%s12321_s19 + $0x2d8] sm:$0xff]  ;;  %v475_v37 = vld [vmem:[%s12321_s19 + $0x2d0] sm:$0xff]  ;;  %v482_v41 = vld [vmem:[%s12321_s19 + $0x308] sm:$0xff] }
  0x4c   : > { %714 = vmatmul.mubr.f32.gmra.mxu0 %v425_v44  ;;  %843 = vmatprep.mubr.f32.mxu1 %v428_v45  ;;  %v603_v38 = vld [vmem:[%s16523_s1 + $0x390] sm:$0xff]  ;;  %v554_v42 = vld [vmem:[%s16523_s1 + $0x208] sm:$0xff]  ;;  %v484_v43 = vld [vmem:[%s12321_s19 + $0x318] sm:$0xff] }
  0x4d   : > { %10230 = vmatprep.subr.mxu0 %v578_v46  ;;  %10300 = vmatpush3.msra.mxu1 %v595_v47  ;;  %v587_v40 = vld [vmem:[%s16523_s1 + $0x310] sm:$0xff]  ;;  %v481_v44 = vld [vmem:[%s12321_s19 + $0x300] sm:$0xff]  ;;  %v602_v45 = vld [vmem:[%s16523_s1 + $0x388] sm:$0xff] }
  0x4e   : > { %844 = vmatmul.mubr.f32.gmra.mxu1 %v427_v48  ;;  %10231 = vmatpush3.msra.mxu0 %v562_v49  ;;  %v483_v46 = vld [vmem:[%s12321_s19 + $0x310] sm:$0xff]  ;;  %v569_v47 = vld [vmem:[%s16523_s1 + $0x280] sm:$0xff]  ;;  %v586_v48 = vld [vmem:[%s16523_s1 + $0x308] sm:$0xff] }
  0x4f   : > { %10301 = vmatprep.subr.mxu1 %v610_v50  ;;  %718 = vmatprep.mubr.f32.mxu0 %v434_v51  ;;  %v553_v49 = vld [vmem:[%s16523_s1 + $0x200] sm:$0xff]  ;;  %v390_v50 = vld [vmem:[%s12321_s19 + $0x28] sm:$0xff] }
  0x50   : > { %10232 = vmatprep.subr.mxu0 %v577_v52  ;;  %10302 = vmatpush3.msra.mxu1 %v594_v53  ;;  %v601_v51 = vld [vmem:[%s16523_s1 + $0x380] sm:$0xff] }
  0x51   : > { %719 = vmatmul.mubr.f32.gmra.mxu0 %v433_v54  ;;  %848 = vmatprep.mubr.f32.mxu1 %v436_v55  ;;  %v389_v52 = vld [vmem:[%s12321_s19 + $0x20] sm:$0xff]  ;;  %v392_v54 = vld [vmem:[%s12321_s19 + $0x38] sm:$0xff]  ;;  %v398_v55 = vld [vmem:[%s12321_s19 + $0x68] sm:$0xff] }
  0x52   : > { %10233 = vmatpush3.msra.mxu0 %v561_v56  ;;  %849 = vmatmul.mubr.f32.gmra.mxu1 %v435_v57  ;;  %v585_v53 = vld [vmem:[%s16523_s1 + $0x300] sm:$0xff]  ;;  %v391_v56 = vld [vmem:[%s12321_s19 + $0x30] sm:$0xff]  ;;  %v400_v57 = vld [vmem:[%s12321_s19 + $0x78] sm:$0xff] }
  0x53   : > { %10303 = vmatprep.subr.mxu1 %v609_v58  ;;  %10234 = vmatprep.subr.mxu0 %v576_v59  ;;  %v397_v58 = vld [vmem:[%s12321_s19 + $0x60] sm:$0xff]  ;;  %v406_v59 = vld [vmem:[%s12321_s19 + $0xa8] sm:$0xff] }
  0x54   : > { %10304 = vmatpush3.msra.mxu1 %v593_v60  ;;  %723 = vmatprep.mubr.f32.mxu0 %v442_v61  ;;  %v399_v60 = vld [vmem:[%s12321_s19 + $0x70] sm:$0xff]  ;;  %v408_v61 = vld [vmem:[%s12321_s19 + $0xb8] sm:$0xff] }
  0x55   : > { %10235 = vmatpush3.msra.mxu0 %v560_v62  ;;  %853 = vmatprep.mubr.f32.mxu1 %v444_v63  ;;  %v405_v62 = vld [vmem:[%s12321_s19 + $0xa0] sm:$0xff]  ;;  %v414_v63 = vld [vmem:[%s12321_s19 + $0xe8] sm:$0xff] }
  0x56   : > { %724 = vmatmul.mubr.f32.gmra.mxu0 %v441_v0  ;;  %10305 = vmatprep.subr.mxu1 %v608_v1  ;;  %v407_v0 = vld [vmem:[%s12321_s19 + $0xb0] sm:$0xff]  ;;  %v416_v1 = vld [vmem:[%s12321_s19 + $0xf8] sm:$0xff] }
  0x57   : > { %854 = vmatmul.mubr.f32.gmra.mxu1 %v443_v2  ;;  %10236 = vmatprep.subr.mxu0 %v575_v3  ;;  %v413_v2 = vld [vmem:[%s12321_s19 + $0xe0] sm:$0xff]  ;;  %v422_v3 = vld [vmem:[%s12321_s19 + $0x128] sm:$0xff] }
  0x58   : > { %10306 = vmatpush3.msra.mxu1 %v592_v4  ;;  %728 = vmatprep.mubr.f32.mxu0 %v450_v5  ;;  %v415_v4 = vld [vmem:[%s12321_s19 + $0xf0] sm:$0xff]  ;;  %v424_v5 = vld [vmem:[%s12321_s19 + $0x138] sm:$0xff] }
  0x59   : > { %10237 = vmatpush3.msra.mxu0 %v559_v6  ;;  %858 = vmatprep.mubr.f32.mxu1 %v452_v7  ;;  %v421_v6 = vld [vmem:[%s12321_s19 + $0x120] sm:$0xff]  ;;  %v430_v7 = vld [vmem:[%s12321_s19 + $0x168] sm:$0xff] }
  0x5a   : > { %729 = vmatmul.mubr.f32.gmra.mxu0 %v449_v8  ;;  %10307 = vmatprep.subr.mxu1 %v607_v9  ;;  %v423_v8 = vld [vmem:[%s12321_s19 + $0x130] sm:$0xff]  ;;  %v432_v9 = vld [vmem:[%s12321_s19 + $0x178] sm:$0xff] }
  0x5b   : > { %859 = vmatmul.mubr.f32.gmra.mxu1 %v451_v10  ;;  %10238 = vmatprep.subr.mxu0 %v574_v11  ;;  %v429_v10 = vld [vmem:[%s12321_s19 + $0x160] sm:$0xff]  ;;  %v438_v11 = vld [vmem:[%s12321_s19 + $0x1a8] sm:$0xff] }
  0x5c   : > { %10308 = vmatpush3.msra.mxu1 %v591_v12  ;;  %10239 = vmatpush3.msra.mxu0 %v558_v13  ;;  %v431_v12 = vld [vmem:[%s12321_s19 + $0x170] sm:$0xff]  ;;  %v440_v13 = vld [vmem:[%s12321_s19 + $0x1b8] sm:$0xff] }
  0x5d   : > { %733 = vmatprep.mubr.f32.mxu0 %v458_v14  ;;  %10309 = vmatprep.subr.mxu1 %v606_v15  ;;  %v437_v14 = vld [vmem:[%s12321_s19 + $0x1a0] sm:$0xff]  ;;  %v446_v15 = vld [vmem:[%s12321_s19 + $0x1e8] sm:$0xff] }
  0x5e   : > { %734 = vmatmul.mubr.f32.gmra.mxu0 %v457_v16  ;;  %863 = vmatprep.mubr.f32.mxu1 %v460_v17  ;;  %v439_v16 = vld [vmem:[%s12321_s19 + $0x1b0] sm:$0xff]  ;;  %v448_v17 = vld [vmem:[%s12321_s19 + $0x1f8] sm:$0xff] }
  0x5f   : > { %10240 = vmatprep.subr.mxu0 %v573_v18  ;;  %10310 = vmatpush3.msra.mxu1 %v590_v19  ;;  %v445_v18 = vld [vmem:[%s12321_s19 + $0x1e0] sm:$0xff]  ;;  %v454_v19 = vld [vmem:[%s12321_s19 + $0x228] sm:$0xff] }
  0x60   : > { %864 = vmatmul.mubr.f32.gmra.mxu1 %v459_v20  ;;  %10241 = vmatpush3.msra.mxu0 %v557_v21  ;;  %v447_v20 = vld [vmem:[%s12321_s19 + $0x1f0] sm:$0xff]  ;;  %v456_v21 = vld [vmem:[%s12321_s19 + $0x238] sm:$0xff] }
  0x61   : > { %10311 = vmatprep.subr.mxu1 %v605_v22  ;;  %738 = vmatprep.mubr.f32.mxu0 %v466_v23  ;;  %v453_v22 = vld [vmem:[%s12321_s19 + $0x220] sm:$0xff]  ;;  %v462_v23 = vld [vmem:[%s12321_s19 + $0x268] sm:$0xff] }
  0x62   : > { %10242 = vmatprep.subr.mxu0 %v572_v24  ;;  %10312 = vmatpush3.msra.mxu1 %v589_v25  ;;  %v455_v24 = vld [vmem:[%s12321_s19 + $0x230] sm:$0xff]  ;;  %v464_v25 = vld [vmem:[%s12321_s19 + $0x278] sm:$0xff] }
  0x63   : > { %739 = vmatmul.mubr.f32.gmra.mxu0 %v465_v26  ;;  %868 = vmatprep.mubr.f32.mxu1 %v468_v27  ;;  %v461_v26 = vld [vmem:[%s12321_s19 + $0x260] sm:$0xff]  ;;  %v470_v27 = vld [vmem:[%s12321_s19 + $0x2a8] sm:$0xff] }
  0x64   : > { %10243 = vmatpush3.msra.mxu0 %v556_v28  ;;  %869 = vmatmul.mubr.f32.gmra.mxu1 %v467_v29  ;;  %v463_v28 = vld [vmem:[%s12321_s19 + $0x270] sm:$0xff]  ;;  %v472_v29 = vld [vmem:[%s12321_s19 + $0x2b8] sm:$0xff] }
  0x65   : > { %10313 = vmatprep.subr.mxu1 %v604_v30  ;;  %743 = vmatprep.mubr.f32.mxu0 %v474_v32  ;;  %v469_v30 = vld [vmem:[%s12321_s19 + $0x2a0] sm:$0xff]  ;;  %v471_v32 = vld [vmem:[%s12321_s19 + $0x2b0] sm:$0xff] }
  0x66   : > { %10314 = vmatpush3.msra.mxu1 %v588_v31  ;;  %10244 = vmatprep.subr.mxu0 %v571_v33  ;;  %v478_v31 = vld [vmem:[%s12321_s19 + $0x2e8] sm:$0xff]  ;;  %v480_v33 = vld [vmem:[%s12321_s19 + $0x2f8] sm:$0xff] }
  0x67   : > { %744 = vmatmul.mubr.f32.gmra.mxu0 %v473_v34  ;;  %873 = vmatprep.mubr.f32.mxu1 %v476_v35  ;;  %v477_v34 = vld [vmem:[%s12321_s19 + $0x2e0] sm:$0xff]  ;;  %v486_v35 = vld [vmem:[%s12321_s19 + $0x328] sm:$0xff] }
  0x68   : > { %10245 = vmatpush3.msra.mxu0 %v555_v36  ;;  %874 = vmatmul.mubr.f32.gmra.mxu1 %v475_v37  ;;  %v479_v36 = vld [vmem:[%s12321_s19 + $0x2f0] sm:$0xff]  ;;  %v488_v37 = vld [vmem:[%s12321_s19 + $0x338] sm:$0xff] }
  0x69   : > { %10315 = vmatprep.subr.mxu1 %v603_v38  ;;  %10246 = vmatprep.subr.mxu0 %v570_v39  ;;  %v485_v38 = vld [vmem:[%s12321_s19 + $0x320] sm:$0xff]  ;;  %v487_v39 = vld [vmem:[%s12321_s19 + $0x330] sm:$0xff]  ;;  %s12030_s19 = smov 64  }
  0x6a   : > { %10316 = vmatpush3.msra.mxu1 %v587_v40  ;;  %748 = vmatprep.mubr.f32.mxu0 %v482_v41  ;;  %v1349_v40 = vld [vmem:[%s16525_s3 + $0xf8] sm:$0xff] }
  0x6b   : > { %10247 = vmatpush3.msra.mxu0 %v554_v42  ;;  %878 = vmatprep.mubr.f32.mxu1 %v484_v43  ;;  %v1333_v41 = vld [vmem:[%s16525_s3 + $0x78] sm:$0xff] }
  0x6c   : > { %749 = vmatmul.mubr.f32.gmra.mxu0 %v481_v44  ;;  %10317 = vmatprep.subr.mxu1 %v602_v45  ;;  %v1381_v42 = vld [vmem:[%s16525_s3 + $0x1f8] sm:$0xff]  ;;  %v1348_v44 = vld [vmem:[%s16525_s3 + $0xf0] sm:$0xff] }
  0x6d   : > { %879 = vmatmul.mubr.f32.gmra.mxu1 %v483_v46  ;;  %10248 = vmatprep.subr.mxu0 %v569_v47  ;;  %v1365_v43 = vld [vmem:[%s16525_s3 + $0x178] sm:$0xff]  ;;  %v1332_v45 = vld [vmem:[%s16525_s3 + $0x70] sm:$0xff]  ;;  %v1347_v47 = vld [vmem:[%s16525_s3 + $0xe8] sm:$0xff] }
  0x6e   : > { %10318 = vmatpush3.msra.mxu1 %v586_v48  ;;  %10249 = vmatpush3.msra.mxu0 %v553_v49  ;;  %v1380_v46 = vld [vmem:[%s16525_s3 + $0x1f0] sm:$0xff]  ;;  %v1331_v49 = vld [vmem:[%s16525_s3 + $0x68] sm:$0xff] }
  0x6f   : > { %948 = vmatprep.mubr.f32.mxu0 %v390_v50  ;;  %10319 = vmatprep.subr.mxu1 %v601_v51  ;;  %v1364_v48 = vld [vmem:[%s16525_s3 + $0x170] sm:$0xff]  ;;  %v1379_v50 = vld [vmem:[%s16525_s3 + $0x1e8] sm:$0xff]  ;;  %v1346_v51 = vld [vmem:[%s16525_s3 + $0xe0] sm:$0xff] }
  0x70   : > { %949 = vmatmul.mubr.f32.vlgmr.msra.gmra.mxu0 %v389_v52  ;;  %10320 = vmatpush3.msra.mxu1 %v585_v53  ;;  %v1363_v52 = vld [vmem:[%s16525_s3 + $0x168] sm:$0xff]  ;;  %v1330_v53 = vld [vmem:[%s16525_s3 + $0x60] sm:$0xff] }
  0x71   : > { %1078 = vmatprep.mubr.f32.mxu1 %v392_v54  ;;  %953 = vmatprep.mubr.f32.mxu0 %v398_v55  ;;  %v1378_v54 = vld [vmem:[%s16525_s3 + $0x1e0] sm:$0xff]  ;;  %v1345_v55 = vld [vmem:[%s16525_s3 + $0xd8] sm:$0xff] }
  0x72   : > { %1079 = vmatmul.mubr.f32.vlgmr.msra.gmra.mxu1 %v391_v56  ;;  %10360 = vmatprep.subr.mxu0 %v1349_v40  ;;  %v1362_v56 = vld [vmem:[%s16525_s3 + $0x160] sm:$0xff]  ;;  %v12029_v40 = vmov 0.0  }
  0x73   : > { %1083 = vmatprep.mubr.f32.mxu1 %v400_v57  ;;  %10361 = vmatpush3.msra.mxu0 %v1333_v41  ;;  %v1329_v57 = vld [vmem:[%s16525_s3 + $0x58] sm:$0xff]  ;;  %1171 = vst [vmem:[#allocation3 + $0x10] sm:$0xff] %v12029_v40  ;;  %1170 = vst [vmem:[#allocation3 + $0xe8] sm:$0xff] %v12029_v40 }
  0x74   : > { %954 = vmatmul.mubr.f32.gmra.mxu0 %v397_v58  ;;  %10428 = vmatprep.subr.mxu1 %v1381_v42  ;;  %v1377_v58 = vld [vmem:[%s16525_s3 + $0x1d8] sm:$0xff]  ;;  %1172 = vst [vmem:[#allocation3 + $0x170] sm:$0xff] %v12029_v40  ;;  %1173 = vst [vmem:[#allocation3 + $0xa0] sm:$0xff] %v12029_v40 }
  0x75   : > { %958 = vmatprep.mubr.f32.mxu0 %v406_v59  ;;  %10429 = vmatpush3.msra.mxu1 %v1365_v43  ;;  %v1361_v59 = vld [vmem:[%s16525_s3 + $0x158] sm:$0xff]  ;;  %1664 = vst [vmem:[#allocation5 + $0x140] sm:$0xff] %v12029_v40  ;;  %1665 = vst [vmem:[#allocation5 + $0x148] sm:$0xff] %v12029_v40 }
  0x76   : > { %1084 = vmatmul.mubr.f32.gmra.mxu1 %v399_v60  ;;  %10362 = vmatprep.subr.mxu0 %v1348_v44  ;;  %v1344_v60 = vld [vmem:[%s16525_s3 + $0xd0] sm:$0xff]  ;;  %1666 = vst [vmem:[#allocation5 + $0x150] sm:$0xff] %v12029_v40  ;;  %1667 = vst [vmem:[#allocation5 + $0x158] sm:$0xff] %v12029_v40 }
  0x77   : > { %1088 = vmatprep.mubr.f32.mxu1 %v408_v61  ;;  %10363 = vmatpush3.msra.mxu0 %v1332_v45  ;;  %v1328_v61 = vld [vmem:[%s16525_s3 + $0x50] sm:$0xff] }
  0x78   : > { %959 = vmatmul.mubr.f32.gmra.mxu0 %v405_v62  ;;  %10430 = vmatprep.subr.mxu1 %v1380_v46  ;;  %v1376_v62 = vld [vmem:[%s16525_s3 + $0x1d0] sm:$0xff] }
  0x79   : > { %963 = vmatprep.mubr.f32.mxu0 %v414_v63  ;;  %10364 = vmatprep.subr.mxu0 %v1347_v47  ;;  %v1343_v63 = vld [vmem:[%s16525_s3 + $0xc8] sm:$0xff] }
  0x7a   : > { %1089 = vmatmul.mubr.f32.gmra.mxu1 %v407_v0  ;;  %10365 = vmatpush3.msra.mxu0 %v1331_v49  ;;  %v1360_v0 = vld [vmem:[%s16525_s3 + $0x150] sm:$0xff] }
  0x7b   : > { %1093 = vmatprep.mubr.f32.mxu1 %v416_v1  ;;  %10431 = vmatpush3.msra.mxu1 %v1364_v48  ;;  %v1327_v1 = vld [vmem:[%s16525_s3 + $0x48] sm:$0xff] }
  0x7c   : > { %964 = vmatmul.mubr.f32.gmra.mxu0 %v413_v2  ;;  %10432 = vmatprep.subr.mxu1 %v1379_v50  ;;  %v1342_v2 = vld [vmem:[%s16525_s3 + $0xc0] sm:$0xff] }
  0x7d   : > { %968 = vmatprep.mubr.f32.mxu0 %v422_v3  ;;  %10366 = vmatprep.subr.mxu0 %v1346_v51  ;;  %v1326_v3 = vld [vmem:[%s16525_s3 + $0x40] sm:$0xff] }
  0x7e   : > { %1094 = vmatmul.mubr.f32.gmra.mxu1 %v415_v4  ;;  %10367 = vmatpush3.msra.mxu0 %v1330_v53  ;;  %v1375_v4 = vld [vmem:[%s16525_s3 + $0x1c8] sm:$0xff] }
  0x7f   : > { %1098 = vmatprep.mubr.f32.mxu1 %v424_v5  ;;  %10433 = vmatpush3.msra.mxu1 %v1363_v52  ;;  %v1341_v5 = vld [vmem:[%s16525_s3 + $0xb8] sm:$0xff] }
  0x80   : > { %969 = vmatmul.mubr.f32.gmra.mxu0 %v421_v6  ;;  %10434 = vmatprep.subr.mxu1 %v1378_v54  ;;  %v1359_v6 = vld [vmem:[%s16525_s3 + $0x148] sm:$0xff] }
  0x81   : > { %973 = vmatprep.mubr.f32.mxu0 %v430_v7  ;;  %10368 = vmatprep.subr.mxu0 %v1345_v55  ;;  %v1325_v7 = vld [vmem:[%s16525_s3 + $0x38] sm:$0xff] }
  0x82   : > { %1099 = vmatmul.mubr.f32.gmra.mxu1 %v423_v8  ;;  %10369 = vmatpush3.msra.mxu0 %v1329_v57  ;;  %v1374_v8 = vld [vmem:[%s16525_s3 + $0x1c0] sm:$0xff] }
  0x83   : > { %1103 = vmatprep.mubr.f32.mxu1 %v432_v9  ;;  %10435 = vmatpush3.msra.mxu1 %v1362_v56  ;;  %v1340_v9 = vld [vmem:[%s16525_s3 + $0xb0] sm:$0xff] }
  0x84   : > { %974 = vmatmul.mubr.f32.gmra.mxu0 %v429_v10  ;;  %10436 = vmatprep.subr.mxu1 %v1377_v58  ;;  %v1358_v10 = vld [vmem:[%s16525_s3 + $0x140] sm:$0xff] }
  0x85   : > { %978 = vmatprep.mubr.f32.mxu0 %v438_v11  ;;  %10437 = vmatpush3.msra.mxu1 %v1361_v59  ;;  %v1324_v11 = vld [vmem:[%s16525_s3 + $0x30] sm:$0xff] }
  0x86   : > { %1104 = vmatmul.mubr.f32.gmra.mxu1 %v431_v12  ;;  %10370 = vmatprep.subr.mxu0 %v1344_v60  ;;  %v1373_v12 = vld [vmem:[%s16525_s3 + $0x1b8] sm:$0xff] }
  0x87   : > { %1108 = vmatprep.mubr.f32.mxu1 %v440_v13  ;;  %10438 = vmatprep.subr.mxu1 %v1376_v62  ;;  %v1339_v13 = vld [vmem:[%s16525_s3 + $0xa8] sm:$0xff] }
  0x88   : > { %979 = vmatmul.mubr.f32.gmra.mxu0 %v437_v14  ;;  %10439 = vmatpush3.msra.mxu1 %v1360_v0  ;;  %v1357_v14 = vld [vmem:[%s16525_s3 + $0x138] sm:$0xff] }
  0x89   : > { %983 = vmatprep.mubr.f32.mxu0 %v446_v15  ;;  %10371 = vmatpush3.msra.mxu0 %v1328_v61  ;;  %v1323_v15 = vld [vmem:[%s16525_s3 + $0x28] sm:$0xff] }
  0x8a   : > { %1109 = vmatmul.mubr.f32.gmra.mxu1 %v439_v16  ;;  %10372 = vmatprep.subr.mxu0 %v1343_v63  ;;  %v1372_v16 = vld [vmem:[%s16525_s3 + $0x1b0] sm:$0xff] }
  0x8b   : > { %1113 = vmatprep.mubr.f32.mxu1 %v448_v17  ;;  %10373 = vmatpush3.msra.mxu0 %v1327_v1  ;;  %v1338_v17 = vld [vmem:[%s16525_s3 + $0xa0] sm:$0xff] }
  0x8c   : > { %984 = vmatmul.mubr.f32.gmra.mxu0 %v445_v18  ;;  %10374 = vmatprep.subr.mxu0 %v1342_v2  ;;  %v1356_v18 = vld [vmem:[%s16525_s3 + $0x130] sm:$0xff] }
  0x8d   : > { %988 = vmatprep.mubr.f32.mxu0 %v454_v19  ;;  %10375 = vmatpush3.msra.mxu0 %v1326_v3  ;;  %v1322_v19 = vld [vmem:[%s16525_s3 + $0x20] sm:$0xff] }
  0x8e   : > { %1114 = vmatmul.mubr.f32.gmra.mxu1 %v447_v20  ;;  %10440 = vmatprep.subr.mxu1 %v1375_v4  ;;  %v1371_v20 = vld [vmem:[%s16525_s3 + $0x1a8] sm:$0xff] }
  0x8f   : > { %1118 = vmatprep.mubr.f32.mxu1 %v456_v21  ;;  %10376 = vmatprep.subr.mxu0 %v1341_v5  ;;  %v1337_v21 = vld [vmem:[%s16525_s3 + $0x98] sm:$0xff] }
  0x90   : > { %989 = vmatmul.mubr.f32.gmra.mxu0 %v453_v22  ;;  %10441 = vmatpush3.msra.mxu1 %v1359_v6  ;;  %v1355_v22 = vld [vmem:[%s16525_s3 + $0x128] sm:$0xff] }
  0x91   : > { %993 = vmatprep.mubr.f32.mxu0 %v462_v23  ;;  %10377 = vmatpush3.msra.mxu0 %v1325_v7  ;;  %v1321_v23 = vld [vmem:[%s16525_s3 + $0x18] sm:$0xff] }
  0x92   : > { %1119 = vmatmul.mubr.f32.gmra.mxu1 %v455_v24  ;;  %10442 = vmatprep.subr.mxu1 %v1374_v8  ;;  %v1370_v24 = vld [vmem:[%s16525_s3 + $0x1a0] sm:$0xff] }
  0x93   : > { %1123 = vmatprep.mubr.f32.mxu1 %v464_v25  ;;  %10378 = vmatprep.subr.mxu0 %v1340_v9  ;;  %v1336_v25 = vld [vmem:[%s16525_s3 + $0x90] sm:$0xff] }
  0x94   : > { %994 = vmatmul.mubr.f32.gmra.mxu0 %v461_v26  ;;  %10443 = vmatpush3.msra.mxu1 %v1358_v10  ;;  %v1354_v26 = vld [vmem:[%s16525_s3 + $0x120] sm:$0xff] }
  0x95   : > { %998 = vmatprep.mubr.f32.mxu0 %v470_v27  ;;  %10379 = vmatpush3.msra.mxu0 %v1324_v11  ;;  %v1320_v27 = vld [vmem:[%s16525_s3 + $0x10] sm:$0xff] }
  0x96   : > { %1124 = vmatmul.mubr.f32.gmra.mxu1 %v463_v28  ;;  %10444 = vmatprep.subr.mxu1 %v1373_v12  ;;  %v1369_v28 = vld [vmem:[%s16525_s3 + $0x198] sm:$0xff] }
  0x97   : > { %1128 = vmatprep.mubr.f32.mxu1 %v472_v29  ;;  %10380 = vmatprep.subr.mxu0 %v1339_v13  ;;  %v1335_v29 = vld [vmem:[%s16525_s3 + $0x88] sm:$0xff] }
  0x98   : > { %999 = vmatmul.mubr.f32.gmra.mxu0 %v469_v30  ;;  %10445 = vmatpush3.msra.mxu1 %v1357_v14  ;;  %v1353_v30 = vld [vmem:[%s16525_s3 + $0x118] sm:$0xff] }
  0x99   : > { %1003 = vmatprep.mubr.f32.mxu0 %v478_v31  ;;  %10381 = vmatpush3.msra.mxu0 %v1323_v15  ;;  %v1319_v31 = vld [vmem:[%s16525_s3 + $0x8] sm:$0xff] }
  0x9a   : > { %1129 = vmatmul.mubr.f32.gmra.mxu1 %v471_v32  ;;  %10446 = vmatprep.subr.mxu1 %v1372_v16  ;;  %v1368_v32 = vld [vmem:[%s16525_s3 + $0x190] sm:$0xff] }
  0x9b   : > { %1133 = vmatprep.mubr.f32.mxu1 %v480_v33  ;;  %10382 = vmatprep.subr.mxu0 %v1338_v17  ;;  %v1334_v33 = vld [vmem:[%s16525_s3 + $0x80] sm:$0xff] }
  0x9c   : > { %1004 = vmatmul.mubr.f32.gmra.mxu0 %v477_v34  ;;  %10447 = vmatpush3.msra.mxu1 %v1356_v18  ;;  %v1352_v34 = vld [vmem:[%s16525_s3 + $0x110] sm:$0xff] }
  0x9d   : > { %1008 = vmatprep.mubr.f32.mxu0 %v486_v35  ;;  %10383 = vmatpush3.msra.mxu0 %v1322_v19  ;;  %v1318_v35 = vld [vmem:[%s16525_s3] sm:$0xff] }
  0x9e   : > { %1134 = vmatmul.mubr.f32.gmra.mxu1 %v479_v36  ;;  %10448 = vmatprep.subr.mxu1 %v1371_v20  ;;  %v1367_v36 = vld [vmem:[%s16525_s3 + $0x188] sm:$0xff] }
  0x9f   : > { %1138 = vmatprep.mubr.f32.mxu1 %v488_v37  ;;  %10384 = vmatprep.subr.mxu0 %v1337_v21  ;;  %v1351_v37 = vld [vmem:[%s16525_s3 + $0x108] sm:$0xff] }
  0xa0   : > { %1009 = vmatmul.mubr.f32.gmra.mxu0 %v485_v38  ;;  %10449 = vmatpush3.msra.mxu1 %v1355_v22  ;;  %v1366_v38 = vld [vmem:[%s16525_s3 + $0x180] sm:$0xff] }
  0xa1   : > { %10385 = vmatpush3.msra.mxu0 %v1321_v23  ;;  %10450 = vmatprep.subr.mxu1 %v1370_v24  ;;  %v12908_v24 = vld [vmem:[%s16524_s2] ss:$0 sm:$0xff] }
  0xa2   : > { %1139 = vmatmul.mubr.f32.gmra.mxu1 %v487_v39  ;;  %10386 = vmatprep.subr.mxu0 %v1336_v25  ;;  %v1350_v39 = vld [vmem:[%s16525_s3 + $0x100] sm:$0xff] }
  0xa3   : > { %10451 = vmatpush3.msra.mxu1 %v1354_v26  ;;  %10387 = vmatpush3.msra.mxu0 %v1320_v27 }
  0xa4   : > { %10452 = vmatprep.subr.mxu1 %v1369_v28  ;;  %10388 = vmatprep.subr.mxu0 %v1335_v29 }
  0xa5   : > { %10453 = vmatpush3.msra.mxu1 %v1353_v30  ;;  %10389 = vmatpush3.msra.mxu0 %v1319_v31 }
  0xa6   : > { %10454 = vmatprep.subr.mxu1 %v1368_v32  ;;  %10390 = vmatprep.subr.mxu0 %v1334_v33 }
  0xa7   : > { %10455 = vmatpush3.msra.mxu1 %v1352_v34  ;;  %10391 = vmatpush3.msra.mxu0 %v1318_v35 }
  0xa8   : > { %10456 = vmatprep.subr.mxu1 %v1367_v36 }
  0xa9   : > { %10457 = vmatpush3.msra.mxu1 %v1351_v37 }
  0xaa   : > { %10458 = vmatprep.subr.mxu1 %v1366_v38 }
  0xab   : > { %10459 = vmatpush3.msra.mxu1 %v1350_v39 }
  0xf6   : > { %v10108_v41 = vpop.f32.mrf.mxu0 }
  0xf8   : > { %v10179_v42 = vpop.f32.mrf.mxu1  ;;  %v10109_v43 = vpop.f32.mrf.mxu0 }
  0xf9   : > { %v10110_v26 = vadd.f32 %v10109_v43, %v10108_v41 }
  0xfa   : > { %v10180_v44 = vpop.f32.mrf.mxu1  ;;  %v10111_v45 = vpop.f32.mrf.mxu0 }
  0xfb   : > { %v691_v31 = vadd.f32 %v10110_v26, %v12908_v24  ;;  %v10181_v34 = vadd.f32 %v10180_v44, %v10179_v42 }
  0xfc   : > { %v10182_v46 = vpop.f32.mrf.mxu1  ;;  %v10112_v47 = vpop.f32.mrf.mxu0 }
  0xfd   : > { %v10113_v29 = vadd.f32 %v10112_v47, %v10111_v45  ;;  %v821_v38 = vadd.f32 %v10181_v34, %v691_v31 }
  0xfe   : > { %v10183_v48 = vpop.f32.mrf.mxu1 }
  0xff   : > { %v10114_v49 = vpop.f32.mrf.mxu0  ;;  %v696_v35 = vadd.f32 %v10113_v29, %v12908_v24  ;;  %v10184_v41 = vadd.f32 %v10183_v48, %v10182_v46 }
 0x100   : > { %v12835_v50 = vpop.f32.mrf.mxu1 }
 0x101   : > { %v10115_v51 = vpop.f32.mrf.mxu0  ;;  %v826_v47 = vadd.f32 %v10184_v41, %v696_v35 }
 0x102   : > { %v12837_v52 = vpop.f32.mrf.mxu1  ;;  %v10116_v39 = vadd.f32 %v10115_v51, %v10114_v49 }
 0x103   : > { %v10187_v31 = vadd.f32 %v12837_v52, %v12835_v50 }
 0x104   : > { %v10117_v53 = vpop.f32.mrf.mxu0  ;;  %v701_v26 = vadd.f32 %v10116_v39, %v12908_v24 }
 0x105   : > { %v12839_v54 = vpop.f32.mrf.mxu1 }
 0x106   : > { %v10118_v55 = vpop.f32.mrf.mxu0  ;;  %v831_v35 = vadd.f32 %v10187_v31, %v701_v26 }
 0x107   : > { %v12841_v56 = vpop.f32.mrf.mxu1 }
 0x108   : > { %v12843_v57 = vpop.f32.mrf.mxu0  ;;  %v10190_v50 = vadd.f32 %v12841_v56, %v12839_v54 }
 0x10a   : > { %v12845_v58 = vpop.f32.mrf.mxu1  ;;  %v12847_v59 = vpop.f32.mrf.mxu0 }
 0x10b   : > { %v10122_v48 = vadd.f32 %v12847_v59, %v12843_v57 }
 0x10c   : > { %v12849_v60 = vpop.f32.mrf.mxu1  ;;  %v12851_v61 = vpop.f32.mrf.mxu0 }
 0x10d   : > { %v711_v57 = vadd.f32 %v10122_v48, %v12908_v24  ;;  %v10193_v54 = vadd.f32 %v12849_v60, %v12845_v58 }
 0x10e   : > { %v12853_v62 = vpop.f32.mrf.mxu1  ;;  %v12855_v63 = vpop.f32.mrf.mxu0 }
 0x110   : > { %v12857_v0 = vpop.f32.mrf.mxu1 }
 0x111   : > { %v12859_v1 = vpop.f32.mrf.mxu0  ;;  %v10196_v31 = vadd.f32 %v12857_v0, %v12853_v62 }
 0x112   : > { %v12861_v2 = vpop.f32.mrf.mxu1 }
 0x113   : > { %v12863_v3 = vpop.f32.mrf.mxu0 }
 0x114   : > { %v12865_v4 = vpop.f32.mrf.mxu1 }
 0x116   : > { %v12867_v5 = vpop.f32.mrf.mxu0 }
 0x117   : > { %v12869_v6 = vpop.f32.mrf.mxu1 }
 0x118   : > { %v12871_v7 = vpop.f32.mrf.mxu0 }
 0x119   : > { %v12873_v8 = vpop.f32.mrf.mxu1 }
 0x11a   : > { %v12875_v9 = vpop.f32.mrf.mxu0 }
 0x11b   : > { %v12877_v10 = vpop.f32.mrf.mxu1 }
 0x11c   : > { %v12879_v11 = vpop.f32.mrf.mxu0 }
 0x11d   : > { %v12881_v12 = vpop.f32.mrf.mxu1 }
 0x11e   : > { %v12883_v13 = vpop.f32.mrf.mxu0 }
 0x120   : > { %v12885_v14 = vpop.f32.mrf.mxu1  ;;  %v12887_v15 = vpop.f32.mrf.mxu0 }
 0x122   : > { %v12889_v16 = vpop.f32.mrf.mxu1 }
 0x123   : > { %v12891_v17 = vpop.f32.mrf.mxu0 }
 0x124   : > { %v12893_v18 = vpop.f32.mrf.mxu1 }
 0x125   : > { %v12895_v19 = vpop.f32.mrf.mxu0 }
 0x126   : > { %v12897_v20 = vpop.f32.mrf.mxu1 }
 0x127   : > { %v12899_v21 = vpop.f32.mrf.mxu0 }
 0x128   : > { %v12901_v22 = vpop.f32.mrf.mxu1 }
 0x129   : > { %16539 = vst [vmem:[#allocation13_spill] sm:$0xff] %v12901_v22  ;;  %v12903_v23 = vpop.f32.mrf.mxu0 }
 0x12a   : > { %v12910_v25 = vpop.f32.mrf.mxu1 }
 0x12b   : > { %16540 = vst [vmem:[#allocation14_spill] sm:$0xff] %v12910_v25 }
 0x12c   : > { %v12912_v27 = vpop.f32.mrf.mxu0 }
 0x12d   : > { %16541 = vst [vmem:[#allocation15_spill] sm:$0xff] %v12912_v27  ;;  %v12914_v28 = vpop.f32.mrf.mxu1 }
 0x12e   : > { %16542 = vst [vmem:[#allocation16_spill] sm:$0xff] %v12914_v28  ;;  %v12916_v30 = vpop.f32.mrf.mxu0 }
 0x12f   : > { %16543 = vst [vmem:[#allocation17_spill] sm:$0xff] %v12916_v30  ;;  %v12919_v32 = vpop.f32.mrf.mxu1 }
 0x130   : > { %16544 = vst [vmem:[#allocation18_spill] sm:$0xff] %v12919_v32  ;;  %v10250_v33 = vpop.f32.mrf.mxu0  ;;  %v10119_v32 = vadd.f32 %v10118_v55, %v10117_v53 }
 0x132   : > { %v10321_v36 = vpop.f32.mrf.mxu1  ;;  %v10251_v37 = vpop.f32.mrf.mxu0 }
 0x133   : > { %v10252_v40 = vadd.f32 %v10251_v37, %v10250_v33 }
 0x134   : > { %v10322_v43 = vpop.f32.mrf.mxu1  ;;  %v10253_v25 = vpop.f32.mrf.mxu0 }
 0x135   : > { %v951_v28 = vadd.f32 %v10252_v40, %v821_v38  ;;  %v10323_v45 = vadd.f32 %v10322_v43, %v10321_v36  ;;  %v706_v36 = vadd.f32 %v10119_v32, %v12908_v24  ;;  %v10125_v32 = vadd.f32 %v12855_v63, %v12851_v61 }
 0x136   : > { %v10324_v22 = vpop.f32.mrf.mxu1  ;;  %v10254_v30 = vpop.f32.mrf.mxu0  ;;  %v10128_v63 = vadd.f32 %v12863_v3, %v12859_v1 }
 0x137   : > { %v1081_v27 = vadd.f32 %v10323_v45, %v951_v28  ;;  %v10255_v42 = vadd.f32 %v10254_v30, %v10253_v25  ;;  %v836_v37 = vadd.f32 %v10190_v50, %v706_v36  ;;  %v716_v61 = vadd.f32 %v10125_v32, %v12908_v24 }
 0x138   : > { %v10325_v44 = vpop.f32.mrf.mxu1  ;;  %v10256_v29 = vpop.f32.mrf.mxu0  ;;  %v721_v36 = vadd.f32 %v10128_v63, %v12908_v24 }
 0x139   : > { %v1144_v49 = vmax.f32 %v1081_v27, 0.0  ;;  %v956_v51 = vadd.f32 %v10255_v42, %v826_v47  ;;  %v10326_v46 = vadd.f32 %v10325_v44, %v10324_v22  ;;  %v841_v47 = vadd.f32 %v10193_v54, %v711_v57 }
 0x13a   : > { %v10327_v33 = vpop.f32.mrf.mxu1  ;;  %v10257_v34 = vpop.f32.mrf.mxu0 }
 0x13b   : > { %1157 = vst [vmem:[#allocation2] sm:$0xff] %v1144_v49  ;;  %v12928_v53 = vadd.f32 %v10326_v46, %v956_v51  ;;  %v10258_v55 = vadd.f32 %v10257_v34, %v10256_v29 }
 0x13c   : > { %v10328_v25 = vpop.f32.mrf.mxu1  ;;  %v10259_v28 = vpop.f32.mrf.mxu0 }
 0x13d   : > { %v1145_v52 = vmax.f32 %v12928_v53, 0.0  ;;  %v961_v22 = vadd.f32 %v10258_v55, %v831_v35  ;;  %v10329_v27 = vadd.f32 %v10328_v25, %v10327_v33  ;;  %v10131_v33 = vadd.f32 %v12871_v7, %v12867_v5 }
 0x13e   : > { %v10330_v59 = vpop.f32.mrf.mxu1  ;;  %v10260_v30 = vpop.f32.mrf.mxu0  ;;  %v846_v35 = vadd.f32 %v10196_v31, %v716_v61 }
 0x13f   : > { %1158 = vst [vmem:[#allocation2 + $0x8] sm:$0xff] %v1145_v52  ;;  %v12938_v38 = vadd.f32 %v10329_v27, %v961_v22  ;;  %v10261_v39 = vadd.f32 %v10260_v30, %v10259_v28  ;;  %v10199_v28 = vadd.f32 %v12865_v4, %v12861_v2  ;;  %v726_v22 = vadd.f32 %v10131_v33, %v12908_v24 }
 0x140   : > { %v10331_v56 = vpop.f32.mrf.mxu1  ;;  %v10262_v40 = vpop.f32.mrf.mxu0  ;;  %v10134_v27 = vadd.f32 %v12879_v11, %v12875_v9  ;;  %v10202_v4 = vadd.f32 %v12873_v8, %v12869_v6  ;;  %v10137_v6 = vadd.f32 %v12887_v15, %v12883_v13 }
 0x141   : > { %v1146_v41 = vmax.f32 %v12938_v38, 0.0  ;;  %v966_v43 = vadd.f32 %v10261_v39, %v836_v37  ;;  %v10332_v45 = vadd.f32 %v10331_v56, %v10330_v59  ;;  %v851_v39 = vadd.f32 %v10199_v28, %v721_v36 }
 0x142   : > { %v10333_v26 = vpop.f32.mrf.mxu1  ;;  %v10263_v42 = vpop.f32.mrf.mxu0 }
 0x143   : > { %1159 = vst [vmem:[#allocation2 + $0x10] sm:$0xff] %v1146_v41  ;;  %v12948_v44 = vadd.f32 %v10332_v45, %v966_v43  ;;  %v10264_v58 = vadd.f32 %v10263_v42, %v10262_v40  ;;  %v856_v43 = vadd.f32 %v10202_v4, %v726_v22  ;;  %v731_v45 = vadd.f32 %v10134_v27, %v12908_v24 }
 0x144   : > { %v10334_v60 = vpop.f32.mrf.mxu1  ;;  %v10265_v29 = vpop.f32.mrf.mxu0 }
 0x145   : > { %v1147_v51 = vmax.f32 %v12948_v44, 0.0  ;;  %v971_v46 = vadd.f32 %v10264_v58, %v841_v47  ;;  %v10335_v48 = vadd.f32 %v10334_v60, %v10333_v26 }
 0x146   : > { %v10266_v34 = vpop.f32.mrf.mxu0  ;;  %v10336_v1 = vpop.f32.mrf.mxu1  ;;  %v1198_v3 = vld [vmem:[#allocation2 + $0x1] sm:$0xff] }
 0x147   : > { %1160 = vst [vmem:[#allocation2 + $0x18] sm:$0xff] %v1147_v51  ;;  %v12958_v55 = vadd.f32 %v10335_v48, %v971_v46  ;;  %v10267_v25 = vadd.f32 %v10266_v34, %v10265_v29  ;;  %1453 = vmatprep.mubr.f32.mxu0 %v1198_v3  ;;  %v10140_v46 = vadd.f32 %v12895_v19, %v12891_v17 }
 0x148   : > { %v10268_v62 = vpop.f32.mrf.mxu0  ;;  %v10337_v0 = vpop.f32.mrf.mxu1  ;;  %1454 = vmatmul.mubr.f32.vlgmr.msra.gmra.mxu0 %v1144_v49  ;;  %v10208_v17 = vadd.f32 %v12889_v16, %v12885_v14  ;;  %v10211_v16 = vadd.f32 %v12897_v20, %v12893_v18  ;;  %v16546_v18 = vld [vmem:[#allocation17_spill] sm:$0xff] }
 0x149   : > { %v1148_v5 = vmax.f32 %v12958_v55, 0.0  ;;  %v976_v7 = vadd.f32 %v10267_v25, %v846_v35  ;;  %v10338_v50 = vadd.f32 %v10337_v0, %v10336_v1  ;;  %v10143_v0 = vadd.f32 %v12903_v23, %v12899_v21 }
 0x14a   : > { %v1222_v57 = vld [vmem:[#allocation2 + $0xa] sm:$0xff]  ;;  %v10269_v59 = vpop.f32.mrf.mxu0  ;;  %v10339_v30 = vpop.f32.mrf.mxu1 }
 0x14b   : > { %v1199_v37 = vld [vmem:[#allocation2 + $0x9] sm:$0xff]  ;;  %1161 = vst [vmem:[#allocation2 + $0x20] sm:$0xff] %v1148_v5  ;;  %v12968_v49 = vadd.f32 %v10338_v50, %v976_v7  ;;  %v10270_v2 = vadd.f32 %v10269_v59, %v10268_v62  ;;  %v741_v62 = vadd.f32 %v10140_v46, %v12908_v24 }
 0x14c   : > { %v1246_v32 = vld [vmem:[#allocation2 + $0xb] sm:$0xff]  ;;  %1458 = vmatprep.mubr.f32.mxu0 %v1199_v37  ;;  %v10271_v54 = vpop.f32.mrf.mxu0  ;;  %v10340_v56 = vpop.f32.mrf.mxu1 }
 0x14d   : > { %1578 = vmatprep.mubr.f32.mxu1 %v1246_v32  ;;  %1459 = vmatmul.mubr.f32.gmra.mxu0 %v1145_v52  ;;  %v1149_v9 = vmax.f32 %v12968_v49, 0.0  ;;  %v981_v11 = vadd.f32 %v10270_v2, %v851_v39  ;;  %v10341_v40 = vadd.f32 %v10340_v56, %v10339_v30  ;;  %v10205_v52 = vadd.f32 %v12881_v12, %v12877_v10 }
 0x14e   : > { %1579 = vmatmul.mubr.f32.vlgmr.msra.gmra.mxu1 %v1222_v57  ;;  %v10272_v47 = vpop.f32.mrf.mxu0  ;;  %v10342_v26 = vpop.f32.mrf.mxu1  ;;  %v1200_v42 = vld [vmem:[#allocation2 + $0x11] sm:$0xff]  ;;  %v736_v10 = vadd.f32 %v10137_v6, %v12908_v24  ;;  %v871_v37 = vadd.f32 %v10211_v16, %v741_v62  ;;  %v746_v32 = vadd.f32 %v10143_v0, %v12908_v24 }
 0x14f   : > { %v1247_v61 = vld [vmem:[#allocation2 + $0x13] sm:$0xff]  ;;  %1162 = vst [vmem:[#allocation2 + $0x28] sm:$0xff] %v1149_v9  ;;  %v12980_v8 = vadd.f32 %v10341_v40, %v981_v11  ;;  %v10273_v53 = vadd.f32 %v10272_v47, %v10271_v54  ;;  %1463 = vmatprep.mubr.f32.mxu0 %v1200_v42  ;;  %v861_v31 = vadd.f32 %v10205_v52, %v731_v45  ;;  %v16545_v11 = vld [vmem:[#allocation15_spill] sm:$0xff] }
 0x150   : > { %v1223_v63 = vld [vmem:[#allocation2 + $0x12] sm:$0xff]  ;;  %1583 = vmatprep.mubr.f32.mxu1 %v1247_v61  ;;  %v10274_v58 = vpop.f32.mrf.mxu0  ;;  %v10343_v60 = vpop.f32.mrf.mxu1  ;;  %v866_v44 = vadd.f32 %v10208_v17, %v736_v10  ;;  %v10146_v20 = vadd.f32 %v16546_v18, %v16545_v11 }
 0x151   : > { %1464 = vmatmul.mubr.f32.gmra.mxu0 %v1146_v41  ;;  %v1150_v29 = vmax.f32 %v12980_v8, 0.0  ;;  %v986_v13 = vadd.f32 %v10273_v53, %v856_v43  ;;  %v10344_v15 = vadd.f32 %v10343_v60, %v10342_v26  ;;  %v16547_v40 = vld [vmem:[#allocation13_spill] sm:$0xff]  ;;  %v16548_v43 = vld [vmem:[#allocation14_spill] sm:$0xff] }
 0x152   : > { %1584 = vmatmul.mubr.f32.gmra.mxu1 %v1223_v63  ;;  %v10275_v48 = vpop.f32.mrf.mxu0  ;;  %v10345_v33 = vpop.f32.mrf.mxu1  ;;  %v1201_v34 = vld [vmem:[#allocation2 + $0x19] sm:$0xff]  ;;  %v10214_v45 = vadd.f32 %v16548_v43, %v16547_v40  ;;  %v2036_v40 = vld [vmem:[%s16527_s5 + $0x68] sm:$0xff] }
 0x153   : > { %v1248_v1 = vld [vmem:[#allocation2 + $0x1b] sm:$0xff]  ;;  %1163 = vst [vmem:[#allocation2 + $0x30] sm:$0xff] %v1150_v29  ;;  %v12992_v12 = vadd.f32 %v10344_v15, %v986_v13  ;;  %v10276_v38 = vadd.f32 %v10275_v48, %v10274_v58  ;;  %1468 = vmatprep.mubr.f32.mxu0 %v1201_v34  ;;  %v751_v15 = vadd.f32 %v10146_v20, %v12908_v24  ;;  %v16549_v48 = vld [vmem:[#allocation16_spill] sm:$0xff] }
 0x154   : > { %v1224_v3 = vld [vmem:[#allocation2 + $0x1a] sm:$0xff]  ;;  %1588 = vmatprep.mubr.f32.mxu1 %v1248_v1  ;;  %v10277_v41 = vpop.f32.mrf.mxu0  ;;  %v10346_v35 = vpop.f32.mrf.mxu1  ;;  %v876_v6 = vadd.f32 %v10214_v45, %v746_v32  ;;  %v2053_v20 = vld [vmem:[%s16527_s5 + $0xf0] sm:$0xff] }
 0x155   : > { %1469 = vmatmul.mubr.f32.gmra.mxu0 %v1147_v51  ;;  %v1151_v19 = vmax.f32 %v12992_v12, 0.0  ;;  %v991_v36 = vadd.f32 %v10276_v38, %v861_v31  ;;  %v10347_v25 = vadd.f32 %v10346_v35, %v10345_v33  ;;  %v16550_v33 = vld [vmem:[#allocation18_spill] sm:$0xff] }
 0x156   : > { %1589 = vmatmul.mubr.f32.gmra.mxu1 %v1224_v3  ;;  %v10278_v28 = vpop.f32.mrf.mxu0  ;;  %v10348_v7 = vpop.f32.mrf.mxu1  ;;  %v1202_v50 = vld [vmem:[#allocation2 + $0x21] sm:$0xff]  ;;  %v10217_v34 = vadd.f32 %v16550_v33, %v16549_v48  ;;  %v2054_v11 = vld [vmem:[%s16527_s5 + $0xf8] sm:$0xff]  ;;  %v2081_v48 = vld [vmem:[%s16527_s5 + $0x1d0] sm:$0xff] }
 0x157   : > { %v1249_v22 = vld [vmem:[#allocation2 + $0x23] sm:$0xff]  ;;  %1164 = vst [vmem:[#allocation2 + $0x38] sm:$0xff] %v1151_v19  ;;  %v13004_v51 = vadd.f32 %v10347_v25, %v991_v36  ;;  %v10279_v14 = vadd.f32 %v10278_v28, %v10277_v41  ;;  %1473 = vmatprep.mubr.f32.mxu0 %v1202_v50  ;;  %v2038_v18 = vld [vmem:[%s16527_s5 + $0x78] sm:$0xff]  ;;  %10496 = vmatprep.subr.mxu0 %v2054_v11 }
 0x158   : > { %v1225_v27 = vld [vmem:[#allocation2 + $0x22] sm:$0xff]  ;;  %1593 = vmatprep.mubr.f32.mxu1 %v1249_v22  ;;  %v10280_v57 = vpop.f32.mrf.mxu0  ;;  %v10349_v59 = vpop.f32.mrf.mxu1  ;;  %v881_v36 = vadd.f32 %v10217_v34, %v751_v15  ;;  %10497 = vmatpush3.msra.mxu0 %v2038_v18  ;;  %v2086_v43 = vld [vmem:[%s16527_s5 + $0x1f8] sm:$0xff]  ;;  %v2033_v15 = vld [vmem:[%s16527_s5 + $0x50] sm:$0xff] }
 0x159   : > { %1474 = vmatmul.mubr.f32.gmra.mxu0 %v1148_v5  ;;  %v1152_v21 = vmax.f32 %v13004_v51, 0.0  ;;  %v996_v23 = vadd.f32 %v10279_v14, %v866_v44  ;;  %v10350_v30 = vadd.f32 %v10349_v59, %v10348_v7  ;;  %10498 = vmatprep.subr.mxu0 %v2053_v20  ;;  %v2051_v45 = vld [vmem:[%s16527_s5 + $0xe0] sm:$0xff]  ;;  %v2065_v34 = vld [vmem:[%s16527_s5 + $0x150] sm:$0xff] }
 0x15a   : > { %1594 = vmatmul.mubr.f32.gmra.mxu1 %v1225_v27  ;;  %v10281_v39 = vpop.f32.mrf.mxu0  ;;  %v10351_v2 = vpop.f32.mrf.mxu1  ;;  %v1203_v4 = vld [vmem:[#allocation2 + $0x29] sm:$0xff]  ;;  %10555 = vmatprep.subr.mxu1 %v2086_v43  ;;  %v2047_v33 = vld [vmem:[%s16527_s5 + $0xc0] sm:$0xff] }
 0x15b   : > { %v1250_v54 = vld [vmem:[#allocation2 + $0x2b] sm:$0xff]  ;;  %1165 = vst [vmem:[#allocation2 + $0x40] sm:$0xff] %v1152_v21  ;;  %v13016_v55 = vadd.f32 %v10350_v30, %v996_v23  ;;  %v10282_v5 = vadd.f32 %v10281_v39, %v10280_v57  ;;  %1478 = vmatprep.mubr.f32.mxu0 %v1203_v4  ;;  %v2043_v11 = vld [vmem:[%s16527_s5 + $0xa0] sm:$0xff] }
 0x15c   : > { %v1226_v56 = vld [vmem:[#allocation2 + $0x2a] sm:$0xff]  ;;  %1598 = vmatprep.mubr.f32.mxu1 %v1250_v54  ;;  %v10283_v47 = vpop.f32.mrf.mxu0  ;;  %v10352_v26 = vpop.f32.mrf.mxu1 }
 0x15d   : > { %1479 = vmatmul.mubr.f32.gmra.mxu0 %v1149_v9  ;;  %v1153_v42 = vmax.f32 %v13016_v55, 0.0  ;;  %v1001_v61 = vadd.f32 %v10282_v5, %v871_v37  ;;  %v10353_v63 = vadd.f32 %v10352_v26, %v10351_v2  ;;  %v2037_v55 = vld [vmem:[%s16527_s5 + $0x70] sm:$0xff]  ;;  %v2052_v5 = vld [vmem:[%s16527_s5 + $0xe8] sm:$0xff] }
 0x15e   : > { %1599 = vmatmul.mubr.f32.gmra.mxu1 %v1226_v56  ;;  %v10284_v53 = vpop.f32.mrf.mxu0  ;;  %v10354_v52 = vpop.f32.mrf.mxu1  ;;  %v1204_v58 = vld [vmem:[#allocation2 + $0x31] sm:$0xff]  ;;  %v13032_v56 = vld [vmem:[#allocation5 + $0x140] sm:$0xff]  ;;  %10499 = vmatpush3.msra.mxu0 %v2037_v55 }
 0x15f   : > { %v1251_v60 = vld [vmem:[#allocation2 + $0x33] sm:$0xff]  ;;  %1166 = vst [vmem:[#allocation2 + $0x48] sm:$0xff] %v1153_v42  ;;  %v1131_v31 = vadd.f32 %v10353_v63, %v1001_v61  ;;  %v10285_v46 = vadd.f32 %v10284_v53, %v10283_v47  ;;  %1483 = vmatprep.mubr.f32.mxu0 %v1204_v58  ;;  %1668 = vst.msk [vmem:[#allocation5 + $0x160] sm:$0xff] %vm1651_vm0, %v13032_v56  ;;  %10500 = vmatprep.subr.mxu0 %v2052_v5  ;;  %v2068_v53 = vld [vmem:[%s16527_s5 + $0x168] sm:$0xff] }
 0x160   : > { %v1227_v13 = vld [vmem:[#allocation2 + $0x32] sm:$0xff]  ;;  %1603 = vmatprep.mubr.f32.mxu1 %v1251_v60  ;;  %v10286_v49 = vpop.f32.mrf.mxu0  ;;  %v10355_v9 = vpop.f32.mrf.mxu1  ;;  %10501 = vmatpush3.msra.mxu0 %v2036_v40  ;;  %v2083_v58 = vld [vmem:[%s16527_s5 + $0x1e0] sm:$0xff] }
 0x161   : > { %1484 = vmatmul.mubr.f32.gmra.mxu0 %v1150_v29  ;;  %v1154_v1 = vmax.f32 %v1131_v31, 0.0  ;;  %v1006_v3 = vadd.f32 %v10285_v46, %v876_v6  ;;  %v10356_v10 = vadd.f32 %v10355_v9, %v10354_v52  ;;  %v2070_v47 = vld [vmem:[%s16527_s5 + $0x178] sm:$0xff]  ;;  %v2085_v26 = vld [vmem:[%s16527_s5 + $0x1f0] sm:$0xff]  ;;  %v2084_v6 = vld [vmem:[%s16527_s5 + $0x1e8] sm:$0xff]  ;;  %10502 = vmatprep.subr.mxu0 %v2051_v45 }
 0x162   : > { %1604 = vmatmul.mubr.f32.gmra.mxu1 %v1227_v13  ;;  %v10287_v38 = vpop.f32.mrf.mxu0  ;;  %v10357_v41 = vpop.f32.mrf.mxu1  ;;  %v1205_v24 = vld [vmem:[#allocation2 + $0x39] sm:$0xff]  ;;  %v2069_v61 = vld [vmem:[%s16527_s5 + $0x170] sm:$0xff]  ;;  %v2048_v46 = vld [vmem:[%s16527_s5 + $0xc8] sm:$0xff] }
 0x163   : > { %v1252_v35 = vld [vmem:[#allocation2 + $0x3b] sm:$0xff]  ;;  %1167 = vst [vmem:[#allocation2 + $0x50] sm:$0xff] %v1154_v1  ;;  %v1136_v25 = vadd.f32 %v10356_v10, %v1006_v3  ;;  %v10288_v62 = vadd.f32 %v10287_v38, %v10286_v49  ;;  %1488 = vmatprep.mubr.f32.mxu0 %v1205_v24  ;;  %10556 = vmatpush3.msra.mxu1 %v2070_v47  ;;  %v2049_v60 = vld [vmem:[%s16527_s5 + $0xd0] sm:$0xff]  ;;  %v2032_v9 = vld [vmem:[%s16527_s5 + $0x48] sm:$0xff] }
 0x164   : > { %v1228_v17 = vld [vmem:[#allocation2 + $0x3a] sm:$0xff]  ;;  %1608 = vmatprep.mubr.f32.mxu1 %v1252_v35  ;;  %v10358_v8 = vpop.f32.mrf.mxu1  ;;  %10557 = vmatprep.subr.mxu1 %v2085_v26  ;;  %v2080_v3 = vld [vmem:[%s16527_s5 + $0x1c8] sm:$0xff]  ;;  %v2045_v35 = vld [vmem:[%s16527_s5 + $0xb0] sm:$0xff] }
 0x165   : > { %1489 = vmatmul.mubr.f32.gmra.mxu0 %v1151_v19  ;;  %v1155_v29 = vmax.f32 %v1136_v25, 0.0  ;;  %v1011_v0 = vadd.f32 %v10288_v62, %v881_v36  ;;  %v10359_v28 = vadd.f32 %v10358_v8, %v10357_v41  ;;  %v2050_v63 = vld [vmem:[%s16527_s5 + $0xd8] sm:$0xff]  ;;  %10558 = vmatpush3.msra.mxu1 %v2069_v61  ;;  %v2067_v13 = vld [vmem:[%s16527_s5 + $0x160] sm:$0xff]  ;;  %v2064_v38 = vld [vmem:[%s16527_s5 + $0x148] sm:$0xff] }
 0x166   : > { %1609 = vmatmul.mubr.f32.gmra.mxu1 %v1228_v17  ;;  %v1206_v7 = vld [vmem:[#allocation2 + $0x41] sm:$0xff]  ;;  %v2034_v52 = vld [vmem:[%s16527_s5 + $0x58] sm:$0xff]  ;;  %10559 = vmatprep.subr.mxu1 %v2084_v6  ;;  %v2029_v17 = vld [vmem:[%s16527_s5 + $0x30] sm:$0xff] }
 0x167   : > { %v1253_v50 = vld [vmem:[#allocation2 + $0x43] sm:$0xff]  ;;  %1168 = vst [vmem:[#allocation2 + $0x58] sm:$0xff] %v1155_v29  ;;  %v1141_v27 = vadd.f32 %v10359_v28, %v1011_v0  ;;  %1493 = vmatprep.mubr.f32.mxu0 %v1206_v7  ;;  %10560 = vmatpush3.msra.mxu1 %v2068_v53  ;;  %v2082_v31 = vld [vmem:[%s16527_s5 + $0x1d8] sm:$0xff]  ;;  %v13144_v8 = vld [vmem:[%s16526_s4] ss:$0 sm:$0xff] }
 0x168   : > { %v1229_v22 = vld [vmem:[#allocation2 + $0x42] sm:$0xff]  ;;  %1613 = vmatprep.mubr.f32.mxu1 %v1253_v50  ;;  %10561 = vmatprep.subr.mxu1 %v2083_v58  ;;  %v2066_v49 = vld [vmem:[%s16527_s5 + $0x158] sm:$0xff]  ;;  %v2077_v55 = vld [vmem:[%s16527_s5 + $0x1b0] sm:$0xff] }
 0x169   : > { %1494 = vmatmul.mubr.f32.gmra.mxu0 %v1152_v21  ;;  %v1156_v44 = vmax.f32 %v1141_v27, 0.0  ;;  %10562 = vmatpush3.msra.mxu1 %v2067_v13  ;;  %v2046_v10 = vld [vmem:[%s16527_s5 + $0xb8] sm:$0xff]  ;;  %v2079_v24 = vld [vmem:[%s16527_s5 + $0x1c0] sm:$0xff]  ;;  %v2061_v61 = vld [vmem:[%s16527_s5 + $0x130] sm:$0xff] }
 0x16a   : > { %1614 = vmatmul.mubr.f32.gmra.mxu1 %v1229_v22  ;;  %v1207_v14 = vld [vmem:[#allocation2 + $0x49] sm:$0xff]  ;;  %10563 = vmatprep.subr.mxu1 %v2082_v31  ;;  %v2030_v41 = vld [vmem:[%s16527_s5 + $0x38] sm:$0xff]  ;;  %v2075_v31 = vld [vmem:[%s16527_s5 + $0x1a0] sm:$0xff] }
 0x16b   : > { %v1254_v16 = vld [vmem:[#allocation2 + $0x4b] sm:$0xff]  ;;  %1169 = vst [vmem:[#allocation2 + $0x60] sm:$0xff] %v1156_v44  ;;  %1498 = vmatprep.mubr.f32.mxu0 %v1207_v14  ;;  %10564 = vmatpush3.msra.mxu1 %v2066_v49 }
 0x16c   : > { %v1230_v12 = vld [vmem:[#allocation2 + $0x4a] sm:$0xff]  ;;  %1618 = vmatprep.mubr.f32.mxu1 %v1254_v16  ;;  %10565 = vmatprep.subr.mxu1 %v2081_v48 }
 0x16d   : > { %1499 = vmatmul.mubr.f32.gmra.mxu0 %v1153_v42  ;;  %v2035_v42 = vld [vmem:[%s16527_s5 + $0x60] sm:$0xff]  ;;  %10566 = vmatpush3.msra.mxu1 %v2065_v34  ;;  %v2076_v53 = vld [vmem:[%s16527_s5 + $0x1a8] sm:$0xff] }
 0x16e   : > { %1619 = vmatmul.mubr.f32.gmra.mxu1 %v1230_v12  ;;  %v1208_v19 = vld [vmem:[#allocation2 + $0x51] sm:$0xff]  ;;  %v1209_v23 = vld [vmem:[#allocation2 + $0x59] sm:$0x1]  ;;  %10503 = vmatpush3.msra.mxu0 %v2035_v42  ;;  %v2027_v42 = vld [vmem:[%s16527_s5 + $0x20] sm:$0xff] }
 0x16f   : > { %v1255_v57 = vld [vmem:[#allocation2 + $0x53] sm:$0xff]  ;;  %1503 = vmatprep.mubr.f32.mxu0 %v1208_v19  ;;  %1221 = vst [vmem:[#allocation3 + $0x10] sm:$0x1] %v1209_v23  ;;  %10504 = vmatprep.subr.mxu0 %v2050_v63  ;;  %v2060_v58 = vld [vmem:[%s16527_s5 + $0x128] sm:$0xff] }
 0x170   : > { %v1231_v59 = vld [vmem:[#allocation2 + $0x52] sm:$0xff]  ;;  %1623 = vmatprep.mubr.f32.mxu1 %v1255_v57  ;;  %10505 = vmatpush3.msra.mxu0 %v2034_v52 }
 0x171   : > { %v1185_v30 = vld [vmem:[#allocation2 + $0x58] sm:$0x1]  ;;  %1504 = vmatmul.mubr.f32.gmra.mxu0 %v1154_v1  ;;  %10506 = vmatprep.subr.mxu0 %v2049_v60  ;;  %v2031_v1 = vld [vmem:[%s16527_s5 + $0x40] sm:$0xff] }
 0x172   : > { %1624 = vmatmul.mubr.f32.gmra.mxu1 %v1231_v59  ;;  %1197 = vst [vmem:[#allocation3 + $0xe8] sm:$0x1] %v1185_v30  ;;  %v1256_v51 = vld [vmem:[#allocation2 + $0x5b] sm:$0xff]  ;;  %v1257_v37 = vld [vmem:[#allocation2 + $0x63] sm:$0x1]  ;;  %10507 = vmatpush3.msra.mxu0 %v2033_v15  ;;  %v2041_v15 = vld [vmem:[%s16527_s5 + $0x90] sm:$0xff] }
 0x173   : > { %v1232_v21 = vld [vmem:[#allocation2 + $0x5a] sm:$0xff]  ;;  %1628 = vmatprep.mubr.f32.mxu1 %v1256_v51  ;;  %1269 = vst [vmem:[#allocation3 + $0xa0] sm:$0x1] %v1257_v37  ;;  %v1233_v32 = vld [vmem:[#allocation2 + $0x62] sm:$0x1]  ;;  %10508 = vmatprep.subr.mxu0 %v2048_v46  ;;  %v2044_v37 = vld [vmem:[%s16527_s5 + $0xa8] sm:$0xff] }
 0x174   : > { %1245 = vst [vmem:[#allocation3 + $0x170] sm:$0x1] %v1233_v32  ;;  %10509 = vmatpush3.msra.mxu0 %v2032_v9  ;;  %10567 = vmatprep.subr.mxu1 %v2080_v3  ;;  %v2063_v32 = vld [vmem:[%s16527_s5 + $0x140] sm:$0xff]  ;;  %v2042_v63 = vld [vmem:[%s16527_s5 + $0x98] sm:$0xff]  ;;  %v2025_v3 = vld [vmem:[%s16527_s5 + $0x10] sm:$0xff] }
 0x175   : > { %10510 = vmatprep.subr.mxu0 %v2047_v33  ;;  %10568 = vmatpush3.msra.mxu1 %v2064_v38  ;;  %v2026_v52 = vld [vmem:[%s16527_s5 + $0x18] sm:$0xff] }
 0x176   : > { %1629 = vmatmul.mubr.f32.gmra.mxu1 %v1232_v21  ;;  %v1315_v39 = vld [vmem:[#allocation3 + $0x10] sm:$0xff]  ;;  %10511 = vmatpush3.msra.mxu0 %v2031_v1 }
 0x177   : > { %1508 = vmatprep.mubr.f32.mxu0 %v1315_v39  ;;  %10512 = vmatprep.subr.mxu0 %v2046_v10  ;;  %v2028_v39 = vld [vmem:[%s16527_s5 + $0x28] sm:$0xff]  ;;  %v2059_v10 = vld [vmem:[%s16527_s5 + $0x120] sm:$0xff] }
 0x178   : > { %10513 = vmatpush3.msra.mxu0 %v2030_v41  ;;  %10569 = vmatprep.subr.mxu1 %v2079_v24  ;;  %v2040_v41 = vld [vmem:[%s16527_s5 + $0x88] sm:$0xff]  ;;  %v2074_v24 = vld [vmem:[%s16527_s5 + $0x198] sm:$0xff] }
 0x179   : > { %v1314_v2 = vld [vmem:[#allocation3 + $0xe8] sm:$0xff]  ;;  %10514 = vmatprep.subr.mxu0 %v2045_v35  ;;  %10570 = vmatpush3.msra.mxu1 %v2063_v32  ;;  %v2024_v35 = vld [vmem:[%s16527_s5 + $0x8] sm:$0xff] }
 0x17a   : > { %1509 = vmatmul.mubr.f32.gmra.mxu0 %v1314_v2  ;;  %v1317_v4 = vld [vmem:[#allocation3 + $0xa0] sm:$0xff] }
 0x17b   : > { %1633 = vmatprep.mubr.f32.mxu1 %v1317_v4  ;;  %v1316_v54 = vld [vmem:[#allocation3 + $0x170] sm:$0xff]  ;;  %10515 = vmatpush3.msra.mxu0 %v2029_v17 }
 0x17c   : > { %1634 = vmatmul.mubr.f32.gmra.mxu1 %v1316_v54  ;;  %10516 = vmatprep.subr.mxu0 %v2044_v37  ;;  %v2078_v4 = vld [vmem:[%s16527_s5 + $0x1b8] sm:$0xff] }
 0x17d   : > { %v2062_v54 = vld [vmem:[%s16527_s5 + $0x138] sm:$0xff]  ;;  %10517 = vmatpush3.msra.mxu0 %v2028_v39  ;;  %10571 = vmatprep.subr.mxu1 %v2078_v4 }
 0x17e   : > { %10572 = vmatpush3.msra.mxu1 %v2062_v54  ;;  %10518 = vmatprep.subr.mxu0 %v2043_v11 }
 0x17f   : > { %10573 = vmatprep.subr.mxu1 %v2077_v55  ;;  %10519 = vmatpush3.msra.mxu0 %v2027_v42 }
 0x180   : > { %10574 = vmatpush3.msra.mxu1 %v2061_v61  ;;  %10520 = vmatprep.subr.mxu0 %v2042_v63 }
 0x181   : > { %10575 = vmatprep.subr.mxu1 %v2076_v53  ;;  %10521 = vmatpush3.msra.mxu0 %v2026_v52 }
 0x182   : > { %10576 = vmatpush3.msra.mxu1 %v2060_v58  ;;  %10522 = vmatprep.subr.mxu0 %v2041_v15 }
 0x183   : > { %10577 = vmatprep.subr.mxu1 %v2075_v31  ;;  %10523 = vmatpush3.msra.mxu0 %v2025_v3 }
 0x184   : > { %10578 = vmatpush3.msra.mxu1 %v2059_v10  ;;  %10524 = vmatprep.subr.mxu0 %v2040_v41 }
 0x185   : > { %10579 = vmatprep.subr.mxu1 %v2074_v24  ;;  %10525 = vmatpush3.msra.mxu0 %v2024_v35 }
 0x208   : > { %v10392_v36 = vpop.f32.mrf.mxu0 }
 0x20a   : > { %v10393_v25 = vpop.f32.mrf.mxu0 }
 0x20b   : > { %v10394_v62 = vadd.f32 %v10393_v25, %v10392_v36  ;;  %v2058_v25 = vld [vmem:[%s16527_s5 + $0x118] sm:$0xff] }
 0x20c   : > { %10580 = vmatpush3.msra.mxu1 %v2058_v25 }
 0x20d   : > { %v10395_v29 = vpop.f32.mrf.mxu0  ;;  %v1456_v50 = vadd.f32 %v10394_v62, %v13144_v8  ;;  %v2039_v62 = vld [vmem:[%s16527_s5 + $0x80] sm:$0xff] }
 0x20e   : > { %v10460_v0 = vpop.f32.mrf.mxu1  ;;  %10526 = vmatprep.subr.mxu0 %v2039_v62 }
 0x20f   : > { %v10396_v28 = vpop.f32.mrf.mxu0 }
 0x210   : > { %v10461_v7 = vpop.f32.mrf.mxu1  ;;  %v10397_v22 = vadd.f32 %v10396_v28, %v10395_v29  ;;  %v2073_v29 = vld [vmem:[%s16527_s5 + $0x190] sm:$0xff] }
 0x211   : > { %v10462_v27 = vadd.f32 %v10461_v7, %v10460_v0  ;;  %v10398_v44 = vpop.f32.mrf.mxu0  ;;  %10581 = vmatprep.subr.mxu1 %v2073_v29 }
 0x212   : > { %v10463_v14 = vpop.f32.mrf.mxu1  ;;  %v1461_v57 = vadd.f32 %v10397_v22, %v13144_v8 }
 0x213   : > { %v1581_v16 = vadd.f32 %v10462_v27, %v1456_v50  ;;  %v10399_v12 = vpop.f32.mrf.mxu0 }
 0x214   : > { %v10464_v19 = vpop.f32.mrf.mxu1  ;;  %v10400_v23 = vadd.f32 %v10399_v12, %v10398_v44 }
 0x215   : > { %v1639_v59 = vmax.f32 %v1581_v16, 0.0  ;;  %v10465_v30 = vadd.f32 %v10464_v19, %v10463_v14  ;;  %v10401_v51 = vpop.f32.mrf.mxu0  ;;  %v2023_v19 = vld [vmem:[%s16527_s5] sm:$0xff] }
 0x216   : > { %v10466_v21 = vpop.f32.mrf.mxu1  ;;  %v1466_v5 = vadd.f32 %v10400_v23, %v13144_v8  ;;  %10527 = vmatpush3.msra.mxu0 %v2023_v19 }
 0x217   : > { %1652 = vst.msk [vmem:[#allocation4] sm:$0xff] %vm1651_vm0, %v1639_v59  ;;  %v1586_v2 = vadd.f32 %v10465_v30, %v1461_v57  ;;  %v10402_v18 = vpop.f32.mrf.mxu0  ;;  %v2057_v57 = vld [vmem:[%s16527_s5 + $0x110] sm:$0xff]  ;;  %v2072_v59 = vld [vmem:[%s16527_s5 + $0x188] sm:$0xff]  ;;  %10701 = vmatprep.subr.mxu0 %v13032_v56 }
 0x218   : > { %v10467_v20 = vpop.f32.mrf.mxu1  ;;  %v10403_v43 = vadd.f32 %v10402_v18, %v10401_v51  ;;  %10582 = vmatpush3.msra.mxu1 %v2057_v57  ;;  %v2056_v51 = vld [vmem:[%s16527_s5 + $0x108] sm:$0xff] }
 0x219   : > { %v1640_v40 = vmax.f32 %v1586_v2, 0.0  ;;  %v10468_v45 = vadd.f32 %v10467_v20, %v10466_v21  ;;  %v10404_v47 = vpop.f32.mrf.mxu0  ;;  %10583 = vmatprep.subr.mxu1 %v2072_v59  ;;  %v2071_v2 = vld [vmem:[%s16527_s5 + $0x180] sm:$0xff] }
 0x21a   : > { %v10469_v26 = vpop.f32.mrf.mxu1  ;;  %v1471_v46 = vadd.f32 %v10403_v43, %v13144_v8  ;;  %10584 = vmatpush3.msra.mxu1 %v2056_v51 }
 0x21b   : > { %1653 = vst.msk [vmem:[#allocation4 + $0x8] sm:$0xff] %vm1651_vm0, %v1640_v40  ;;  %v1591_v6 = vadd.f32 %v10468_v45, %v1466_v5  ;;  %v10405_v60 = vpop.f32.mrf.mxu0  ;;  %v2055_v40 = vld [vmem:[%s16527_s5 + $0x100] sm:$0xff]  ;;  %10585 = vmatprep.subr.mxu1 %v2071_v2 }
 0x21c   : > { %v10470_v13 = vpop.f32.mrf.mxu1  ;;  %v10406_v9 = vadd.f32 %v10405_v60, %v10404_v47  ;;  %10586 = vmatpush3.msra.mxu1 %v2055_v40 }
 0x21d   : > { %v1641_v49 = vmax.f32 %v1591_v6, 0.0  ;;  %v10471_v48 = vadd.f32 %v10470_v13, %v10469_v26  ;;  %v10407_v33 = vpop.f32.mrf.mxu0 }
 0x21e   : > { %v10472_v34 = vpop.f32.mrf.mxu1  ;;  %v1669_v1 = vld [vmem:[#allocation4] sm:$0xff]  ;;  %v1476_v0 = vadd.f32 %v10406_v9, %v13144_v8 }
 0x21f   : > { %1654 = vst.msk [vmem:[#allocation4 + $0x10] sm:$0xff] %vm1651_vm0, %v1641_v49  ;;  %v1596_v38 = vadd.f32 %v10471_v48, %v1471_v46  ;;  %1678 = vst.msk [vmem:[#allocation5] sm:$0xff] %vm1651_vm0, %v1669_v1  ;;  %v10408_v17 = vpop.f32.mrf.mxu0 }
 0x220   : > { %v10473_v36 = vpop.f32.mrf.mxu1  ;;  %v10409_v7 = vadd.f32 %v10408_v17, %v10407_v33 }
 0x221   : > { %v1642_v28 = vmax.f32 %v1596_v38, 0.0  ;;  %v10474_v50 = vadd.f32 %v10473_v36, %v10472_v34  ;;  %v10410_v22 = vpop.f32.mrf.mxu0 }
 0x222   : > { %v10475_v27 = vpop.f32.mrf.mxu1  ;;  %v1688_v44 = vld [vmem:[#allocation4 + $0x1] sm:$0xff]  ;;  %v1481_v21 = vadd.f32 %v10409_v7, %v13144_v8 }
 0x223   : > { %v1670_v14 = vld [vmem:[#allocation4 + $0x8] sm:$0xff]  ;;  %1655 = vst.msk [vmem:[#allocation4 + $0x18] sm:$0xff] %vm1651_vm0, %v1642_v28  ;;  %v1601_v12 = vadd.f32 %v10474_v50, %v1476_v0  ;;  %1706 = vrot.lane.b32.xlu0 %v1688_v44, %s12030_s19  ;;  %v10411_v23 = vpop.f32.mrf.mxu0 }
 0x224   : > { %v1744_v16 = vld [vmem:[#allocation4 + $0x2] sm:$0xff]  ;;  %1679 = vst.msk [vmem:[#allocation5 + $0x28] sm:$0xff] %vm1651_vm0, %v1670_v14  ;;  %v10476_v30 = vpop.f32.mrf.mxu1  ;;  %v10412_v32 = vadd.f32 %v10411_v23, %v10410_v22 }
 0x225   : > { %1753 = vst.msk [vmem:[#allocation5 + $0x8] sm:$0xff] %vm1651_vm0, %v1744_v16  ;;  %v1643_v37 = vmax.f32 %v1601_v12, 0.0  ;;  %v10477_v39 = vadd.f32 %v10476_v30, %v10475_v27  ;;  %v10413_v4 = vpop.f32.mrf.mxu0 }
 0x226   : > { %v10478_v54 = vpop.f32.mrf.mxu1  ;;  %v1689_v11 = vld [vmem:[#allocation4 + $0x9] sm:$0xff]  ;;  %v1486_v47 = vadd.f32 %v10412_v32, %v13144_v8 }
 0x227   : > { %v1762_v18 = vld [vmem:[#allocation4 + $0xa] sm:$0xff]  ;;  %1656 = vst.msk [vmem:[#allocation4 + $0x20] sm:$0xff] %vm1651_vm0, %v1643_v37  ;;  %v1606_v20 = vadd.f32 %v10477_v39, %v1481_v21  ;;  %1708 = vrot.lane.b32.xlu1 %v1689_v11, %s12030_s19  ;;  %v10414_v43 = vpop.f32.mrf.mxu0 }
 0x228   : > { %1780 = vrot.lane.b32.xlu0 %v1762_v18, %s12030_s19  ;;  %v1816_v55 = vld [vmem:[#allocation4 + $0xb] sm:$0xff]  ;;  %1754 = vst.msk [vmem:[#allocation5 + $0x30] sm:$0xff] %vm1651_vm0, %v1762_v18  ;;  %v10479_v45 = vpop.f32.mrf.mxu1  ;;  %v10415_v42 = vadd.f32 %v10414_v43, %v10413_v4 }
 0x229   : > { %v1671_v5 = vld [vmem:[#allocation4 + $0x10] sm:$0xff]  ;;  %1825 = vst.msk [vmem:[#allocation5 + $0x10] sm:$0xff] %vm1651_vm0, %v1816_v55  ;;  %v1644_v26 = vmax.f32 %v1606_v20, 0.0  ;;  %v10480_v61 = vadd.f32 %v10479_v45, %v10478_v54  ;;  %v10416_v53 = vpop.f32.mrf.mxu0 }
 0x22a   : > { %1680 = vst.msk [vmem:[#allocation5 + $0x50] sm:$0xff] %vm1651_vm0, %v1671_v5  ;;  %v1834_v63 = vld [vmem:[#allocation4 + $0xc] sm:$0xff]  ;;  %v1960_v6 = vld [vmem:[#allocation4 + $0x16] sm:$0xff]  ;;  %v10481_v52 = vpop.f32.mrf.mxu1  ;;  %v1491_v48 = vadd.f32 %v10415_v42, %v13144_v8 }
 0x22b   : > { %v1906_v58 = vld [vmem:[#allocation4 + $0x15] sm:$0xff]  ;;  %1969 = vst.msk [vmem:[#allocation5 + $0x20] sm:$0xff] %vm1651_vm0, %v1960_v6  ;;  %1657 = vst.msk [vmem:[#allocation4 + $0x28] sm:$0xff] %vm1651_vm0, %v1644_v26  ;;  %v1611_v13 = vadd.f32 %v10480_v61, %v1486_v47  ;;  %1852 = vrot.lane.b32.xlu1 %v1834_v63, %s12030_s19  ;;  %v10417_v46 = vpop.f32.mrf.mxu0 }
 0x22c   : > { %v1763_v60 = vld [vmem:[#allocation4 + $0x12] sm:$0xff]  ;;  %1924 = vrot.lane.b32.xlu0 %v1906_v58, %s12030_s19  ;;  %v10482_v49 = vpop.f32.mrf.mxu1  ;;  %v10418_v34 = vadd.f32 %v10417_v46, %v10416_v53 }
 0x22d   : > { %v13259_v15 = vld [vmem:[#allocation4 + $0x14] sm:$0xff]  ;;  %1755 = vst.msk [vmem:[#allocation5 + $0x58] sm:$0xff] %vm1651_vm0, %v1763_v60  ;;  %v1645_v33 = vmax.f32 %v1611_v13, 0.0  ;;  %v10483_v1 = vadd.f32 %v10482_v49, %v10481_v52  ;;  %v10419_v3 = vpop.f32.mrf.mxu0 }
 0x22e   : > { %v1672_v31 = vld [vmem:[#allocation4 + $0x18] sm:$0xff]  ;;  %1897 = vst.msk [vmem:[#allocation5 + $0x18] sm:$0xff] %vm1651_vm0, %v13259_v15  ;;  %v10484_v10 = vpop.f32.mrf.mxu1  ;;  %v1673_v35 = vld [vmem:[#allocation4 + $0x20] sm:$0xff]  ;;  %v1496_v29 = vadd.f32 %v10418_v34, %v13144_v8 }
 0x22f   : > { %1681 = vst.msk [vmem:[#allocation5 + $0x78] sm:$0xff] %vm1651_vm0, %v1672_v31  ;;  %v1817_v9 = vld [vmem:[#allocation4 + $0x13] sm:$0xff]  ;;  %1658 = vst.msk [vmem:[#allocation4 + $0x30] sm:$0xff] %vm1651_vm0, %v1645_v33  ;;  %v1616_v41 = vadd.f32 %v10483_v1, %v1491_v48  ;;  %1782 = vrot.lane.b32.xlu1 %v1763_v60, %s12030_s19  ;;  %v13270_v24 = vld [vmem:[#allocation4 + $0x1c] sm:$0xff]  ;;  %v10420_v17 = vpop.f32.mrf.mxu0 }
 0x230   : > { %1826 = vst.msk [vmem:[#allocation5 + $0x38] sm:$0xff] %vm1651_vm0, %v1817_v9  ;;  %v1764_v38 = vld [vmem:[#allocation4 + $0x1a] sm:$0xff]  ;;  %v10485_v36 = vpop.f32.mrf.mxu1  ;;  %1682 = vst.msk [vmem:[#allocation5 + $0xa0] sm:$0xff] %vm1651_vm0, %v1673_v35  ;;  %v10421_v28 = vadd.f32 %v10420_v17, %v10419_v3  ;;  %v1690_v27 = vld [vmem:[#allocation4 + $0x11] sm:$0xff] }
 0x231   : > { %1784 = vrot.lane.b32.xlu0 %v1764_v38, %s12030_s19  ;;  %1756 = vst.msk [vmem:[#allocation5 + $0x80] sm:$0xff] %vm1651_vm0, %v1764_v38  ;;  %1898 = vst.msk [vmem:[#allocation5 + $0x40] sm:$0xff] %vm1651_vm0, %v13270_v24  ;;  %v1818_v25 = vld [vmem:[#allocation4 + $0x1b] sm:$0xff]  ;;  %v1646_v0 = vmax.f32 %v1616_v41, 0.0  ;;  %v10486_v7 = vadd.f32 %v10485_v36, %v10484_v10  ;;  %v10422_v50 = vpop.f32.mrf.mxu0 }
 0x232   : > { %v1961_v62 = vld [vmem:[#allocation4 + $0x1e] sm:$0xff]  ;;  %1827 = vst.msk [vmem:[#allocation5 + $0x60] sm:$0xff] %vm1651_vm0, %v1818_v25  ;;  %v10487_v22 = vpop.f32.mrf.mxu1  ;;  %v1674_v12 = vld [vmem:[#allocation4 + $0x28] sm:$0xff]  ;;  %v1501_v30 = vadd.f32 %v10421_v28, %v13144_v8 }
 0x233   : > { %1970 = vst.msk [vmem:[#allocation5 + $0x48] sm:$0xff] %vm1651_vm0, %v1961_v62  ;;  %v1765_v44 = vld [vmem:[#allocation4 + $0x22] sm:$0xff]  ;;  %1659 = vst.msk [vmem:[#allocation4 + $0x38] sm:$0xff] %vm1651_vm0, %v1646_v0  ;;  %v1621_v14 = vadd.f32 %v10486_v7, %v1496_v29  ;;  %1710 = vrot.lane.b32.xlu1 %v1690_v27, %s12030_s19  ;;  %v10423_v19 = vpop.f32.mrf.mxu0  ;;  %v1691_v39 = vld [vmem:[#allocation4 + $0x19] sm:$0xff] }
 0x234   : > { %v13282_v16 = vld [vmem:[#allocation4 + $0x24] sm:$0xff]  ;;  %1757 = vst.msk [vmem:[#allocation5 + $0xa8] sm:$0xff] %vm1651_vm0, %v1765_v44  ;;  %v10488_v57 = vpop.f32.mrf.mxu1  ;;  %1683 = vst.msk [vmem:[#allocation5 + $0xc8] sm:$0xff] %vm1651_vm0, %v1674_v12  ;;  %v10424_v21 = vadd.f32 %v10423_v19, %v10422_v50 }
 0x235   : > { %1786 = vrot.lane.b32.xlu0 %v1765_v44, %s12030_s19  ;;  %1899 = vst.msk [vmem:[#allocation5 + $0x68] sm:$0xff] %vm1651_vm0, %v13282_v16  ;;  %v1819_v59 = vld [vmem:[#allocation4 + $0x23] sm:$0xff]  ;;  %v1647_v51 = vmax.f32 %v1621_v14, 0.0  ;;  %v10489_v37 = vadd.f32 %v10488_v57, %v10487_v22 }
 0x236   : > { %v1962_v23 = vld [vmem:[#allocation4 + $0x26] sm:$0xff]  ;;  %1828 = vst.msk [vmem:[#allocation5 + $0x88] sm:$0xff] %vm1651_vm0, %v1819_v59  ;;  %v10490_v32 = vpop.f32.mrf.mxu1  ;;  %v1675_v11 = vld [vmem:[#allocation4 + $0x30] sm:$0xff]  ;;  %v1506_v5 = vadd.f32 %v10424_v21, %v13144_v8  ;;  %v1907_v27 = vld [vmem:[#allocation4 + $0x1d] sm:$0xff] }
 0x237   : > { %1971 = vst.msk [vmem:[#allocation5 + $0x70] sm:$0xff] %vm1651_vm0, %v1962_v23  ;;  %v1766_v2 = vld [vmem:[#allocation4 + $0x2a] sm:$0xff]  ;;  %1660 = vst.msk [vmem:[#allocation4 + $0x40] sm:$0xff] %vm1651_vm0, %v1647_v51  ;;  %v1626_v4 = vadd.f32 %v10489_v37, %v1501_v30  ;;  %1712 = vrot.lane.b32.xlu1 %v1691_v39, %s12030_s19  ;;  %v1692_v45 = vld [vmem:[#allocation4 + $0x21] sm:$0xff] }
 0x238   : > { %v13294_v54 = vld [vmem:[#allocation4 + $0x2c] sm:$0xff]  ;;  %1758 = vst.msk [vmem:[#allocation5 + $0xd0] sm:$0xff] %vm1651_vm0, %v1766_v2  ;;  %v10491_v18 = vpop.f32.mrf.mxu1  ;;  %1684 = vst.msk [vmem:[#allocation5 + $0xf0] sm:$0xff] %vm1651_vm0, %v1675_v11 }
 0x239   : > { %1788 = vrot.lane.b32.xlu0 %v1766_v2, %s12030_s19  ;;  %1900 = vst.msk [vmem:[#allocation5 + $0x90] sm:$0xff] %vm1651_vm0, %v13294_v54  ;;  %v1820_v20 = vld [vmem:[#allocation4 + $0x2b] sm:$0xff]  ;;  %v1648_v40 = vmax.f32 %v1626_v4, 0.0  ;;  %v10492_v43 = vadd.f32 %v10491_v18, %v10490_v32 }
 0x23a   : > { %v1963_v55 = vld [vmem:[#allocation4 + $0x2e] sm:$0xff]  ;;  %1829 = vst.msk [vmem:[#allocation5 + $0xb0] sm:$0xff] %vm1651_vm0, %v1820_v20  ;;  %v10425_v26 = vpop.f32.mrf.mxu0  ;;  %v1676_v63 = vld [vmem:[#allocation4 + $0x38] sm:$0xff]  ;;  %v1908_v44 = vld [vmem:[#allocation4 + $0x25] sm:$0xff] }
 0x23b   : > { %1972 = vst.msk [vmem:[#allocation5 + $0x98] sm:$0xff] %vm1651_vm0, %v1963_v55  ;;  %v1767_v47 = vld [vmem:[#allocation4 + $0x32] sm:$0xff]  ;;  %1661 = vst.msk [vmem:[#allocation4 + $0x48] sm:$0xff] %vm1651_vm0, %v1648_v40  ;;  %v1631_v42 = vadd.f32 %v10492_v43, %v1506_v5  ;;  %1714 = vrot.lane.b32.xlu1 %v1692_v45, %s12030_s19  ;;  %v1693_v31 = vld [vmem:[#allocation4 + $0x29] sm:$0xff] }
 0x23c   : > { %v13306_v61 = vld [vmem:[#allocation4 + $0x34] sm:$0xff]  ;;  %1759 = vst.msk [vmem:[#allocation5 + $0xf8] sm:$0xff] %vm1651_vm0, %v1767_v47  ;;  %1685 = vst.msk [vmem:[#allocation5 + $0x118] sm:$0xff] %vm1651_vm0, %v1676_v63  ;;  %v10426_v52 = vpop.f32.mrf.mxu0  ;;  %v10493_v13 = vpop.f32.mrf.mxu1  ;;  %v2093_v11 = vld [vmem:[%s16527_s5 + $0x230] sm:$0xff] }
 0x23d   : > { %1790 = vrot.lane.b32.xlu0 %v1767_v47, %s12030_s19  ;;  %1901 = vst.msk [vmem:[#allocation5 + $0xb8] sm:$0xff] %vm1651_vm0, %v13306_v61  ;;  %v1821_v6 = vld [vmem:[#allocation4 + $0x33] sm:$0xff]  ;;  %v1649_v58 = vmax.f32 %v1631_v42, 0.0  ;;  %v10427_v60 = vadd.f32 %v10426_v52, %v10425_v26  ;;  %v2092_v40 = vld [vmem:[%s16527_s5 + $0x228] sm:$0xff] }
 0x23e   : > { %v1964_v53 = vld [vmem:[#allocation4 + $0x36] sm:$0xff]  ;;  %1830 = vst.msk [vmem:[#allocation5 + $0xd8] sm:$0xff] %vm1651_vm0, %v1821_v6  ;;  %v1752_v9 = vld [vmem:[#allocation4 + $0x42] sm:$0x7]  ;;  %v10494_v48 = vpop.f32.mrf.mxu1  ;;  %v1909_v12 = vld [vmem:[#allocation4 + $0x2d] sm:$0xff] }
 0x23f   : > { %1973 = vst.msk [vmem:[#allocation5 + $0xc0] sm:$0xff] %vm1651_vm0, %v1964_v53  ;;  %v1768_v46 = vld [vmem:[#allocation4 + $0x3a] sm:$0xff]  ;;  %1662 = vst.msk [vmem:[#allocation4 + $0x50] sm:$0xff] %vm1651_vm0, %v1649_v58  ;;  %1716 = vrot.lane.b32.xlu1 %v1693_v31, %s12030_s19  ;;  %v1511_v1 = vadd.f32 %v10427_v60, %v13144_v8  ;;  %v10495_v3 = vadd.f32 %v10494_v48, %v10493_v13  ;;  %v1694_v38 = vld [vmem:[#allocation4 + $0x31] sm:$0xff] }
 0x240   : > { %v1840_v49 = vld [vmem:[#allocation4 + $0x3c] sm:$0xff]  ;;  %1760 = vst.msk [vmem:[#allocation5 + $0x120] sm:$0xff] %vm1651_vm0, %v1768_v46  ;;  %v2094_v4 = vld [vmem:[%s16527_s5 + $0x238] sm:$0xff]  ;;  %v2089_v6 = vld [vmem:[%s16527_s5 + $0x210] sm:$0xff] }
 0x241   : > { %1792 = vrot.lane.b32.xlu0 %v1768_v46, %s12030_s19  ;;  %1761 = vst.msk [vmem:[#allocation5 + $0x148] sm:$0x7] %vm1686_vm1, %v1752_v9  ;;  %v1677_v33 = vld [vmem:[#allocation4 + $0x40] sm:$0x7]  ;;  %v1636_v35 = vadd.f32 %v10495_v3, %v1511_v1  ;;  %v1910_v19 = vld [vmem:[#allocation4 + $0x35] sm:$0xff] }
 0x242   : > { %1902 = vst.msk [vmem:[#allocation5 + $0xe0] sm:$0xff] %vm1651_vm0, %v1840_v49  ;;  %v1822_v34 = vld [vmem:[#allocation4 + $0x3b] sm:$0xff]  ;;  %v1841_v17 = vld [vmem:[#allocation4 + $0x44] sm:$0xff]  ;;  %v1842_v59 = vld [vmem:[#allocation4 + $0x4c] sm:$0x7] }
 0x243   : > { %1687 = vst.msk [vmem:[#allocation5 + $0x140] sm:$0x7] %vm1686_vm1, %v1677_v33  ;;  %v1965_v10 = vld [vmem:[#allocation4 + $0x3e] sm:$0xff]  ;;  %1718 = vrot.lane.b32.xlu1 %v1694_v38, %s12030_s19  ;;  %v1824_v8 = vld [vmem:[#allocation4 + $0x4b] sm:$0x7]  ;;  %v1650_v25 = vmax.f32 %v1636_v35, 0.0 }
 0x244   : > { %1831 = vst.msk [vmem:[#allocation5 + $0x100] sm:$0xff] %vm1651_vm0, %v1822_v34  ;;  %v1769_v41 = vld [vmem:[#allocation4 + $0x42] sm:$0xff]  ;;  %1974 = vst.msk [vmem:[#allocation5 + $0xe8] sm:$0xff] %vm1651_vm0, %v1965_v10  ;;  %v1695_v29 = vld [vmem:[#allocation4 + $0x39] sm:$0xff] }
 0x245   : > { %1794 = vrot.lane.b32.xlu0 %v1769_v41, %s12030_s19  ;;  %v1823_v36 = vld [vmem:[#allocation4 + $0x43] sm:$0xff]  ;;  %1903 = vst.msk [vmem:[#allocation5 + $0x108] sm:$0xff] %vm1651_vm0, %v1841_v17  ;;  %1663 = vst.msk [vmem:[#allocation4 + $0x58] sm:$0xff] %vm1651_vm0, %v1650_v25  ;;  %v2091_v43 = vld [vmem:[%s16527_s5 + $0x220] sm:$0xff] }
 0x246   : > { %1832 = vst.msk [vmem:[#allocation5 + $0x128] sm:$0xff] %vm1651_vm0, %v1823_v36  ;;  %v1966_v62 = vld [vmem:[#allocation4 + $0x46] sm:$0xff]  ;;  %v1896_v7 = vld [vmem:[#allocation4 + $0x54] sm:$0x7]  ;;  %v1696_v22 = vld [vmem:[#allocation4 + $0x41] sm:$0x7] }
 0x247   : > { %1833 = vst.msk [vmem:[#allocation5 + $0x150] sm:$0x7] %vm1686_vm1, %v1824_v8  ;;  %v1770_v0 = vld [vmem:[#allocation4 + $0x4a] sm:$0x7]  ;;  %1720 = vrot.lane.b32.xlu1 %v1695_v29, %s12030_s19  ;;  %v1967_v50 = vld [vmem:[#allocation4 + $0x4e] sm:$0xff]  ;;  %v1911_v57 = vld [vmem:[#allocation4 + $0x3d] sm:$0xff] }
 0x248   : > { %v1895_v28 = vld [vmem:[#allocation4 + $0x4c] sm:$0xff]  ;;  %1975 = vst.msk [vmem:[#allocation5 + $0x110] sm:$0xff] %vm1651_vm0, %v1966_v62  ;;  %1976 = vst.msk [vmem:[#allocation5 + $0x138] sm:$0xff] %vm1651_vm0, %v1967_v50  ;;  %v2088_v60 = vld [vmem:[%s16527_s5 + $0x208] sm:$0xff] }
 0x249   : > { %1796 = vrot.lane.b32.xlu0 %v1770_v0, %s12030_s19  ;;  %1904 = vst.msk [vmem:[#allocation5 + $0x130] sm:$0xff] %vm1651_vm0, %v1895_v28  ;;  %v2090_v42 = vld [vmem:[%s16527_s5 + $0x218] sm:$0xff]  ;;  %v2087_v31 = vld [vmem:[%s16527_s5 + $0x200] sm:$0xff] }
 0x24a   : > { %1905 = vst.msk [vmem:[#allocation5 + $0x158] sm:$0x7] %vm1686_vm1, %v1896_v7 }
 0x24b   : > { %1722 = vrot.lane.b32.xlu1 %v1696_v22, %s12030_s19 }
 0x24c   : > { %v1968_v14 = vld [vmem:[#allocation4 + $0x56] sm:$0x7] }
 0x24d   : > { %1926 = vrot.lane.b32.xlu0 %v1907_v27, %s12030_s19  ;;  %1977 = vst.msk [vmem:[#allocation5 + $0x160] sm:$0x7] %vm1686_vm1, %v1968_v14 }
 0x24f   : > { %1854 = vrot.lane.b32.xlu1 %v13259_v15, %s12030_s19  ;;  %v1912_v15 = vld [vmem:[#allocation4 + $0x45] sm:$0xff] }
 0x251   : > { %1928 = vrot.lane.b32.xlu0 %v1908_v44, %s12030_s19 }
 0x253   : > { %1856 = vrot.lane.b32.xlu1 %v13270_v24, %s12030_s19  ;;  %v1913_v24 = vld [vmem:[#allocation4 + $0x4d] sm:$0xff] }
 0x255   : > { %1930 = vrot.lane.b32.xlu0 %v1909_v12, %s12030_s19 }
 0x257   : > { %1858 = vrot.lane.b32.xlu1 %v13282_v16, %s12030_s19  ;;  %v1914_v16 = vld [vmem:[#allocation4 + $0x55] sm:$0x7] }
 0x259   : > { %1932 = vrot.lane.b32.xlu0 %v1910_v19, %s12030_s19 }
 0x25b   : > { %1860 = vrot.lane.b32.xlu1 %v13294_v54, %s12030_s19 }
 0x25d   : > { %1934 = vrot.lane.b32.xlu0 %v1911_v57, %s12030_s19  ;;  %v1982_v57 = vld [vmem:[#allocation5 + $0x20] sm:$0xff] }
 0x25f   : > { %1862 = vrot.lane.b32.xlu1 %v13306_v61, %s12030_s19 }
 0x261   : > { %1936 = vrot.lane.b32.xlu0 %v1912_v15, %s12030_s19 }
 0x263   : > { %1864 = vrot.lane.b32.xlu1 %v1840_v49, %s12030_s19 }
 0x265   : > { %1938 = vrot.lane.b32.xlu0 %v1913_v24, %s12030_s19 }
 0x267   : > { %1866 = vrot.lane.b32.xlu1 %v1841_v17, %s12030_s19 }
 0x269   : > { %1940 = vrot.lane.b32.xlu0 %v1914_v16, %s12030_s19 }
 0x26b   : > { %1868 = vrot.lane.b32.xlu1 %v1842_v59, %s12030_s19 }
 0x295   : > { %v1707_v23 = vpop.permute.xlu0 %1706 }
 0x296   : > { %1734 = vst.msk [vmem:[#allocation5] sm:$0xff] %vm1733_vm2, %v1707_v23  ;;  %v1987_v23 = vld [vmem:[#allocation5 + $0x48] sm:$0xff] }
 0x299   : > { %v1709_v30 = vpop.permute.xlu1 %1708 }
 0x29a   : > { %v1781_v51 = vpop.permute.xlu0 %1780  ;;  %1735 = vst.msk [vmem:[#allocation5 + $0x28] sm:$0xff] %vm1733_vm2, %v1709_v30 }
 0x29b   : > { %1807 = vst.msk [vmem:[#allocation5 + $0x8] sm:$0xff] %vm1733_vm2, %v1781_v51 }
 0x29d   : > { %v1853_v21 = vpop.permute.xlu1 %1852  ;;  %v1978_v54 = vld [vmem:[#allocation5] sm:$0xff] }
 0x29e   : > { %v1925_v37 = vpop.permute.xlu0 %1924  ;;  %1879 = vst.msk [vmem:[#allocation5 + $0x10] sm:$0xff] %vm1733_vm2, %v1853_v21 }
 0x29f   : > { %1951 = vst.msk [vmem:[#allocation5 + $0x18] sm:$0xff] %vm1733_vm2, %v1925_v37 }
 0x2a1   : > { %v1783_v32 = vpop.permute.xlu1 %1782  ;;  %v1983_v61 = vld [vmem:[#allocation5 + $0x28] sm:$0xff] }
 0x2a2   : > { %v1979_v2 = vld [vmem:[#allocation5 + $0x8] sm:$0xff]  ;;  %1808 = vst.msk [vmem:[#allocation5 + $0x30] sm:$0xff] %vm1733_vm2, %v1783_v32  ;;  %v1992_v32 = vld [vmem:[#allocation5 + $0x70] sm:$0xff] }
 0x2a3   : > { %v1785_v39 = vpop.permute.xlu0 %1784  ;;  %2193 = vmatprep.mubr.f32.mxu0 %v1979_v2 }
 0x2a4   : > { %1809 = vst.msk [vmem:[#allocation5 + $0x58] sm:$0xff] %vm1733_vm2, %v1785_v39  ;;  %2194 = vmatmul.mubr.f32.vlgmr.msra.gmra.mxu0 %v1978_v54 }
 0x2a5   : > { %10702 = vmatpush3.msra.mxu0 %v2094_v4  ;;  %v1711_v18 = vpop.permute.xlu1 %1710  ;;  %v1980_v5 = vld [vmem:[#allocation5 + $0x10] sm:$0xff] }
 0x2a6   : > { %v1981_v55 = vld [vmem:[#allocation5 + $0x18] sm:$0xff]  ;;  %10703 = vmatprep.subr.mxu0 %v13032_v56  ;;  %1736 = vst.msk [vmem:[#allocation5 + $0x50] sm:$0xff] %vm1733_vm2, %v1711_v18 }
 0x2a7   : > { %v1787_v20 = vpop.permute.xlu0 %1786  ;;  %2303 = vmatprep.mubr.f32.mxu1 %v1981_v55  ;;  %10704 = vmatpush3.msra.mxu0 %v2093_v11  ;;  %v1997_v11 = vld [vmem:[#allocation5 + $0x98] sm:$0xff] }
 0x2a8   : > { %1810 = vst.msk [vmem:[#allocation5 + $0x80] sm:$0xff] %vm1733_vm2, %v1787_v20  ;;  %2304 = vmatmul.mubr.f32.vlgmr.msra.gmra.mxu1 %v1980_v5  ;;  %10705 = vmatprep.subr.mxu0 %v13032_v56 }
 0x2a9   : > { %10706 = vmatpush3.msra.mxu0 %v2092_v40  ;;  %v1713_v45 = vpop.permute.xlu1 %1712  ;;  %v1984_v26 = vld [vmem:[#allocation5 + $0x30] sm:$0xff]  ;;  %v2002_v40 = vld [vmem:[#allocation5 + $0xc0] sm:$0xff] }
 0x2aa   : > { %10707 = vmatprep.subr.mxu0 %v13032_v56  ;;  %1737 = vst.msk [vmem:[#allocation5 + $0x78] sm:$0xff] %vm1733_vm2, %v1713_v45  ;;  %2198 = vmatprep.mubr.f32.mxu0 %v1984_v26  ;;  %v2007_v26 = vld [vmem:[#allocation5 + $0xe8] sm:$0xff] }
 0x2ab   : > { %v1789_v47 = vpop.permute.xlu0 %1788  ;;  %10708 = vmatpush3.msra.mxu0 %v2091_v43  ;;  %v1989_v63 = vld [vmem:[#allocation5 + $0x58] sm:$0xff] }
 0x2ac   : > { %1811 = vst.msk [vmem:[#allocation5 + $0xa8] sm:$0xff] %vm1733_vm2, %v1789_v47  ;;  %2199 = vmatmul.mubr.f32.gmra.mxu0 %v1983_v61  ;;  %10709 = vmatprep.subr.mxu0 %v13032_v56 }
 0x2ad   : > { %2203 = vmatprep.mubr.f32.mxu0 %v1989_v63  ;;  %10710 = vmatpush3.msra.mxu0 %v2090_v42  ;;  %v1715_v53 = vpop.permute.xlu1 %1714  ;;  %v1988_v58 = vld [vmem:[#allocation5 + $0x50] sm:$0xff] }
 0x2ae   : > { %10711 = vmatprep.subr.mxu0 %v13032_v56  ;;  %1738 = vst.msk [vmem:[#allocation5 + $0xa0] sm:$0xff] %vm1733_vm2, %v1715_v53  ;;  %v2012_v63 = vld [vmem:[#allocation5 + $0x110] sm:$0xff]  ;;  %v2017_v53 = vld [vmem:[#allocation5 + $0x138] sm:$0xff] }
 0x2af   : > { %v1791_v52 = vpop.permute.xlu0 %1790  ;;  %10712 = vmatpush3.msra.mxu0 %v2089_v6  ;;  %v1994_v13 = vld [vmem:[#allocation5 + $0x80] sm:$0xff] }
 0x2b0   : > { %1812 = vst.msk [vmem:[#allocation5 + $0xd0] sm:$0xff] %vm1733_vm2, %v1791_v52  ;;  %2204 = vmatmul.mubr.f32.gmra.mxu0 %v1988_v58  ;;  %10713 = vmatprep.subr.mxu0 %v13032_v56  ;;  %v2022_v52 = vld [vmem:[#allocation5 + $0x160] sm:$0xff]  ;;  %v10789_v58 = vld [vmem:[%s16529_s7 + $0xe0] ss:$16 sps:$4 sm:$0xff]  }
 0x2b1   : > { %2208 = vmatprep.mubr.f32.mxu0 %v1994_v13  ;;  %10714 = vmatpush3.msra.mxu0 %v2088_v60  ;;  %v1717_v46 = vpop.permute.xlu1 %1716  ;;  %v1993_v9 = vld [vmem:[#allocation5 + $0x78] sm:$0xff] }
 0x2b2   : > { %10715 = vmatprep.subr.mxu0 %v13032_v56  ;;  %1739 = vst.msk [vmem:[#allocation5 + $0xc8] sm:$0xff] %vm1733_vm2, %v1717_v46  ;;  %v10791_v60 = vld [vmem:[%s16529_s7 + $0xe4] ss:$16 sps:$4 sm:$0xff]   ;;  %v10792_v13 = vld [vmem:[%s16529_s7 + $0x2e0] ss:$16 sps:$4 sm:$0xff]  }
 0x2b3   : > { %v1793_v49 = vpop.permute.xlu0 %1792  ;;  %10716 = vmatpush3.msra.mxu0 %v2087_v31  ;;  %v1999_v48 = vld [vmem:[#allocation5 + $0xa8] sm:$0xff]  ;;  %7901 = vmatprep.subr.bf16.mxu1 %v10791_v60 }
 0x2b4   : > { %1813 = vst.msk [vmem:[#allocation5 + $0xf8] sm:$0xff] %vm1733_vm2, %v1793_v49  ;;  %2209 = vmatmul.mubr.f32.gmra.mxu0 %v1993_v9  ;;  %v10794_v31 = vld [vmem:[%s16529_s7 + $0x2e4] ss:$16 sps:$4 sm:$0xff]   ;;  %7902 = vmatpush1.bf16.msra.mxu1 %v10789_v58  ;;  %v10795_v49 = vld [vmem:[%s16529_s7 + $0xc0] ss:$16 sps:$4 sm:$0xff]  }
 0x2b5   : > { %2213 = vmatprep.mubr.f32.mxu0 %v1999_v48  ;;  %v1719_v33 = vpop.permute.xlu1 %1718  ;;  %v1998_v1 = vld [vmem:[#allocation5 + $0xa0] sm:$0xff]  ;;  %v10800_v46 = vld [vmem:[%s16529_s7 + $0x2c4] ss:$16 sps:$4 sm:$0xff]   ;;  %7942 = vmatprep.subr.bf16.mxu0 %v10794_v31  ;;  %v10798_v9 = vld [vmem:[%s16529_s7 + $0x2c0] ss:$16 sps:$4 sm:$0xff]  }
 0x2b6   : > { %1740 = vst.msk [vmem:[#allocation5 + $0xf0] sm:$0xff] %vm1733_vm2, %v1719_v33  ;;  %v10803_v48 = vld [vmem:[%s16529_s7 + $0xa4] ss:$16 sps:$4 sm:$0xff]  }
 0x2b7   : > { %v1795_v34 = vpop.permute.xlu0 %1794  ;;  %v2004_v3 = vld [vmem:[#allocation5 + $0xd0] sm:$0xff]  ;;  %v10806_v33 = vld [vmem:[%s16529_s7 + $0x2a4] ss:$16 sps:$4 sm:$0xff]  }
 0x2b8   : > { %1814 = vst.msk [vmem:[#allocation5 + $0x120] sm:$0xff] %vm1733_vm2, %v1795_v34  ;;  %2214 = vmatmul.mubr.f32.gmra.mxu0 %v1998_v1  ;;  %v10801_v34 = vld [vmem:[%s16529_s7 + $0xa0] ss:$16 sps:$4 sm:$0xff]  }
 0x2b9   : > { %2218 = vmatprep.mubr.f32.mxu0 %v2004_v3  ;;  %v1721_v10 = vpop.permute.xlu1 %1720  ;;  %v2003_v41 = vld [vmem:[#allocation5 + $0xc8] sm:$0xff] }
 0x2ba   : > { %1741 = vst.msk [vmem:[#allocation5 + $0x118] sm:$0xff] %vm1733_vm2, %v1721_v10  ;;  %v10804_v1 = vld [vmem:[%s16529_s7 + $0x2a0] ss:$16 sps:$4 sm:$0xff]   ;;  %v10809_v3 = vld [vmem:[%s16529_s7 + $0x84] ss:$16 sps:$4 sm:$0xff]  }
 0x2bb   : > { %v1797_v38 = vpop.permute.xlu0 %1796  ;;  %v2009_v35 = vld [vmem:[#allocation5 + $0xf8] sm:$0xff] }
 0x2bc   : > { %1815 = vst.msk [vmem:[#allocation5 + $0x148] sm:$0x7] %vm1742_vm3, %v1797_v38  ;;  %2219 = vmatmul.mubr.f32.gmra.mxu0 %v2003_v41  ;;  %v10812_v10 = vld [vmem:[%s16529_s7 + $0x284] ss:$16 sps:$4 sm:$0xff]   ;;  %v10807_v38 = vld [vmem:[%s16529_s7 + $0x80] ss:$16 sps:$4 sm:$0xff]  }
 0x2bd   : > { %2223 = vmatprep.mubr.f32.mxu0 %v2009_v35  ;;  %v1723_v17 = vpop.permute.xlu1 %1722  ;;  %v2008_v8 = vld [vmem:[#allocation5 + $0xf0] sm:$0xff]  ;;  %v10810_v41 = vld [vmem:[%s16529_s7 + $0x280] ss:$16 sps:$4 sm:$0xff]   ;;  %v10815_v35 = vld [vmem:[%s16529_s7 + $0x64] ss:$16 sps:$4 sm:$0xff]  }
 0x2be   : > { %1743 = vst.msk [vmem:[#allocation5 + $0x140] sm:$0x7] %vm1742_vm3, %v1723_v17  ;;  %v10818_v17 = vld [vmem:[%s16529_s7 + $0x264] ss:$16 sps:$4 sm:$0xff]  }
 0x2bf   : > { %v1927_v36 = vpop.permute.xlu0 %1926  ;;  %v2014_v25 = vld [vmem:[#allocation5 + $0x120] sm:$0xff] }
 0x2c0   : > { %1952 = vst.msk [vmem:[#allocation5 + $0x40] sm:$0xff] %vm1733_vm2, %v1927_v36  ;;  %2224 = vmatmul.mubr.f32.gmra.mxu0 %v2008_v8  ;;  %v10813_v36 = vld [vmem:[%s16529_s7 + $0x60] ss:$16 sps:$4 sm:$0xff]  }
 0x2c1   : > { %2228 = vmatprep.mubr.f32.mxu0 %v2014_v25  ;;  %v1855_v62 = vpop.permute.xlu1 %1854  ;;  %v2013_v0 = vld [vmem:[#allocation5 + $0x118] sm:$0xff] }
 0x2c2   : > { %1880 = vst.msk [vmem:[#allocation5 + $0x38] sm:$0xff] %vm1733_vm2, %v1855_v62  ;;  %v10816_v8 = vld [vmem:[%s16529_s7 + $0x260] ss:$16 sps:$4 sm:$0xff]   ;;  %v10821_v25 = vld [vmem:[%s16529_s7 + $0x44] ss:$16 sps:$4 sm:$0xff]  }
 0x2c3   : > { %v1929_v29 = vpop.permute.xlu0 %1928  ;;  %v2019_v28 = vld [vmem:[#allocation5 + $0x148] sm:$0xff] }
 0x2c4   : > { %1953 = vst.msk [vmem:[#allocation5 + $0x68] sm:$0xff] %vm1733_vm2, %v1929_v29  ;;  %2229 = vmatmul.mubr.f32.gmra.mxu0 %v2013_v0  ;;  %v10824_v62 = vld [vmem:[%s16529_s7 + $0x244] ss:$16 sps:$4 sm:$0xff]   ;;  %v10819_v29 = vld [vmem:[%s16529_s7 + $0x40] ss:$16 sps:$4 sm:$0xff]  }
 0x2c5   : > { %2233 = vmatprep.mubr.f32.mxu0 %v2019_v28  ;;  %v1857_v7 = vpop.permute.xlu1 %1856  ;;  %v2018_v27 = vld [vmem:[#allocation5 + $0x140] sm:$0xff]  ;;  %v10822_v0 = vld [vmem:[%s16529_s7 + $0x240] ss:$16 sps:$4 sm:$0xff]   ;;  %v10827_v28 = vld [vmem:[%s16529_s7 + $0x24] ss:$16 sps:$4 sm:$0xff]  }
 0x2c6   : > { %1881 = vst.msk [vmem:[#allocation5 + $0x60] sm:$0xff] %vm1733_vm2, %v1857_v7  ;;  %v10830_v7 = vld [vmem:[%s16529_s7 + $0x224] ss:$16 sps:$4 sm:$0xff]  }
 0x2c7   : > { %v1931_v50 = vpop.permute.xlu0 %1930  ;;  %v1986_v22 = vld [vmem:[#allocation5 + $0x40] sm:$0xff] }
 0x2c8   : > { %1954 = vst.msk [vmem:[#allocation5 + $0x90] sm:$0xff] %vm1733_vm2, %v1931_v50  ;;  %2308 = vmatprep.mubr.f32.mxu1 %v1986_v22  ;;  %2234 = vmatmul.mubr.f32.gmra.mxu0 %v2018_v27  ;;  %v10825_v50 = vld [vmem:[%s16529_s7 + $0x20] ss:$16 sps:$4 sm:$0xff]   ;;  %v10833_v27 = vld [vmem:[%s16529_s7 + $0x4] ss:$16 sps:$4 sm:$0xff]  }
 0x2c9   : > { %10717 = vmatprep.mubr.msk.f32.mxu0 %vm12031_vm4, %v13032_v56  ;;  %v1859_v44 = vpop.permute.xlu1 %1858  ;;  %v1985_v12 = vld [vmem:[#allocation5 + $0x38] sm:$0xff] }
 0x2ca   : > { %1882 = vst.msk [vmem:[#allocation5 + $0x88] sm:$0xff] %vm1733_vm2, %v1859_v44  ;;  %2309 = vmatmul.mubr.f32.gmra.mxu1 %v1985_v12  ;;  %v10828_v22 = vld [vmem:[%s16529_s7 + $0x220] ss:$16 sps:$4 sm:$0xff]   ;;  %v10836_v44 = vld [vmem:[%s16529_s7 + $0x204] ss:$16 sps:$4 sm:$0xff]  }
 0x2cb   : > { %v1933_v14 = vpop.permute.xlu0 %1932  ;;  %v1991_v19 = vld [vmem:[#allocation5 + $0x68] sm:$0xff] }
 0x2cc   : > { %1955 = vst.msk [vmem:[#allocation5 + $0xb8] sm:$0xff] %vm1733_vm2, %v1933_v14  ;;  %2313 = vmatprep.mubr.f32.mxu1 %v1991_v19  ;;  %10718 = vmatmul.mubr.msk.f32.vlgmr.msra.gmra.mxu0 %vm1651_vm0, %v1982_v57  ;;  %v10831_v14 = vld [vmem:[%s16529_s7] ss:$16 sps:$4 sm:$0xff]   ;;  %v10839_v19 = vld [vmem:[%s16529_s7 + $0x1e4] ss:$16 sps:$4 sm:$0xff]  }
 0x2cd   : > { %10720 = vmatprep.mubr.msk.f32.mxu0 %vm12031_vm4, %v13032_v56  ;;  %v1861_v15 = vpop.permute.xlu1 %1860  ;;  %v1990_v16 = vld [vmem:[#allocation5 + $0x60] sm:$0xff]  ;;  %7943 = vmatpush1.bf16.msra.mxu0 %v10792_v13  ;;  %v10834_v12 = vld [vmem:[%s16529_s7 + $0x200] ss:$16 sps:$4 sm:$0xff]   ;;  %v10842_v57 = vld [vmem:[%s16529_s7 + $0x3e4] ss:$16 sps:$4 sm:$0xff]  }
 0x2ce   : > { %1883 = vst.msk [vmem:[#allocation5 + $0xb0] sm:$0xff] %vm1733_vm2, %v1861_v15  ;;  %2314 = vmatmul.mubr.f32.gmra.mxu1 %v1990_v16  ;;  %7944 = vmatprep.subr.bf16.mxu0 %v10800_v46  ;;  %v10840_v16 = vld [vmem:[%s16529_s7 + $0x3e0] ss:$16 sps:$4 sm:$0xff]  }
 0x2cf   : > { %v1935_v24 = vpop.permute.xlu0 %1934  ;;  %v1996_v59 = vld [vmem:[#allocation5 + $0x90] sm:$0xff] }
 0x2d0   : > { %1956 = vst.msk [vmem:[#allocation5 + $0xe0] sm:$0xff] %vm1733_vm2, %v1935_v24  ;;  %2318 = vmatprep.mubr.f32.mxu1 %v1996_v59  ;;  %10721 = vmatmul.mubr.msk.f32.gmra.mxu0 %vm1651_vm0, %v1987_v23  ;;  %v10837_v24 = vld [vmem:[%s16529_s7 + $0x1e0] ss:$16 sps:$4 sm:$0xff]   ;;  %v10845_v59 = vld [vmem:[%s16529_s7 + $0x1c4] ss:$16 sps:$4 sm:$0xff]  }
 0x2d1   : > { %10723 = vmatprep.mubr.msk.f32.mxu0 %vm12031_vm4, %v13032_v56  ;;  %v1863_v30 = vpop.permute.xlu1 %1862  ;;  %v1995_v21 = vld [vmem:[#allocation5 + $0x88] sm:$0xff]  ;;  %7945 = vmatpush1.bf16.msra.mxu0 %v10798_v9  ;;  %v12032_v9 = vmov 1966171168  }
 0x2d2   : > { %1884 = vst.msk [vmem:[#allocation5 + $0xd8] sm:$0xff] %vm1733_vm2, %v1863_v30  ;;  %2319 = vmatmul.mubr.f32.gmra.mxu1 %v1995_v21  ;;  %7946 = vmatprep.subr.bf16.mxu0 %v10806_v33  ;;  %v10848_v23 = vld [vmem:[%s16529_s7 + $0x3c4] ss:$16 sps:$4 sm:$0xff]  }
 0x2d3   : > { %v1937_v51 = vpop.permute.xlu0 %1936  ;;  %v2001_v37 = vld [vmem:[#allocation5 + $0xb8] sm:$0xff] }
 0x2d4   : > { %1957 = vst.msk [vmem:[#allocation5 + $0x108] sm:$0xff] %vm1733_vm2, %v1937_v51  ;;  %2323 = vmatprep.mubr.f32.mxu1 %v2001_v37  ;;  %10724 = vmatmul.mubr.msk.f32.gmra.mxu0 %vm1651_vm0, %v1992_v32  ;;  %v10843_v51 = vld [vmem:[%s16529_s7 + $0x1c0] ss:$16 sps:$4 sm:$0xff]  }
 0x2d5   : > { %10726 = vmatprep.mubr.msk.f32.mxu0 %vm12031_vm4, %v13032_v56  ;;  %v1865_v39 = vpop.permute.xlu1 %1864  ;;  %v2000_v4 = vld [vmem:[#allocation5 + $0xb0] sm:$0xff]  ;;  %7947 = vmatpush1.bf16.msra.mxu0 %v10804_v1  ;;  %v10846_v37 = vld [vmem:[%s16529_s7 + $0x3c0] ss:$16 sps:$4 sm:$0xff]  }
 0x2d6   : > { %1885 = vst.msk [vmem:[#allocation5 + $0x100] sm:$0xff] %vm1733_vm2, %v1865_v39  ;;  %2324 = vmatmul.mubr.f32.gmra.mxu1 %v2000_v4  ;;  %7948 = vmatprep.subr.bf16.mxu0 %v10812_v10 }
 0x2d7   : > { %v1939_v2 = vpop.permute.xlu0 %1938  ;;  %v2006_v54 = vld [vmem:[#allocation5 + $0xe0] sm:$0xff] }
 0x2d8   : > { %1958 = vst.msk [vmem:[#allocation5 + $0x130] sm:$0xff] %vm1733_vm2, %v1939_v2  ;;  %2328 = vmatprep.mubr.f32.mxu1 %v2006_v54  ;;  %10727 = vmatmul.mubr.msk.f32.gmra.mxu0 %vm1651_vm0, %v1997_v11 }
 0x2d9   : > { %10729 = vmatprep.mubr.msk.f32.mxu0 %vm12031_vm4, %v13032_v56  ;;  %v1867_v18 = vpop.permute.xlu1 %1866  ;;  %v2005_v55 = vld [vmem:[#allocation5 + $0xd8] sm:$0xff]  ;;  %7949 = vmatpush1.bf16.msra.mxu0 %v10810_v41 }
 0x2da   : > { %1886 = vst.msk [vmem:[#allocation5 + $0x128] sm:$0xff] %vm1733_vm2, %v1867_v18  ;;  %2329 = vmatmul.mubr.f32.gmra.mxu1 %v2005_v55  ;;  %7950 = vmatprep.subr.bf16.mxu0 %v10818_v17  ;;  %v10849_v41 = vld [vmem:[%s16529_s7 + $0x1a0] ss:$16 sps:$4 sm:$0xff]  }
 0x2db   : > { %v1941_v20 = vpop.permute.xlu0 %1940  ;;  %v2011_v5 = vld [vmem:[#allocation5 + $0x108] sm:$0xff] }
 0x2dc   : > { %1959 = vst.msk [vmem:[#allocation5 + $0x158] sm:$0x7] %vm1742_vm3, %v1941_v20  ;;  %2333 = vmatprep.mubr.f32.mxu1 %v2011_v5  ;;  %10730 = vmatmul.mubr.msk.f32.gmra.mxu0 %vm1651_vm0, %v2002_v40 }
 0x2dd   : > { %10732 = vmatprep.mubr.msk.f32.mxu0 %vm12031_vm4, %v13032_v56  ;;  %v1869_v43 = vpop.permute.xlu1 %1868  ;;  %v2010_v45 = vld [vmem:[#allocation5 + $0x100] sm:$0xff]  ;;  %7951 = vmatpush1.bf16.msra.mxu0 %v10816_v8  ;;  %v10852_v8 = vld [vmem:[%s16529_s7 + $0x3a0] ss:$16 sps:$4 sm:$0xff]  }
 0x2de   : > { %1887 = vst.msk [vmem:[#allocation5 + $0x150] sm:$0x7] %vm1742_vm3, %v1869_v43  ;;  %2334 = vmatmul.mubr.f32.gmra.mxu1 %v2010_v45  ;;  %7952 = vmatprep.subr.bf16.mxu0 %v10824_v62 }
 0x2df   : > { %v2016_v47 = vld [vmem:[#allocation5 + $0x130] sm:$0xff] }
 0x2e0   : > { %2338 = vmatprep.mubr.f32.mxu1 %v2016_v47  ;;  %10733 = vmatmul.mubr.msk.f32.gmra.mxu0 %vm1651_vm0, %v2007_v26 }
 0x2e1   : > { %10735 = vmatprep.mubr.msk.f32.mxu0 %vm12031_vm4, %v13032_v56  ;;  %v2015_v42 = vld [vmem:[#allocation5 + $0x128] sm:$0xff]  ;;  %7953 = vmatpush1.bf16.msra.mxu0 %v10822_v0 }
 0x2e2   : > { %2339 = vmatmul.mubr.f32.gmra.mxu1 %v2015_v42  ;;  %7954 = vmatprep.subr.bf16.mxu0 %v10830_v7  ;;  %v13586_v42 = vld [vmem:[%s16528_s6] ss:$0 sm:$0xff] }
 0x2e3   : > { %v2021_v61 = vld [vmem:[#allocation5 + $0x158] sm:$0xff] }
 0x2e4   : > { %2343 = vmatprep.mubr.f32.mxu1 %v2021_v61  ;;  %10736 = vmatmul.mubr.msk.f32.gmra.mxu0 %vm1651_vm0, %v2012_v63 }
 0x2e5   : > { %10738 = vmatprep.mubr.msk.f32.mxu0 %vm12031_vm4, %v13032_v56  ;;  %v2020_v6 = vld [vmem:[#allocation5 + $0x150] sm:$0xff]  ;;  %7955 = vmatpush1.bf16.msra.mxu0 %v10828_v22 }
 0x2e6   : > { %2344 = vmatmul.mubr.f32.gmra.mxu1 %v2020_v6  ;;  %7956 = vmatprep.subr.bf16.mxu0 %v10836_v44 }
 0x2e8   : > { %10739 = vmatmul.mubr.msk.f32.gmra.mxu0 %vm1651_vm0, %v2017_v53 }
 0x2e9   : > { %10741 = vmatprep.mubr.msk.f32.mxu0 %vm12031_vm4, %v13032_v56  ;;  %v10797_v56 = vld [vmem:[%s16529_s7 + $0xc4] ss:$16 sps:$4 sm:$0xff]   ;;  %7957 = vmatpush1.bf16.msra.mxu0 %v10834_v12 }
 0x2ea   : > { %7903 = vmatprep.subr.bf16.mxu1 %v10797_v56  ;;  %7958 = vmatprep.subr.bf16.mxu0 %v10842_v57  ;;  %v10857_v12 = vld [vmem:[%s16529_s7 + $0x184] ss:$16 sps:$4 sm:$0xff]  }
 0x2eb   : > { %7904 = vmatpush1.bf16.msra.mxu1 %v10795_v49  ;;  %v2478_v49 = vlaneseq }
 0x2ec   : > { %10742 = vmatmul.mubr.msk.f32.gmra.mxu0 %vm1651_vm0, %v2022_v52  ;;  %7905 = vmatprep.subr.bf16.mxu1 %v10803_v48  ;;  %v2493_v48 = vunpack.c.l.s4 %v12032_v9 }
 0x2ed   : > { %7959 = vmatpush2.bf16.msra.mxu0 %v10840_v16  ;;  %v10860_v16 = vld [vmem:[%s16529_s7 + $0x384] ss:$16 sps:$4 sm:$0xff]   ;;  %vm13631_vm5 = vcmp.lt.s32.totalorder %v2478_v49, 64  ;;  %vm2502_vm6 = vcmp.ge.s32.totalorder %v2478_v49, 64  ;;  %vm2503_vm7 = vcmp.lt.s32.totalorder %v2478_v49, 128 }
 0x2ee   : > { %7960 = vmatprep.subr.bf16.mxu0 %v10848_v23  ;;  %v2494_v0 = vunpack.c.0.s8 %v2493_v48  ;;  %vm13809_vm8 = vmand %vm2502_vm6, %vm2503_vm7 }
 0x2ef   : > { %7906 = vmatpush1.bf16.msra.mxu1 %v10801_v34 }
 0x2f0   : > { %7907 = vmatprep.subr.bf16.mxu1 %v10809_v3 }
 0x2f1   : > { %7961 = vmatpush2.bf16.msra.mxu0 %v10846_v37 }
 0x2f3   : > { %7908 = vmatpush1.bf16.msra.mxu1 %v10807_v38 }
 0x2f4   : > { %7909 = vmatprep.subr.bf16.mxu1 %v10815_v35  ;;  %v10851_v35 = vld [vmem:[%s16529_s7 + $0x1a4] ss:$16 sps:$4 sm:$0xff]  }
 0x2f7   : > { %7910 = vmatpush1.bf16.msra.mxu1 %v10813_v36 }
 0x2f8   : > { %7911 = vmatprep.subr.bf16.mxu1 %v10821_v25  ;;  %v10854_v25 = vld [vmem:[%s16529_s7 + $0x3a4] ss:$16 sps:$4 sm:$0xff]  }
 0x2f9   : > { %7962 = vmatprep.subr.bf16.mxu0 %v10854_v25 }
 0x2fa   : > { %7963 = vmatpush2.bf16.msra.mxu0 %v10852_v8 }
 0x2fb   : > { %7912 = vmatpush1.bf16.msra.mxu1 %v10819_v29  ;;  %7964 = vmatprep.subr.bf16.mxu0 %v10860_v16  ;;  %v10872_v16 = vld [vmem:[%s16529_s7 + $0x344] ss:$16 sps:$4 sm:$0xff]  }
 0x2fc   : > { %7913 = vmatprep.subr.bf16.mxu1 %v10827_v28  ;;  %v13610_v28 = vshrl.u32 %v2478_v49, 7 }
 0x2ff   : > { %7914 = vmatpush1.bf16.msra.mxu1 %v10825_v50 }
 0x300   : > { %7915 = vmatprep.subr.bf16.mxu1 %v10833_v27 }
 0x303   : > { %7916 = vmatpush1.bf16.msra.mxu1 %v10831_v14  ;;  %v10855_v14 = vld [vmem:[%s16529_s7 + $0x180] ss:$16 sps:$4 sm:$0xff]  }
 0x304   : > { %7917 = vmatprep.subr.bf16.mxu1 %v10839_v19  ;;  %v10858_v19 = vld [vmem:[%s16529_s7 + $0x380] ss:$16 sps:$4 sm:$0xff]  }
 0x305   : > { %7965 = vmatpush2.bf16.msra.mxu0 %v10858_v19 }
 0x307   : > { %7918 = vmatpush2.bf16.msra.mxu1 %v10837_v24 }
 0x308   : > { %7919 = vmatprep.subr.bf16.mxu1 %v10845_v59 }
 0x30b   : > { %7920 = vmatpush2.bf16.msra.mxu1 %v10843_v51 }
 0x30c   : > { %7921 = vmatprep.subr.bf16.mxu1 %v10851_v35  ;;  %v10867_v35 = vld [vmem:[%s16529_s7 + $0x140] ss:$16 sps:$4 sm:$0xff]  }
 0x30f   : > { %7922 = vmatpush2.bf16.msra.mxu1 %v10849_v41 }
 0x310   : > { %7923 = vmatprep.subr.bf16.mxu1 %v10857_v12 }
 0x313   : > { %7924 = vmatpush2.bf16.msra.mxu1 %v10855_v14 }
 0x364   : > { %v10528_v15 = vpop.f32.mrf.mxu0 }
 0x366   : > { %v10529_v30 = vpop.f32.mrf.mxu0 }
 0x367   : > { %v10530_v26 = vadd.f32 %v10529_v30, %v10528_v15  ;;  %v13627_v30 = vsub.s32 %v2494_v0, %v13610_v28 }
 0x368   : > { %v10587_v5 = vpop.f32.mrf.mxu1 }
 0x369   : > { %v2196_v53 = vadd.f32 %v10530_v26, %v13586_v42  ;;  %v10864_v26 = vld [vmem:[%s16529_s7 + $0x360] ss:$16 sps:$4 sm:$0xff]  }
 0x36a   : > { %v10588_v45 = vpop.f32.mrf.mxu1 }
 0x36b   : > { %v10589_v63 = vadd.f32 %v10588_v45, %v10587_v5 }
 0x36c   : > { %v10531_v21 = vpop.f32.mrf.mxu0 }
 0x36d   : > { %v2306_v13 = vadd.f32 %v10589_v63, %v2196_v53 }
 0x36e   : > { %v10532_v32 = vpop.f32.mrf.mxu0 }
 0x36f   : > { %v10533_v52 = vadd.f32 %v10532_v32, %v10531_v21 }
 0x370   : > { %v10534_v39 = vpop.f32.mrf.mxu0 }
 0x371   : > { %v2201_v33 = vadd.f32 %v10533_v52, %v13586_v42 }
 0x372   : > { %v10535_v2 = vpop.f32.mrf.mxu0 }
 0x373   : > { %v10536_v34 = vadd.f32 %v10535_v2, %v10534_v39 }
 0x374   : > { %v10537_v4 = vpop.f32.mrf.mxu0 }
 0x375   : > { %v2206_v7 = vadd.f32 %v10536_v34, %v13586_v42 }
 0x376   : > { %v10538_v54 = vpop.f32.mrf.mxu0 }
 0x377   : > { %v10539_v62 = vadd.f32 %v10538_v54, %v10537_v4  ;;  %v10861_v4 = vld [vmem:[%s16529_s7 + $0x160] ss:$16 sps:$4 sm:$0xff]   ;;  %v10863_v54 = vld [vmem:[%s16529_s7 + $0x164] ss:$16 sps:$4 sm:$0xff]  }
 0x378   : > { %v10540_v11 = vpop.f32.mrf.mxu0  ;;  %7925 = vmatprep.subr.bf16.mxu1 %v10863_v54 }
 0x379   : > { %v2211_v59 = vadd.f32 %v10539_v62, %v13586_v42  ;;  %7926 = vmatpush2.bf16.msra.mxu1 %v10861_v4 }
 0x37a   : > { %v10541_v18 = vpop.f32.mrf.mxu0 }
 0x37b   : > { %v10542_v51 = vadd.f32 %v10541_v18, %v10540_v11 }
 0x37c   : > { %v13573_v20 = vpop.f32.mrf.mxu0 }
 0x37e   : > { %v13575_v55 = vpop.f32.mrf.mxu0 }
 0x37f   : > { %v10545_v63 = vadd.f32 %v13575_v55, %v13573_v20 }
 0x380   : > { %v13577_v40 = vpop.f32.mrf.mxu0 }
 0x382   : > { %v13579_v43 = vpop.f32.mrf.mxu0 }
 0x383   : > { %v10548_v8 = vadd.f32 %v13579_v43, %v13577_v40 }
 0x384   : > { %v13581_v47 = vpop.f32.mrf.mxu0 }
 0x386   : > { %v13588_v61 = vpop.f32.mrf.mxu0 }
 0x388   : > { %v13590_v6 = vpop.f32.mrf.mxu0 }
 0x38a   : > { %v13593_v58 = vpop.f32.mrf.mxu0  ;;  %v10590_v60 = vpop.f32.mrf.mxu1 }
 0x38c   : > { %v2415_v31 = vpop.f32.mrf.mxu0  ;;  %v10591_v46 = vpop.f32.mrf.mxu1 }
 0x38d   : > { %v2416_v56 = vadd.f32 %v2415_v31, %v2306_v13  ;;  %v10592_v1 = vadd.f32 %v10591_v46, %v10590_v60  ;;  %v2216_v31 = vadd.f32 %v10542_v51, %v13586_v42 }
 0x38e   : > { %v10719_v3 = vpop.f32.mrf.mxu0  ;;  %v10593_v38 = vpop.f32.mrf.mxu1 }
 0x38f   : > { %v2459_v10 = vmax.f32 %v2416_v56, 0.0  ;;  %v2311_v17 = vadd.f32 %v10592_v1, %v2201_v33  ;;  %v10866_v3 = vld [vmem:[%s16529_s7 + $0x364] ss:$16 sps:$4 sm:$0xff]  }
 0x390   : > { %v2420_v36 = vpop.f32.mrf.mxu0  ;;  %v10594_v29 = vpop.f32.mrf.mxu1  ;;  %7966 = vmatprep.subr.bf16.mxu0 %v10866_v3 }
 0x391   : > { %2468 = vst.msk [vmem:[#allocation6] sm:$0xff] %vm1651_vm0, %v2459_v10  ;;  %v2421_v50 = vadd.f32 %v2420_v36, %v2311_v17  ;;  %v10595_v22 = vadd.f32 %v10594_v29, %v10593_v38  ;;  %v10869_v17 = vld [vmem:[%s16529_s7 + $0x144] ss:$16 sps:$4 sm:$0xff]   ;;  %v2221_v36 = vadd.f32 %v10545_v63, %v13586_v42  ;;  %7967 = vmatpush2.bf16.msra.mxu0 %v10864_v26 }
 0x392   : > { %v10722_v27 = vpop.f32.mrf.mxu0  ;;  %v10596_v44 = vpop.f32.mrf.mxu1  ;;  %7927 = vmatprep.subr.bf16.mxu1 %v10869_v17  ;;  %7968 = vmatprep.subr.bf16.mxu0 %v10872_v16  ;;  %v10881_v17 = vld [vmem:[%s16529_s7 + $0x104] ss:$16 sps:$4 sm:$0xff]  }
 0x393   : > { %v2460_v57 = vmax.f32 %v2421_v50, 0.0  ;;  %v2316_v15 = vadd.f32 %v10595_v22, %v2206_v7  ;;  %7928 = vmatpush2.bf16.msra.mxu1 %v10867_v35 }
 0x394   : > { %v2425_v24 = vpop.f32.mrf.mxu0  ;;  %v10597_v23 = vpop.f32.mrf.mxu1 }
 0x395   : > { %2469 = vst.msk [vmem:[#allocation6 + $0x8] sm:$0xff] %vm1651_vm0, %v2460_v57  ;;  %v2426_v21 = vadd.f32 %v2425_v24, %v2316_v15  ;;  %v10598_v37 = vadd.f32 %v10597_v23, %v10596_v44  ;;  %v10870_v24 = vld [vmem:[%s16529_s7 + $0x340] ss:$16 sps:$4 sm:$0xff]   ;;  %v10551_v23 = vadd.f32 %v13588_v61, %v13581_v47 }
 0x396   : > { %v10725_v32 = vpop.f32.mrf.mxu0  ;;  %v10599_v39 = vpop.f32.mrf.mxu1  ;;  %7969 = vmatpush2.bf16.msra.mxu0 %v10870_v24  ;;  %v10873_v47 = vld [vmem:[%s16529_s7 + $0x120] ss:$16 sps:$4 sm:$0xff]  }
 0x397   : > { %v2461_v11 = vmax.f32 %v2426_v21, 0.0  ;;  %v2321_v18 = vadd.f32 %v10598_v37, %v2211_v59  ;;  %v2226_v59 = vadd.f32 %v10548_v8, %v13586_v42 }
 0x398   : > { %v2430_v5 = vpop.f32.mrf.mxu0  ;;  %v9263_v45 = vld.sshfl [vmem:[#allocation6 + $0x3] sm:$0x1 pattern:$0x75316420]  ;;  %v10600_v53 = vpop.f32.mrf.mxu1  ;;  %v2506_v13 = vld [vmem:[#allocation6 + $0x2] sm:$0x1] }
 0x399   : > { %v2523_v52 = vrot.slane %v9263_v45, %v13627_v30  ;;  %v9262_v60 = vld.sshfl [vmem:[#allocation6 + $0x1] sm:$0x1 pattern:$0x75316420]  ;;  %2470 = vst.msk [vmem:[#allocation6 + $0x10] sm:$0xff] %vm1651_vm0, %v2461_v11  ;;  %v2431_v56 = vadd.f32 %v2430_v5, %v2321_v18  ;;  %v10601_v46 = vadd.f32 %v10600_v53, %v10599_v39 }
 0x39a   : > { %v10728_v9 = vpop.f32.mrf.mxu0  ;;  %v2498_v48 = vrot.slane %v9262_v60, %v13627_v30  ;;  %v9264_v33 = vld.sshfl [vmem:[#allocation6 + $0x5] sm:$0x1 pattern:$0x75316420]  ;;  %2507 = vst.msk [vmem:[#allocation7 + $0x1] sm:$0x1] %vm13631_vm5, %v2506_v13  ;;  %v10602_v55 = vpop.f32.mrf.mxu1  ;;  %v2231_v60 = vadd.f32 %v10551_v23, %v13586_v42  ;;  %v10554_v13 = vadd.f32 %v13593_v58, %v13590_v6 }
 0x39b   : > { %v2477_v20 = vld [vmem:[#allocation6] sm:$0x1]  ;;  %2524 = vrot.lane.b32.xlu1 %v2523_v52, %s12030_s19  ;;  %v2528_v34 = vld [vmem:[#allocation6 + $0x4] sm:$0x1]  ;;  %v2550_v1 = vld [vmem:[#allocation6 + $0x6] sm:$0x1]  ;;  %v2326_v38 = vadd.f32 %v10601_v46, %v2216_v31  ;;  %v2545_v62 = vrot.slane %v9264_v33, %v13627_v30 }
 0x39c   : > { %2482 = vst.msk [vmem:[#allocation7] sm:$0x1] %vm13631_vm5, %v2477_v20  ;;  %v2462_v10 = vmax.f32 %v2431_v56, 0.0  ;;  %2499 = vrot.lane.b32.xlu0 %v2498_v48, %s12030_s19  ;;  %v2435_v41 = vpop.f32.mrf.mxu0  ;;  %2529 = vst.msk [vmem:[#allocation7 + $0x2] sm:$0x1] %vm13631_vm5, %v2528_v34  ;;  %v10603_v25 = vpop.f32.mrf.mxu1 }
 0x39d   : > { %2551 = vst.msk [vmem:[#allocation7 + $0x3] sm:$0x1] %vm13631_vm5, %v2550_v1  ;;  %v9265_v29 = vld.sshfl [vmem:[#allocation6 + $0xa] sm:$0x1 pattern:$0x75316420]  ;;  %v2436_v7 = vadd.f32 %v2435_v41, %v2326_v38  ;;  %v10604_v50 = vadd.f32 %v10603_v25, %v10602_v55 }
 0x39e   : > { %v2572_v0 = vld [vmem:[#allocation6 + $0xb] sm:$0x1]  ;;  %2471 = vst.msk [vmem:[#allocation6 + $0x18] sm:$0xff] %vm1651_vm0, %v2462_v10  ;;  %v10731_v22 = vpop.f32.mrf.mxu0  ;;  %v2567_v27 = vrot.slane %v9265_v29, %v13627_v30  ;;  %v2594_v14 = vld [vmem:[#allocation6 + $0xd] sm:$0x1]  ;;  %v10605_v40 = vpop.f32.mrf.mxu1 }
 0x39f   : > { %v9266_v44 = vld.sshfl [vmem:[#allocation6 + $0xc] sm:$0x1 pattern:$0x75316420]  ;;  %2573 = vst.msk [vmem:[#allocation7 + $0x4] sm:$0x1] %vm13631_vm5, %v2572_v0  ;;  %v2331_v57 = vadd.f32 %v10604_v50, %v2221_v36  ;;  %v2236_v36 = vadd.f32 %v10554_v13, %v13586_v42 }
 0x3a0   : > { %v9267_v43 = vld.sshfl [vmem:[#allocation6 + $0xe] sm:$0x1 pattern:$0x75316420]  ;;  %2595 = vst.msk [vmem:[#allocation7 + $0x5] sm:$0x1] %vm13631_vm5, %v2594_v14  ;;  %2546 = vrot.lane.b32.xlu0 %v2545_v62, %s12030_s19  ;;  %v2440_v15 = vpop.f32.mrf.mxu0  ;;  %2568 = vrot.lane.b32.xlu1 %v2567_v27, %s12030_s19  ;;  %v10606_v51 = vpop.f32.mrf.mxu1  ;;  %v2589_v4 = vrot.slane %v9266_v44, %v13627_v30 }
 0x3a1   : > { %v2616_v12 = vld [vmem:[#allocation6 + $0xf] sm:$0x1]  ;;  %v2463_v19 = vmax.f32 %v2436_v7, 0.0  ;;  %v2638_v21 = vld [vmem:[#allocation6 + $0x14] sm:$0x1]  ;;  %v2441_v37 = vadd.f32 %v2440_v15, %v2331_v57  ;;  %v10607_v32 = vadd.f32 %v10606_v51, %v10605_v40  ;;  %v2611_v54 = vrot.slane %v9267_v43, %v13627_v30 }
 0x3a2   : > { %2617 = vst.msk [vmem:[#allocation7 + $0x6] sm:$0x1] %vm13631_vm5, %v2616_v12  ;;  %v10734_v39 = vpop.f32.mrf.mxu0  ;;  %v9268_v11 = vld.sshfl [vmem:[#allocation6 + $0x10] sm:$0x1 pattern:$0x75316420]  ;;  %v10608_v5 = vpop.f32.mrf.mxu1 }
 0x3a3   : > { %2472 = vst.msk [vmem:[#allocation6 + $0x20] sm:$0xff] %vm1651_vm0, %v2463_v19  ;;  %v2660_v18 = vld [vmem:[#allocation6 + $0x16] sm:$0x1]  ;;  %v2464_v61 = vmax.f32 %v2441_v37, 0.0  ;;  %v2336_v26 = vadd.f32 %v10607_v32, %v2226_v59  ;;  %v10876_v46 = vld [vmem:[%s16529_s7 + $0x320] ss:$16 sps:$4 sm:$0xff]   ;;  %v2633_v20 = vrot.slane %v9268_v11, %v13627_v30 }
 0x3a4   : > { %2639 = vst.msk [vmem:[#allocation7 + $0x7] sm:$0x1] %vm13631_vm5, %v2638_v21  ;;  %v9269_v45 = vld.sshfl [vmem:[#allocation6 + $0x15] sm:$0x1 pattern:$0x75316420]  ;;  %2590 = vrot.lane.b32.xlu0 %v2589_v4, %s12030_s19  ;;  %v2445_v63 = vpop.f32.mrf.mxu0  ;;  %2612 = vrot.lane.b32.xlu1 %v2611_v54, %s12030_s19  ;;  %v10609_v31 = vpop.f32.mrf.mxu1 }
 0x3a5   : > { %2661 = vst.msk [vmem:[#allocation7 + $0x8] sm:$0x1] %vm13631_vm5, %v2660_v18  ;;  %v9270_v53 = vld.sshfl [vmem:[#allocation6 + $0x17] sm:$0x1 pattern:$0x75316420]  ;;  %v2446_v9 = vadd.f32 %v2445_v63, %v2336_v26  ;;  %v10610_v48 = vadd.f32 %v10609_v31, %v10608_v5  ;;  %v2655_v55 = vrot.slane %v9269_v45, %v13627_v30 }
 0x3a6   : > { %v10875_v52 = vld [vmem:[%s16529_s7 + $0x124] ss:$16 sps:$4 sm:$0xff]   ;;  %v2682_v56 = vld [vmem:[#allocation6 + $0x18] sm:$0x1]  ;;  %2473 = vst.msk [vmem:[#allocation6 + $0x28] sm:$0xff] %vm1651_vm0, %v2464_v61  ;;  %v10737_v33 = vpop.f32.mrf.mxu0  ;;  %v10611_v58 = vpop.f32.mrf.mxu1  ;;  %v2677_v25 = vrot.slane %v9270_v53, %v13627_v30 }
 0x3a7   : > { %v9271_v34 = vld.sshfl [vmem:[#allocation6 + $0x19] sm:$0x1 pattern:$0x75316420]  ;;  %2683 = vst.msk [vmem:[#allocation7 + $0x9] sm:$0x1] %vm13631_vm5, %v2682_v56  ;;  %7929 = vmatprep.subr.bf16.mxu1 %v10875_v52  ;;  %v2341_v41 = vadd.f32 %v10610_v48, %v2231_v60 }
 0x3a8   : > { %v10878_v6 = vld [vmem:[%s16529_s7 + $0x324] ss:$16 sps:$4 sm:$0xff]   ;;  %7930 = vmatpush2.bf16.msra.mxu1 %v10873_v47  ;;  %v2704_v1 = vld [vmem:[#allocation6 + $0x1a] sm:$0x1]  ;;  %v2726_v3 = vld [vmem:[#allocation6 + $0x1f] sm:$0x1]  ;;  %2634 = vrot.lane.b32.xlu0 %v2633_v20, %s12030_s19  ;;  %v2450_v35 = vpop.f32.mrf.mxu0  ;;  %v10612_v8 = vpop.f32.mrf.mxu1  ;;  %v2699_v22 = vrot.slane %v9271_v34, %v13627_v30 }
 0x3a9   : > { %v10879_v10 = vld [vmem:[%s16529_s7 + $0x100] ss:$16 sps:$4 sm:$0xff]   ;;  %v2465_v38 = vmax.f32 %v2446_v9, 0.0  ;;  %2656 = vrot.lane.b32.xlu1 %v2655_v55, %s12030_s19  ;;  %2705 = vst.msk [vmem:[#allocation7 + $0xa] sm:$0x1] %vm13631_vm5, %v2704_v1  ;;  %7970 = vmatprep.subr.bf16.mxu0 %v10878_v6  ;;  %v2451_v0 = vadd.f32 %v2450_v35, %v2341_v41  ;;  %v10613_v7 = vadd.f32 %v10612_v8, %v10611_v58 }
 0x3aa   : > { %2727 = vst.msk [vmem:[#allocation7 + $0xb] sm:$0x1] %vm13631_vm5, %v2726_v3  ;;  %v9272_v62 = vld.sshfl [vmem:[#allocation6 + $0x1e] sm:$0x1 pattern:$0x75316420]  ;;  %v10740_v50 = vpop.f32.mrf.mxu0  ;;  %7971 = vmatpush2.bf16.msra.mxu0 %v10876_v46  ;;  %7931 = vmatprep.subr.bf16.mxu1 %v10881_v17 }
 0x3ab   : > { %v10884_v29 = vld [vmem:[%s16529_s7 + $0x304] ss:$16 sps:$4 sm:$0xff]   ;;  %2474 = vst.msk [vmem:[#allocation6 + $0x30] sm:$0xff] %vm1651_vm0, %v2465_v38  ;;  %v10882_v42 = vld [vmem:[%s16529_s7 + $0x300] ss:$16 sps:$4 sm:$0xff]   ;;  %v2466_v40 = vmax.f32 %v2451_v0, 0.0  ;;  %v2346_v43 = vadd.f32 %v10613_v7, %v2236_v36  ;;  %v2721_v24 = vrot.slane %v9272_v62, %v13627_v30 }
 0x3ac   : > { %v2748_v27 = vld [vmem:[#allocation6 + $0x21] sm:$0x1]  ;;  %v9273_v44 = vld.sshfl [vmem:[#allocation6 + $0x20] sm:$0x1 pattern:$0x75316420]  ;;  %7972 = vmatprep.subr.bf16.mxu0 %v10884_v29  ;;  %7932 = vmatpush2.bf16.msra.mxu1 %v10879_v10  ;;  %v2455_v12 = vpop.f32.mrf.mxu0 }
 0x3ad   : > { %2749 = vst.msk [vmem:[#allocation7 + $0xc] sm:$0x1] %vm13631_vm5, %v2748_v27  ;;  %v2770_v14 = vld [vmem:[#allocation6 + $0x23] sm:$0x1]  ;;  %2678 = vrot.lane.b32.xlu0 %v2677_v25, %s12030_s19  ;;  %2700 = vrot.lane.b32.xlu1 %v2699_v22, %s12030_s19  ;;  %v10887_v19 = vld [vmem:[%s16529_s7 + $0x4e4] ss:$16 sps:$4 sm:$0xff]   ;;  %v2456_v57 = vadd.f32 %v2455_v12, %v2346_v43  ;;  %v2743_v16 = vrot.slane %v9273_v44, %v13627_v30 }
 0x3ae   : > { %2771 = vst.msk [vmem:[#allocation7 + $0xd] sm:$0x1] %vm13631_vm5, %v2770_v14  ;;  %v10743_v15 = vpop.f32.mrf.mxu0  ;;  %v9274_v59 = vld.sshfl [vmem:[#allocation6 + $0x22] sm:$0x1 pattern:$0x75316420]  ;;  %7973 = vmatpush2.bf16.msra.mxu0 %v10882_v42  ;;  %7983 = vmatprep.subr.bf16.mxu1 %v10887_v19 }
 0x3af   : > { %2475 = vst.msk [vmem:[#allocation6 + $0x38] sm:$0xff] %vm1651_vm0, %v2466_v40  ;;  %v10890_v23 = vld [vmem:[%s16529_s7 + $0x6e4] ss:$16 sps:$4 sm:$0xff]   ;;  %v2467_v21 = vmax.f32 %v2456_v57, 0.0  ;;  %v2792_v37 = vld [vmem:[#allocation6 + $0x28] sm:$0x1]  ;;  %v2765_v39 = vrot.slane %v9274_v59, %v13627_v30 }
 0x3b0   : > { %v9275_v51 = vld.sshfl [vmem:[#allocation6 + $0x24] sm:$0x1 pattern:$0x75316420]  ;;  %v2814_v32 = vld [vmem:[#allocation6 + $0x2a] sm:$0x1]  ;;  %8024 = vmatprep.subr.bf16.mxu0 %v10890_v23 }
 0x3b1   : > { %2722 = vrot.lane.b32.xlu0 %v2721_v24, %s12030_s19  ;;  %2744 = vrot.lane.b32.xlu1 %v2743_v16, %s12030_s19  ;;  %2793 = vst.msk [vmem:[#allocation7 + $0xe] sm:$0x1] %vm13631_vm5, %v2792_v37  ;;  %2815 = vst.msk [vmem:[#allocation7 + $0xf] sm:$0x1] %vm13631_vm5, %v2814_v32  ;;  %v2787_v4 = vrot.slane %v9275_v51, %v13627_v30  ;;  %v2836_v18 = vld [vmem:[#allocation6 + $0x2c] sm:$0x1] }
 0x3b2   : > { %2476 = vst.msk [vmem:[#allocation6 + $0x40] sm:$0xff] %vm1651_vm0, %v2467_v21  ;;  %v9276_v54 = vld.sshfl [vmem:[#allocation6 + $0x29] sm:$0x1 pattern:$0x75316420]  ;;  %v13834_v7 = vsub.s32 1, %v13610_v28 }
 0x3b3   : > { %v9277_v11 = vld.sshfl [vmem:[#allocation6 + $0x2b] sm:$0x1 pattern:$0x75316420]  ;;  %v2858_v5 = vld [vmem:[#allocation6 + $0x2e] sm:$0x1]  ;;  %v2809_v45 = vrot.slane %v9276_v54, %v13627_v30 }
 0x3b4   : > { %2837 = vst.msk [vmem:[#allocation7 + $0x10] sm:$0x1] %vm13631_vm5, %v2836_v18  ;;  %2859 = vst.msk [vmem:[#allocation7 + $0x11] sm:$0x1] %vm13631_vm5, %v2858_v5  ;;  %v2831_v47 = vrot.slane %v9277_v11, %v13627_v30  ;;  %v2880_v63 = vld [vmem:[#allocation6 + $0x33] sm:$0x1] }
 0x3b5   : > { %2766 = vrot.lane.b32.xlu0 %v2765_v39, %s12030_s19  ;;  %2788 = vrot.lane.b32.xlu1 %v2787_v4, %s12030_s19  ;;  %v9278_v61 = vld.sshfl [vmem:[#allocation6 + $0x2d] sm:$0x1 pattern:$0x75316420]  ;;  %v2902_v53 = vld [vmem:[#allocation6 + $0x35] sm:$0x1] }
 0x3b6   : > { %v9279_v26 = vld.sshfl [vmem:[#allocation6 + $0x32] sm:$0x1 pattern:$0x75316420]  ;;  %2881 = vst.msk [vmem:[#allocation7 + $0x12] sm:$0x1] %vm13631_vm5, %v2880_v63  ;;  %v2853_v13 = vrot.slane %v9278_v61, %v13627_v30 }
 0x3b7   : > { %v9280_v60 = vld.sshfl [vmem:[#allocation6 + $0x34] sm:$0x1 pattern:$0x75316420]  ;;  %2903 = vst.msk [vmem:[#allocation7 + $0x13] sm:$0x1] %vm13631_vm5, %v2902_v53  ;;  %v2875_v31 = vrot.slane %v9279_v26, %v13627_v30 }
 0x3b8   : > { %v9281_v56 = vld.sshfl [vmem:[#allocation6 + $0x36] sm:$0x1 pattern:$0x75316420]  ;;  %v2924_v46 = vld [vmem:[#allocation6 + $0x37] sm:$0x1]  ;;  %v2897_v20 = vrot.slane %v9280_v60, %v13627_v30 }
 0x3b9   : > { %2810 = vrot.lane.b32.xlu0 %v2809_v45, %s12030_s19  ;;  %2832 = vrot.lane.b32.xlu1 %v2831_v47, %s12030_s19  ;;  %v3012_v52 = vld [vmem:[#allocation6 + $0x42] sm:$0x1]  ;;  %v2946_v9 = vld [vmem:[#allocation6 + $0x3c] sm:$0x1]  ;;  %2925 = vst.msk [vmem:[#allocation7 + $0x14] sm:$0x1] %vm13631_vm5, %v2924_v46  ;;  %v2919_v55 = vrot.slane %v9281_v56, %v13627_v30 }
 0x3ba   : > { %3013 = vst.msk [vmem:[#allocation7 + $0x18] sm:$0x1] %vm13631_vm5, %v3012_v52  ;;  %2947 = vst.msk [vmem:[#allocation7 + $0x15] sm:$0x1] %vm13631_vm5, %v2946_v9  ;;  %v2968_v48 = vld [vmem:[#allocation6 + $0x3e] sm:$0x1] }
 0x3bb   : > { %2969 = vst.msk [vmem:[#allocation7 + $0x16] sm:$0x1] %vm13631_vm5, %v2968_v48  ;;  %v2990_v33 = vld [vmem:[#allocation6 + $0x40] sm:$0x1]  ;;  %v13837_v50 = vsub.s32 3, %v13610_v28  ;;  %v13840_v22 = vsub.s32 0, %v13610_v28 }
 0x3bc   : > { %v9282_v34 = vld.sshfl [vmem:[#allocation6 + $0x38] sm:$0x1 pattern:$0x75316420]  ;;  %2991 = vst.msk [vmem:[#allocation7 + $0x17] sm:$0x1] %vm13631_vm5, %v2990_v33 }
 0x3bd   : > { %2854 = vrot.lane.b32.xlu0 %v2853_v13, %s12030_s19  ;;  %2876 = vrot.lane.b32.xlu1 %v2875_v31, %s12030_s19  ;;  %v9283_v6 = vld.sshfl [vmem:[#allocation6 + $0x3d] sm:$0x1 pattern:$0x75316420]  ;;  %v2941_v58 = vrot.slane %v9282_v34, %v13627_v30  ;;  %v13843_v42 = vsub.s32 2, %v13610_v28  ;;  %v13846_v27 = vsub.s32 5, %v13610_v28 }
 0x3be   : > { %v2963_v1 = vrot.slane %v9283_v6, %v13627_v30  ;;  %v9284_v3 = vld.sshfl [vmem:[#allocation6 + $0x3f] sm:$0x1 pattern:$0x75316420]  ;;  %v13849_v44 = vsub.s32 7, %v13610_v28  ;;  %v13948_v6 = vsub.s32 4, %v13610_v28 }
 0x3bf   : > { %v9285_v10 = vld.sshfl [vmem:[#allocation6 + $0x41] sm:$0x1 pattern:$0x75316420]  ;;  %v2985_v38 = vrot.slane %v9284_v3, %v13627_v30  ;;  %v10893_v54 = vld [vmem:[%s16529_s7 + $0x4c4] ss:$16 sps:$4 sm:$0xff]  }
 0x3c0   : > { %v3007_v2 = vrot.slane %v9285_v10, %v13627_v30  ;;  %v10885_v51 = vld [vmem:[%s16529_s7 + $0x4e0] ss:$16 sps:$4 sm:$0xff]   ;;  %v10896_v11 = vld [vmem:[%s16529_s7 + $0x6c4] ss:$16 sps:$4 sm:$0xff]  }
 0x3c1   : > { %2898 = vrot.lane.b32.xlu0 %v2897_v20, %s12030_s19  ;;  %2920 = vrot.lane.b32.xlu1 %v2919_v55, %s12030_s19  ;;  %v10888_v21 = vld [vmem:[%s16529_s7 + $0x6e0] ss:$16 sps:$4 sm:$0xff]   ;;  %v10899_v63 = vld [vmem:[%s16529_s7 + $0x4a4] ss:$16 sps:$4 sm:$0xff]  }
 0x3c2   : > { %v10891_v45 = vld [vmem:[%s16529_s7 + $0x4c0] ss:$16 sps:$4 sm:$0xff]   ;;  %v10902_v53 = vld [vmem:[%s16529_s7 + $0x6a4] ss:$16 sps:$4 sm:$0xff]  }
 0x3c3   : > { %v10894_v47 = vld [vmem:[%s16529_s7 + $0x6c0] ss:$16 sps:$4 sm:$0xff]   ;;  %v10905_v56 = vld [vmem:[%s16529_s7 + $0x484] ss:$16 sps:$4 sm:$0xff]  }
 0x3c4   : > { %v10897_v52 = vld [vmem:[%s16529_s7 + $0x4a0] ss:$16 sps:$4 sm:$0xff]   ;;  %v10908_v46 = vld [vmem:[%s16529_s7 + $0x684] ss:$16 sps:$4 sm:$0xff]  }
 0x3c5   : > { %2942 = vrot.lane.b32.xlu0 %v2941_v58, %s12030_s19  ;;  %2964 = vrot.lane.b32.xlu1 %v2963_v1, %s12030_s19  ;;  %v10900_v60 = vld [vmem:[%s16529_s7 + $0x6a0] ss:$16 sps:$4 sm:$0xff]   ;;  %v10911_v33 = vld [vmem:[%s16529_s7 + $0x464] ss:$16 sps:$4 sm:$0xff]   ;;  %v13951_v58 = vsub.s32 6, %v13610_v28 }
 0x3c6   : > { %v10903_v9 = vld [vmem:[%s16529_s7 + $0x480] ss:$16 sps:$4 sm:$0xff]   ;;  %v10914_v34 = vld [vmem:[%s16529_s7 + $0x664] ss:$16 sps:$4 sm:$0xff]  }
 0x3c7   : > { %v10906_v48 = vld [vmem:[%s16529_s7 + $0x680] ss:$16 sps:$4 sm:$0xff]   ;;  %v10932_v41 = vld [vmem:[%s16529_s7 + $0x604] ss:$16 sps:$4 sm:$0xff]  }
 0x3c9   : > { %2986 = vrot.lane.b32.xlu0 %v2985_v38, %s12030_s19  ;;  %3008 = vrot.lane.b32.xlu1 %v3007_v2, %s12030_s19  ;;  %v10909_v2 = vld [vmem:[%s16529_s7 + $0x460] ss:$16 sps:$4 sm:$0xff]   ;;  %s378_s19 = scalar_lea.vmem [#allocation8], %s377_s24 }
 0x3ca   : > { %s9190_s22 = sshll.u32 %s378_s19, 4  ;;  %s9191_s22 = int_to_ptr.vmem [resolvable:$true] %s9190_s22 }
 0x3cb   : > { %s11967_s29 = scalar_lea.vmem %s9191_s22, 16  ;;  %p11974_p0 = scmp.lt.s32.totalorder %s9191_s22, %s11972_s26 }
 0x3cc   : > { %p11968_p11 = scmp.ne.s32.totalorder %s9191_s22, %s11967_s29  ;;  %p11975_p1 = scmp.lt.s32.totalorder %s11973_s21, %s11967_s29 }
 0x3ce   : > { %p11969_p12 = pnand %p11968_p11, %p12133_p5  ;;  %p11976_p2 = por %p11975_p1, %p11974_p0 }
 0x3d0   : > { %p11970_p13 = pneg %p11969_p12 }
 0x3d2   : > { %p11977_p3 = pnand %p11976_p2, %p11970_p13 }
 0x40d   : > { %v2525_v35 = vpop.permute.xlu1 %2524 }
 0x40e   : > { %2527 = vst.msk [vmem:[#allocation7 + $0x1] sm:$0x1] %vm13809_vm8, %v2525_v35  ;;  %v2500_v17 = vpop.permute.xlu0 %2499  ;;  %v10912_v35 = vld [vmem:[%s16529_s7 + $0x660] ss:$16 sps:$4 sm:$0xff]  }
 0x40f   : > { %2505 = vst.msk [vmem:[#allocation7] sm:$0x1] %vm13809_vm8, %v2500_v17 }
 0x412   : > { %v2547_v30 = vpop.permute.xlu0 %2546  ;;  %v2569_v36 = vpop.permute.xlu1 %2568 }
 0x413   : > { %2549 = vst.msk [vmem:[#allocation7 + $0x2] sm:$0x1] %vm13809_vm8, %v2547_v30  ;;  %2571 = vst.msk [vmem:[#allocation7 + $0x3] sm:$0x1] %vm13809_vm8, %v2569_v36  ;;  %v10917_v36 = vld [vmem:[%s16529_s7 + $0x444] ss:$16 sps:$4 sm:$0xff]  }
 0x416   : > { %v2591_v49 = vpop.permute.xlu0 %2590  ;;  %v2613_v8 = vpop.permute.xlu1 %2612 }
 0x417   : > { %2593 = vst.msk [vmem:[#allocation7 + $0x4] sm:$0x1] %vm13809_vm8, %v2591_v49  ;;  %2615 = vst.msk [vmem:[#allocation7 + $0x5] sm:$0x1] %vm13809_vm8, %v2613_v8  ;;  %v10920_v49 = vld [vmem:[%s16529_s7 + $0x644] ss:$16 sps:$4 sm:$0xff]  }
 0x418   : > { %v10915_v8 = vld [vmem:[%s16529_s7 + $0x440] ss:$16 sps:$4 sm:$0xff]  }
 0x41a   : > { %v2635_v25 = vpop.permute.xlu0 %2634 }
 0x41b   : > { %v2657_v62 = vpop.permute.xlu1 %2656  ;;  %2637 = vst.msk [vmem:[#allocation7 + $0x6] sm:$0x1] %vm13809_vm8, %v2635_v25  ;;  %v10918_v25 = vld [vmem:[%s16529_s7 + $0x640] ss:$16 sps:$4 sm:$0xff]  }
 0x41c   : > { %2659 = vst.msk [vmem:[#allocation7 + $0x7] sm:$0x1] %vm13809_vm8, %v2657_v62 }
 0x41f   : > { %v2679_v29 = vpop.permute.xlu0 %2678  ;;  %v2701_v0 = vpop.permute.xlu1 %2700 }
 0x420   : > { %2681 = vst.msk [vmem:[#allocation7 + $0x8] sm:$0x1] %vm13809_vm8, %v2679_v29  ;;  %2703 = vst.msk [vmem:[#allocation7 + $0x9] sm:$0x1] %vm13809_vm8, %v2701_v0  ;;  %v10923_v0 = vld [vmem:[%s16529_s7 + $0x424] ss:$16 sps:$4 sm:$0xff]  }
 0x423   : > { %v2723_v14 = vpop.permute.xlu0 %2722  ;;  %v2745_v40 = vpop.permute.xlu1 %2744  ;;  %v13851_v43 = vld [vmem:[#allocation7] sm:$0xff] }
 0x424   : > { %2725 = vst.msk [vmem:[#allocation7 + $0xa] sm:$0x1] %vm13809_vm8, %v2723_v14  ;;  %2747 = vst.msk [vmem:[#allocation7 + $0xb] sm:$0x1] %vm13809_vm8, %v2745_v40  ;;  %v3029_v12 = vrot.slane %v13851_v43, %v13834_v7  ;;  %v3037_v19 = vrot.slane %v13851_v43, %v13837_v50  ;;  %v3025_v57 = vrot.slane %v13851_v43, %v13840_v22  ;;  %v10926_v14 = vld [vmem:[%s16529_s7 + $0x624] ss:$16 sps:$4 sm:$0xff]  }
 0x425   : > { %v3033_v15 = vrot.slane %v13851_v43, %v13843_v42  ;;  %v3045_v24 = vrot.slane %v13851_v43, %v13846_v27  ;;  %v3053_v16 = vrot.slane %v13851_v43, %v13849_v44  ;;  %v10921_v40 = vld [vmem:[%s16529_s7 + $0x420] ss:$16 sps:$4 sm:$0xff]  }
 0x426   : > { %v13869_v59 = vpack.c.bf16 %v3029_v12, %v3029_v12  ;;  %v13871_v23 = vpack.c.bf16 %v3037_v19, %v3037_v19  ;;  %v13879_v37 = vpack.c.bf16 %v3025_v57, %v3025_v57  ;;  %v10924_v12 = vld [vmem:[%s16529_s7 + $0x620] ss:$16 sps:$4 sm:$0xff]   ;;  %v10929_v19 = vld [vmem:[%s16529_s7 + $0x404] ss:$16 sps:$4 sm:$0xff]  }
 0x427   : > { %v13881_v32 = vpack.c.bf16 %v3033_v15, %v3033_v15  ;;  %v2767_v39 = vpop.permute.xlu0 %2766  ;;  %v2789_v4 = vpop.permute.xlu1 %2788  ;;  %v13897_v18 = vpack.c.bf16 %v3045_v24, %v3045_v24  ;;  %v13899_v5 = vpack.c.bf16 %v3053_v16, %v3053_v16  ;;  %v10927_v57 = vld [vmem:[%s16529_s7 + $0x400] ss:$16 sps:$4 sm:$0xff]   ;;  %v10935_v24 = vld [vmem:[%s16529_s7 + $0x5e4] ss:$16 sps:$4 sm:$0xff]  }
 0x428   : > { %2769 = vst.msk [vmem:[#allocation7 + $0xc] sm:$0x1] %vm13809_vm8, %v2767_v39  ;;  %2791 = vst.msk [vmem:[#allocation7 + $0xd] sm:$0x1] %vm13809_vm8, %v2789_v4  ;;  %7933 = vmatprep.mubr.bf16.mxu1 %v13869_v59  ;;  %7974 = vmatprep.mubr.bf16.mxu0 %v13871_v23  ;;  %v10930_v15 = vld [vmem:[%s16529_s7 + $0x600] ss:$16 sps:$4 sm:$0xff]  }
 0x429   : > { %7934 = vmatmul.mubr.bf16.vlgmr.msra.gmra.mxu1 %v13879_v37  ;;  %7975 = vmatmul.mubr.bf16.vlgmr.msra.gmra.mxu0 %v13881_v32  ;;  %v10938_v16 = vld [vmem:[%s16529_s7 + $0x7e4] ss:$16 sps:$4 sm:$0xff]   ;;  %v10936_v39 = vld [vmem:[%s16529_s7 + $0x7e0] ss:$16 sps:$4 sm:$0xff]  }
 0x42a   : > { %7984 = vmatpush1.bf16.msra.mxu1 %v10885_v51  ;;  %8025 = vmatpush1.bf16.msra.mxu0 %v10888_v21  ;;  %v10933_v21 = vld [vmem:[%s16529_s7 + $0x5e0] ss:$16 sps:$4 sm:$0xff]  }
 0x42b   : > { %v2811_v61 = vpop.permute.xlu0 %2810  ;;  %8015 = vmatprep.mubr.bf16.mxu1 %v13897_v18  ;;  %8056 = vmatprep.mubr.bf16.mxu0 %v13899_v5  ;;  %v2833_v26 = vpop.permute.xlu1 %2832 }
 0x42c   : > { %2813 = vst.msk [vmem:[#allocation7 + $0xe] sm:$0x1] %vm13809_vm8, %v2811_v61  ;;  %2835 = vst.msk [vmem:[#allocation7 + $0xf] sm:$0x1] %vm13809_vm8, %v2833_v26  ;;  %7985 = vmatprep.subr.bf16.mxu1 %v10893_v54  ;;  %8026 = vmatprep.subr.bf16.mxu0 %v10896_v11  ;;  %v10942_v61 = vld [vmem:[%s16529_s7 + $0x7c0] ss:$16 sps:$4 sm:$0xff]  }
 0x42d   : > { %v10947_v26 = vld [vmem:[%s16529_s7 + $0x5a4] ss:$16 sps:$4 sm:$0xff]  }
 0x42e   : > { %7986 = vmatpush1.bf16.msra.mxu1 %v10891_v45  ;;  %8027 = vmatpush1.bf16.msra.mxu0 %v10894_v47  ;;  %v10941_v45 = vld [vmem:[%s16529_s7 + $0x5c4] ss:$16 sps:$4 sm:$0xff]  }
 0x42f   : > { %v2855_v13 = vpop.permute.xlu0 %2854  ;;  %v2877_v31 = vpop.permute.xlu1 %2876  ;;  %7987 = vmatprep.subr.bf16.mxu1 %v10899_v63  ;;  %8028 = vmatprep.subr.bf16.mxu0 %v10902_v53  ;;  %v10944_v47 = vld [vmem:[%s16529_s7 + $0x7c4] ss:$16 sps:$4 sm:$0xff]   ;;  %v10945_v53 = vld [vmem:[%s16529_s7 + $0x5a0] ss:$16 sps:$4 sm:$0xff]  }
 0x430   : > { %2857 = vst.msk [vmem:[#allocation7 + $0x10] sm:$0x1] %vm13809_vm8, %v2855_v13  ;;  %2879 = vst.msk [vmem:[#allocation7 + $0x11] sm:$0x1] %vm13809_vm8, %v2877_v31  ;;  %v10950_v63 = vld [vmem:[%s16529_s7 + $0x7a4] ss:$16 sps:$4 sm:$0xff]  }
 0x431   : > { %v10956_v13 = vld [vmem:[%s16529_s7 + $0x784] ss:$16 sps:$4 sm:$0xff]   ;;  %v10951_v31 = vld [vmem:[%s16529_s7 + $0x580] ss:$16 sps:$4 sm:$0xff]  }
 0x432   : > { %7988 = vmatpush1.bf16.msra.mxu1 %v10897_v52  ;;  %8029 = vmatpush1.bf16.msra.mxu0 %v10900_v60  ;;  %v10948_v52 = vld [vmem:[%s16529_s7 + $0x7a0] ss:$16 sps:$4 sm:$0xff]   ;;  %v10953_v60 = vld [vmem:[%s16529_s7 + $0x584] ss:$16 sps:$4 sm:$0xff]  }
 0x433   : > { %v2899_v20 = vpop.permute.xlu0 %2898  ;;  %v2921_v55 = vpop.permute.xlu1 %2920  ;;  %7989 = vmatprep.subr.bf16.mxu1 %v10905_v56  ;;  %8030 = vmatprep.subr.bf16.mxu0 %v10908_v46  ;;  %v13953_v1 = vld [vmem:[#allocation7 + $0x8] sm:$0xff] }
 0x434   : > { %2901 = vst.msk [vmem:[#allocation7 + $0x12] sm:$0x1] %vm13809_vm8, %v2899_v20  ;;  %2923 = vst.msk [vmem:[#allocation7 + $0x13] sm:$0x1] %vm13809_vm8, %v2921_v55  ;;  %v13961_v3 = vrot.slane %v13953_v1, %v13846_v27  ;;  %v13965_v10 = vrot.slane %v13953_v1, %v13849_v44  ;;  %v13969_v28 = vrot.slane %v13953_v1, %v13948_v6  ;;  %v10954_v56 = vld [vmem:[%s16529_s7 + $0x780] ss:$16 sps:$4 sm:$0xff]  }
 0x435   : > { %v13973_v38 = vrot.slane %v13953_v1, %v13951_v58  ;;  %v10959_v46 = vld [vmem:[%s16529_s7 + $0x564] ss:$16 sps:$4 sm:$0xff]  }
 0x436   : > { %7990 = vmatpush1.bf16.msra.mxu1 %v10903_v9  ;;  %8031 = vmatpush1.bf16.msra.mxu0 %v10906_v48  ;;  %v10962_v9 = vld [vmem:[%s16529_s7 + $0x764] ss:$16 sps:$4 sm:$0xff]   ;;  %v10957_v48 = vld [vmem:[%s16529_s7 + $0x560] ss:$16 sps:$4 sm:$0xff]  }
 0x437   : > { %v2943_v17 = vpop.permute.xlu0 %2942  ;;  %v2965_v30 = vpop.permute.xlu1 %2964  ;;  %7991 = vmatprep.subr.bf16.mxu1 %v10911_v33  ;;  %8032 = vmatprep.subr.bf16.mxu0 %v10914_v34  ;;  %v10960_v33 = vld [vmem:[%s16529_s7 + $0x760] ss:$16 sps:$4 sm:$0xff]   ;;  %v10965_v20 = vld [vmem:[%s16529_s7 + $0x544] ss:$16 sps:$4 sm:$0xff]  }
 0x438   : > { %2945 = vst.msk [vmem:[#allocation7 + $0x14] sm:$0x1] %vm13809_vm8, %v2943_v17  ;;  %2967 = vst.msk [vmem:[#allocation7 + $0x15] sm:$0x1] %vm13809_vm8, %v2965_v30  ;;  %v10968_v55 = vld [vmem:[%s16529_s7 + $0x744] ss:$16 sps:$4 sm:$0xff]  }
 0x439   : > { %v10963_v34 = vld [vmem:[%s16529_s7 + $0x540] ss:$16 sps:$4 sm:$0xff]   ;;  %v10974_v17 = vld [vmem:[%s16529_s7 + $0x724] ss:$16 sps:$4 sm:$0xff]  }
 0x43a   : > { %7992 = vmatpush1.bf16.msra.mxu1 %v10909_v2  ;;  %8033 = vmatpush1.bf16.msra.mxu0 %v10912_v35  ;;  %v10966_v2 = vld [vmem:[%s16529_s7 + $0x740] ss:$16 sps:$4 sm:$0xff]   ;;  %v10971_v35 = vld [vmem:[%s16529_s7 + $0x524] ss:$16 sps:$4 sm:$0xff]  }
 0x43b   : > { %v2987_v62 = vpop.permute.xlu0 %2986  ;;  %v3009_v29 = vpop.permute.xlu1 %3008  ;;  %7993 = vmatprep.subr.bf16.mxu1 %v10917_v36  ;;  %8034 = vmatprep.subr.bf16.mxu0 %v10920_v49  ;;  %v10969_v30 = vld [vmem:[%s16529_s7 + $0x520] ss:$16 sps:$4 sm:$0xff]   ;;  %v10977_v49 = vld [vmem:[%s16529_s7 + $0x504] ss:$16 sps:$4 sm:$0xff]  }
 0x43c   : > { %2989 = vst.msk [vmem:[#allocation7 + $0x16] sm:$0x1] %vm13809_vm8, %v2987_v62  ;;  %3011 = vst.msk [vmem:[#allocation7 + $0x17] sm:$0x1] %vm13809_vm8, %v3009_v29  ;;  %v10972_v36 = vld [vmem:[%s16529_s7 + $0x720] ss:$16 sps:$4 sm:$0xff]   ;;  %v3041_v29 = vrot.slane %v13851_v43, %v13948_v6 }
 0x43d   : > { %v10978_v62 = vld [vmem:[%s16529_s7 + $0x700] ss:$16 sps:$4 sm:$0xff]  }
 0x43e   : > { %7994 = vmatpush1.bf16.msra.mxu1 %v10915_v8  ;;  %8035 = vmatpush1.bf16.msra.mxu0 %v10918_v25  ;;  %v10980_v8 = vld [vmem:[%s16529_s7 + $0x704] ss:$16 sps:$4 sm:$0xff]   ;;  %v10975_v25 = vld [vmem:[%s16529_s7 + $0x500] ss:$16 sps:$4 sm:$0xff]  }
 0x43f   : > { %7995 = vmatprep.subr.bf16.mxu1 %v10923_v0  ;;  %8036 = vmatprep.subr.bf16.mxu0 %v10926_v14  ;;  %v3049_v0 = vrot.slane %v13851_v43, %v13951_v58  ;;  %v10983_v14 = vld [vmem:[%s16529_s7 + $0x8e4] ss:$16 sps:$4 sm:$0xff]   ;;  %v10981_v43 = vld [vmem:[%s16529_s7 + $0x8e0] ss:$16 sps:$4 sm:$0xff]  }
 0x442   : > { %7996 = vmatpush1.bf16.msra.mxu1 %v10921_v40  ;;  %8037 = vmatpush1.bf16.msra.mxu0 %v10924_v12  ;;  %v10986_v40 = vld [vmem:[%s16529_s7 + $0xae4] ss:$16 sps:$4 sm:$0xff]   ;;  %v3061_v12 = vrot.slane %v13953_v1, %v13834_v7 }
 0x443   : > { %7997 = vmatprep.subr.bf16.mxu1 %v10929_v19  ;;  %8038 = vmatprep.subr.bf16.mxu0 %v10932_v41  ;;  %v14031_v51 = vld [vmem:[#allocation7 + $0x10] sm:$0xff]  ;;  %v3069_v19 = vrot.slane %v13953_v1, %v13837_v50  ;;  %v10984_v41 = vld [vmem:[%s16529_s7 + $0xae0] ss:$16 sps:$4 sm:$0xff]  }
 0x444   : > { %v14041_v4 = vrot.slane %v14031_v51, %v13846_v27  ;;  %v14045_v54 = vrot.slane %v14031_v51, %v13849_v44  ;;  %v14049_v11 = vrot.slane %v14031_v51, %v13948_v6  ;;  %v14059_v27 = vrot.slane %v14031_v51, %v13951_v58  ;;  %v10939_v44 = vld [vmem:[%s16529_s7 + $0x5c0] ss:$16 sps:$4 sm:$0xff]  }
 0x445   : > { %v14156_v6 = vpack.c.bf16 %v3041_v29, %v3041_v29  ;;  %v14158_v58 = vpack.c.bf16 %v3049_v0, %v3049_v0  ;;  %v11037_v29 = vld [vmem:[%s16529_s7 + $0x9c4] ss:$16 sps:$4 sm:$0xff]  }
 0x446   : > { %7998 = vmatpush1.bf16.msra.mxu1 %v10927_v57  ;;  %8039 = vmatpush1.bf16.msra.mxu0 %v10930_v15  ;;  %v14163_v57 = vpack.c.bf16 %v3061_v12, %v3061_v12  ;;  %v10989_v15 = vld [vmem:[%s16529_s7 + $0x8c4] ss:$16 sps:$4 sm:$0xff]  }
 0x447   : > { %7999 = vmatprep.subr.bf16.mxu1 %v10935_v24  ;;  %8040 = vmatprep.subr.bf16.mxu0 %v10938_v16  ;;  %v10992_v24 = vld [vmem:[%s16529_s7 + $0xac4] ss:$16 sps:$4 sm:$0xff]   ;;  %v14173_v16 = vpack.c.bf16 %v3069_v19, %v3069_v19 }
 0x448   : > { %v11040_v0 = vld [vmem:[%s16529_s7 + $0xbc4] ss:$16 sps:$4 sm:$0xff]  }
 0x449   : > { %v11043_v12 = vld [vmem:[%s16529_s7 + $0x9a4] ss:$16 sps:$4 sm:$0xff]  }
 0x44a   : > { %8000 = vmatpush2.bf16.msra.mxu1 %v10933_v21  ;;  %8041 = vmatpush2.bf16.msra.mxu0 %v10936_v39  ;;  %v10987_v21 = vld [vmem:[%s16529_s7 + $0x8c0] ss:$16 sps:$4 sm:$0xff]   ;;  %v11046_v19 = vld [vmem:[%s16529_s7 + $0xba4] ss:$16 sps:$4 sm:$0xff]  }
 0x44b   : > { %8001 = vmatprep.subr.bf16.mxu1 %v10941_v45  ;;  %8042 = vmatprep.subr.bf16.mxu0 %v10944_v47  ;;  %v10990_v39 = vld [vmem:[%s16529_s7 + $0xac0] ss:$16 sps:$4 sm:$0xff]   ;;  %v10995_v45 = vld [vmem:[%s16529_s7 + $0x8a4] ss:$16 sps:$4 sm:$0xff]  }
 0x44c   : > { %v10998_v47 = vld [vmem:[%s16529_s7 + $0xaa4] ss:$16 sps:$4 sm:$0xff]  }
 0x44e   : > { %8002 = vmatpush2.bf16.msra.mxu1 %v10939_v44  ;;  %8043 = vmatpush2.bf16.msra.mxu0 %v10942_v61  ;;  %v10993_v44 = vld [vmem:[%s16529_s7 + $0x8a0] ss:$16 sps:$4 sm:$0xff]  }
 0x44f   : > { %8003 = vmatprep.subr.bf16.mxu1 %v10947_v26  ;;  %8044 = vmatprep.subr.bf16.mxu0 %v10950_v63  ;;  %v10996_v61 = vld [vmem:[%s16529_s7 + $0xaa0] ss:$16 sps:$4 sm:$0xff]   ;;  %v11001_v26 = vld [vmem:[%s16529_s7 + $0x884] ss:$16 sps:$4 sm:$0xff]  }
 0x450   : > { %v11004_v63 = vld [vmem:[%s16529_s7 + $0xa84] ss:$16 sps:$4 sm:$0xff]  }
 0x452   : > { %8004 = vmatpush2.bf16.msra.mxu1 %v10945_v53  ;;  %8045 = vmatpush2.bf16.msra.mxu0 %v10948_v52  ;;  %v10999_v53 = vld [vmem:[%s16529_s7 + $0x880] ss:$16 sps:$4 sm:$0xff]  }
 0x453   : > { %8005 = vmatprep.subr.bf16.mxu1 %v10953_v60  ;;  %8046 = vmatprep.subr.bf16.mxu0 %v10956_v13  ;;  %v11002_v52 = vld [vmem:[%s16529_s7 + $0xa80] ss:$16 sps:$4 sm:$0xff]   ;;  %v11007_v60 = vld [vmem:[%s16529_s7 + $0x864] ss:$16 sps:$4 sm:$0xff]  }
 0x454   : > { %v11010_v13 = vld [vmem:[%s16529_s7 + $0xa64] ss:$16 sps:$4 sm:$0xff]  }
 0x456   : > { %8006 = vmatpush2.bf16.msra.mxu1 %v10951_v31  ;;  %8047 = vmatpush2.bf16.msra.mxu0 %v10954_v56  ;;  %v11005_v31 = vld [vmem:[%s16529_s7 + $0x860] ss:$16 sps:$4 sm:$0xff]  }
 0x457   : > { %8007 = vmatprep.subr.bf16.mxu1 %v10959_v46  ;;  %8048 = vmatprep.subr.bf16.mxu0 %v10962_v9  ;;  %v11008_v56 = vld [vmem:[%s16529_s7 + $0xa60] ss:$16 sps:$4 sm:$0xff]   ;;  %v11013_v46 = vld [vmem:[%s16529_s7 + $0x844] ss:$16 sps:$4 sm:$0xff]  }
 0x458   : > { %v11016_v9 = vld [vmem:[%s16529_s7 + $0xa44] ss:$16 sps:$4 sm:$0xff]  }
 0x45a   : > { %8008 = vmatpush2.bf16.msra.mxu1 %v10957_v48  ;;  %8049 = vmatpush2.bf16.msra.mxu0 %v10960_v33  ;;  %v11011_v48 = vld [vmem:[%s16529_s7 + $0x840] ss:$16 sps:$4 sm:$0xff]  }
 0x45b   : > { %8009 = vmatprep.subr.bf16.mxu1 %v10965_v20  ;;  %8050 = vmatprep.subr.bf16.mxu0 %v10968_v55  ;;  %v11014_v33 = vld [vmem:[%s16529_s7 + $0xa40] ss:$16 sps:$4 sm:$0xff]   ;;  %v11019_v20 = vld [vmem:[%s16529_s7 + $0x824] ss:$16 sps:$4 sm:$0xff]  }
 0x45c   : > { %v11022_v55 = vld [vmem:[%s16529_s7 + $0xa24] ss:$16 sps:$4 sm:$0xff]  }
 0x45e   : > { %8010 = vmatpush2.bf16.msra.mxu1 %v10963_v34  ;;  %8051 = vmatpush2.bf16.msra.mxu0 %v10966_v2  ;;  %v11017_v34 = vld [vmem:[%s16529_s7 + $0x820] ss:$16 sps:$4 sm:$0xff]  }
 0x45f   : > { %8011 = vmatprep.subr.bf16.mxu1 %v10971_v35  ;;  %8052 = vmatprep.subr.bf16.mxu0 %v10974_v17  ;;  %v11020_v2 = vld [vmem:[%s16529_s7 + $0xa20] ss:$16 sps:$4 sm:$0xff]   ;;  %v11025_v35 = vld [vmem:[%s16529_s7 + $0x804] ss:$16 sps:$4 sm:$0xff]  }
 0x460   : > { %v11028_v17 = vld [vmem:[%s16529_s7 + $0xa04] ss:$16 sps:$4 sm:$0xff]  }
 0x462   : > { %8012 = vmatpush2.bf16.msra.mxu1 %v10969_v30  ;;  %8053 = vmatpush2.bf16.msra.mxu0 %v10972_v36  ;;  %v11023_v30 = vld [vmem:[%s16529_s7 + $0x800] ss:$16 sps:$4 sm:$0xff]  }
 0x463   : > { %8013 = vmatprep.subr.bf16.mxu1 %v10977_v49  ;;  %8054 = vmatprep.subr.bf16.mxu0 %v10980_v8  ;;  %v11026_v36 = vld [vmem:[%s16529_s7 + $0xa00] ss:$16 sps:$4 sm:$0xff]   ;;  %v11031_v49 = vld [vmem:[%s16529_s7 + $0x9e4] ss:$16 sps:$4 sm:$0xff]  }
 0x464   : > { %v11034_v8 = vld [vmem:[%s16529_s7 + $0xbe4] ss:$16 sps:$4 sm:$0xff]  }
 0x466   : > { %8014 = vmatpush2.bf16.msra.mxu1 %v10975_v25  ;;  %8055 = vmatpush2.bf16.msra.mxu0 %v10978_v62  ;;  %v11029_v25 = vld [vmem:[%s16529_s7 + $0x9e0] ss:$16 sps:$4 sm:$0xff]  }
 0x467   : > { %8065 = vmatprep.subr.bf16.mxu1 %v10983_v14  ;;  %8106 = vmatprep.subr.bf16.mxu0 %v10986_v40  ;;  %v11032_v62 = vld [vmem:[%s16529_s7 + $0xbe0] ss:$16 sps:$4 sm:$0xff]  }
 0x468   : > { %v11035_v14 = vld [vmem:[%s16529_s7 + $0x9c0] ss:$16 sps:$4 sm:$0xff]  }
 0x469   : > { %8016 = vmatmul.mubr.bf16.vlgmr.msra.gmra.mxu1 %v14156_v6  ;;  %8057 = vmatmul.mubr.bf16.vlgmr.msra.gmra.mxu0 %v14158_v58  ;;  %v11038_v40 = vld [vmem:[%s16529_s7 + $0xbc0] ss:$16 sps:$4 sm:$0xff]  }
 0x46a   : > { %8066 = vmatpush1.bf16.msra.mxu1 %v10981_v43  ;;  %8097 = vmatprep.mubr.bf16.mxu1 %v14163_v57  ;;  %v11041_v43 = vld [vmem:[%s16529_s7 + $0x9a0] ss:$16 sps:$4 sm:$0xff]  }
 0x46b   : > { %8107 = vmatpush1.bf16.msra.mxu0 %v10984_v41  ;;  %8138 = vmatprep.mubr.bf16.mxu0 %v14173_v16  ;;  %v11044_v41 = vld [vmem:[%s16529_s7 + $0xba0] ss:$16 sps:$4 sm:$0xff]  }
 0x46c   : > { %8067 = vmatprep.subr.bf16.mxu1 %v10989_v15  ;;  %8108 = vmatprep.subr.bf16.mxu0 %v10992_v24  ;;  %v11049_v15 = vld [vmem:[%s16529_s7 + $0x984] ss:$16 sps:$4 sm:$0xff]  }
 0x46d   : > { %v11052_v24 = vld [vmem:[%s16529_s7 + $0xb84] ss:$16 sps:$4 sm:$0xff]  }
 0x46e   : > { %8068 = vmatpush1.bf16.msra.mxu1 %v10987_v21  ;;  %v11047_v21 = vld [vmem:[%s16529_s7 + $0x980] ss:$16 sps:$4 sm:$0xff]  }
 0x46f   : > { %8109 = vmatpush1.bf16.msra.mxu0 %v10990_v39  ;;  %8069 = vmatprep.subr.bf16.mxu1 %v10995_v45  ;;  %v11050_v39 = vld [vmem:[%s16529_s7 + $0xb80] ss:$16 sps:$4 sm:$0xff]   ;;  %v11055_v45 = vld [vmem:[%s16529_s7 + $0x964] ss:$16 sps:$4 sm:$0xff]  }
 0x470   : > { %8110 = vmatprep.subr.bf16.mxu0 %v10998_v47  ;;  %v11058_v47 = vld [vmem:[%s16529_s7 + $0xb64] ss:$16 sps:$4 sm:$0xff]  }
 0x472   : > { %8070 = vmatpush1.bf16.msra.mxu1 %v10993_v44  ;;  %v11053_v44 = vld [vmem:[%s16529_s7 + $0x960] ss:$16 sps:$4 sm:$0xff]  }
 0x473   : > { %8111 = vmatpush1.bf16.msra.mxu0 %v10996_v61  ;;  %8071 = vmatprep.subr.bf16.mxu1 %v11001_v26  ;;  %v11056_v61 = vld [vmem:[%s16529_s7 + $0xb60] ss:$16 sps:$4 sm:$0xff]   ;;  %v11061_v26 = vld [vmem:[%s16529_s7 + $0x944] ss:$16 sps:$4 sm:$0xff]  }
 0x474   : > { %8112 = vmatprep.subr.bf16.mxu0 %v11004_v63  ;;  %v11064_v63 = vld [vmem:[%s16529_s7 + $0xb44] ss:$16 sps:$4 sm:$0xff]  }
 0x476   : > { %8072 = vmatpush1.bf16.msra.mxu1 %v10999_v53  ;;  %v11059_v53 = vld [vmem:[%s16529_s7 + $0x940] ss:$16 sps:$4 sm:$0xff]  }
 0x477   : > { %8113 = vmatpush1.bf16.msra.mxu0 %v11002_v52  ;;  %8073 = vmatprep.subr.bf16.mxu1 %v11007_v60  ;;  %v11062_v52 = vld [vmem:[%s16529_s7 + $0xb40] ss:$16 sps:$4 sm:$0xff]   ;;  %v11067_v60 = vld [vmem:[%s16529_s7 + $0x924] ss:$16 sps:$4 sm:$0xff]  }
 0x478   : > { %8114 = vmatprep.subr.bf16.mxu0 %v11010_v13  ;;  %v11070_v13 = vld [vmem:[%s16529_s7 + $0xb24] ss:$16 sps:$4 sm:$0xff]  }
 0x47a   : > { %8074 = vmatpush1.bf16.msra.mxu1 %v11005_v31  ;;  %v11065_v31 = vld [vmem:[%s16529_s7 + $0x920] ss:$16 sps:$4 sm:$0xff]  }
 0x47b   : > { %8115 = vmatpush1.bf16.msra.mxu0 %v11008_v56  ;;  %8075 = vmatprep.subr.bf16.mxu1 %v11013_v46  ;;  %v11068_v56 = vld [vmem:[%s16529_s7 + $0xb20] ss:$16 sps:$4 sm:$0xff]   ;;  %v11073_v46 = vld [vmem:[%s16529_s7 + $0x904] ss:$16 sps:$4 sm:$0xff]  }
 0x47c   : > { %8116 = vmatprep.subr.bf16.mxu0 %v11016_v9  ;;  %v11076_v9 = vld [vmem:[%s16529_s7 + $0xb04] ss:$16 sps:$4 sm:$0xff]  }
 0x47e   : > { %8076 = vmatpush1.bf16.msra.mxu1 %v11011_v48  ;;  %v11071_v48 = vld [vmem:[%s16529_s7 + $0x900] ss:$16 sps:$4 sm:$0xff]  }
 0x47f   : > { %8117 = vmatpush1.bf16.msra.mxu0 %v11014_v33  ;;  %8077 = vmatprep.subr.bf16.mxu1 %v11019_v20  ;;  %v11074_v33 = vld [vmem:[%s16529_s7 + $0xb00] ss:$16 sps:$4 sm:$0xff]   ;;  %v3057_v20 = vrot.slane %v13953_v1, %v13840_v22 }
 0x480   : > { %8118 = vmatprep.subr.bf16.mxu0 %v11022_v55  ;;  %v11079_v55 = vld [vmem:[%s16529_s7 + $0xce4] ss:$16 sps:$4 sm:$0xff]  }
 0x482   : > { %8078 = vmatpush1.bf16.msra.mxu1 %v11017_v34  ;;  %v3065_v34 = vrot.slane %v13953_v1, %v13843_v42  ;;  %v11085_v1 = vld [vmem:[%s16529_s7 + $0xcc4] ss:$16 sps:$4 sm:$0xff]  }
 0x483   : > { %8119 = vmatpush1.bf16.msra.mxu0 %v11020_v2  ;;  %8079 = vmatprep.subr.bf16.mxu1 %v11025_v35  ;;  %v11082_v2 = vld [vmem:[%s16529_s7 + $0xee4] ss:$16 sps:$4 sm:$0xff]   ;;  %v11077_v35 = vld [vmem:[%s16529_s7 + $0xce0] ss:$16 sps:$4 sm:$0xff]  }
 0x484   : > { %8120 = vmatprep.subr.bf16.mxu0 %v11028_v17  ;;  %v14364_v17 = vpack.c.bf16 %v3057_v20, %v3057_v20  ;;  %v11136_v20 = vld [vmem:[%s16529_s7 + $0xfc4] ss:$16 sps:$4 sm:$0xff]  }
 0x486   : > { %8080 = vmatpush1.bf16.msra.mxu1 %v11023_v30  ;;  %v11080_v30 = vld [vmem:[%s16529_s7 + $0xee0] ss:$16 sps:$4 sm:$0xff]  }
 0x487   : > { %8121 = vmatpush1.bf16.msra.mxu0 %v11026_v36  ;;  %8081 = vmatprep.subr.bf16.mxu1 %v11031_v49  ;;  %v14369_v36 = vpack.c.bf16 %v3065_v34, %v3065_v34  ;;  %v14377_v49 = vpack.c.bf16 %v13961_v3, %v13961_v3  ;;  %v11086_v3 = vld [vmem:[%s16529_s7 + $0xec0] ss:$16 sps:$4 sm:$0xff]  }
 0x488   : > { %8122 = vmatprep.subr.bf16.mxu0 %v11034_v8  ;;  %v11088_v8 = vld [vmem:[%s16529_s7 + $0xec4] ss:$16 sps:$4 sm:$0xff]   ;;  %v11134_v34 = vld [vmem:[%s16529_s7 + $0xfc0] ss:$16 sps:$4 sm:$0xff]  }
 0x48a   : > { %8082 = vmatpush2.bf16.msra.mxu1 %v11029_v25  ;;  %v14385_v25 = vpack.c.bf16 %v13965_v10, %v13965_v10  ;;  %v11094_v10 = vld [vmem:[%s16529_s7 + $0xea4] ss:$16 sps:$4 sm:$0xff]  }
 0x48b   : > { %8123 = vmatpush2.bf16.msra.mxu0 %v11032_v62  ;;  %8083 = vmatprep.subr.bf16.mxu1 %v11037_v29  ;;  %v11083_v62 = vld [vmem:[%s16529_s7 + $0xcc0] ss:$16 sps:$4 sm:$0xff]   ;;  %v11091_v29 = vld [vmem:[%s16529_s7 + $0xca4] ss:$16 sps:$4 sm:$0xff]  }
 0x48c   : > { %8124 = vmatprep.subr.bf16.mxu0 %v11040_v0  ;;  %v11089_v0 = vld [vmem:[%s16529_s7 + $0xca0] ss:$16 sps:$4 sm:$0xff]  }
 0x48e   : > { %8084 = vmatpush2.bf16.msra.mxu1 %v11035_v14  ;;  %v11092_v14 = vld [vmem:[%s16529_s7 + $0xea0] ss:$16 sps:$4 sm:$0xff]  }
 0x48f   : > { %8125 = vmatpush2.bf16.msra.mxu0 %v11038_v40  ;;  %8085 = vmatprep.subr.bf16.mxu1 %v11043_v12  ;;  %v11097_v40 = vld [vmem:[%s16529_s7 + $0xc84] ss:$16 sps:$4 sm:$0xff]  }
 0x490   : > { %8126 = vmatprep.subr.bf16.mxu0 %v11046_v19  ;;  %v11100_v12 = vld [vmem:[%s16529_s7 + $0xe84] ss:$16 sps:$4 sm:$0xff]   ;;  %v11095_v19 = vld [vmem:[%s16529_s7 + $0xc80] ss:$16 sps:$4 sm:$0xff]  }
 0x492   : > { %8086 = vmatpush2.bf16.msra.mxu1 %v11041_v43  ;;  %v11098_v43 = vld [vmem:[%s16529_s7 + $0xe80] ss:$16 sps:$4 sm:$0xff]  }
 0x493   : > { %8127 = vmatpush2.bf16.msra.mxu0 %v11044_v41  ;;  %8087 = vmatprep.subr.bf16.mxu1 %v11049_v15  ;;  %v11103_v41 = vld [vmem:[%s16529_s7 + $0xc64] ss:$16 sps:$4 sm:$0xff]  }
 0x494   : > { %8128 = vmatprep.subr.bf16.mxu0 %v11052_v24  ;;  %v11106_v15 = vld [vmem:[%s16529_s7 + $0xe64] ss:$16 sps:$4 sm:$0xff]   ;;  %v11101_v24 = vld [vmem:[%s16529_s7 + $0xc60] ss:$16 sps:$4 sm:$0xff]  }
 0x496   : > { %8088 = vmatpush2.bf16.msra.mxu1 %v11047_v21  ;;  %v11104_v21 = vld [vmem:[%s16529_s7 + $0xe60] ss:$16 sps:$4 sm:$0xff]  }
 0x497   : > { %8129 = vmatpush2.bf16.msra.mxu0 %v11050_v39  ;;  %8089 = vmatprep.subr.bf16.mxu1 %v11055_v45  ;;  %v11109_v39 = vld [vmem:[%s16529_s7 + $0xc44] ss:$16 sps:$4 sm:$0xff]  }
 0x498   : > { %8130 = vmatprep.subr.bf16.mxu0 %v11058_v47  ;;  %v11112_v45 = vld [vmem:[%s16529_s7 + $0xe44] ss:$16 sps:$4 sm:$0xff]   ;;  %v11107_v47 = vld [vmem:[%s16529_s7 + $0xc40] ss:$16 sps:$4 sm:$0xff]  }
 0x49a   : > { %8090 = vmatpush2.bf16.msra.mxu1 %v11053_v44  ;;  %v11110_v44 = vld [vmem:[%s16529_s7 + $0xe40] ss:$16 sps:$4 sm:$0xff]  }
 0x49b   : > { %8131 = vmatpush2.bf16.msra.mxu0 %v11056_v61  ;;  %8091 = vmatprep.subr.bf16.mxu1 %v11061_v26  ;;  %v11115_v61 = vld [vmem:[%s16529_s7 + $0xc24] ss:$16 sps:$4 sm:$0xff]  }
 0x49c   : > { %8132 = vmatprep.subr.bf16.mxu0 %v11064_v63  ;;  %v11118_v26 = vld [vmem:[%s16529_s7 + $0xe24] ss:$16 sps:$4 sm:$0xff]   ;;  %v11113_v63 = vld [vmem:[%s16529_s7 + $0xc20] ss:$16 sps:$4 sm:$0xff]  }
 0x49e   : > { %8092 = vmatpush2.bf16.msra.mxu1 %v11059_v53  ;;  %v11116_v53 = vld [vmem:[%s16529_s7 + $0xe20] ss:$16 sps:$4 sm:$0xff]  }
 0x49f   : > { %8133 = vmatpush2.bf16.msra.mxu0 %v11062_v52  ;;  %8093 = vmatprep.subr.bf16.mxu1 %v11067_v60  ;;  %v11121_v52 = vld [vmem:[%s16529_s7 + $0xc04] ss:$16 sps:$4 sm:$0xff]  }
 0x4a0   : > { %8134 = vmatprep.subr.bf16.mxu0 %v11070_v13  ;;  %v11124_v60 = vld [vmem:[%s16529_s7 + $0xe04] ss:$16 sps:$4 sm:$0xff]   ;;  %v11119_v13 = vld [vmem:[%s16529_s7 + $0xc00] ss:$16 sps:$4 sm:$0xff]  }
 0x4a2   : > { %8094 = vmatpush2.bf16.msra.mxu1 %v11065_v31  ;;  %v11122_v31 = vld [vmem:[%s16529_s7 + $0xe00] ss:$16 sps:$4 sm:$0xff]  }
 0x4a3   : > { %8135 = vmatpush2.bf16.msra.mxu0 %v11068_v56  ;;  %8095 = vmatprep.subr.bf16.mxu1 %v11073_v46  ;;  %v11127_v56 = vld [vmem:[%s16529_s7 + $0xde4] ss:$16 sps:$4 sm:$0xff]  }
 0x4a4   : > { %8136 = vmatprep.subr.bf16.mxu0 %v11076_v9  ;;  %v11130_v46 = vld [vmem:[%s16529_s7 + $0xfe4] ss:$16 sps:$4 sm:$0xff]   ;;  %v11125_v9 = vld [vmem:[%s16529_s7 + $0xde0] ss:$16 sps:$4 sm:$0xff]  }
 0x4a6   : > { %8096 = vmatpush2.bf16.msra.mxu1 %v11071_v48  ;;  %v11128_v48 = vld [vmem:[%s16529_s7 + $0xfe0] ss:$16 sps:$4 sm:$0xff]  }
 0x4a7   : > { %8137 = vmatpush2.bf16.msra.mxu0 %v11074_v33  ;;  %8147 = vmatprep.subr.bf16.mxu1 %v11079_v55  ;;  %v11133_v33 = vld [vmem:[%s16529_s7 + $0xdc4] ss:$16 sps:$4 sm:$0xff]   ;;  %v11131_v55 = vld [vmem:[%s16529_s7 + $0xdc0] ss:$16 sps:$4 sm:$0xff]  }
 0x4a8   : > { %8188 = vmatprep.subr.bf16.mxu0 %v11082_v2  ;;  %v11139_v2 = vld [vmem:[%s16529_s7 + $0xda4] ss:$16 sps:$4 sm:$0xff]  }
 0x4a9   : > { %8098 = vmatmul.mubr.bf16.vlgmr.msra.gmra.mxu1 %v14364_v17 }
 0x4aa   : > { %8139 = vmatmul.mubr.bf16.vlgmr.msra.gmra.mxu0 %v14369_v36  ;;  %8148 = vmatpush1.bf16.msra.mxu1 %v11077_v35  ;;  %v11142_v35 = vld [vmem:[%s16529_s7 + $0xfa4] ss:$16 sps:$4 sm:$0xff]  }
 0x4ab   : > { %8179 = vmatprep.mubr.bf16.mxu1 %v14377_v49  ;;  %8189 = vmatpush1.bf16.msra.mxu0 %v11080_v30  ;;  %v11137_v30 = vld [vmem:[%s16529_s7 + $0xda0] ss:$16 sps:$4 sm:$0xff]  }
 0x4ac   : > { %8220 = vmatprep.mubr.bf16.mxu0 %v14385_v25  ;;  %8149 = vmatprep.subr.bf16.mxu1 %v11085_v1  ;;  %v11140_v1 = vld [vmem:[%s16529_s7 + $0xfa0] ss:$16 sps:$4 sm:$0xff]  }
 0x4ad   : > { %8190 = vmatprep.subr.bf16.mxu0 %v11088_v8  ;;  %v11145_v8 = vld [vmem:[%s16529_s7 + $0xd84] ss:$16 sps:$4 sm:$0xff]  }
 0x4ae   : > { %8150 = vmatpush1.bf16.msra.mxu1 %v11083_v62  ;;  %v11148_v62 = vld [vmem:[%s16529_s7 + $0xf84] ss:$16 sps:$4 sm:$0xff]  }
 0x4af   : > { %8191 = vmatpush1.bf16.msra.mxu0 %v11086_v3  ;;  %8151 = vmatprep.subr.bf16.mxu1 %v11091_v29  ;;  %v11143_v3 = vld [vmem:[%s16529_s7 + $0xd80] ss:$16 sps:$4 sm:$0xff]  }
 0x4b0   : > { %8192 = vmatprep.subr.bf16.mxu0 %v11094_v10  ;;  %v11146_v29 = vld [vmem:[%s16529_s7 + $0xf80] ss:$16 sps:$4 sm:$0xff]   ;;  %v11151_v10 = vld [vmem:[%s16529_s7 + $0xd64] ss:$16 sps:$4 sm:$0xff]  }
 0x4b2   : > { %8152 = vmatpush1.bf16.msra.mxu1 %v11089_v0  ;;  %v11154_v0 = vld [vmem:[%s16529_s7 + $0xf64] ss:$16 sps:$4 sm:$0xff]  }
 0x4b3   : > { %8193 = vmatpush1.bf16.msra.mxu0 %v11092_v14  ;;  %8153 = vmatprep.subr.bf16.mxu1 %v11097_v40  ;;  %v11149_v14 = vld [vmem:[%s16529_s7 + $0xd60] ss:$16 sps:$4 sm:$0xff]  }
 0x4b4   : > { %8194 = vmatprep.subr.bf16.mxu0 %v11100_v12  ;;  %v11152_v40 = vld [vmem:[%s16529_s7 + $0xf60] ss:$16 sps:$4 sm:$0xff]   ;;  %v11157_v12 = vld [vmem:[%s16529_s7 + $0xd44] ss:$16 sps:$4 sm:$0xff]  }
 0x4b6   : > { %8154 = vmatpush1.bf16.msra.mxu1 %v11095_v19  ;;  %v11160_v19 = vld [vmem:[%s16529_s7 + $0xf44] ss:$16 sps:$4 sm:$0xff]  }
 0x4b7   : > { %8195 = vmatpush1.bf16.msra.mxu0 %v11098_v43  ;;  %8155 = vmatprep.subr.bf16.mxu1 %v11103_v41  ;;  %v11155_v43 = vld [vmem:[%s16529_s7 + $0xd40] ss:$16 sps:$4 sm:$0xff]  }
 0x4b8   : > { %8196 = vmatprep.subr.bf16.mxu0 %v11106_v15  ;;  %v11158_v41 = vld [vmem:[%s16529_s7 + $0xf40] ss:$16 sps:$4 sm:$0xff]   ;;  %v11163_v15 = vld [vmem:[%s16529_s7 + $0xd24] ss:$16 sps:$4 sm:$0xff]  }
 0x4ba   : > { %8156 = vmatpush1.bf16.msra.mxu1 %v11101_v24  ;;  %v11166_v24 = vld [vmem:[%s16529_s7 + $0xf24] ss:$16 sps:$4 sm:$0xff]  }
 0x4bb   : > { %8197 = vmatpush1.bf16.msra.mxu0 %v11104_v21  ;;  %8157 = vmatprep.subr.bf16.mxu1 %v11109_v39  ;;  %v11161_v21 = vld [vmem:[%s16529_s7 + $0xd20] ss:$16 sps:$4 sm:$0xff]  }
 0x4bc   : > { %8198 = vmatprep.subr.bf16.mxu0 %v11112_v45  ;;  %v11164_v39 = vld [vmem:[%s16529_s7 + $0xf20] ss:$16 sps:$4 sm:$0xff]   ;;  %v11169_v45 = vld [vmem:[%s16529_s7 + $0xd04] ss:$16 sps:$4 sm:$0xff]  }
 0x4be   : > { %8158 = vmatpush1.bf16.msra.mxu1 %v11107_v47  ;;  %v11172_v47 = vld [vmem:[%s16529_s7 + $0xf04] ss:$16 sps:$4 sm:$0xff]  }
 0x4bf   : > { %8199 = vmatpush1.bf16.msra.mxu0 %v11110_v44  ;;  %8159 = vmatprep.subr.bf16.mxu1 %v11115_v61  ;;  %v11167_v44 = vld [vmem:[%s16529_s7 + $0xd00] ss:$16 sps:$4 sm:$0xff]  }
 0x4c0   : > { %8200 = vmatprep.subr.bf16.mxu0 %v11118_v26  ;;  %v11170_v61 = vld [vmem:[%s16529_s7 + $0xf00] ss:$16 sps:$4 sm:$0xff]   ;;  %v11175_v26 = vld [vmem:[%s16529_s7 + $0x10e4] ss:$16 sps:$4 sm:$0xff]  }
 0x4c2   : > { %8160 = vmatpush1.bf16.msra.mxu1 %v11113_v63  ;;  %v3956_v63 = vld [vmem:[%s16530_s8] sm:$0xf] }
 0x4c3   : > { %8201 = vmatpush1.bf16.msra.mxu0 %v11116_v53  ;;  %8161 = vmatprep.subr.bf16.mxu1 %v11121_v52  ;;  %v11178_v53 = vld [vmem:[%s16529_s7 + $0x12e4] ss:$16 sps:$4 sm:$0xff]   ;;  %v3093_v52 = vrot.slane %v14031_v51, %v13834_v7 }
 0x4c4   : > { %8202 = vmatprep.subr.bf16.mxu0 %v11124_v60  ;;  %v11173_v60 = vld [vmem:[%s16529_s7 + $0x10e0] ss:$16 sps:$4 sm:$0xff]  }
 0x4c6   : > { %8162 = vmatpush1.bf16.msra.mxu1 %v11119_v13  ;;  %v7881_v13 = vrot.slane %v3956_v63, %v13840_v22 }
 0x4c7   : > { %8203 = vmatpush1.bf16.msra.mxu0 %v11122_v31  ;;  %8163 = vmatprep.subr.bf16.mxu1 %v11127_v56  ;;  %v3101_v31 = vrot.slane %v14031_v51, %v13837_v50  ;;  %v14582_v56 = vpack.c.bf16 %v13969_v28, %v13969_v28 }
 0x4c8   : > { %8204 = vmatprep.subr.bf16.mxu0 %v11130_v46  ;;  %v11176_v46 = vld [vmem:[%s16529_s7 + $0x12e0] ss:$16 sps:$4 sm:$0xff]  }
 0x4ca   : > { %8164 = vmatpush2.bf16.msra.mxu1 %v11125_v9  ;;  %v14589_v9 = vpack.c.bf16 %v13973_v38, %v13973_v38 }
 0x4cb   : > { %8205 = vmatpush2.bf16.msra.mxu0 %v11128_v48  ;;  %8165 = vmatprep.subr.bf16.mxu1 %v11133_v33  ;;  %v7885_v48 = vrot.slane %v3956_v63, %v13834_v7  ;;  %v11181_v33 = vld [vmem:[%s16529_s7 + $0x10c4] ss:$16 sps:$4 sm:$0xff]   ;;  %v11179_v7 = vld [vmem:[%s16529_s7 + $0x10c0] ss:$16 sps:$4 sm:$0xff]  }
 0x4cc   : > { %8206 = vmatprep.subr.bf16.mxu0 %v11136_v20  ;;  %v11203_v63 = vld [vmem:[%s16529_s7 + $0x1040] ss:$16 sps:$4 sm:$0xff]  }
 0x4ce   : > { %8166 = vmatpush2.bf16.msra.mxu1 %v11131_v55  ;;  %v14596_v55 = vpack.c.bf16 %v3093_v52, %v3093_v52  ;;  %v11211_v52 = vld [vmem:[%s16529_s7 + $0x1024] ss:$16 sps:$4 sm:$0xff]  }
 0x4cf   : > { %8207 = vmatpush2.bf16.msra.mxu0 %v11134_v34  ;;  %8167 = vmatprep.subr.bf16.mxu1 %v11139_v2  ;;  %v11184_v34 = vld [vmem:[%s16529_s7 + $0x12c4] ss:$16 sps:$4 sm:$0xff]   ;;  %v14602_v2 = vpack.c.bf16 %v3101_v31, %v3101_v31  ;;  %v11212_v31 = vld [vmem:[%s16529_s7 + $0x1220] ss:$16 sps:$4 sm:$0xff]  }
 0x4d0   : > { %8208 = vmatprep.subr.bf16.mxu0 %v11142_v35 }
 0x4d2   : > { %8168 = vmatpush2.bf16.msra.mxu1 %v11137_v30 }
 0x4d3   : > { %8209 = vmatpush2.bf16.msra.mxu0 %v11140_v1  ;;  %8169 = vmatprep.subr.bf16.mxu1 %v11145_v8  ;;  %v11182_v1 = vld [vmem:[%s16529_s7 + $0x12c0] ss:$16 sps:$4 sm:$0xff]   ;;  %v11187_v8 = vld [vmem:[%s16529_s7 + $0x10a4] ss:$16 sps:$4 sm:$0xff]  }
 0x4d4   : > { %8210 = vmatprep.subr.bf16.mxu0 %v11148_v62 }
 0x4d6   : > { %8170 = vmatpush2.bf16.msra.mxu1 %v11143_v3 }
 0x4d7   : > { %8211 = vmatpush2.bf16.msra.mxu0 %v11146_v29  ;;  %8171 = vmatprep.subr.bf16.mxu1 %v11151_v10  ;;  %v11190_v29 = vld [vmem:[%s16529_s7 + $0x12a4] ss:$16 sps:$4 sm:$0xff]  }
 0x4d8   : > { %8212 = vmatprep.subr.bf16.mxu0 %v11154_v0 }
 0x4da   : > { %8172 = vmatpush2.bf16.msra.mxu1 %v11149_v14 }
 0x4db   : > { %8213 = vmatpush2.bf16.msra.mxu0 %v11152_v40  ;;  %8173 = vmatprep.subr.bf16.mxu1 %v11157_v12  ;;  %v11185_v40 = vld [vmem:[%s16529_s7 + $0x10a0] ss:$16 sps:$4 sm:$0xff]  }
 0x4dc   : > { %8214 = vmatprep.subr.bf16.mxu0 %v11160_v19 }
 0x4de   : > { %8174 = vmatpush2.bf16.msra.mxu1 %v11155_v43  ;;  %v11188_v43 = vld [vmem:[%s16529_s7 + $0x12a0] ss:$16 sps:$4 sm:$0xff]  }
 0x4df   : > { %8215 = vmatpush2.bf16.msra.mxu0 %v11158_v41  ;;  %8175 = vmatprep.subr.bf16.mxu1 %v11163_v15  ;;  %v11193_v41 = vld [vmem:[%s16529_s7 + $0x1084] ss:$16 sps:$4 sm:$0xff]  }
 0x4e0   : > { %8216 = vmatprep.subr.bf16.mxu0 %v11166_v24  ;;  %v11196_v15 = vld [vmem:[%s16529_s7 + $0x1284] ss:$16 sps:$4 sm:$0xff]   ;;  %v11191_v24 = vld [vmem:[%s16529_s7 + $0x1080] ss:$16 sps:$4 sm:$0xff]  }
 0x4e2   : > { %8176 = vmatpush2.bf16.msra.mxu1 %v11161_v21  ;;  %v11194_v21 = vld [vmem:[%s16529_s7 + $0x1280] ss:$16 sps:$4 sm:$0xff]  }
 0x4e3   : > { %8217 = vmatpush2.bf16.msra.mxu0 %v11164_v39  ;;  %8177 = vmatprep.subr.bf16.mxu1 %v11169_v45  ;;  %v11199_v39 = vld [vmem:[%s16529_s7 + $0x1064] ss:$16 sps:$4 sm:$0xff]  }
 0x4e4   : > { %8218 = vmatprep.subr.bf16.mxu0 %v11172_v47  ;;  %v11202_v45 = vld [vmem:[%s16529_s7 + $0x1264] ss:$16 sps:$4 sm:$0xff]   ;;  %v11197_v47 = vld [vmem:[%s16529_s7 + $0x1060] ss:$16 sps:$4 sm:$0xff]  }
 0x4e6   : > { %8178 = vmatpush2.bf16.msra.mxu1 %v11167_v44  ;;  %v11200_v44 = vld [vmem:[%s16529_s7 + $0x1260] ss:$16 sps:$4 sm:$0xff]  }
 0x4e7   : > { %8219 = vmatpush2.bf16.msra.mxu0 %v11170_v61  ;;  %8229 = vmatprep.subr.bf16.mxu1 %v11175_v26  ;;  %v11205_v61 = vld [vmem:[%s16529_s7 + $0x1044] ss:$16 sps:$4 sm:$0xff]  }
 0x4e8   : > { %8270 = vmatprep.subr.bf16.mxu0 %v11178_v53  ;;  %v11208_v26 = vld [vmem:[%s16529_s7 + $0x1244] ss:$16 sps:$4 sm:$0xff]   ;;  %v11206_v53 = vld [vmem:[%s16529_s7 + $0x1240] ss:$16 sps:$4 sm:$0xff]  }
 0x4e9   : > { %8180 = vmatmul.mubr.bf16.vlgmr.msra.gmra.mxu1 %v14582_v56  ;;  %v7935_v28 = vpop.f32.mrf.mxu1  ;;  %v7976_v20 = vpop.f32.mrf.mxu0 }
 0x4ea   : > { %8221 = vmatmul.mubr.bf16.vlgmr.msra.gmra.mxu0 %v14589_v9  ;;  %v7936_v38 = vadd.f32 %v7935_v28, %v7881_v13  ;;  %8230 = vmatpush1.bf16.msra.mxu1 %v11173_v60  ;;  %v11214_v60 = vld [vmem:[%s16529_s7 + $0x1224] ss:$16 sps:$4 sm:$0xff]   ;;  %v11209_v13 = vld [vmem:[%s16529_s7 + $0x1020] ss:$16 sps:$4 sm:$0xff]  }
 0x4eb   : > { %8261 = vmatprep.mubr.bf16.mxu1 %v14596_v55  ;;  %8271 = vmatpush1.bf16.msra.mxu0 %v11176_v46  ;;  %v7937_v35 = vpop.f32.mrf.mxu1  ;;  %v7978_v30 = vpop.f32.mrf.mxu0  ;;  %v11217_v46 = vld [vmem:[%s16529_s7 + $0x1004] ss:$16 sps:$4 sm:$0xff]   ;;  %v11218_v28 = vld [vmem:[%s16529_s7 + $0x1200] ss:$16 sps:$4 sm:$0xff]  }
 0x4ec   : > { %v14614_v62 = vadd.f32 %v7976_v20, %v7936_v38  ;;  %8302 = vmatprep.mubr.bf16.mxu0 %v14602_v2  ;;  %v7938_v3 = vadd.f32 %v7937_v35, %v7885_v48  ;;  %8231 = vmatprep.subr.bf16.mxu1 %v11181_v33  ;;  %v11220_v48 = vld [vmem:[%s16529_s7 + $0x1204] ss:$16 sps:$4 sm:$0xff]   ;;  %v11215_v33 = vld [vmem:[%s16529_s7 + $0x1000] ss:$16 sps:$4 sm:$0xff]  }
 0x4ed   : > { %8272 = vmatprep.subr.bf16.mxu0 %v11184_v34  ;;  %v7939_v10 = vpop.f32.mrf.mxu1  ;;  %v7980_v0 = vpop.f32.mrf.mxu0  ;;  %v11223_v20 = vld [vmem:[%s16529_s7 + $0x11e4] ss:$16 sps:$4 sm:$0xff]   ;;  %v11221_v38 = vld [vmem:[%s16529_s7 + $0x11e0] ss:$16 sps:$4 sm:$0xff]  }
 0x4ee   : > { %v14620_v14 = vadd.f32 %v7978_v30, %v7938_v3  ;;  %8232 = vmatpush1.bf16.msra.mxu1 %v11179_v7  ;;  %v11226_v34 = vld [vmem:[%s16529_s7 + $0x13e4] ss:$16 sps:$4 sm:$0xff]   ;;  %v11224_v7 = vld [vmem:[%s16529_s7 + $0x13e0] ss:$16 sps:$4 sm:$0xff]  }
 0x4ef   : > { %8273 = vmatpush1.bf16.msra.mxu0 %v11182_v1  ;;  %v7940_v12 = vpop.f32.mrf.mxu1  ;;  %v7981_v19 = vpop.f32.mrf.mxu0  ;;  %8233 = vmatprep.subr.bf16.mxu1 %v11187_v8  ;;  %v11229_v35 = vld [vmem:[%s16529_s7 + $0x11c4] ss:$16 sps:$4 sm:$0xff]   ;;  %v11227_v1 = vld [vmem:[%s16529_s7 + $0x11c0] ss:$16 sps:$4 sm:$0xff]  }
 0x4f0   : > { %8274 = vmatprep.subr.bf16.mxu0 %v11190_v29  ;;  %v11232_v30 = vld [vmem:[%s16529_s7 + $0x13c4] ss:$16 sps:$4 sm:$0xff]   ;;  %v11230_v8 = vld [vmem:[%s16529_s7 + $0x13c0] ss:$16 sps:$4 sm:$0xff]  }
 0x4f1   : > { %v11235_v3 = vld [vmem:[%s16529_s7 + $0x11a4] ss:$16 sps:$4 sm:$0xff]   ;;  %v11233_v10 = vld [vmem:[%s16529_s7 + $0x11a0] ss:$16 sps:$4 sm:$0xff]  }
 0x4f2   : > { %8234 = vmatpush1.bf16.msra.mxu1 %v11185_v40  ;;  %v11238_v29 = vld [vmem:[%s16529_s7 + $0x13a4] ss:$16 sps:$4 sm:$0xff]   ;;  %v11236_v0 = vld [vmem:[%s16529_s7 + $0x13a0] ss:$16 sps:$4 sm:$0xff]  }
 0x4f3   : > { %8275 = vmatpush1.bf16.msra.mxu0 %v11188_v43  ;;  %8235 = vmatprep.subr.bf16.mxu1 %v11193_v41  ;;  %v11241_v40 = vld [vmem:[%s16529_s7 + $0x1184] ss:$16 sps:$4 sm:$0xff]   ;;  %v11239_v19 = vld [vmem:[%s16529_s7 + $0x1180] ss:$16 sps:$4 sm:$0xff]  }
 0x4f4   : > { %8276 = vmatprep.subr.bf16.mxu0 %v11196_v15  ;;  %v11244_v12 = vld [vmem:[%s16529_s7 + $0x1384] ss:$16 sps:$4 sm:$0xff]   ;;  %v11242_v43 = vld [vmem:[%s16529_s7 + $0x1380] ss:$16 sps:$4 sm:$0xff]  }
 0x4f5   : > { %v11247_v41 = vld [vmem:[%s16529_s7 + $0x1164] ss:$16 sps:$4 sm:$0xff]  }
 0x4f6   : > { %8236 = vmatpush1.bf16.msra.mxu1 %v11191_v24  ;;  %v11250_v15 = vld [vmem:[%s16529_s7 + $0x1364] ss:$16 sps:$4 sm:$0xff]   ;;  %v11245_v24 = vld [vmem:[%s16529_s7 + $0x1160] ss:$16 sps:$4 sm:$0xff]  }
 0x4f7   : > { %8277 = vmatpush1.bf16.msra.mxu0 %v11194_v21  ;;  %8237 = vmatprep.subr.bf16.mxu1 %v11199_v39  ;;  %v11248_v21 = vld [vmem:[%s16529_s7 + $0x1360] ss:$16 sps:$4 sm:$0xff]   ;;  %v11253_v39 = vld [vmem:[%s16529_s7 + $0x1144] ss:$16 sps:$4 sm:$0xff]  }
 0x4f8   : > { %8278 = vmatprep.subr.bf16.mxu0 %v11202_v45  ;;  %v11256_v45 = vld [vmem:[%s16529_s7 + $0x1344] ss:$16 sps:$4 sm:$0xff]  }
 0x4fa   : > { %8238 = vmatpush1.bf16.msra.mxu1 %v11197_v47  ;;  %v11251_v47 = vld [vmem:[%s16529_s7 + $0x1140] ss:$16 sps:$4 sm:$0xff]  }
 0x4fb   : > { %8279 = vmatpush1.bf16.msra.mxu0 %v11200_v44  ;;  %8239 = vmatprep.subr.bf16.mxu1 %v11205_v61  ;;  %v11254_v44 = vld [vmem:[%s16529_s7 + $0x1340] ss:$16 sps:$4 sm:$0xff]   ;;  %v11259_v61 = vld [vmem:[%s16529_s7 + $0x1124] ss:$16 sps:$4 sm:$0xff]  }
 0x4fc   : > { %8280 = vmatprep.subr.bf16.mxu0 %v11208_v26  ;;  %v11262_v26 = vld [vmem:[%s16529_s7 + $0x1324] ss:$16 sps:$4 sm:$0xff]  }
 0x4fe   : > { %8240 = vmatpush1.bf16.msra.mxu1 %v11203_v63  ;;  %v11257_v63 = vld [vmem:[%s16529_s7 + $0x1120] ss:$16 sps:$4 sm:$0xff]  }
 0x4ff   : > { %8281 = vmatpush1.bf16.msra.mxu0 %v11206_v53  ;;  %8241 = vmatprep.subr.bf16.mxu1 %v11211_v52  ;;  %v11260_v53 = vld [vmem:[%s16529_s7 + $0x1320] ss:$16 sps:$4 sm:$0xff]   ;;  %v11265_v52 = vld [vmem:[%s16529_s7 + $0x1104] ss:$16 sps:$4 sm:$0xff]  }
 0x500   : > { %8282 = vmatprep.subr.bf16.mxu0 %v11214_v60  ;;  %v11268_v60 = vld [vmem:[%s16529_s7 + $0x1304] ss:$16 sps:$4 sm:$0xff]  }
 0x502   : > { %8242 = vmatpush1.bf16.msra.mxu1 %v11209_v13  ;;  %v11263_v13 = vld [vmem:[%s16529_s7 + $0x1100] ss:$16 sps:$4 sm:$0xff]  }
 0x503   : > { %8283 = vmatpush1.bf16.msra.mxu0 %v11212_v31  ;;  %8243 = vmatprep.subr.bf16.mxu1 %v11217_v46  ;;  %v11266_v31 = vld [vmem:[%s16529_s7 + $0x1300] ss:$16 sps:$4 sm:$0xff]   ;;  %v3089_v46 = vrot.slane %v14031_v51, %v13840_v22 }
 0x504   : > { %8284 = vmatprep.subr.bf16.mxu0 %v11220_v48  ;;  %v11271_v48 = vld [vmem:[%s16529_s7 + $0x14e4] ss:$16 sps:$4 sm:$0xff]   ;;  %v11272_v22 = vld [vmem:[%s16529_s7 + $0x16e0] ss:$16 sps:$4 sm:$0xff]  }
 0x506   : > { %8244 = vmatpush1.bf16.msra.mxu1 %v11215_v33  ;;  %v3097_v33 = vrot.slane %v14031_v51, %v13843_v42  ;;  %v11277_v51 = vld [vmem:[%s16529_s7 + $0x14c4] ss:$16 sps:$4 sm:$0xff]  }
 0x507   : > { %8285 = vmatpush1.bf16.msra.mxu0 %v11218_v28  ;;  %8245 = vmatprep.subr.bf16.mxu1 %v11223_v20  ;;  %v11274_v28 = vld [vmem:[%s16529_s7 + $0x16e4] ss:$16 sps:$4 sm:$0xff]   ;;  %v11269_v20 = vld [vmem:[%s16529_s7 + $0x14e0] ss:$16 sps:$4 sm:$0xff]  }
 0x508   : > { %8286 = vmatprep.subr.bf16.mxu0 %v11226_v34  ;;  %v14797_v34 = vpack.c.bf16 %v3089_v46, %v3089_v46  ;;  %v11307_v46 = vld [vmem:[%s16529_s7 + $0x1424] ss:$16 sps:$4 sm:$0xff]  }
 0x50a   : > { %8246 = vmatpush2.bf16.msra.mxu1 %v11221_v38  ;;  %v14802_v38 = vpack.c.bf16 %v3097_v33, %v3097_v33  ;;  %v11305_v33 = vld [vmem:[%s16529_s7 + $0x1420] ss:$16 sps:$4 sm:$0xff]  }
 0x50b   : > { %8287 = vmatpush2.bf16.msra.mxu0 %v11224_v7  ;;  %8247 = vmatprep.subr.bf16.mxu1 %v11229_v35 }
 0x50c   : > { %8288 = vmatprep.subr.bf16.mxu0 %v11232_v30  ;;  %v14810_v30 = vpack.c.bf16 %v14041_v4, %v14041_v4 }
 0x50e   : > { %8248 = vmatpush2.bf16.msra.mxu1 %v11227_v1  ;;  %v11280_v1 = vld [vmem:[%s16529_s7 + $0x16c4] ss:$16 sps:$4 sm:$0xff]  }
 0x50f   : > { %8289 = vmatpush2.bf16.msra.mxu0 %v11230_v8  ;;  %8249 = vmatprep.subr.bf16.mxu1 %v11235_v3  ;;  %v14819_v3 = vpack.c.bf16 %v14045_v54, %v14045_v54 }
 0x510   : > { %8290 = vmatprep.subr.bf16.mxu0 %v11238_v29  ;;  %v11275_v29 = vld [vmem:[%s16529_s7 + $0x14c0] ss:$16 sps:$4 sm:$0xff]  }
 0x512   : > { %8250 = vmatpush2.bf16.msra.mxu1 %v11233_v10 }
 0x513   : > { %8291 = vmatpush2.bf16.msra.mxu0 %v11236_v0  ;;  %8251 = vmatprep.subr.bf16.mxu1 %v11241_v40  ;;  %v11283_v0 = vld [vmem:[%s16529_s7 + $0x14a4] ss:$16 sps:$4 sm:$0xff]  }
 0x514   : > { %8292 = vmatprep.subr.bf16.mxu0 %v11244_v12  ;;  %v11286_v12 = vld [vmem:[%s16529_s7 + $0x16a4] ss:$16 sps:$4 sm:$0xff]  }
 0x516   : > { %8252 = vmatpush2.bf16.msra.mxu1 %v11239_v19 }
 0x517   : > { %8293 = vmatpush2.bf16.msra.mxu0 %v11242_v43  ;;  %8253 = vmatprep.subr.bf16.mxu1 %v11247_v41 }
 0x518   : > { %8294 = vmatprep.subr.bf16.mxu0 %v11250_v15  ;;  %v11281_v15 = vld [vmem:[%s16529_s7 + $0x14a0] ss:$16 sps:$4 sm:$0xff]  }
 0x51a   : > { %8254 = vmatpush2.bf16.msra.mxu1 %v11245_v24 }
 0x51b   : > { %8295 = vmatpush2.bf16.msra.mxu0 %v11248_v21  ;;  %8255 = vmatprep.subr.bf16.mxu1 %v11253_v39  ;;  %v11289_v39 = vld [vmem:[%s16529_s7 + $0x1484] ss:$16 sps:$4 sm:$0xff]  }
 0x51c   : > { %8296 = vmatprep.subr.bf16.mxu0 %v11256_v45  ;;  %v11292_v45 = vld [vmem:[%s16529_s7 + $0x1684] ss:$16 sps:$4 sm:$0xff]  }
 0x51e   : > { %8256 = vmatpush2.bf16.msra.mxu1 %v11251_v47  ;;  %v11287_v47 = vld [vmem:[%s16529_s7 + $0x1480] ss:$16 sps:$4 sm:$0xff]  }
 0x51f   : > { %8297 = vmatpush2.bf16.msra.mxu0 %v11254_v44  ;;  %8257 = vmatprep.subr.bf16.mxu1 %v11259_v61  ;;  %v11290_v44 = vld [vmem:[%s16529_s7 + $0x1680] ss:$16 sps:$4 sm:$0xff]   ;;  %v11295_v61 = vld [vmem:[%s16529_s7 + $0x1464] ss:$16 sps:$4 sm:$0xff]  }
 0x520   : > { %8298 = vmatprep.subr.bf16.mxu0 %v11262_v26  ;;  %v11298_v26 = vld [vmem:[%s16529_s7 + $0x1664] ss:$16 sps:$4 sm:$0xff]  }
 0x522   : > { %8258 = vmatpush2.bf16.msra.mxu1 %v11257_v63  ;;  %v11293_v63 = vld [vmem:[%s16529_s7 + $0x1460] ss:$16 sps:$4 sm:$0xff]  }
 0x523   : > { %8299 = vmatpush2.bf16.msra.mxu0 %v11260_v53  ;;  %8259 = vmatprep.subr.bf16.mxu1 %v11265_v52  ;;  %v11296_v53 = vld [vmem:[%s16529_s7 + $0x1660] ss:$16 sps:$4 sm:$0xff]   ;;  %v11301_v52 = vld [vmem:[%s16529_s7 + $0x1444] ss:$16 sps:$4 sm:$0xff]  }
 0x524   : > { %8300 = vmatprep.subr.bf16.mxu0 %v11268_v60  ;;  %v11304_v60 = vld [vmem:[%s16529_s7 + $0x1644] ss:$16 sps:$4 sm:$0xff]  }
 0x526   : > { %8260 = vmatpush2.bf16.msra.mxu1 %v11263_v13  ;;  %v11299_v13 = vld [vmem:[%s16529_s7 + $0x1440] ss:$16 sps:$4 sm:$0xff]  }
 0x527   : > { %8301 = vmatpush2.bf16.msra.mxu0 %v11266_v31  ;;  %8311 = vmatprep.subr.bf16.mxu1 %v11271_v48  ;;  %v11302_v31 = vld [vmem:[%s16529_s7 + $0x1640] ss:$16 sps:$4 sm:$0xff]   ;;  %v11310_v48 = vld [vmem:[%s16529_s7 + $0x1624] ss:$16 sps:$4 sm:$0xff]  }
 0x528   : > { %8352 = vmatprep.subr.bf16.mxu0 %v11274_v28  ;;  %v11308_v28 = vld [vmem:[%s16529_s7 + $0x1620] ss:$16 sps:$4 sm:$0xff]  }
 0x529   : > { %v8017_v7 = vpop.f32.mrf.mxu1  ;;  %v8058_v35 = vpop.f32.mrf.mxu0  ;;  %8262 = vmatmul.mubr.bf16.vlgmr.msra.gmra.mxu1 %v14797_v34 }
 0x52a   : > { %v8018_v8 = vadd.f32 %v8017_v7, %v14614_v62  ;;  %8303 = vmatmul.mubr.bf16.vlgmr.msra.gmra.mxu0 %v14802_v38  ;;  %8312 = vmatpush1.bf16.msra.mxu1 %v11269_v20  ;;  %v11278_v62 = vld [vmem:[%s16529_s7 + $0x16c0] ss:$16 sps:$4 sm:$0xff]   ;;  %v11313_v20 = vld [vmem:[%s16529_s7 + $0x1404] ss:$16 sps:$4 sm:$0xff]  }
 0x52b   : > { %8343 = vmatprep.mubr.bf16.mxu1 %v14810_v30  ;;  %8353 = vmatpush1.bf16.msra.mxu0 %v11272_v22  ;;  %v8019_v4 = vpop.f32.mrf.mxu1  ;;  %v8060_v10 = vpop.f32.mrf.mxu0  ;;  %v11316_v22 = vld [vmem:[%s16529_s7 + $0x1604] ss:$16 sps:$4 sm:$0xff]   ;;  %v11314_v7 = vld [vmem:[%s16529_s7 + $0x1600] ss:$16 sps:$4 sm:$0xff]  }
 0x52c   : > { %v14831_v40 = vadd.f32 %v8058_v35, %v8018_v8  ;;  %8384 = vmatprep.mubr.bf16.mxu0 %v14819_v3  ;;  %v8020_v54 = vadd.f32 %v8019_v4, %v14620_v14  ;;  %8313 = vmatprep.subr.bf16.mxu1 %v11277_v51  ;;  %v11284_v14 = vld [vmem:[%s16529_s7 + $0x16a0] ss:$16 sps:$4 sm:$0xff]   ;;  %v11319_v35 = vld [vmem:[%s16529_s7 + $0x15e4] ss:$16 sps:$4 sm:$0xff]  }
 0x52d   : > { %v8021_v19 = vpop.f32.mrf.mxu1  ;;  %v8062_v43 = vpop.f32.mrf.mxu0  ;;  %8354 = vmatprep.subr.bf16.mxu0 %v11280_v1  ;;  %v11311_v51 = vld [vmem:[%s16529_s7 + $0x1400] ss:$16 sps:$4 sm:$0xff]   ;;  %v11322_v1 = vld [vmem:[%s16529_s7 + $0x17e4] ss:$16 sps:$4 sm:$0xff]  }
 0x52e   : > { %v14838_v41 = vadd.f32 %v8060_v10, %v8020_v54  ;;  %8314 = vmatpush1.bf16.msra.mxu1 %v11275_v29  ;;  %v11317_v8 = vld [vmem:[%s16529_s7 + $0x15e0] ss:$16 sps:$4 sm:$0xff]   ;;  %v11325_v4 = vld [vmem:[%s16529_s7 + $0x15c4] ss:$16 sps:$4 sm:$0xff]  }
 0x52f   : > { %8355 = vmatpush1.bf16.msra.mxu0 %v11278_v62  ;;  %v8022_v24 = vpop.f32.mrf.mxu1  ;;  %v8063_v21 = vpop.f32.mrf.mxu0  ;;  %8315 = vmatprep.subr.bf16.mxu1 %v11283_v0  ;;  %v11320_v29 = vld [vmem:[%s16529_s7 + $0x17e0] ss:$16 sps:$4 sm:$0xff]   ;;  %v11328_v10 = vld [vmem:[%s16529_s7 + $0x17c4] ss:$16 sps:$4 sm:$0xff]  }
 0x530   : > { %8356 = vmatprep.subr.bf16.mxu0 %v11286_v12  ;;  %v11323_v62 = vld [vmem:[%s16529_s7 + $0x15c0] ss:$16 sps:$4 sm:$0xff]   ;;  %v11331_v54 = vld [vmem:[%s16529_s7 + $0x15a4] ss:$16 sps:$4 sm:$0xff]  }
 0x531   : > { %v11326_v0 = vld [vmem:[%s16529_s7 + $0x17c0] ss:$16 sps:$4 sm:$0xff]   ;;  %v11334_v12 = vld [vmem:[%s16529_s7 + $0x17a4] ss:$16 sps:$4 sm:$0xff]  }
 0x532   : > { %8316 = vmatpush1.bf16.msra.mxu1 %v11281_v15  ;;  %v11329_v19 = vld [vmem:[%s16529_s7 + $0x15a0] ss:$16 sps:$4 sm:$0xff]   ;;  %v11337_v15 = vld [vmem:[%s16529_s7 + $0x1584] ss:$16 sps:$4 sm:$0xff]  }
 0x533   : > { %8357 = vmatpush1.bf16.msra.mxu0 %v11284_v14  ;;  %8317 = vmatprep.subr.bf16.mxu1 %v11289_v39  ;;  %v11332_v43 = vld [vmem:[%s16529_s7 + $0x17a0] ss:$16 sps:$4 sm:$0xff]   ;;  %v11340_v24 = vld [vmem:[%s16529_s7 + $0x1784] ss:$16 sps:$4 sm:$0xff]  }
 0x534   : > { %8358 = vmatprep.subr.bf16.mxu0 %v11292_v45  ;;  %v11335_v21 = vld [vmem:[%s16529_s7 + $0x1580] ss:$16 sps:$4 sm:$0xff]   ;;  %v11343_v39 = vld [vmem:[%s16529_s7 + $0x1564] ss:$16 sps:$4 sm:$0xff]  }
 0x535   : > { %v11338_v14 = vld [vmem:[%s16529_s7 + $0x1780] ss:$16 sps:$4 sm:$0xff]   ;;  %v11346_v45 = vld [vmem:[%s16529_s7 + $0x1764] ss:$16 sps:$4 sm:$0xff]  }
 0x536   : > { %8318 = vmatpush1.bf16.msra.mxu1 %v11287_v47  ;;  %v11341_v47 = vld [vmem:[%s16529_s7 + $0x1560] ss:$16 sps:$4 sm:$0xff]  }
 0x537   : > { %8359 = vmatpush1.bf16.msra.mxu0 %v11290_v44  ;;  %8319 = vmatprep.subr.bf16.mxu1 %v11295_v61  ;;  %v11344_v44 = vld [vmem:[%s16529_s7 + $0x1760] ss:$16 sps:$4 sm:$0xff]   ;;  %v11349_v61 = vld [vmem:[%s16529_s7 + $0x1544] ss:$16 sps:$4 sm:$0xff]  }
 0x538   : > { %8360 = vmatprep.subr.bf16.mxu0 %v11298_v26  ;;  %v11352_v26 = vld [vmem:[%s16529_s7 + $0x1744] ss:$16 sps:$4 sm:$0xff]  }
 0x53a   : > { %8320 = vmatpush1.bf16.msra.mxu1 %v11293_v63  ;;  %v11347_v63 = vld [vmem:[%s16529_s7 + $0x1540] ss:$16 sps:$4 sm:$0xff]  }
 0x53b   : > { %8361 = vmatpush1.bf16.msra.mxu0 %v11296_v53  ;;  %8321 = vmatprep.subr.bf16.mxu1 %v11301_v52  ;;  %v11350_v53 = vld [vmem:[%s16529_s7 + $0x1740] ss:$16 sps:$4 sm:$0xff]   ;;  %v11355_v52 = vld [vmem:[%s16529_s7 + $0x1524] ss:$16 sps:$4 sm:$0xff]  }
 0x53c   : > { %8362 = vmatprep.subr.bf16.mxu0 %v11304_v60  ;;  %v11358_v60 = vld [vmem:[%s16529_s7 + $0x1724] ss:$16 sps:$4 sm:$0xff]  }
 0x53e   : > { %8322 = vmatpush1.bf16.msra.mxu1 %v11299_v13  ;;  %v11353_v13 = vld [vmem:[%s16529_s7 + $0x1520] ss:$16 sps:$4 sm:$0xff]  }
 0x53f   : > { %8363 = vmatpush1.bf16.msra.mxu0 %v11302_v31  ;;  %8323 = vmatprep.subr.bf16.mxu1 %v11307_v46  ;;  %v11356_v31 = vld [vmem:[%s16529_s7 + $0x1720] ss:$16 sps:$4 sm:$0xff]   ;;  %v11361_v46 = vld [vmem:[%s16529_s7 + $0x1504] ss:$16 sps:$4 sm:$0xff]  }
 0x540   : > { %8364 = vmatprep.subr.bf16.mxu0 %v11310_v48  ;;  %v11364_v48 = vld [vmem:[%s16529_s7 + $0x1704] ss:$16 sps:$4 sm:$0xff]  }
 0x542   : > { %8324 = vmatpush1.bf16.msra.mxu1 %v11305_v33  ;;  %v11359_v33 = vld [vmem:[%s16529_s7 + $0x1500] ss:$16 sps:$4 sm:$0xff]  }
 0x543   : > { %8365 = vmatpush1.bf16.msra.mxu0 %v11308_v28  ;;  %8325 = vmatprep.subr.bf16.mxu1 %v11313_v20  ;;  %v11362_v28 = vld [vmem:[%s16529_s7 + $0x1700] ss:$16 sps:$4 sm:$0xff]   ;;  %v11367_v20 = vld [vmem:[%s16529_s7 + $0x1864] ss:$16 sps:$4 sm:$0xff]  }
 0x544   : > { %8366 = vmatprep.subr.bf16.mxu0 %v11316_v22  ;;  %v11370_v22 = vld [vmem:[%s16529_s7 + $0x2ec] ss:$16 sps:$4 sm:$0xff]  }
 0x546   : > { %8326 = vmatpush1.bf16.msra.mxu1 %v11311_v51  ;;  %v11365_v51 = vld [vmem:[%s16529_s7 + $0x1860] ss:$16 sps:$4 sm:$0xff]  }
 0x547   : > { %8367 = vmatpush1.bf16.msra.mxu0 %v11314_v7  ;;  %8327 = vmatprep.subr.bf16.mxu1 %v11319_v35  ;;  %v15013_v7 = vpack.c.bf16 %v14049_v11, %v14049_v11  ;;  %v11368_v35 = vld [vmem:[%s16529_s7 + $0x2e8] ss:$16 sps:$4 sm:$0xff]  }
 0x548   : > { %8368 = vmatprep.subr.bf16.mxu0 %v11322_v1  ;;  %v15020_v1 = vpack.c.bf16 %v14059_v27, %v14059_v27  ;;  %v11371_v27 = vld [vmem:[%s16529_s7 + $0x1840] ss:$16 sps:$4 sm:$0xff]  }
 0x54a   : > { %8328 = vmatpush2.bf16.msra.mxu1 %v11317_v8  ;;  %v11373_v8 = vld [vmem:[%s16529_s7 + $0x1844] ss:$16 sps:$4 sm:$0xff]  }
 0x54b   : > { %8369 = vmatpush2.bf16.msra.mxu0 %v11320_v29  ;;  %8329 = vmatprep.subr.bf16.mxu1 %v11325_v4  ;;  %v11376_v29 = vld [vmem:[%s16529_s7 + $0x2cc] ss:$16 sps:$4 sm:$0xff]  }
 0x54c   : > { %8370 = vmatprep.subr.bf16.mxu0 %v11328_v10 }
 0x54e   : > { %8330 = vmatpush2.bf16.msra.mxu1 %v11323_v62 }
 0x54f   : > { %8371 = vmatpush2.bf16.msra.mxu0 %v11326_v0  ;;  %8331 = vmatprep.subr.bf16.mxu1 %v11331_v54  ;;  %v11374_v0 = vld [vmem:[%s16529_s7 + $0x2c8] ss:$16 sps:$4 sm:$0xff]  }
 0x550   : > { %8372 = vmatprep.subr.bf16.mxu0 %v11334_v12 }
 0x552   : > { %8332 = vmatpush2.bf16.msra.mxu1 %v11329_v19 }
 0x553   : > { %8373 = vmatpush2.bf16.msra.mxu0 %v11332_v43  ;;  %8333 = vmatprep.subr.bf16.mxu1 %v11337_v15  ;;  %v12033_v15 = vmov 0  }
 0x554   : > { %8374 = vmatprep.subr.bf16.mxu0 %v11340_v24 }
 0x556   : > { %8334 = vmatpush2.bf16.msra.mxu1 %v11335_v21 }
 0x557   : > { %8375 = vmatpush2.bf16.msra.mxu0 %v11338_v14  ;;  %8335 = vmatprep.subr.bf16.mxu1 %v11343_v39  ;;  %v11377_v14 = vld [vmem:[%s16529_s7 + $0x1820] ss:$16 sps:$4 sm:$0xff]   ;;  %v11380_v39 = vld [vmem:[%s16529_s7 + $0x2a8] ss:$16 sps:$4 sm:$0xff]  }
 0x558   : > { %8376 = vmatprep.subr.bf16.mxu0 %v11346_v45  ;;  %v11385_v45 = vld [vmem:[%s16529_s7 + $0x1804] ss:$16 sps:$4 sm:$0xff]  }
 0x55a   : > { %8336 = vmatpush2.bf16.msra.mxu1 %v11341_v47 }
 0x55b   : > { %8377 = vmatpush2.bf16.msra.mxu0 %v11344_v44  ;;  %8337 = vmatprep.subr.bf16.mxu1 %v11349_v61  ;;  %v11388_v44 = vld [vmem:[%s16529_s7 + $0x28c] ss:$16 sps:$4 sm:$0xff]   ;;  %v11383_v61 = vld [vmem:[%s16529_s7 + $0x1800] ss:$16 sps:$4 sm:$0xff]  }
 0x55c   : > { %8378 = vmatprep.subr.bf16.mxu0 %v11352_v26  ;;  %v11386_v26 = vld [vmem:[%s16529_s7 + $0x288] ss:$16 sps:$4 sm:$0xff]  }
 0x55e   : > { %8338 = vmatpush2.bf16.msra.mxu1 %v11347_v63  ;;  %v11391_v63 = vld [vmem:[%s16529_s7 + $0xec] ss:$16 sps:$4 sm:$0xff]  }
 0x55f   : > { %8379 = vmatpush2.bf16.msra.mxu0 %v11350_v53  ;;  %8339 = vmatprep.subr.bf16.mxu1 %v11355_v52  ;;  %v9286_v53 = vld [vmem:[#allocation7 + $0x18] ss:$0 sm:$0xff]  ;;  %v11394_v52 = vld [vmem:[%s16529_s7 + $0x26c] ss:$16 sps:$4 sm:$0xff]  }
 0x560   : > { %8380 = vmatprep.subr.bf16.mxu0 %v11358_v60  ;;  %v11389_v60 = vld [vmem:[%s16529_s7 + $0xe8] ss:$16 sps:$4 sm:$0xff]  }
 0x562   : > { %8340 = vmatpush2.bf16.msra.mxu1 %v11353_v13  ;;  %v15077_v13 = vpack.c.bf16 %v9286_v53, %v9286_v53  ;;  %v11445_v53 = vld [vmem:[%s16529_s7 + $0x1cc] ss:$16 sps:$4 sm:$0xff]  }
 0x563   : > { %8381 = vmatpush2.bf16.msra.mxu0 %v11356_v31  ;;  %8341 = vmatprep.subr.bf16.mxu1 %v11361_v46  ;;  %v11392_v31 = vld [vmem:[%s16529_s7 + $0x268] ss:$16 sps:$4 sm:$0xff]   ;;  %v11397_v46 = vld [vmem:[%s16529_s7 + $0xcc] ss:$16 sps:$4 sm:$0xff]  }
 0x564   : > { %8382 = vmatprep.subr.bf16.mxu0 %v11364_v48  ;;  %v11400_v48 = vld [vmem:[%s16529_s7 + $0x24c] ss:$16 sps:$4 sm:$0xff]  }
 0x566   : > { %8342 = vmatpush2.bf16.msra.mxu1 %v11359_v33  ;;  %v11395_v33 = vld [vmem:[%s16529_s7 + $0xc8] ss:$16 sps:$4 sm:$0xff]  }
 0x567   : > { %8383 = vmatpush2.bf16.msra.mxu0 %v11362_v28  ;;  %8401 = vmatprep.subr.bf16.mxu1 %v11367_v20  ;;  %v11398_v28 = vld [vmem:[%s16529_s7 + $0x248] ss:$16 sps:$4 sm:$0xff]   ;;  %v11403_v20 = vld [vmem:[%s16529_s7 + $0xac] ss:$16 sps:$4 sm:$0xff]  }
 0x568   : > { %8475 = vmatprep.subr.bf16.mxu0 %v11370_v22  ;;  %v11406_v22 = vld [vmem:[%s16529_s7 + $0x22c] ss:$16 sps:$4 sm:$0xff]  }
 0x569   : > { %v8099_v11 = vpop.f32.mrf.mxu1  ;;  %8344 = vmatmul.mubr.bf16.vlgmr.msra.gmra.mxu1 %v15013_v7 }
 0x56a   : > { %v8100_v4 = vadd.f32 %v8099_v11, %v14831_v40  ;;  %v8140_v10 = vpop.f32.mrf.mxu0  ;;  %8385 = vmatmul.mubr.bf16.vlgmr.msra.gmra.mxu0 %v15020_v1  ;;  %8402 = vmatpush1.bf16.msra.mxu1 %v11365_v51  ;;  %v11379_v40 = vld [vmem:[%s16529_s7 + $0x1824] ss:$16 sps:$4 sm:$0xff]   ;;  %v11404_v51 = vld [vmem:[%s16529_s7 + $0x228] ss:$16 sps:$4 sm:$0xff]  }
 0x56b   : > { %8476 = vmatpush1.bf16.msra.mxu0 %v11368_v35  ;;  %8507 = vmatprep.mubr.bf16.mxu0 %v13871_v23  ;;  %v8101_v62 = vpop.f32.mrf.mxu1  ;;  %v11382_v23 = vld [vmem:[%s16529_s7 + $0x2ac] ss:$16 sps:$4 sm:$0xff]   ;;  %v11410_v11 = vld [vmem:[%s16529_s7 + $0x208] ss:$16 sps:$4 sm:$0xff]  }
 0x56c   : > { %v15041_v54 = vadd.f32 %v8140_v10, %v8100_v4  ;;  %v8102_v12 = vadd.f32 %v8101_v62, %v14838_v41  ;;  %v8142_v19 = vpop.f32.mrf.mxu0  ;;  %8403 = vmatprep.subr.bf16.mxu1 %v11373_v8  ;;  %8477 = vmatprep.subr.bf16.mxu0 %v11376_v29  ;;  %v11409_v35 = vld [vmem:[%s16529_s7 + $0x8c] ss:$16 sps:$4 sm:$0xff]   ;;  %v11407_v29 = vld [vmem:[%s16529_s7 + $0x88] ss:$16 sps:$4 sm:$0xff]  }
 0x56d   : > { %v8103_v43 = vpop.f32.mrf.mxu1  ;;  %8425 = vmatprep.mubr.bf16.mxu1 %v12033_v15  ;;  %v11412_v8 = vld [vmem:[%s16529_s7 + $0x20c] ss:$16 sps:$4 sm:$0xff]   ;;  %v11416_v62 = vld [vmem:[%s16529_s7 + $0x3e8] ss:$16 sps:$4 sm:$0xff]  }
 0x56e   : > { %v15048_v24 = vadd.f32 %v8142_v19, %v8102_v12  ;;  %v8144_v21 = vpop.f32.mrf.mxu0  ;;  %8404 = vmatpush1.bf16.msra.mxu1 %v11371_v27  ;;  %v11415_v4 = vld [vmem:[%s16529_s7 + $0x6c] ss:$16 sps:$4 sm:$0xff]   ;;  %v11413_v27 = vld [vmem:[%s16529_s7 + $0x68] ss:$16 sps:$4 sm:$0xff]  }
 0x56f   : > { %8478 = vmatpush1.bf16.msra.mxu0 %v11374_v0  ;;  %v8104_v41 = vpop.f32.mrf.mxu1  ;;  %8405 = vmatprep.subr.bf16.mxu1 %v11379_v40  ;;  %v11418_v10 = vld [vmem:[%s16529_s7 + $0x3ec] ss:$16 sps:$4 sm:$0xff]   ;;  %v11419_v12 = vld [vmem:[%s16529_s7 + $0x48] ss:$16 sps:$4 sm:$0xff]  }
 0x570   : > { %v8145_v47 = vpop.f32.mrf.mxu0  ;;  %8479 = vmatprep.subr.bf16.mxu0 %v11382_v23  ;;  %v11421_v0 = vld [vmem:[%s16529_s7 + $0x4c] ss:$16 sps:$4 sm:$0xff]   ;;  %v11422_v19 = vld [vmem:[%s16529_s7 + $0x3c8] ss:$16 sps:$4 sm:$0xff]  }
 0x571   : > { %v11424_v40 = vld [vmem:[%s16529_s7 + $0x3cc] ss:$16 sps:$4 sm:$0xff]   ;;  %v11425_v21 = vld [vmem:[%s16529_s7 + $0x28] ss:$16 sps:$4 sm:$0xff]  }
 0x572   : > { %8406 = vmatpush1.bf16.msra.mxu1 %v11377_v14  ;;  %v11427_v23 = vld [vmem:[%s16529_s7 + $0x2c] ss:$16 sps:$4 sm:$0xff]   ;;  %v11428_v14 = vld [vmem:[%s16529_s7 + $0x3a8] ss:$16 sps:$4 sm:$0xff]  }
 0x573   : > { %8480 = vmatpush1.bf16.msra.mxu0 %v11380_v39  ;;  %8407 = vmatprep.subr.bf16.mxu1 %v11385_v45  ;;  %v11430_v43 = vld [vmem:[%s16529_s7 + $0x3ac] ss:$16 sps:$4 sm:$0xff]   ;;  %v11431_v45 = vld [vmem:[%s16529_s7 + $0x8] ss:$16 sps:$4 sm:$0xff]  }
 0x574   : > { %8481 = vmatprep.subr.bf16.mxu0 %v11388_v44  ;;  %v11433_v41 = vld [vmem:[%s16529_s7 + $0xc] ss:$16 sps:$4 sm:$0xff]   ;;  %v11434_v47 = vld [vmem:[%s16529_s7 + $0x388] ss:$16 sps:$4 sm:$0xff]  }
 0x575   : > { %v11436_v39 = vld [vmem:[%s16529_s7 + $0x38c] ss:$16 sps:$4 sm:$0xff]  }
 0x576   : > { %8408 = vmatpush1.bf16.msra.mxu1 %v11383_v61  ;;  %v11439_v44 = vld [vmem:[%s16529_s7 + $0x1ec] ss:$16 sps:$4 sm:$0xff]  }
 0x577   : > { %8482 = vmatpush1.bf16.msra.mxu0 %v11386_v26  ;;  %8434 = vmatprep.subr.bf16.mxu1 %v11391_v63  ;;  %v11442_v61 = vld [vmem:[%s16529_s7 + $0x36c] ss:$16 sps:$4 sm:$0xff]   ;;  %v11437_v26 = vld [vmem:[%s16529_s7 + $0x1e8] ss:$16 sps:$4 sm:$0xff]  }
 0x578   : > { %8483 = vmatprep.subr.bf16.mxu0 %v11394_v52  ;;  %v11440_v63 = vld [vmem:[%s16529_s7 + $0x368] ss:$16 sps:$4 sm:$0xff]   ;;  %v11448_v52 = vld [vmem:[%s16529_s7 + $0x34c] ss:$16 sps:$4 sm:$0xff]  }
 0x579   : > { %10071 = vmatmul.mubr.msk.bf16.vlgmr.msra.gmra.mxu1 %vm1651_vm0, %v15077_v13 }
 0x57a   : > { %8435 = vmatpush1.bf16.msra.mxu1 %v11389_v60  ;;  %8466 = vmatprep.mubr.bf16.mxu1 %v13869_v59  ;;  %v11401_v59 = vld [vmem:[%s16529_s7 + $0xa8] ss:$16 sps:$4 sm:$0xff]  }
 0x57b   : > { %8484 = vmatpush1.bf16.msra.mxu0 %v11392_v31  ;;  %8436 = vmatprep.subr.bf16.mxu1 %v11397_v46  ;;  %v11443_v60 = vld [vmem:[%s16529_s7 + $0x1c8] ss:$16 sps:$4 sm:$0xff]   ;;  %v11451_v46 = vld [vmem:[%s16529_s7 + $0x1ac] ss:$16 sps:$4 sm:$0xff]  }
 0x57c   : > { %8485 = vmatprep.subr.bf16.mxu0 %v11400_v48  ;;  %v11446_v31 = vld [vmem:[%s16529_s7 + $0x348] ss:$16 sps:$4 sm:$0xff]   ;;  %v11454_v48 = vld [vmem:[%s16529_s7 + $0x32c] ss:$16 sps:$4 sm:$0xff]  }
 0x57e   : > { %8437 = vmatpush1.bf16.msra.mxu1 %v11395_v33  ;;  %v11449_v33 = vld [vmem:[%s16529_s7 + $0x1a8] ss:$16 sps:$4 sm:$0xff]  }
 0x57f   : > { %8486 = vmatpush1.bf16.msra.mxu0 %v11398_v28  ;;  %8438 = vmatprep.subr.bf16.mxu1 %v11403_v20  ;;  %v11452_v28 = vld [vmem:[%s16529_s7 + $0x328] ss:$16 sps:$4 sm:$0xff]   ;;  %v11457_v20 = vld [vmem:[%s16529_s7 + $0x18c] ss:$16 sps:$4 sm:$0xff]  }
 0x580   : > { %8487 = vmatprep.subr.bf16.mxu0 %v11406_v22  ;;  %v11460_v22 = vld [vmem:[%s16529_s7 + $0x30c] ss:$16 sps:$4 sm:$0xff]  }
 0x582   : > { %8439 = vmatpush1.bf16.msra.mxu1 %v11401_v59  ;;  %v11455_v59 = vld [vmem:[%s16529_s7 + $0x188] ss:$16 sps:$4 sm:$0xff]  }
 0x583   : > { %8488 = vmatpush1.bf16.msra.mxu0 %v11404_v51  ;;  %8440 = vmatprep.subr.bf16.mxu1 %v11409_v35  ;;  %v11458_v51 = vld [vmem:[%s16529_s7 + $0x308] ss:$16 sps:$4 sm:$0xff]   ;;  %v11463_v35 = vld [vmem:[%s16529_s7 + $0x16c] ss:$16 sps:$4 sm:$0xff]  }
 0x584   : > { %8489 = vmatprep.subr.bf16.mxu0 %v11412_v8  ;;  %v11466_v8 = vld [vmem:[%s16529_s7 + $0x6ec] ss:$16 sps:$4 sm:$0xff]  }
 0x586   : > { %8441 = vmatpush1.bf16.msra.mxu1 %v11407_v29  ;;  %v11461_v29 = vld [vmem:[%s16529_s7 + $0x168] ss:$16 sps:$4 sm:$0xff]  }
 0x587   : > { %8490 = vmatpush1.bf16.msra.mxu0 %v11410_v11  ;;  %8442 = vmatprep.subr.bf16.mxu1 %v11415_v4  ;;  %v11464_v11 = vld [vmem:[%s16529_s7 + $0x6e8] ss:$16 sps:$4 sm:$0xff]   ;;  %v11469_v4 = vld [vmem:[%s16529_s7 + $0x14c] ss:$16 sps:$4 sm:$0xff]  }
 0x588   : > { %8491 = vmatprep.subr.bf16.mxu0 %v11418_v10  ;;  %v11472_v10 = vld [vmem:[%s16529_s7 + $0x6cc] ss:$16 sps:$4 sm:$0xff]  }
 0x58a   : > { %8443 = vmatpush1.bf16.msra.mxu1 %v11413_v27 }
 0x58b   : > { %8492 = vmatpush2.bf16.msra.mxu0 %v11416_v62  ;;  %8444 = vmatprep.subr.bf16.mxu1 %v11421_v0 }
 0x58c   : > { %8493 = vmatprep.subr.bf16.mxu0 %v11424_v40  ;;  %v11467_v40 = vld [vmem:[%s16529_s7 + $0x148] ss:$16 sps:$4 sm:$0xff]  }
 0x58e   : > { %8445 = vmatpush1.bf16.msra.mxu1 %v11419_v12 }
 0x58f   : > { %8494 = vmatpush2.bf16.msra.mxu0 %v11422_v19  ;;  %8446 = vmatprep.subr.bf16.mxu1 %v11427_v23  ;;  %v11470_v19 = vld [vmem:[%s16529_s7 + $0x6c8] ss:$16 sps:$4 sm:$0xff]  }
 0x590   : > { %8495 = vmatprep.subr.bf16.mxu0 %v11430_v43 }
 0x592   : > { %8447 = vmatpush1.bf16.msra.mxu1 %v11425_v21 }
 0x593   : > { %8496 = vmatpush2.bf16.msra.mxu0 %v11428_v14  ;;  %8448 = vmatprep.subr.bf16.mxu1 %v11433_v41 }
 0x594   : > { %8497 = vmatprep.subr.bf16.mxu0 %v11436_v39  ;;  %v11473_v39 = vld [vmem:[%s16529_s7 + $0x128] ss:$16 sps:$4 sm:$0xff]  }
 0x596   : > { %8449 = vmatpush1.bf16.msra.mxu1 %v11431_v45 }
 0x597   : > { %8498 = vmatpush2.bf16.msra.mxu0 %v11434_v47  ;;  %8450 = vmatprep.subr.bf16.mxu1 %v11439_v44  ;;  %v11481_v47 = vld [vmem:[%s16529_s7 + $0x10c] ss:$16 sps:$4 sm:$0xff]  }
 0x598   : > { %8499 = vmatprep.subr.bf16.mxu0 %v11442_v61  ;;  %v11484_v61 = vld [vmem:[%s16529_s7 + $0x68c] ss:$16 sps:$4 sm:$0xff]  }
 0x59a   : > { %8451 = vmatpush2.bf16.msra.mxu1 %v11437_v26  ;;  %v11479_v26 = vld [vmem:[%s16529_s7 + $0x108] ss:$16 sps:$4 sm:$0xff]  }
 0x59b   : > { %8500 = vmatpush2.bf16.msra.mxu0 %v11440_v63  ;;  %8452 = vmatprep.subr.bf16.mxu1 %v11445_v53  ;;  %v11482_v63 = vld [vmem:[%s16529_s7 + $0x688] ss:$16 sps:$4 sm:$0xff]   ;;  %v11487_v53 = vld [vmem:[%s16529_s7 + $0x4ec] ss:$16 sps:$4 sm:$0xff]  }
 0x59c   : > { %8501 = vmatprep.subr.bf16.mxu0 %v11448_v52  ;;  %v11490_v52 = vld [vmem:[%s16529_s7 + $0x66c] ss:$16 sps:$4 sm:$0xff]  }
 0x59e   : > { %8453 = vmatpush2.bf16.msra.mxu1 %v11443_v60  ;;  %v11485_v60 = vld [vmem:[%s16529_s7 + $0x4e8] ss:$16 sps:$4 sm:$0xff]  }
 0x59f   : > { %8502 = vmatpush2.bf16.msra.mxu0 %v11446_v31  ;;  %8454 = vmatprep.subr.bf16.mxu1 %v11451_v46  ;;  %v11488_v31 = vld [vmem:[%s16529_s7 + $0x668] ss:$16 sps:$4 sm:$0xff]   ;;  %v11493_v46 = vld [vmem:[%s16529_s7 + $0x4cc] ss:$16 sps:$4 sm:$0xff]  }
 0x5a0   : > { %8503 = vmatprep.subr.bf16.mxu0 %v11454_v48  ;;  %v11496_v48 = vld [vmem:[%s16529_s7 + $0x64c] ss:$16 sps:$4 sm:$0xff]  }
 0x5a2   : > { %8455 = vmatpush2.bf16.msra.mxu1 %v11449_v33  ;;  %v11491_v33 = vld [vmem:[%s16529_s7 + $0x4c8] ss:$16 sps:$4 sm:$0xff]  }
 0x5a3   : > { %8504 = vmatpush2.bf16.msra.mxu0 %v11452_v28  ;;  %8456 = vmatprep.subr.bf16.mxu1 %v11457_v20  ;;  %v11494_v28 = vld [vmem:[%s16529_s7 + $0x648] ss:$16 sps:$4 sm:$0xff]   ;;  %v11499_v20 = vld [vmem:[%s16529_s7 + $0x4ac] ss:$16 sps:$4 sm:$0xff]  }
 0x5a4   : > { %8505 = vmatprep.subr.bf16.mxu0 %v11460_v22  ;;  %v11500_v22 = vld [vmem:[%s16529_s7 + $0x628] ss:$16 sps:$4 sm:$0xff]  }
 0x5a6   : > { %8457 = vmatpush2.bf16.msra.mxu1 %v11455_v59  ;;  %v11505_v59 = vld [vmem:[%s16529_s7 + $0x48c] ss:$16 sps:$4 sm:$0xff]  }
 0x5a7   : > { %8506 = vmatpush2.bf16.msra.mxu0 %v11458_v51  ;;  %8458 = vmatprep.subr.bf16.mxu1 %v11463_v35  ;;  %v11508_v51 = vld [vmem:[%s16529_s7 + $0x60c] ss:$16 sps:$4 sm:$0xff]   ;;  %v11503_v35 = vld [vmem:[%s16529_s7 + $0x488] ss:$16 sps:$4 sm:$0xff]  }
 0x5a8   : > { %8557 = vmatprep.subr.bf16.mxu0 %v11466_v8  ;;  %v11506_v8 = vld [vmem:[%s16529_s7 + $0x608] ss:$16 sps:$4 sm:$0xff]  }
 0x5a9   : > { %v8181_v27 = vpop.f32.mrf.mxu1 }
 0x5aa   : > { %v8182_v62 = vadd.f32 %v8181_v27, %v15041_v54  ;;  %v8222_v0 = vpop.f32.mrf.mxu0  ;;  %8508 = vmatmul.mubr.bf16.vlgmr.msra.gmra.mxu0 %v13881_v32  ;;  %8459 = vmatpush2.bf16.msra.mxu1 %v11461_v29  ;;  %v11475_v54 = vld [vmem:[%s16529_s7 + $0x12c] ss:$16 sps:$4 sm:$0xff]  }
 0x5ab   : > { %8558 = vmatpush1.bf16.msra.mxu0 %v11464_v11  ;;  %8589 = vmatprep.mubr.bf16.mxu0 %v13899_v5  ;;  %v8183_v12 = vpop.f32.mrf.mxu1  ;;  %v11478_v5 = vld [vmem:[%s16529_s7 + $0x6ac] ss:$16 sps:$4 sm:$0xff]  }
 0x5ac   : > { %v15247_v23 = vadd.f32 %v8222_v0, %v8182_v62  ;;  %v8184_v32 = vadd.f32 %v8183_v12, %v15048_v24  ;;  %v8224_v43 = vpop.f32.mrf.mxu0  ;;  %8460 = vmatprep.subr.bf16.mxu1 %v11469_v4  ;;  %8559 = vmatprep.subr.bf16.mxu0 %v11472_v10  ;;  %v11476_v24 = vld [vmem:[%s16529_s7 + $0x6a8] ss:$16 sps:$4 sm:$0xff]   ;;  %v11511_v29 = vld [vmem:[%s16529_s7 + $0x46c] ss:$16 sps:$4 sm:$0xff]  }
 0x5ad   : > { %v8185_v21 = vpop.f32.mrf.mxu1  ;;  %v11514_v11 = vld [vmem:[%s16529_s7 + $0x7ec] ss:$16 sps:$4 sm:$0xff]   ;;  %v11509_v4 = vld [vmem:[%s16529_s7 + $0x468] ss:$16 sps:$4 sm:$0xff]  }
 0x5ae   : > { %v15253_v14 = vadd.f32 %v8224_v43, %v8184_v32  ;;  %v8226_v41 = vpop.f32.mrf.mxu0  ;;  %8461 = vmatpush2.bf16.msra.mxu1 %v11467_v40  ;;  %v11512_v10 = vld [vmem:[%s16529_s7 + $0x7e8] ss:$16 sps:$4 sm:$0xff]   ;;  %v11517_v27 = vld [vmem:[%s16529_s7 + $0x44c] ss:$16 sps:$4 sm:$0xff]  }
 0x5af   : > { %8560 = vmatpush1.bf16.msra.mxu0 %v11470_v19  ;;  %v8186_v45 = vpop.f32.mrf.mxu1  ;;  %8462 = vmatprep.subr.bf16.mxu1 %v11475_v54  ;;  %v11520_v62 = vld [vmem:[%s16529_s7 + $0x7cc] ss:$16 sps:$4 sm:$0xff]   ;;  %v11515_v0 = vld [vmem:[%s16529_s7 + $0x448] ss:$16 sps:$4 sm:$0xff]  }
 0x5b0   : > { %v8227_v44 = vpop.f32.mrf.mxu0  ;;  %8561 = vmatprep.subr.bf16.mxu0 %v11478_v5  ;;  %v11518_v40 = vld [vmem:[%s16529_s7 + $0x7c8] ss:$16 sps:$4 sm:$0xff]   ;;  %v11523_v12 = vld [vmem:[%s16529_s7 + $0x42c] ss:$16 sps:$4 sm:$0xff]  }
 0x5b1   : > { %v11526_v19 = vld [vmem:[%s16529_s7 + $0x7ac] ss:$16 sps:$4 sm:$0xff]   ;;  %v11521_v54 = vld [vmem:[%s16529_s7 + $0x428] ss:$16 sps:$4 sm:$0xff]  }
 0x5b2   : > { %8463 = vmatpush2.bf16.msra.mxu1 %v11473_v39  ;;  %v11524_v32 = vld [vmem:[%s16529_s7 + $0x7a8] ss:$16 sps:$4 sm:$0xff]   ;;  %v11529_v43 = vld [vmem:[%s16529_s7 + $0x40c] ss:$16 sps:$4 sm:$0xff]  }
 0x5b3   : > { %8562 = vmatpush1.bf16.msra.mxu0 %v11476_v24  ;;  %8464 = vmatprep.subr.bf16.mxu1 %v11481_v47  ;;  %v11532_v5 = vld [vmem:[%s16529_s7 + $0x78c] ss:$16 sps:$4 sm:$0xff]   ;;  %v11527_v21 = vld [vmem:[%s16529_s7 + $0x408] ss:$16 sps:$4 sm:$0xff]  }
 0x5b4   : > { %8563 = vmatprep.subr.bf16.mxu0 %v11484_v61  ;;  %v11530_v41 = vld [vmem:[%s16529_s7 + $0x788] ss:$16 sps:$4 sm:$0xff]   ;;  %v11535_v39 = vld [vmem:[%s16529_s7 + $0x5ec] ss:$16 sps:$4 sm:$0xff]  }
 0x5b5   : > { %v11538_v45 = vld [vmem:[%s16529_s7 + $0x76c] ss:$16 sps:$4 sm:$0xff]   ;;  %v11533_v24 = vld [vmem:[%s16529_s7 + $0x5e8] ss:$16 sps:$4 sm:$0xff]  }
 0x5b6   : > { %8465 = vmatpush2.bf16.msra.mxu1 %v11479_v26  ;;  %v11536_v47 = vld [vmem:[%s16529_s7 + $0x768] ss:$16 sps:$4 sm:$0xff]   ;;  %v11541_v44 = vld [vmem:[%s16529_s7 + $0x5cc] ss:$16 sps:$4 sm:$0xff]  }
 0x5b7   : > { %8564 = vmatpush1.bf16.msra.mxu0 %v11482_v63  ;;  %8516 = vmatprep.subr.bf16.mxu1 %v11487_v53  ;;  %v11544_v61 = vld [vmem:[%s16529_s7 + $0x74c] ss:$16 sps:$4 sm:$0xff]   ;;  %v11539_v26 = vld [vmem:[%s16529_s7 + $0x5c8] ss:$16 sps:$4 sm:$0xff]  }
 0x5b8   : > { %8565 = vmatprep.subr.bf16.mxu0 %v11490_v52  ;;  %v11542_v63 = vld [vmem:[%s16529_s7 + $0x748] ss:$16 sps:$4 sm:$0xff]   ;;  %v11547_v53 = vld [vmem:[%s16529_s7 + $0x5ac] ss:$16 sps:$4 sm:$0xff]  }
 0x5b9   : > { %8467 = vmatmul.mubr.bf16.vlgmr.msra.gmra.mxu1 %v13879_v37  ;;  %v11502_v37 = vld [vmem:[%s16529_s7 + $0x62c] ss:$16 sps:$4 sm:$0xff]  }
 0x5ba   : > { %8517 = vmatpush1.bf16.msra.mxu1 %v11485_v60  ;;  %8548 = vmatprep.mubr.bf16.mxu1 %v13897_v18  ;;  %v11497_v18 = vld [vmem:[%s16529_s7 + $0x4a8] ss:$16 sps:$4 sm:$0xff]   ;;  %v11550_v52 = vld [vmem:[%s16529_s7 + $0x72c] ss:$16 sps:$4 sm:$0xff]  }
 0x5bb   : > { %8566 = vmatpush1.bf16.msra.mxu0 %v11488_v31  ;;  %8518 = vmatprep.subr.bf16.mxu1 %v11493_v46  ;;  %v11545_v60 = vld [vmem:[%s16529_s7 + $0x5a8] ss:$16 sps:$4 sm:$0xff]   ;;  %v11553_v46 = vld [vmem:[%s16529_s7 + $0x58c] ss:$16 sps:$4 sm:$0xff]  }
 0x5bc   : > { %8567 = vmatprep.subr.bf16.mxu0 %v11496_v48  ;;  %v11548_v31 = vld [vmem:[%s16529_s7 + $0x728] ss:$16 sps:$4 sm:$0xff]   ;;  %v11556_v48 = vld [vmem:[%s16529_s7 + $0x70c] ss:$16 sps:$4 sm:$0xff]  }
 0x5be   : > { %8519 = vmatpush1.bf16.msra.mxu1 %v11491_v33  ;;  %v11551_v33 = vld [vmem:[%s16529_s7 + $0x588] ss:$16 sps:$4 sm:$0xff]  }
 0x5bf   : > { %8568 = vmatpush1.bf16.msra.mxu0 %v11494_v28  ;;  %8520 = vmatprep.subr.bf16.mxu1 %v11499_v20  ;;  %v11554_v28 = vld [vmem:[%s16529_s7 + $0x708] ss:$16 sps:$4 sm:$0xff]   ;;  %v11559_v20 = vld [vmem:[%s16529_s7 + $0x56c] ss:$16 sps:$4 sm:$0xff]  }
 0x5c0   : > { %8569 = vmatprep.subr.bf16.mxu0 %v11502_v37  ;;  %v11562_v37 = vld [vmem:[%s16529_s7 + $0xaec] ss:$16 sps:$4 sm:$0xff]  }
 0x5c2   : > { %8521 = vmatpush1.bf16.msra.mxu1 %v11497_v18  ;;  %v11557_v18 = vld [vmem:[%s16529_s7 + $0x568] ss:$16 sps:$4 sm:$0xff]  }
 0x5c3   : > { %8570 = vmatpush1.bf16.msra.mxu0 %v11500_v22  ;;  %8522 = vmatprep.subr.bf16.mxu1 %v11505_v59  ;;  %v11560_v22 = vld [vmem:[%s16529_s7 + $0xae8] ss:$16 sps:$4 sm:$0xff]   ;;  %v11565_v59 = vld [vmem:[%s16529_s7 + $0x54c] ss:$16 sps:$4 sm:$0xff]  }
 0x5c4   : > { %8571 = vmatprep.subr.bf16.mxu0 %v11508_v51  ;;  %v11568_v51 = vld [vmem:[%s16529_s7 + $0xacc] ss:$16 sps:$4 sm:$0xff]  }
 0x5c6   : > { %8523 = vmatpush1.bf16.msra.mxu1 %v11503_v35 }
 0x5c7   : > { %8572 = vmatpush1.bf16.msra.mxu0 %v11506_v8  ;;  %8524 = vmatprep.subr.bf16.mxu1 %v11511_v29 }
 0x5c8   : > { %8573 = vmatprep.subr.bf16.mxu0 %v11514_v11  ;;  %v11563_v11 = vld [vmem:[%s16529_s7 + $0x548] ss:$16 sps:$4 sm:$0xff]  }
 0x5ca   : > { %8525 = vmatpush1.bf16.msra.mxu1 %v11509_v4 }
 0x5cb   : > { %8574 = vmatpush2.bf16.msra.mxu0 %v11512_v10  ;;  %8526 = vmatprep.subr.bf16.mxu1 %v11517_v27  ;;  %v11566_v10 = vld [vmem:[%s16529_s7 + $0xac8] ss:$16 sps:$4 sm:$0xff]  }
 0x5cc   : > { %8575 = vmatprep.subr.bf16.mxu0 %v11520_v62 }
 0x5ce   : > { %8527 = vmatpush1.bf16.msra.mxu1 %v11515_v0 }
 0x5cf   : > { %8576 = vmatpush2.bf16.msra.mxu0 %v11518_v40  ;;  %8528 = vmatprep.subr.bf16.mxu1 %v11523_v12 }
 0x5d0   : > { %8577 = vmatprep.subr.bf16.mxu0 %v11526_v19  ;;  %v11569_v19 = vld [vmem:[%s16529_s7 + $0x528] ss:$16 sps:$4 sm:$0xff]  }
 0x5d2   : > { %8529 = vmatpush1.bf16.msra.mxu1 %v11521_v54 }
 0x5d3   : > { %8578 = vmatpush2.bf16.msra.mxu0 %v11524_v32  ;;  %8530 = vmatprep.subr.bf16.mxu1 %v11529_v43  ;;  %v11577_v32 = vld [vmem:[%s16529_s7 + $0x50c] ss:$16 sps:$4 sm:$0xff]  }
 0x5d4   : > { %8579 = vmatprep.subr.bf16.mxu0 %v11532_v5  ;;  %v11580_v5 = vld [vmem:[%s16529_s7 + $0xa8c] ss:$16 sps:$4 sm:$0xff]  }
 0x5d6   : > { %8531 = vmatpush1.bf16.msra.mxu1 %v11527_v21  ;;  %v11575_v21 = vld [vmem:[%s16529_s7 + $0x508] ss:$16 sps:$4 sm:$0xff]  }
 0x5d7   : > { %8580 = vmatpush2.bf16.msra.mxu0 %v11530_v41  ;;  %8532 = vmatprep.subr.bf16.mxu1 %v11535_v39  ;;  %v11578_v41 = vld [vmem:[%s16529_s7 + $0xa88] ss:$16 sps:$4 sm:$0xff]   ;;  %v11583_v39 = vld [vmem:[%s16529_s7 + $0x8ec] ss:$16 sps:$4 sm:$0xff]  }
 0x5d8   : > { %8581 = vmatprep.subr.bf16.mxu0 %v11538_v45  ;;  %v11586_v45 = vld [vmem:[%s16529_s7 + $0xa6c] ss:$16 sps:$4 sm:$0xff]  }
 0x5da   : > { %8533 = vmatpush2.bf16.msra.mxu1 %v11533_v24  ;;  %v11581_v24 = vld [vmem:[%s16529_s7 + $0x8e8] ss:$16 sps:$4 sm:$0xff]  }
 0x5db   : > { %8582 = vmatpush2.bf16.msra.mxu0 %v11536_v47  ;;  %8534 = vmatprep.subr.bf16.mxu1 %v11541_v44  ;;  %v11584_v47 = vld [vmem:[%s16529_s7 + $0xa68] ss:$16 sps:$4 sm:$0xff]   ;;  %v11589_v44 = vld [vmem:[%s16529_s7 + $0x8cc] ss:$16 sps:$4 sm:$0xff]  }
 0x5dc   : > { %8583 = vmatprep.subr.bf16.mxu0 %v11544_v61  ;;  %v11592_v61 = vld [vmem:[%s16529_s7 + $0xa4c] ss:$16 sps:$4 sm:$0xff]  }
 0x5de   : > { %8535 = vmatpush2.bf16.msra.mxu1 %v11539_v26  ;;  %v11587_v26 = vld [vmem:[%s16529_s7 + $0x8c8] ss:$16 sps:$4 sm:$0xff]  }
 0x5df   : > { %8584 = vmatpush2.bf16.msra.mxu0 %v11542_v63  ;;  %8536 = vmatprep.subr.bf16.mxu1 %v11547_v53  ;;  %v11590_v63 = vld [vmem:[%s16529_s7 + $0xa48] ss:$16 sps:$4 sm:$0xff]   ;;  %v11595_v53 = vld [vmem:[%s16529_s7 + $0x8ac] ss:$16 sps:$4 sm:$0xff]  }
 0x5e0   : > { %8585 = vmatprep.subr.bf16.mxu0 %v11550_v52  ;;  %v11596_v52 = vld [vmem:[%s16529_s7 + $0xa28] ss:$16 sps:$4 sm:$0xff]  }
 0x5e2   : > { %8537 = vmatpush2.bf16.msra.mxu1 %v11545_v60  ;;  %v11601_v60 = vld [vmem:[%s16529_s7 + $0x88c] ss:$16 sps:$4 sm:$0xff]  }
 0x5e3   : > { %8586 = vmatpush2.bf16.msra.mxu0 %v11548_v31  ;;  %8538 = vmatprep.subr.bf16.mxu1 %v11553_v46  ;;  %v11604_v31 = vld [vmem:[%s16529_s7 + $0xa0c] ss:$16 sps:$4 sm:$0xff]   ;;  %v11599_v46 = vld [vmem:[%s16529_s7 + $0x888] ss:$16 sps:$4 sm:$0xff]  }
 0x5e4   : > { %8587 = vmatprep.subr.bf16.mxu0 %v11556_v48  ;;  %v11602_v48 = vld [vmem:[%s16529_s7 + $0xa08] ss:$16 sps:$4 sm:$0xff]  }
 0x5e6   : > { %8539 = vmatpush2.bf16.msra.mxu1 %v11551_v33  ;;  %v11607_v33 = vld [vmem:[%s16529_s7 + $0x86c] ss:$16 sps:$4 sm:$0xff]  }
 0x5e7   : > { %8588 = vmatpush2.bf16.msra.mxu0 %v11554_v28  ;;  %8540 = vmatprep.subr.bf16.mxu1 %v11559_v20  ;;  %v11610_v28 = vld [vmem:[%s16529_s7 + $0xbec] ss:$16 sps:$4 sm:$0xff]   ;;  %v11605_v20 = vld [vmem:[%s16529_s7 + $0x868] ss:$16 sps:$4 sm:$0xff]  }
 0x5e8   : > { %8639 = vmatprep.subr.bf16.mxu0 %v11562_v37  ;;  %v11608_v37 = vld [vmem:[%s16529_s7 + $0xbe8] ss:$16 sps:$4 sm:$0xff]  }
 0x5e9   : > { %v8263_v35 = vpop.f32.mrf.mxu1 }
 0x5ea   : > { %v8264_v8 = vadd.f32 %v8263_v35, %v15247_v23  ;;  %v8304_v29 = vpop.f32.mrf.mxu0  ;;  %8590 = vmatmul.mubr.bf16.vlgmr.msra.gmra.mxu0 %v14158_v58  ;;  %8541 = vmatpush2.bf16.msra.mxu1 %v11557_v18  ;;  %v11571_v23 = vld [vmem:[%s16529_s7 + $0x52c] ss:$16 sps:$4 sm:$0xff]  }
 0x5eb   : > { %8640 = vmatpush1.bf16.msra.mxu0 %v11560_v22  ;;  %8671 = vmatprep.mubr.bf16.mxu0 %v14173_v16  ;;  %v8265_v4 = vpop.f32.mrf.mxu1  ;;  %v11574_v16 = vld [vmem:[%s16529_s7 + $0xaac] ss:$16 sps:$4 sm:$0xff]  }
 0x5ec   : > { %v15449_v27 = vadd.f32 %v8304_v29, %v8264_v8  ;;  %v8266_v58 = vadd.f32 %v8265_v4, %v15253_v14  ;;  %v8306_v62 = vpop.f32.mrf.mxu0  ;;  %8542 = vmatprep.subr.bf16.mxu1 %v11565_v59  ;;  %8641 = vmatprep.subr.bf16.mxu0 %v11568_v51  ;;  %v11572_v14 = vld [vmem:[%s16529_s7 + $0xaa8] ss:$16 sps:$4 sm:$0xff]   ;;  %v11613_v18 = vld [vmem:[%s16529_s7 + $0x84c] ss:$16 sps:$4 sm:$0xff]  }
 0x5ed   : > { %v8267_v0 = vpop.f32.mrf.mxu1  ;;  %v11616_v22 = vld [vmem:[%s16529_s7 + $0xbcc] ss:$16 sps:$4 sm:$0xff]   ;;  %v11611_v59 = vld [vmem:[%s16529_s7 + $0x848] ss:$16 sps:$4 sm:$0xff]  }
 0x5ee   : > { %v15455_v40 = vadd.f32 %v8306_v62, %v8266_v58  ;;  %v8308_v12 = vpop.f32.mrf.mxu0  ;;  %8543 = vmatpush2.bf16.msra.mxu1 %v11563_v11  ;;  %v11614_v51 = vld [vmem:[%s16529_s7 + $0xbc8] ss:$16 sps:$4 sm:$0xff]   ;;  %v11619_v35 = vld [vmem:[%s16529_s7 + $0x82c] ss:$16 sps:$4 sm:$0xff]  }
 0x5ef   : > { %8642 = vmatpush1.bf16.msra.mxu0 %v11566_v10  ;;  %v8268_v54 = vpop.f32.mrf.mxu1  ;;  %8544 = vmatprep.subr.bf16.mxu1 %v11571_v23  ;;  %v11622_v8 = vld [vmem:[%s16529_s7 + $0xbac] ss:$16 sps:$4 sm:$0xff]   ;;  %v11617_v29 = vld [vmem:[%s16529_s7 + $0x828] ss:$16 sps:$4 sm:$0xff]  }
 0x5f0   : > { %v8309_v43 = vpop.f32.mrf.mxu0  ;;  %8643 = vmatprep.subr.bf16.mxu0 %v11574_v16  ;;  %v11620_v11 = vld [vmem:[%s16529_s7 + $0xba8] ss:$16 sps:$4 sm:$0xff]   ;;  %v11625_v4 = vld [vmem:[%s16529_s7 + $0x80c] ss:$16 sps:$4 sm:$0xff]  }
 0x5f1   : > { %v11628_v10 = vld [vmem:[%s16529_s7 + $0xb8c] ss:$16 sps:$4 sm:$0xff]   ;;  %v11623_v23 = vld [vmem:[%s16529_s7 + $0x808] ss:$16 sps:$4 sm:$0xff]  }
 0x5f2   : > { %8545 = vmatpush2.bf16.msra.mxu1 %v11569_v19  ;;  %v11626_v58 = vld [vmem:[%s16529_s7 + $0xb88] ss:$16 sps:$4 sm:$0xff]   ;;  %v11631_v62 = vld [vmem:[%s16529_s7 + $0x9ec] ss:$16 sps:$4 sm:$0xff]  }
 0x5f3   : > { %8644 = vmatpush1.bf16.msra.mxu0 %v11572_v14  ;;  %8546 = vmatprep.subr.bf16.mxu1 %v11577_v32  ;;  %v11634_v16 = vld [vmem:[%s16529_s7 + $0xb6c] ss:$16 sps:$4 sm:$0xff]   ;;  %v11629_v0 = vld [vmem:[%s16529_s7 + $0x9e8] ss:$16 sps:$4 sm:$0xff]  }
 0x5f4   : > { %8645 = vmatprep.subr.bf16.mxu0 %v11580_v5  ;;  %v11632_v12 = vld [vmem:[%s16529_s7 + $0xb68] ss:$16 sps:$4 sm:$0xff]   ;;  %v11637_v19 = vld [vmem:[%s16529_s7 + $0x9cc] ss:$16 sps:$4 sm:$0xff]  }
 0x5f5   : > { %v11640_v54 = vld [vmem:[%s16529_s7 + $0xb4c] ss:$16 sps:$4 sm:$0xff]   ;;  %v11635_v14 = vld [vmem:[%s16529_s7 + $0x9c8] ss:$16 sps:$4 sm:$0xff]  }
 0x5f6   : > { %8547 = vmatpush2.bf16.msra.mxu1 %v11575_v21  ;;  %v11638_v32 = vld [vmem:[%s16529_s7 + $0xb48] ss:$16 sps:$4 sm:$0xff]   ;;  %v11643_v43 = vld [vmem:[%s16529_s7 + $0x9ac] ss:$16 sps:$4 sm:$0xff]  }
 0x5f7   : > { %8646 = vmatpush1.bf16.msra.mxu0 %v11578_v41  ;;  %8598 = vmatprep.subr.bf16.mxu1 %v11583_v39  ;;  %v11646_v5 = vld [vmem:[%s16529_s7 + $0xb2c] ss:$16 sps:$4 sm:$0xff]   ;;  %v11641_v21 = vld [vmem:[%s16529_s7 + $0x9a8] ss:$16 sps:$4 sm:$0xff]  }
 0x5f8   : > { %8647 = vmatprep.subr.bf16.mxu0 %v11586_v45  ;;  %v11644_v41 = vld [vmem:[%s16529_s7 + $0xb28] ss:$16 sps:$4 sm:$0xff]   ;;  %v11649_v39 = vld [vmem:[%s16529_s7 + $0x98c] ss:$16 sps:$4 sm:$0xff]  }
 0x5f9   : > { %8549 = vmatmul.mubr.bf16.vlgmr.msra.gmra.mxu1 %v14156_v6  ;;  %v11598_v6 = vld [vmem:[%s16529_s7 + $0xa2c] ss:$16 sps:$4 sm:$0xff]  }
 0x5fa   : > { %8599 = vmatpush1.bf16.msra.mxu1 %v11581_v24  ;;  %8630 = vmatprep.mubr.bf16.mxu1 %v14163_v57  ;;  %v11593_v57 = vld [vmem:[%s16529_s7 + $0x8a8] ss:$16 sps:$4 sm:$0xff]   ;;  %v11652_v45 = vld [vmem:[%s16529_s7 + $0xb0c] ss:$16 sps:$4 sm:$0xff]  }
 0x5fb   : > { %8648 = vmatpush1.bf16.msra.mxu0 %v11584_v47  ;;  %8600 = vmatprep.subr.bf16.mxu1 %v11589_v44  ;;  %v11647_v24 = vld [vmem:[%s16529_s7 + $0x988] ss:$16 sps:$4 sm:$0xff]   ;;  %v11655_v44 = vld [vmem:[%s16529_s7 + $0x96c] ss:$16 sps:$4 sm:$0xff]  }
 0x5fc   : > { %8649 = vmatprep.subr.bf16.mxu0 %v11592_v61  ;;  %v11650_v47 = vld [vmem:[%s16529_s7 + $0xb08] ss:$16 sps:$4 sm:$0xff]   ;;  %v11658_v61 = vld [vmem:[%s16529_s7 + $0xeec] ss:$16 sps:$4 sm:$0xff]  }
 0x5fe   : > { %8601 = vmatpush1.bf16.msra.mxu1 %v11587_v26  ;;  %v11653_v26 = vld [vmem:[%s16529_s7 + $0x968] ss:$16 sps:$4 sm:$0xff]  }
 0x5ff   : > { %8650 = vmatpush1.bf16.msra.mxu0 %v11590_v63  ;;  %8602 = vmatprep.subr.bf16.mxu1 %v11595_v53  ;;  %v11656_v63 = vld [vmem:[%s16529_s7 + $0xee8] ss:$16 sps:$4 sm:$0xff]   ;;  %v11661_v53 = vld [vmem:[%s16529_s7 + $0x94c] ss:$16 sps:$4 sm:$0xff]  }
 0x600   : > { %8651 = vmatprep.subr.bf16.mxu0 %v11598_v6  ;;  %v11664_v6 = vld [vmem:[%s16529_s7 + $0xecc] ss:$16 sps:$4 sm:$0xff]  }
 0x602   : > { %8603 = vmatpush1.bf16.msra.mxu1 %v11593_v57 }
 0x603   : > { %8652 = vmatpush1.bf16.msra.mxu0 %v11596_v52  ;;  %8604 = vmatprep.subr.bf16.mxu1 %v11601_v60 }
 0x604   : > { %8653 = vmatprep.subr.bf16.mxu0 %v11604_v31  ;;  %v11659_v31 = vld [vmem:[%s16529_s7 + $0x948] ss:$16 sps:$4 sm:$0xff]  }
 0x606   : > { %8605 = vmatpush1.bf16.msra.mxu1 %v11599_v46 }
 0x607   : > { %8654 = vmatpush1.bf16.msra.mxu0 %v11602_v48  ;;  %8606 = vmatprep.subr.bf16.mxu1 %v11607_v33  ;;  %v11662_v48 = vld [vmem:[%s16529_s7 + $0xec8] ss:$16 sps:$4 sm:$0xff]  }
 0x608   : > { %8655 = vmatprep.subr.bf16.mxu0 %v11610_v28 }
 0x60a   : > { %8607 = vmatpush1.bf16.msra.mxu1 %v11605_v20  ;;  %v11670_v20 = vld [vmem:[%s16529_s7 + $0xeac] ss:$16 sps:$4 sm:$0xff]  }
 0x60b   : > { %8656 = vmatpush2.bf16.msra.mxu0 %v11608_v37  ;;  %8608 = vmatprep.subr.bf16.mxu1 %v11613_v18 }
 0x60c   : > { %8657 = vmatprep.subr.bf16.mxu0 %v11616_v22  ;;  %v11665_v22 = vld [vmem:[%s16529_s7 + $0x928] ss:$16 sps:$4 sm:$0xff]  }
 0x60e   : > { %8609 = vmatpush1.bf16.msra.mxu1 %v11611_v59 }
 0x60f   : > { %8658 = vmatpush2.bf16.msra.mxu0 %v11614_v51  ;;  %8610 = vmatprep.subr.bf16.mxu1 %v11619_v35  ;;  %v11673_v51 = vld [vmem:[%s16529_s7 + $0x90c] ss:$16 sps:$4 sm:$0xff]  }
 0x610   : > { %8659 = vmatprep.subr.bf16.mxu0 %v11622_v8  ;;  %v11676_v8 = vld [vmem:[%s16529_s7 + $0xe8c] ss:$16 sps:$4 sm:$0xff]  }
 0x612   : > { %8611 = vmatpush1.bf16.msra.mxu1 %v11617_v29  ;;  %v11671_v29 = vld [vmem:[%s16529_s7 + $0x908] ss:$16 sps:$4 sm:$0xff]  }
 0x613   : > { %8660 = vmatpush2.bf16.msra.mxu0 %v11620_v11  ;;  %8612 = vmatprep.subr.bf16.mxu1 %v11625_v4  ;;  %v11674_v11 = vld [vmem:[%s16529_s7 + $0xe88] ss:$16 sps:$4 sm:$0xff]   ;;  %v11679_v4 = vld [vmem:[%s16529_s7 + $0xcec] ss:$16 sps:$4 sm:$0xff]  }
 0x614   : > { %8661 = vmatprep.subr.bf16.mxu0 %v11628_v10  ;;  %v11682_v10 = vld [vmem:[%s16529_s7 + $0xe6c] ss:$16 sps:$4 sm:$0xff]  }
 0x616   : > { %8613 = vmatpush1.bf16.msra.mxu1 %v11623_v23  ;;  %v11677_v23 = vld [vmem:[%s16529_s7 + $0xce8] ss:$16 sps:$4 sm:$0xff]  }
 0x617   : > { %8662 = vmatpush2.bf16.msra.mxu0 %v11626_v58  ;;  %8614 = vmatprep.subr.bf16.mxu1 %v11631_v62  ;;  %v11680_v58 = vld [vmem:[%s16529_s7 + $0xe68] ss:$16 sps:$4 sm:$0xff]   ;;  %v11685_v62 = vld [vmem:[%s16529_s7 + $0xccc] ss:$16 sps:$4 sm:$0xff]  }
 0x618   : > { %8663 = vmatprep.subr.bf16.mxu0 %v11634_v16  ;;  %v11688_v16 = vld [vmem:[%s16529_s7 + $0xe4c] ss:$16 sps:$4 sm:$0xff]  }
 0x61a   : > { %8615 = vmatpush2.bf16.msra.mxu1 %v11629_v0 }
 0x61b   : > { %8664 = vmatpush2.bf16.msra.mxu0 %v11632_v12  ;;  %8616 = vmatprep.subr.bf16.mxu1 %v11637_v19  ;;  %v11683_v19 = vld [vmem:[%s16529_s7 + $0xcc8] ss:$16 sps:$4 sm:$0xff]  }
 0x61c   : > { %8665 = vmatprep.subr.bf16.mxu0 %v11640_v54 }
 0x61e   : > { %8617 = vmatpush2.bf16.msra.mxu1 %v11635_v14  ;;  %v11686_v14 = vld [vmem:[%s16529_s7 + $0xe48] ss:$16 sps:$4 sm:$0xff]  }
 0x61f   : > { %8666 = vmatpush2.bf16.msra.mxu0 %v11638_v32  ;;  %8618 = vmatprep.subr.bf16.mxu1 %v11643_v43 }
 0x620   : > { %8667 = vmatprep.subr.bf16.mxu0 %v11646_v5  ;;  %v11689_v5 = vld [vmem:[%s16529_s7 + $0xca8] ss:$16 sps:$4 sm:$0xff]  }
 0x622   : > { %8619 = vmatpush2.bf16.msra.mxu1 %v11641_v21 }
 0x623   : > { %8668 = vmatpush2.bf16.msra.mxu0 %v11644_v41  ;;  %8620 = vmatprep.subr.bf16.mxu1 %v11649_v39  ;;  %v11692_v41 = vld [vmem:[%s16529_s7 + $0xe28] ss:$16 sps:$4 sm:$0xff]   ;;  %v11697_v39 = vld [vmem:[%s16529_s7 + $0xc8c] ss:$16 sps:$4 sm:$0xff]  }
 0x624   : > { %8669 = vmatprep.subr.bf16.mxu0 %v11652_v45  ;;  %v11700_v45 = vld [vmem:[%s16529_s7 + $0xe0c] ss:$16 sps:$4 sm:$0xff]  }
 0x626   : > { %8621 = vmatpush2.bf16.msra.mxu1 %v11647_v24  ;;  %v11695_v24 = vld [vmem:[%s16529_s7 + $0xc88] ss:$16 sps:$4 sm:$0xff]  }
 0x627   : > { %8670 = vmatpush2.bf16.msra.mxu0 %v11650_v47  ;;  %8622 = vmatprep.subr.bf16.mxu1 %v11655_v44  ;;  %v11698_v47 = vld [vmem:[%s16529_s7 + $0xe08] ss:$16 sps:$4 sm:$0xff]   ;;  %v11703_v44 = vld [vmem:[%s16529_s7 + $0xc6c] ss:$16 sps:$4 sm:$0xff]  }
 0x628   : > { %8721 = vmatprep.subr.bf16.mxu0 %v11658_v61  ;;  %v11706_v61 = vld [vmem:[%s16529_s7 + $0xfec] ss:$16 sps:$4 sm:$0xff]  }
 0x629   : > { %v8345_v57 = vpop.f32.mrf.mxu1 }
 0x62a   : > { %v8346_v52 = vadd.f32 %v8345_v57, %v15449_v27  ;;  %v8386_v60 = vpop.f32.mrf.mxu0  ;;  %8672 = vmatmul.mubr.bf16.vlgmr.msra.gmra.mxu0 %v14369_v36  ;;  %8623 = vmatpush2.bf16.msra.mxu1 %v11653_v26  ;;  %v11667_v27 = vld [vmem:[%s16529_s7 + $0x92c] ss:$16 sps:$4 sm:$0xff]   ;;  %v11701_v26 = vld [vmem:[%s16529_s7 + $0xc68] ss:$16 sps:$4 sm:$0xff]  }
 0x62b   : > { %8722 = vmatpush1.bf16.msra.mxu0 %v11656_v63  ;;  %8753 = vmatprep.mubr.bf16.mxu0 %v14385_v25  ;;  %v8347_v46 = vpop.f32.mrf.mxu1  ;;  %v11704_v63 = vld [vmem:[%s16529_s7 + $0xfe8] ss:$16 sps:$4 sm:$0xff]  }
 0x62c   : > { %v8387_v33 = vadd.f32 %v8386_v60, %v8346_v52  ;;  %v8348_v36 = vadd.f32 %v8347_v46, %v15455_v40  ;;  %v8388_v28 = vpop.f32.mrf.mxu0  ;;  %8624 = vmatprep.subr.bf16.mxu1 %v11661_v53  ;;  %8723 = vmatprep.subr.bf16.mxu0 %v11664_v6  ;;  %v11668_v40 = vld [vmem:[%s16529_s7 + $0xea8] ss:$16 sps:$4 sm:$0xff]   ;;  %v11709_v53 = vld [vmem:[%s16529_s7 + $0xc4c] ss:$16 sps:$4 sm:$0xff]  }
 0x62d   : > { %v8349_v25 = vpop.f32.mrf.mxu1  ;;  %v11712_v6 = vld [vmem:[%s16529_s7 + $0xfcc] ss:$16 sps:$4 sm:$0xff]   ;;  %v11707_v57 = vld [vmem:[%s16529_s7 + $0xc48] ss:$16 sps:$4 sm:$0xff]  }
 0x62e   : > { %v8389_v37 = vadd.f32 %v8388_v28, %v8348_v36  ;;  %v8390_v18 = vpop.f32.mrf.mxu0  ;;  %8625 = vmatpush2.bf16.msra.mxu1 %v11659_v31  ;;  %v11710_v52 = vld [vmem:[%s16529_s7 + $0xfc8] ss:$16 sps:$4 sm:$0xff]   ;;  %v11715_v60 = vld [vmem:[%s16529_s7 + $0xc2c] ss:$16 sps:$4 sm:$0xff]  }
 0x62f   : > { %8724 = vmatpush1.bf16.msra.mxu0 %v11662_v48  ;;  %v8350_v59 = vpop.f32.mrf.mxu1  ;;  %8626 = vmatprep.subr.bf16.mxu1 %v11667_v27  ;;  %v11718_v31 = vld [vmem:[%s16529_s7 + $0xfac] ss:$16 sps:$4 sm:$0xff]   ;;  %v11713_v46 = vld [vmem:[%s16529_s7 + $0xc28] ss:$16 sps:$4 sm:$0xff]  }
 0x630   : > { %v8391_v35 = vpop.f32.mrf.mxu0  ;;  %8725 = vmatprep.subr.bf16.mxu0 %v11670_v20  ;;  %v11716_v48 = vld [vmem:[%s16529_s7 + $0xfa8] ss:$16 sps:$4 sm:$0xff]   ;;  %v11721_v27 = vld [vmem:[%s16529_s7 + $0xc0c] ss:$16 sps:$4 sm:$0xff]  }
 0x631   : > { %v11719_v36 = vld [vmem:[%s16529_s7 + $0xc08] ss:$16 sps:$4 sm:$0xff]   ;;  %v11727_v20 = vld [vmem:[%s16529_s7 + $0xdec] ss:$16 sps:$4 sm:$0xff]  }
 0x632   : > { %8627 = vmatpush2.bf16.msra.mxu1 %v11665_v22  ;;  %v11722_v28 = vld [vmem:[%s16529_s7 + $0xf88] ss:$16 sps:$4 sm:$0xff]   ;;  %v11730_v25 = vld [vmem:[%s16529_s7 + $0xf6c] ss:$16 sps:$4 sm:$0xff]  }
 0x633   : > { %8726 = vmatpush1.bf16.msra.mxu0 %v11668_v40  ;;  %8628 = vmatprep.subr.bf16.mxu1 %v11673_v51  ;;  %v11728_v18 = vld [vmem:[%s16529_s7 + $0xf68] ss:$16 sps:$4 sm:$0xff]   ;;  %v11733_v22 = vld [vmem:[%s16529_s7 + $0xdcc] ss:$16 sps:$4 sm:$0xff]  }
 0x634   : > { %8727 = vmatprep.subr.bf16.mxu0 %v11676_v8  ;;  %v11736_v59 = vld [vmem:[%s16529_s7 + $0xf4c] ss:$16 sps:$4 sm:$0xff]   ;;  %v11731_v40 = vld [vmem:[%s16529_s7 + $0xdc8] ss:$16 sps:$4 sm:$0xff]  }
 0x635   : > { %v11734_v51 = vld [vmem:[%s16529_s7 + $0xf48] ss:$16 sps:$4 sm:$0xff]   ;;  %v11739_v35 = vld [vmem:[%s16529_s7 + $0xdac] ss:$16 sps:$4 sm:$0xff]  }
 0x636   : > { %8629 = vmatpush2.bf16.msra.mxu1 %v11671_v29  ;;  %v11742_v8 = vld [vmem:[%s16529_s7 + $0xf2c] ss:$16 sps:$4 sm:$0xff]   ;;  %v11737_v29 = vld [vmem:[%s16529_s7 + $0xda8] ss:$16 sps:$4 sm:$0xff]  }
 0x637   : > { %8728 = vmatpush1.bf16.msra.mxu0 %v11674_v11  ;;  %8680 = vmatprep.subr.bf16.mxu1 %v11679_v4  ;;  %v11740_v11 = vld [vmem:[%s16529_s7 + $0xf28] ss:$16 sps:$4 sm:$0xff]   ;;  %v11745_v4 = vld [vmem:[%s16529_s7 + $0xd8c] ss:$16 sps:$4 sm:$0xff]  }
 0x638   : > { %8729 = vmatprep.subr.bf16.mxu0 %v11682_v10  ;;  %v11748_v10 = vld [vmem:[%s16529_s7 + $0xf0c] ss:$16 sps:$4 sm:$0xff]  }
 0x639   : > { %v8427_v0 = vpop.f32.mrf.mxu1  ;;  %8631 = vmatmul.mubr.bf16.vlgmr.msra.gmra.mxu1 %v14364_v17  ;;  %v11691_v17 = vld [vmem:[%s16529_s7 + $0xcac] ss:$16 sps:$4 sm:$0xff]  }
 0x63a   : > { %v15692_v12 = vadd.f32 %v8427_v0, %v8387_v33  ;;  %8681 = vmatpush1.bf16.msra.mxu1 %v11677_v23  ;;  %8712 = vmatprep.mubr.bf16.mxu1 %v14377_v49  ;;  %v11694_v49 = vld [vmem:[%s16529_s7 + $0xe2c] ss:$16 sps:$4 sm:$0xff]   ;;  %v11743_v23 = vld [vmem:[%s16529_s7 + $0xd88] ss:$16 sps:$4 sm:$0xff]  }
 0x63b   : > { %8730 = vmatpush1.bf16.msra.mxu0 %v11680_v58  ;;  %v8429_v54 = vpop.f32.mrf.mxu1  ;;  %8682 = vmatprep.subr.bf16.mxu1 %v11685_v62  ;;  %v11724_v33 = vld [vmem:[%s16529_s7 + $0xf8c] ss:$16 sps:$4 sm:$0xff]   ;;  %v11746_v58 = vld [vmem:[%s16529_s7 + $0xf08] ss:$16 sps:$4 sm:$0xff]  }
 0x63c   : > { %v15704_v32 = vadd.f32 %v8429_v54, %v8389_v37  ;;  %8731 = vmatprep.subr.bf16.mxu0 %v11688_v16  ;;  %v11725_v37 = vld [vmem:[%s16529_s7 + $0xde8] ss:$16 sps:$4 sm:$0xff]   ;;  %v11751_v62 = vld [vmem:[%s16529_s7 + $0xd6c] ss:$16 sps:$4 sm:$0xff]  }
 0x63d   : > { %v8431_v43 = vpop.f32.mrf.mxu1  ;;  %v11754_v16 = vld [vmem:[%s16529_s7 + $0x12ec] ss:$16 sps:$4 sm:$0xff]   ;;  %v11749_v0 = vld [vmem:[%s16529_s7 + $0xd68] ss:$16 sps:$4 sm:$0xff]  }
 0x63e   : > { %8683 = vmatpush1.bf16.msra.mxu1 %v11683_v19  ;;  %v11752_v19 = vld [vmem:[%s16529_s7 + $0x12e8] ss:$16 sps:$4 sm:$0xff]   ;;  %v11757_v54 = vld [vmem:[%s16529_s7 + $0xd4c] ss:$16 sps:$4 sm:$0xff]  }
 0x63f   : > { %8732 = vmatpush1.bf16.msra.mxu0 %v11686_v14  ;;  %v8432_v21 = vpop.f32.mrf.mxu1  ;;  %8684 = vmatprep.subr.bf16.mxu1 %v11691_v17  ;;  %v11760_v14 = vld [vmem:[%s16529_s7 + $0x12cc] ss:$16 sps:$4 sm:$0xff]   ;;  %v11758_v43 = vld [vmem:[%s16529_s7 + $0x12c8] ss:$16 sps:$4 sm:$0xff]  }
 0x640   : > { %8733 = vmatprep.subr.bf16.mxu0 %v11694_v49  ;;  %v11755_v49 = vld [vmem:[%s16529_s7 + $0xd48] ss:$16 sps:$4 sm:$0xff]  }
 0x642   : > { %8685 = vmatpush1.bf16.msra.mxu1 %v11689_v5  ;;  %v11763_v5 = vld [vmem:[%s16529_s7 + $0xd2c] ss:$16 sps:$4 sm:$0xff]  }
 0x643   : > { %8734 = vmatpush1.bf16.msra.mxu0 %v11692_v41  ;;  %8686 = vmatprep.subr.bf16.mxu1 %v11697_v39  ;;  %v11764_v39 = vld [vmem:[%s16529_s7 + $0x12a8] ss:$16 sps:$4 sm:$0xff]  }
 0x644   : > { %8735 = vmatprep.subr.bf16.mxu0 %v11700_v45  ;;  %v11769_v45 = vld [vmem:[%s16529_s7 + $0xd0c] ss:$16 sps:$4 sm:$0xff]  }
 0x646   : > { %8687 = vmatpush1.bf16.msra.mxu1 %v11695_v24 }
 0x647   : > { %8736 = vmatpush1.bf16.msra.mxu0 %v11698_v47  ;;  %8688 = vmatprep.subr.bf16.mxu1 %v11703_v44  ;;  %v11772_v47 = vld [vmem:[%s16529_s7 + $0x128c] ss:$16 sps:$4 sm:$0xff]   ;;  %v11767_v44 = vld [vmem:[%s16529_s7 + $0xd08] ss:$16 sps:$4 sm:$0xff]  }
 0x648   : > { %8737 = vmatprep.subr.bf16.mxu0 %v11706_v61  ;;  %v11770_v61 = vld [vmem:[%s16529_s7 + $0x1288] ss:$16 sps:$4 sm:$0xff]  }
 0x64a   : > { %8689 = vmatpush1.bf16.msra.mxu1 %v11701_v26  ;;  %v11775_v26 = vld [vmem:[%s16529_s7 + $0x10ec] ss:$16 sps:$4 sm:$0xff]  }
 0x64b   : > { %8738 = vmatpush2.bf16.msra.mxu0 %v11704_v63  ;;  %8690 = vmatprep.subr.bf16.mxu1 %v11709_v53  ;;  %v11778_v63 = vld [vmem:[%s16529_s7 + $0x126c] ss:$16 sps:$4 sm:$0xff]   ;;  %v11966_v53 = vld [vmem:[%s16530_s8] sm:$0xf] }
 0x64c   : > { %8739 = vmatprep.subr.bf16.mxu0 %v11712_v6  ;;  %v7889_v6 = vrot.slane %v11966_v53, %v13843_v42  ;;  %v11784_v42 = vld [vmem:[%s16529_s7 + $0x124c] ss:$16 sps:$4 sm:$0xff]  }
 0x64e   : > { %8691 = vmatpush1.bf16.msra.mxu1 %v11707_v57  ;;  %v11773_v57 = vld [vmem:[%s16529_s7 + $0x10e8] ss:$16 sps:$4 sm:$0xff]  }
 0x64f   : > { %8740 = vmatpush2.bf16.msra.mxu0 %v11710_v52  ;;  %8692 = vmatprep.subr.bf16.mxu1 %v11715_v60  ;;  %v11776_v52 = vld [vmem:[%s16529_s7 + $0x1268] ss:$16 sps:$4 sm:$0xff]   ;;  %v11781_v60 = vld [vmem:[%s16529_s7 + $0x10cc] ss:$16 sps:$4 sm:$0xff]  }
 0x650   : > { %8741 = vmatprep.subr.bf16.mxu0 %v11718_v31  ;;  %v7893_v31 = vrot.slane %v11966_v53, %v13837_v50  ;;  %v11782_v50 = vld [vmem:[%s16529_s7 + $0x1248] ss:$16 sps:$4 sm:$0xff]   ;;  %v11844_v53 = vld [vmem:[%s16529_s7 + $0x130c] ss:$16 sps:$4 sm:$0xff]  }
 0x652   : > { %8693 = vmatpush1.bf16.msra.mxu1 %v11713_v46 }
 0x653   : > { %8742 = vmatpush2.bf16.msra.mxu0 %v11716_v48  ;;  %8694 = vmatprep.subr.bf16.mxu1 %v11721_v27  ;;  %v11779_v27 = vld [vmem:[%s16529_s7 + $0x10c8] ss:$16 sps:$4 sm:$0xff]  }
 0x654   : > { %8743 = vmatprep.subr.bf16.mxu0 %v11724_v33 }
 0x656   : > { %8695 = vmatpush1.bf16.msra.mxu1 %v11719_v36  ;;  %v11787_v36 = vld [vmem:[%s16529_s7 + $0x10ac] ss:$16 sps:$4 sm:$0xff]  }
 0x657   : > { %8744 = vmatpush2.bf16.msra.mxu0 %v11722_v28  ;;  %8696 = vmatprep.subr.bf16.mxu1 %v11727_v20 }
 0x658   : > { %8745 = vmatprep.subr.bf16.mxu0 %v11730_v25  ;;  %v11785_v25 = vld [vmem:[%s16529_s7 + $0x10a8] ss:$16 sps:$4 sm:$0xff]  }
 0x65a   : > { %8697 = vmatpush2.bf16.msra.mxu1 %v11725_v37 }
 0x65b   : > { %8746 = vmatpush2.bf16.msra.mxu0 %v11728_v18  ;;  %8698 = vmatprep.subr.bf16.mxu1 %v11733_v22  ;;  %v11788_v22 = vld [vmem:[%s16529_s7 + $0x1228] ss:$16 sps:$4 sm:$0xff]  }
 0x65c   : > { %8747 = vmatprep.subr.bf16.mxu0 %v11736_v59  ;;  %v11793_v59 = vld [vmem:[%s16529_s7 + $0x108c] ss:$16 sps:$4 sm:$0xff]  }
 0x65e   : > { %8699 = vmatpush2.bf16.msra.mxu1 %v11731_v40  ;;  %v11796_v40 = vld [vmem:[%s16529_s7 + $0x120c] ss:$16 sps:$4 sm:$0xff]  }
 0x65f   : > { %8748 = vmatpush2.bf16.msra.mxu0 %v11734_v51  ;;  %8700 = vmatprep.subr.bf16.mxu1 %v11739_v35  ;;  %v11791_v51 = vld [vmem:[%s16529_s7 + $0x1088] ss:$16 sps:$4 sm:$0xff]  }
 0x660   : > { %8749 = vmatprep.subr.bf16.mxu0 %v11742_v8  ;;  %v11794_v35 = vld [vmem:[%s16529_s7 + $0x1208] ss:$16 sps:$4 sm:$0xff]   ;;  %v11799_v8 = vld [vmem:[%s16529_s7 + $0x106c] ss:$16 sps:$4 sm:$0xff]  }
 0x662   : > { %8701 = vmatpush2.bf16.msra.mxu1 %v11737_v29  ;;  %v11802_v29 = vld [vmem:[%s16529_s7 + $0x13ec] ss:$16 sps:$4 sm:$0xff]  }
 0x663   : > { %8750 = vmatpush2.bf16.msra.mxu0 %v11740_v11  ;;  %8702 = vmatprep.subr.bf16.mxu1 %v11745_v4  ;;  %v11797_v11 = vld [vmem:[%s16529_s7 + $0x1068] ss:$16 sps:$4 sm:$0xff]  }
 0x664   : > { %8751 = vmatprep.subr.bf16.mxu0 %v11748_v10  ;;  %v11800_v4 = vld [vmem:[%s16529_s7 + $0x13e8] ss:$16 sps:$4 sm:$0xff]   ;;  %v11805_v10 = vld [vmem:[%s16529_s7 + $0x104c] ss:$16 sps:$4 sm:$0xff]  }
 0x666   : > { %8703 = vmatpush2.bf16.msra.mxu1 %v11743_v23  ;;  %v11808_v23 = vld [vmem:[%s16529_s7 + $0x13cc] ss:$16 sps:$4 sm:$0xff]  }
 0x667   : > { %8752 = vmatpush2.bf16.msra.mxu0 %v11746_v58  ;;  %8704 = vmatprep.subr.bf16.mxu1 %v11751_v62  ;;  %v11803_v58 = vld [vmem:[%s16529_s7 + $0x1048] ss:$16 sps:$4 sm:$0xff]  }
 0x668   : > { %8803 = vmatprep.subr.bf16.mxu0 %v11754_v16  ;;  %v11806_v62 = vld [vmem:[%s16529_s7 + $0x13c8] ss:$16 sps:$4 sm:$0xff]   ;;  %v11811_v16 = vld [vmem:[%s16529_s7 + $0x102c] ss:$16 sps:$4 sm:$0xff]  }
 0x66a   : > { %v8509_v17 = vpop.f32.mrf.mxu0  ;;  %8754 = vmatmul.mubr.bf16.vlgmr.msra.gmra.mxu0 %v14589_v9  ;;  %8705 = vmatpush2.bf16.msra.mxu1 %v11749_v0  ;;  %v11766_v9 = vld [vmem:[%s16529_s7 + $0x12ac] ss:$16 sps:$4 sm:$0xff]  }
 0x66b   : > { %8804 = vmatpush1.bf16.msra.mxu0 %v11752_v19  ;;  %8835 = vmatprep.mubr.bf16.mxu0 %v14602_v2  ;;  %v11761_v2 = vld [vmem:[%s16529_s7 + $0xd28] ss:$16 sps:$4 sm:$0xff]   ;;  %v11814_v0 = vld [vmem:[%s16529_s7 + $0x13ac] ss:$16 sps:$4 sm:$0xff]  }
 0x66c   : > { %v8511_v21 = vpop.f32.mrf.mxu0  ;;  %8706 = vmatprep.subr.bf16.mxu1 %v11757_v54  ;;  %8805 = vmatprep.subr.bf16.mxu0 %v11760_v14  ;;  %v11809_v19 = vld [vmem:[%s16529_s7 + $0x1028] ss:$16 sps:$4 sm:$0xff]   ;;  %v11817_v14 = vld [vmem:[%s16529_s7 + $0x100c] ss:$16 sps:$4 sm:$0xff]  }
 0x66d   : > { %v11812_v54 = vld [vmem:[%s16529_s7 + $0x13a8] ss:$16 sps:$4 sm:$0xff]  }
 0x66e   : > { %v8513_v41 = vpop.f32.mrf.mxu0  ;;  %8707 = vmatpush2.bf16.msra.mxu1 %v11755_v49  ;;  %v11815_v49 = vld [vmem:[%s16529_s7 + $0x1008] ss:$16 sps:$4 sm:$0xff]  }
 0x66f   : > { %8806 = vmatpush1.bf16.msra.mxu0 %v11758_v43  ;;  %8708 = vmatprep.subr.bf16.mxu1 %v11763_v5  ;;  %v11818_v43 = vld [vmem:[%s16529_s7 + $0x1388] ss:$16 sps:$4 sm:$0xff]   ;;  %v11823_v5 = vld [vmem:[%s16529_s7 + $0x11ec] ss:$16 sps:$4 sm:$0xff]  }
 0x670   : > { %v8514_v24 = vpop.f32.mrf.mxu0  ;;  %8807 = vmatprep.subr.bf16.mxu0 %v11766_v9  ;;  %v11821_v9 = vld [vmem:[%s16529_s7 + $0x11e8] ss:$16 sps:$4 sm:$0xff]  }
 0x671   : > { %v11824_v41 = vld [vmem:[%s16529_s7 + $0x1368] ss:$16 sps:$4 sm:$0xff]  }
 0x672   : > { %8709 = vmatpush2.bf16.msra.mxu1 %v11761_v2  ;;  %v11829_v2 = vld [vmem:[%s16529_s7 + $0x11cc] ss:$16 sps:$4 sm:$0xff]   ;;  %v11830_v24 = vld [vmem:[%s16529_s7 + $0x1348] ss:$16 sps:$4 sm:$0xff]  }
 0x673   : > { %8808 = vmatpush1.bf16.msra.mxu0 %v11764_v39  ;;  %8710 = vmatprep.subr.bf16.mxu1 %v11769_v45  ;;  %v11832_v39 = vld [vmem:[%s16529_s7 + $0x134c] ss:$16 sps:$4 sm:$0xff]   ;;  %v11827_v45 = vld [vmem:[%s16529_s7 + $0x11c8] ss:$16 sps:$4 sm:$0xff]  }
 0x674   : > { %8809 = vmatprep.subr.bf16.mxu0 %v11772_v47  ;;  %v11835_v47 = vld [vmem:[%s16529_s7 + $0x11ac] ss:$16 sps:$4 sm:$0xff]  }
 0x676   : > { %8711 = vmatpush2.bf16.msra.mxu1 %v11767_v44  ;;  %v11838_v44 = vld [vmem:[%s16529_s7 + $0x132c] ss:$16 sps:$4 sm:$0xff]  }
 0x677   : > { %8810 = vmatpush1.bf16.msra.mxu0 %v11770_v61  ;;  %8762 = vmatprep.subr.bf16.mxu1 %v11775_v26  ;;  %v11833_v61 = vld [vmem:[%s16529_s7 + $0x11a8] ss:$16 sps:$4 sm:$0xff]  }
 0x678   : > { %8811 = vmatprep.subr.bf16.mxu0 %v11778_v63  ;;  %v11836_v26 = vld [vmem:[%s16529_s7 + $0x1328] ss:$16 sps:$4 sm:$0xff]   ;;  %v11841_v63 = vld [vmem:[%s16529_s7 + $0x118c] ss:$16 sps:$4 sm:$0xff]  }
 0x679   : > { %v8468_v46 = vpop.f32.mrf.mxu1  ;;  %8713 = vmatmul.mubr.bf16.vlgmr.msra.gmra.mxu1 %v14582_v56 }
 0x67a   : > { %v8469_v48 = vadd.f32 %v8468_v46, %v7889_v6  ;;  %8763 = vmatpush1.bf16.msra.mxu1 %v11773_v57  ;;  %8794 = vmatprep.mubr.bf16.mxu1 %v14596_v55  ;;  %v11790_v55 = vld [vmem:[%s16529_s7 + $0x122c] ss:$16 sps:$4 sm:$0xff]   ;;  %v11839_v6 = vld [vmem:[%s16529_s7 + $0x1188] ss:$16 sps:$4 sm:$0xff]  }
 0x67b   : > { %8812 = vmatpush1.bf16.msra.mxu0 %v11776_v52  ;;  %v8470_v33 = vpop.f32.mrf.mxu1  ;;  %8764 = vmatprep.subr.bf16.mxu1 %v11781_v60  ;;  %v11842_v57 = vld [vmem:[%s16529_s7 + $0x1308] ss:$16 sps:$4 sm:$0xff]   ;;  %v11847_v52 = vld [vmem:[%s16529_s7 + $0x116c] ss:$16 sps:$4 sm:$0xff]  }
 0x67c   : > { %v8471_v56 = vadd.f32 %v8470_v33, %v7893_v31  ;;  %8813 = vmatprep.subr.bf16.mxu0 %v11784_v42  ;;  %v15910_v28 = vadd.f32 %v8509_v17, %v8469_v48  ;;  %v11820_v17 = vld [vmem:[%s16529_s7 + $0x138c] ss:$16 sps:$4 sm:$0xff]   ;;  %v11845_v31 = vld [vmem:[%s16529_s7 + $0x1168] ss:$16 sps:$4 sm:$0xff]  }
 0x67d   : > { %v8472_v20 = vpop.f32.mrf.mxu1  ;;  %v11850_v60 = vld [vmem:[%s16529_s7 + $0x16ec] ss:$16 sps:$4 sm:$0xff]   ;;  %v11848_v42 = vld [vmem:[%s16529_s7 + $0x16e8] ss:$16 sps:$4 sm:$0xff]  }
 0x67e   : > { %8765 = vmatpush1.bf16.msra.mxu1 %v11779_v27  ;;  %v15915_v37 = vadd.f32 %v8511_v21, %v8471_v56  ;;  %v11826_v21 = vld [vmem:[%s16529_s7 + $0x136c] ss:$16 sps:$4 sm:$0xff]   ;;  %v11851_v33 = vld [vmem:[%s16529_s7 + $0x1148] ss:$16 sps:$4 sm:$0xff]  }
 0x67f   : > { %8814 = vmatpush1.bf16.msra.mxu0 %v11782_v50  ;;  %v8473_v18 = vpop.f32.mrf.mxu1  ;;  %8766 = vmatprep.subr.bf16.mxu1 %v11787_v36  ;;  %v11853_v46 = vld [vmem:[%s16529_s7 + $0x114c] ss:$16 sps:$4 sm:$0xff]   ;;  %v11854_v50 = vld [vmem:[%s16529_s7 + $0x16c8] ss:$16 sps:$4 sm:$0xff]  }
 0x680   : > { %8815 = vmatprep.subr.bf16.mxu0 %v11790_v55  ;;  %v11856_v48 = vld [vmem:[%s16529_s7 + $0x16cc] ss:$16 sps:$4 sm:$0xff]   ;;  %v11860_v20 = vld [vmem:[%s16529_s7 + $0x16a8] ss:$16 sps:$4 sm:$0xff]  }
 0x681   : > { %v11859_v36 = vld [vmem:[%s16529_s7 + $0x112c] ss:$16 sps:$4 sm:$0xff]  }
 0x682   : > { %8767 = vmatpush1.bf16.msra.mxu1 %v11785_v25  ;;  %v11865_v25 = vld [vmem:[%s16529_s7 + $0x110c] ss:$16 sps:$4 sm:$0xff]  }
 0x683   : > { %8816 = vmatpush1.bf16.msra.mxu0 %v11788_v22  ;;  %8768 = vmatprep.subr.bf16.mxu1 %v11793_v59  ;;  %v11868_v22 = vld [vmem:[%s16529_s7 + $0x168c] ss:$16 sps:$4 sm:$0xff]   ;;  %v11863_v59 = vld [vmem:[%s16529_s7 + $0x1108] ss:$16 sps:$4 sm:$0xff]  }
 0x684   : > { %8817 = vmatprep.subr.bf16.mxu0 %v11796_v40  ;;  %v11866_v40 = vld [vmem:[%s16529_s7 + $0x1688] ss:$16 sps:$4 sm:$0xff]  }
 0x686   : > { %8769 = vmatpush1.bf16.msra.mxu1 %v11791_v51  ;;  %v11871_v51 = vld [vmem:[%s16529_s7 + $0x14ec] ss:$16 sps:$4 sm:$0xff]  }
 0x687   : > { %8818 = vmatpush1.bf16.msra.mxu0 %v11794_v35  ;;  %8770 = vmatprep.subr.bf16.mxu1 %v11799_v8  ;;  %v11874_v35 = vld [vmem:[%s16529_s7 + $0x166c] ss:$16 sps:$4 sm:$0xff]   ;;  %v11869_v8 = vld [vmem:[%s16529_s7 + $0x14e8] ss:$16 sps:$4 sm:$0xff]  }
 0x688   : > { %8819 = vmatprep.subr.bf16.mxu0 %v11802_v29  ;;  %v11872_v29 = vld [vmem:[%s16529_s7 + $0x1668] ss:$16 sps:$4 sm:$0xff]  }
 0x68a   : > { %8771 = vmatpush1.bf16.msra.mxu1 %v11797_v11  ;;  %v11877_v11 = vld [vmem:[%s16529_s7 + $0x14cc] ss:$16 sps:$4 sm:$0xff]  }
 0x68b   : > { %8820 = vmatpush2.bf16.msra.mxu0 %v11800_v4  ;;  %8772 = vmatprep.subr.bf16.mxu1 %v11805_v10  ;;  %v11880_v4 = vld [vmem:[%s16529_s7 + $0x164c] ss:$16 sps:$4 sm:$0xff]  }
 0x68c   : > { %8821 = vmatprep.subr.bf16.mxu0 %v11808_v23 }
 0x68e   : > { %8773 = vmatpush1.bf16.msra.mxu1 %v11803_v58  ;;  %v11875_v58 = vld [vmem:[%s16529_s7 + $0x14c8] ss:$16 sps:$4 sm:$0xff]  }
 0x68f   : > { %8822 = vmatpush2.bf16.msra.mxu0 %v11806_v62  ;;  %8774 = vmatprep.subr.bf16.mxu1 %v11811_v16  ;;  %v11878_v16 = vld [vmem:[%s16529_s7 + $0x1648] ss:$16 sps:$4 sm:$0xff]  }
 0x690   : > { %8823 = vmatprep.subr.bf16.mxu0 %v11814_v0 }
 0x692   : > { %8775 = vmatpush1.bf16.msra.mxu1 %v11809_v19 }
 0x693   : > { %8824 = vmatpush2.bf16.msra.mxu0 %v11812_v54  ;;  %8776 = vmatprep.subr.bf16.mxu1 %v11817_v14  ;;  %v11881_v54 = vld [vmem:[%s16529_s7 + $0x14a8] ss:$16 sps:$4 sm:$0xff]  }
 0x694   : > { %8825 = vmatprep.subr.bf16.mxu0 %v11820_v17 }
 0x696   : > { %8777 = vmatpush1.bf16.msra.mxu1 %v11815_v49  ;;  %v11889_v49 = vld [vmem:[%s16529_s7 + $0x148c] ss:$16 sps:$4 sm:$0xff]  }
 0x697   : > { %8826 = vmatpush2.bf16.msra.mxu0 %v11818_v43  ;;  %8778 = vmatprep.subr.bf16.mxu1 %v11823_v5  ;;  %v11892_v43 = vld [vmem:[%s16529_s7 + $0x160c] ss:$16 sps:$4 sm:$0xff]   ;;  %v11887_v5 = vld [vmem:[%s16529_s7 + $0x1488] ss:$16 sps:$4 sm:$0xff]  }
 0x698   : > { %8827 = vmatprep.subr.bf16.mxu0 %v11826_v21  ;;  %v11890_v21 = vld [vmem:[%s16529_s7 + $0x1608] ss:$16 sps:$4 sm:$0xff]  }
 0x69a   : > { %8779 = vmatpush2.bf16.msra.mxu1 %v11821_v9  ;;  %v11895_v9 = vld [vmem:[%s16529_s7 + $0x146c] ss:$16 sps:$4 sm:$0xff]  }
 0x69b   : > { %8828 = vmatpush2.bf16.msra.mxu0 %v11824_v41  ;;  %8780 = vmatprep.subr.bf16.mxu1 %v11829_v2  ;;  %v11898_v41 = vld [vmem:[%s16529_s7 + $0x17ec] ss:$16 sps:$4 sm:$0xff]   ;;  %v11893_v2 = vld [vmem:[%s16529_s7 + $0x1468] ss:$16 sps:$4 sm:$0xff]  }
 0x69c   : > { %8829 = vmatprep.subr.bf16.mxu0 %v11832_v39  ;;  %v11896_v39 = vld [vmem:[%s16529_s7 + $0x17e8] ss:$16 sps:$4 sm:$0xff]  }
 0x69e   : > { %8781 = vmatpush2.bf16.msra.mxu1 %v11827_v45  ;;  %v11901_v45 = vld [vmem:[%s16529_s7 + $0x144c] ss:$16 sps:$4 sm:$0xff]  }
 0x69f   : > { %8830 = vmatpush2.bf16.msra.mxu0 %v11830_v24  ;;  %8782 = vmatprep.subr.bf16.mxu1 %v11835_v47  ;;  %v11904_v24 = vld [vmem:[%s16529_s7 + $0x17cc] ss:$16 sps:$4 sm:$0xff]   ;;  %v11899_v47 = vld [vmem:[%s16529_s7 + $0x1448] ss:$16 sps:$4 sm:$0xff]  }
 0x6a0   : > { %8831 = vmatprep.subr.bf16.mxu0 %v11838_v44  ;;  %v11902_v44 = vld [vmem:[%s16529_s7 + $0x17c8] ss:$16 sps:$4 sm:$0xff]  }
 0x6a2   : > { %8783 = vmatpush2.bf16.msra.mxu1 %v11833_v61  ;;  %v11907_v61 = vld [vmem:[%s16529_s7 + $0x142c] ss:$16 sps:$4 sm:$0xff]  }
 0x6a3   : > { %8832 = vmatpush2.bf16.msra.mxu0 %v11836_v26  ;;  %8784 = vmatprep.subr.bf16.mxu1 %v11841_v63  ;;  %v11910_v26 = vld [vmem:[%s16529_s7 + $0x17ac] ss:$16 sps:$4 sm:$0xff]   ;;  %v11905_v63 = vld [vmem:[%s16529_s7 + $0x1428] ss:$16 sps:$4 sm:$0xff]  }
 0x6a4   : > { %8833 = vmatprep.subr.bf16.mxu0 %v11844_v53  ;;  %v11908_v53 = vld [vmem:[%s16529_s7 + $0x17a8] ss:$16 sps:$4 sm:$0xff]  }
 0x6a6   : > { %8785 = vmatpush2.bf16.msra.mxu1 %v11839_v6  ;;  %v11913_v6 = vld [vmem:[%s16529_s7 + $0x140c] ss:$16 sps:$4 sm:$0xff]  }
 0x6a7   : > { %8834 = vmatpush2.bf16.msra.mxu0 %v11842_v57  ;;  %8786 = vmatprep.subr.bf16.mxu1 %v11847_v52  ;;  %v11916_v57 = vld [vmem:[%s16529_s7 + $0x178c] ss:$16 sps:$4 sm:$0xff]   ;;  %v11911_v52 = vld [vmem:[%s16529_s7 + $0x1408] ss:$16 sps:$4 sm:$0xff]  }
 0x6a8   : > { %8885 = vmatprep.subr.bf16.mxu0 %v11850_v60  ;;  %v11914_v60 = vld [vmem:[%s16529_s7 + $0x1788] ss:$16 sps:$4 sm:$0xff]  }
 0x6aa   : > { %v8591_v27 = vpop.f32.mrf.mxu0  ;;  %8836 = vmatmul.mubr.bf16.vlgmr.msra.gmra.mxu0 %v14802_v38  ;;  %8787 = vmatpush2.bf16.msra.mxu1 %v11845_v31  ;;  %v11862_v38 = vld [vmem:[%s16529_s7 + $0x16ac] ss:$16 sps:$4 sm:$0xff]  }
 0x6ab   : > { %8886 = vmatpush1.bf16.msra.mxu0 %v11848_v42  ;;  %8917 = vmatprep.mubr.bf16.mxu0 %v14819_v3  ;;  %v11857_v3 = vld [vmem:[%s16529_s7 + $0x1128] ss:$16 sps:$4 sm:$0xff]   ;;  %v11919_v31 = vld [vmem:[%s16529_s7 + $0x15ec] ss:$16 sps:$4 sm:$0xff]  }
 0x6ac   : > { %v8593_v56 = vpop.f32.mrf.mxu0  ;;  %8788 = vmatprep.subr.bf16.mxu1 %v11853_v46  ;;  %8887 = vmatprep.subr.bf16.mxu0 %v11856_v48  ;;  %v11922_v42 = vld [vmem:[%s16529_s7 + $0x176c] ss:$16 sps:$4 sm:$0xff]   ;;  %v11917_v46 = vld [vmem:[%s16529_s7 + $0x15e8] ss:$16 sps:$4 sm:$0xff]  }
 0x6ad   : > { %v11920_v48 = vld [vmem:[%s16529_s7 + $0x1768] ss:$16 sps:$4 sm:$0xff]  }
 0x6ae   : > { %v8595_v55 = vpop.f32.mrf.mxu0  ;;  %8789 = vmatpush2.bf16.msra.mxu1 %v11851_v33  ;;  %v11928_v33 = vld [vmem:[%s16529_s7 + $0x174c] ss:$16 sps:$4 sm:$0xff]  }
 0x6af   : > { %8888 = vmatpush1.bf16.msra.mxu0 %v11854_v50  ;;  %8790 = vmatprep.subr.bf16.mxu1 %v11859_v36  ;;  %v11923_v50 = vld [vmem:[%s16529_s7 + $0x15c8] ss:$16 sps:$4 sm:$0xff]  }
 0x6b0   : > { %v8596_v18 = vpop.f32.mrf.mxu0  ;;  %8889 = vmatprep.subr.bf16.mxu0 %v11862_v38  ;;  %v11926_v36 = vld [vmem:[%s16529_s7 + $0x1748] ss:$16 sps:$4 sm:$0xff]   ;;  %v11934_v38 = vld [vmem:[%s16529_s7 + $0x172c] ss:$16 sps:$4 sm:$0xff]  }
 0x6b1   : > { %v11929_v55 = vld [vmem:[%s16529_s7 + $0x15a8] ss:$16 sps:$4 sm:$0xff]  }
 0x6b2   : > { %8791 = vmatpush2.bf16.msra.mxu1 %v11857_v3  ;;  %v11932_v3 = vld [vmem:[%s16529_s7 + $0x1728] ss:$16 sps:$4 sm:$0xff]  }
 0x6b3   : > { %8890 = vmatpush1.bf16.msra.mxu0 %v11860_v20  ;;  %8792 = vmatprep.subr.bf16.mxu1 %v11865_v25  ;;  %v11937_v20 = vld [vmem:[%s16529_s7 + $0x158c] ss:$16 sps:$4 sm:$0xff]   ;;  %v11935_v18 = vld [vmem:[%s16529_s7 + $0x1588] ss:$16 sps:$4 sm:$0xff]  }
 0x6b4   : > { %8891 = vmatprep.subr.bf16.mxu0 %v11868_v22  ;;  %v11940_v25 = vld [vmem:[%s16529_s7 + $0x170c] ss:$16 sps:$4 sm:$0xff]   ;;  %v11938_v22 = vld [vmem:[%s16529_s7 + $0x1708] ss:$16 sps:$4 sm:$0xff]  }
 0x6b6   : > { %8793 = vmatpush2.bf16.msra.mxu1 %v11863_v59  ;;  %v11943_v59 = vld [vmem:[%s16529_s7 + $0x156c] ss:$16 sps:$4 sm:$0xff]  }
 0x6b7   : > { %8892 = vmatpush1.bf16.msra.mxu0 %v11866_v40  ;;  %8844 = vmatprep.subr.bf16.mxu1 %v11871_v51  ;;  %v11941_v40 = vld [vmem:[%s16529_s7 + $0x1568] ss:$16 sps:$4 sm:$0xff]   ;;  %v11946_v51 = vld [vmem:[%s16529_s7 + $0x154c] ss:$16 sps:$4 sm:$0xff]  }
 0x6b8   : > { %8893 = vmatprep.subr.bf16.mxu0 %v11874_v35 }
 0x6b9   : > { %v8550_v10 = vpop.f32.mrf.mxu1  ;;  %8795 = vmatmul.mubr.bf16.vlgmr.msra.gmra.mxu1 %v14797_v34  ;;  %v11883_v34 = vld [vmem:[%s16529_s7 + $0x14ac] ss:$16 sps:$4 sm:$0xff]  }
 0x6ba   : > { %v8551_v23 = vadd.f32 %v8550_v10, %v15910_v28  ;;  %8845 = vmatpush1.bf16.msra.mxu1 %v11869_v8  ;;  %8876 = vmatprep.mubr.bf16.mxu1 %v14810_v30  ;;  %v11886_v30 = vld [vmem:[%s16529_s7 + $0x162c] ss:$16 sps:$4 sm:$0xff]   ;;  %v11944_v8 = vld [vmem:[%s16529_s7 + $0x1548] ss:$16 sps:$4 sm:$0xff]  }
 0x6bb   : > { %8894 = vmatpush1.bf16.msra.mxu0 %v11872_v29  ;;  %v8552_v62 = vpop.f32.mrf.mxu1  ;;  %8846 = vmatprep.subr.bf16.mxu1 %v11877_v11  ;;  %v11949_v29 = vld [vmem:[%s16529_s7 + $0x152c] ss:$16 sps:$4 sm:$0xff]   ;;  %v11947_v10 = vld [vmem:[%s16529_s7 + $0x1528] ss:$16 sps:$4 sm:$0xff]  }
 0x6bc   : > { %v8553_v28 = vadd.f32 %v8552_v62, %v15915_v37  ;;  %8895 = vmatprep.subr.bf16.mxu0 %v11880_v4  ;;  %v16112_v0 = vadd.f32 %v8591_v27, %v8551_v23  ;;  %v11884_v37 = vld [vmem:[%s16529_s7 + $0x1628] ss:$16 sps:$4 sm:$0xff]   ;;  %v11925_v27 = vld [vmem:[%s16529_s7 + $0x15cc] ss:$16 sps:$4 sm:$0xff]  }
 0x6bd   : > { %v8554_v19 = vpop.f32.mrf.mxu1  ;;  %v11955_v62 = vld [vmem:[%s16529_s7 + $0x186c] ss:$16 sps:$4 sm:$0xff]  }
 0x6be   : > { %8847 = vmatpush1.bf16.msra.mxu1 %v11875_v58  ;;  %v16117_v14 = vadd.f32 %v8593_v56, %v8553_v28  ;;  %v11931_v56 = vld [vmem:[%s16529_s7 + $0x15ac] ss:$16 sps:$4 sm:$0xff]   ;;  %v11950_v58 = vld [vmem:[%s16529_s7 + $0x1508] ss:$16 sps:$4 sm:$0xff]  }
 0x6bf   : > { %8896 = vmatpush1.bf16.msra.mxu0 %v11878_v16  ;;  %v8555_v17 = vpop.f32.mrf.mxu1  ;;  %8848 = vmatprep.subr.bf16.mxu1 %v11883_v34  ;;  %v11953_v16 = vld [vmem:[%s16529_s7 + $0x1868] ss:$16 sps:$4 sm:$0xff]   ;;  %v11958_v34 = vld [vmem:[%s16529_s7 + $0x184c] ss:$16 sps:$4 sm:$0xff]  }
 0x6c0   : > { %8897 = vmatprep.subr.bf16.mxu0 %v11886_v30  ;;  %v11956_v19 = vld [vmem:[%s16529_s7 + $0x1848] ss:$16 sps:$4 sm:$0xff]   ;;  %v11961_v17 = vld [vmem:[%s16529_s7 + $0x182c] ss:$16 sps:$4 sm:$0xff]  }
 0x6c2   : > { %8849 = vmatpush1.bf16.msra.mxu1 %v11881_v54 }
 0x6c3   : > { %8898 = vmatpush1.bf16.msra.mxu0 %v11884_v37  ;;  %8850 = vmatprep.subr.bf16.mxu1 %v11889_v49 }
 0x6c4   : > { %8899 = vmatprep.subr.bf16.mxu0 %v11892_v43 }
 0x6c6   : > { %8851 = vmatpush1.bf16.msra.mxu1 %v11887_v5 }
 0x6c7   : > { %8900 = vmatpush1.bf16.msra.mxu0 %v11890_v21  ;;  %8852 = vmatprep.subr.bf16.mxu1 %v11895_v9  ;;  %v9002_v21 = vld [vmem:[%s16531_s9 + $0xf8] sm:$0xff] }
 0x6c8   : > { %8901 = vmatprep.subr.bf16.mxu0 %v11898_v41  ;;  %v8986_v9 = vld [vmem:[%s16531_s9 + $0x78] sm:$0xff]  ;;  %v8968_v41 = vmax.f32 %v15704_v32, 0.0  ;;  %v8984_v32 = vld [vmem:[%s16531_s9 + $0x68] sm:$0xff] }
 0x6ca   : > { %8853 = vmatpush1.bf16.msra.mxu1 %v11893_v2  ;;  %v9001_v2 = vld [vmem:[%s16531_s9 + $0xf0] sm:$0xff] }
 0x6cb   : > { %8902 = vmatpush2.bf16.msra.mxu0 %v11896_v39  ;;  %8854 = vmatprep.subr.bf16.mxu1 %v11901_v45  ;;  %v8985_v39 = vld [vmem:[%s16531_s9 + $0x70] sm:$0xff]  ;;  %v9000_v45 = vld [vmem:[%s16531_s9 + $0xe8] sm:$0xff] }
 0x6cc   : > { %8903 = vmatprep.subr.bf16.mxu0 %v11904_v24  ;;  %v8983_v24 = vld [vmem:[%s16531_s9 + $0x60] sm:$0xff] }
 0x6ce   : > { %8855 = vmatpush1.bf16.msra.mxu1 %v11899_v47  ;;  %v8998_v47 = vld [vmem:[%s16531_s9 + $0xd8] sm:$0xff] }
 0x6cf   : > { %8904 = vmatpush2.bf16.msra.mxu0 %v11902_v44  ;;  %8856 = vmatprep.subr.bf16.mxu1 %v11907_v61  ;;  %v8982_v44 = vld [vmem:[%s16531_s9 + $0x58] sm:$0xff]  ;;  %v8997_v61 = vld [vmem:[%s16531_s9 + $0xd0] sm:$0xff] }
 0x6d0   : > { %8905 = vmatprep.subr.bf16.mxu0 %v11910_v26  ;;  %v8981_v26 = vld [vmem:[%s16531_s9 + $0x50] sm:$0xff] }
 0x6d2   : > { %8857 = vmatpush1.bf16.msra.mxu1 %v11905_v63  ;;  %v8996_v63 = vld [vmem:[%s16531_s9 + $0xc8] sm:$0xff] }
 0x6d3   : > { %8906 = vmatpush2.bf16.msra.mxu0 %v11908_v53  ;;  %8858 = vmatprep.subr.bf16.mxu1 %v11913_v6  ;;  %v8980_v53 = vld [vmem:[%s16531_s9 + $0x48] sm:$0xff]  ;;  %v8995_v6 = vld [vmem:[%s16531_s9 + $0xc0] sm:$0xff] }
 0x6d4   : > { %8907 = vmatprep.subr.bf16.mxu0 %v11916_v57  ;;  %v8979_v57 = vld [vmem:[%s16531_s9 + $0x40] sm:$0xff] }
 0x6d6   : > { %8859 = vmatpush1.bf16.msra.mxu1 %v11911_v52  ;;  %v8994_v52 = vld [vmem:[%s16531_s9 + $0xb8] sm:$0xff] }
 0x6d7   : > { %8908 = vmatpush2.bf16.msra.mxu0 %v11914_v60  ;;  %8860 = vmatprep.subr.bf16.mxu1 %v11919_v31  ;;  %v8978_v60 = vld [vmem:[%s16531_s9 + $0x38] sm:$0xff]  ;;  %v8993_v31 = vld [vmem:[%s16531_s9 + $0xb0] sm:$0xff] }
 0x6d8   : > { %8909 = vmatprep.subr.bf16.mxu0 %v11922_v42  ;;  %v8977_v42 = vld [vmem:[%s16531_s9 + $0x30] sm:$0xff] }
 0x6da   : > { %8861 = vmatpush2.bf16.msra.mxu1 %v11917_v46  ;;  %v8992_v46 = vld [vmem:[%s16531_s9 + $0xa8] sm:$0xff] }
 0x6db   : > { %8910 = vmatpush2.bf16.msra.mxu0 %v11920_v48  ;;  %8862 = vmatprep.subr.bf16.mxu1 %v11925_v27  ;;  %v8976_v48 = vld [vmem:[%s16531_s9 + $0x28] sm:$0xff]  ;;  %v8991_v27 = vld [vmem:[%s16531_s9 + $0xa0] sm:$0xff] }
 0x6dc   : > { %8911 = vmatprep.subr.bf16.mxu0 %v11928_v33  ;;  %v8975_v33 = vld [vmem:[%s16531_s9 + $0x20] sm:$0xff] }
 0x6de   : > { %8863 = vmatpush2.bf16.msra.mxu1 %v11923_v50  ;;  %v8990_v50 = vld [vmem:[%s16531_s9 + $0x98] sm:$0xff] }
 0x6df   : > { %8912 = vmatpush2.bf16.msra.mxu0 %v11926_v36  ;;  %8864 = vmatprep.subr.bf16.mxu1 %v11931_v56  ;;  %v8974_v36 = vld [vmem:[%s16531_s9 + $0x18] sm:$0xff]  ;;  %v8989_v56 = vld [vmem:[%s16531_s9 + $0x90] sm:$0xff] }
 0x6e0   : > { %8913 = vmatprep.subr.bf16.mxu0 %v11934_v38  ;;  %v8973_v38 = vld [vmem:[%s16531_s9 + $0x10] sm:$0xff] }
 0x6e2   : > { %8865 = vmatpush2.bf16.msra.mxu1 %v11929_v55  ;;  %v8988_v55 = vld [vmem:[%s16531_s9 + $0x88] sm:$0xff] }
 0x6e3   : > { %8914 = vmatpush2.bf16.msra.mxu0 %v11932_v3  ;;  %8866 = vmatprep.subr.bf16.mxu1 %v11937_v20  ;;  %v8972_v3 = vld [vmem:[%s16531_s9 + $0x8] sm:$0xff]  ;;  %v8987_v20 = vld [vmem:[%s16531_s9 + $0x80] sm:$0xff] }
 0x6e4   : > { %8915 = vmatprep.subr.bf16.mxu0 %v11940_v25  ;;  %v8971_v25 = vld [vmem:[%s16531_s9] sm:$0xff] }
 0x6e6   : > { %8867 = vmatpush2.bf16.msra.mxu1 %v11935_v18  ;;  %v8967_v18 = vmax.f32 %v15692_v12, 0.0  ;;  %v9017_v12 = vld [vmem:[%s16531_s9 + $0x170] sm:$0xff] }
 0x6e7   : > { %8916 = vmatpush2.bf16.msra.mxu0 %v11938_v22  ;;  %8868 = vmatprep.subr.bf16.mxu1 %v11943_v59 }
 0x6ea   : > { %v8673_v35 = vpop.f32.mrf.mxu0  ;;  %8918 = vmatmul.mubr.bf16.vlgmr.msra.gmra.mxu0 %v15020_v1  ;;  %8869 = vmatpush2.bf16.msra.mxu1 %v11941_v40  ;;  %v11952_v1 = vld [vmem:[%s16529_s7 + $0x150c] ss:$16 sps:$4 sm:$0xff]  }
 0x6eb   : > { %8870 = vmatprep.subr.bf16.mxu1 %v11946_v51 }
 0x6ec   : > { %v8675_v11 = vpop.f32.mrf.mxu0 }
 0x6ee   : > { %v8677_v4 = vpop.f32.mrf.mxu0  ;;  %8871 = vmatpush2.bf16.msra.mxu1 %v11944_v8  ;;  %v9018_v8 = vld [vmem:[%s16531_s9 + $0x178] sm:$0xff] }
 0x6ef   : > { %8872 = vmatprep.subr.bf16.mxu1 %v11949_v29  ;;  %v9033_v29 = vld [vmem:[%s16531_s9 + $0x1f0] sm:$0xff]  ;;  %v9016_v4 = vld [vmem:[%s16531_s9 + $0x168] sm:$0xff] }
 0x6f0   : > { %v8678_v23 = vpop.f32.mrf.mxu0 }
 0x6f2   : > { %8873 = vmatpush2.bf16.msra.mxu1 %v11947_v10  ;;  %v9031_v10 = vld [vmem:[%s16531_s9 + $0x1e0] sm:$0xff] }
 0x6f3   : > { %8874 = vmatprep.subr.bf16.mxu1 %v11952_v1  ;;  %v9015_v1 = vld [vmem:[%s16531_s9 + $0x160] sm:$0xff] }
 0x6f6   : > { %8875 = vmatpush2.bf16.msra.mxu1 %v11950_v58 }
 0x6f7   : > { %8934 = vmatprep.subr.bf16.mxu1 %v11955_v62  ;;  %v9030_v62 = vld [vmem:[%s16531_s9 + $0x1d8] sm:$0xff] }
 0x6f9   : > { %v8632_v28 = vpop.f32.mrf.mxu1  ;;  %8877 = vmatmul.mubr.bf16.vlgmr.msra.gmra.mxu1 %v15013_v7 }
 0x6fa   : > { %v8633_v30 = vadd.f32 %v8632_v28, %v16112_v0  ;;  %8935 = vmatpush1.bf16.msra.mxu1 %v11953_v16  ;;  %8958 = vmatprep.mubr.bf16.mxu1 %v12033_v15  ;;  %v11959_v0 = vld [vmem:[%s16529_s7 + $0x1828] ss:$16 sps:$4 sm:$0xff]   ;;  %v11964_v15 = vld [vmem:[%s16529_s7 + $0x180c] ss:$16 sps:$4 sm:$0xff]  }
 0x6fb   : > { %v8634_v54 = vpop.f32.mrf.mxu1  ;;  %8936 = vmatprep.subr.bf16.mxu1 %v11958_v34  ;;  %v9014_v16 = vld [vmem:[%s16531_s9 + $0x158] sm:$0xff] }
 0x6fc   : > { %v8635_v37 = vadd.f32 %v8634_v54, %v16117_v14  ;;  %v16274_v49 = vadd.f32 %v8673_v35, %v8633_v30  ;;  %v11962_v14 = vld [vmem:[%s16529_s7 + $0x1808] ss:$16 sps:$4 sm:$0xff]   ;;  %v9013_v54 = vld [vmem:[%s16531_s9 + $0x150] sm:$0xff] }
 0x6fd   : > { %v8636_v7 = vpop.f32.mrf.mxu1  ;;  %v9034_v35 = vld [vmem:[%s16531_s9 + $0x1f8] sm:$0xff] }
 0x6fe   : > { %8937 = vmatpush1.bf16.msra.mxu1 %v11956_v19  ;;  %v16279_v43 = vadd.f32 %v8675_v11, %v8635_v37  ;;  %10666 = vmatprep.subr.mxu0 %v9034_v35  ;;  %v9032_v11 = vld [vmem:[%s16531_s9 + $0x1e8] sm:$0xff]  ;;  %v9029_v19 = vld [vmem:[%s16531_s9 + $0x1d0] sm:$0xff] }
 0x6ff   : > { %v8637_v5 = vpop.f32.mrf.mxu1  ;;  %8938 = vmatprep.subr.bf16.mxu1 %v11961_v17  ;;  %10667 = vmatpush3.msra.mxu0 %v9018_v8  ;;  %v9028_v37 = vld [vmem:[%s16531_s9 + $0x1c8] sm:$0xff] }
 0x700   : > { %10668 = vmatprep.subr.mxu0 %v9033_v29  ;;  %v9011_v5 = vld [vmem:[%s16531_s9 + $0x140] sm:$0xff] }
 0x701   : > { %10669 = vmatpush3.msra.mxu0 %v9017_v12 }
 0x702   : > { %8939 = vmatpush1.bf16.msra.mxu1 %v11959_v0  ;;  %10670 = vmatprep.subr.mxu0 %v9032_v11 }
 0x703   : > { %8940 = vmatprep.subr.bf16.mxu1 %v11964_v15  ;;  %10671 = vmatpush3.msra.mxu0 %v9016_v4  ;;  %v9026_v15 = vld [vmem:[%s16531_s9 + $0x1b8] sm:$0xff] }
 0x704   : > { %10672 = vmatprep.subr.mxu0 %v9031_v10 }
 0x705   : > { %10673 = vmatpush3.msra.mxu0 %v9015_v1 }
 0x706   : > { %8941 = vmatpush1.bf16.msra.mxu1 %v11962_v14  ;;  %10674 = vmatprep.subr.mxu0 %v9030_v62  ;;  %v9010_v14 = vld [vmem:[%s16531_s9 + $0x138] sm:$0xff] }
 0x707   : > { %10631 = vmatprep.subr.mxu1 %v9002_v21  ;;  %10675 = vmatpush3.msra.mxu0 %v9014_v16  ;;  %v9025_v21 = vld [vmem:[%s16531_s9 + $0x1b0] sm:$0xff]  ;;  %v9035_v16 = vld [vmem:[%s16532_s10] sm:$0x1] }
 0x708   : > { %10676 = vmatprep.subr.mxu0 %v9029_v19 }
 0x709   : > { %10072 = vmatmul.mubr.msk.bf16.vlgmr.msra.gmra.mxu1 %vm1651_vm0, %v15077_v13  ;;  %v8999_v13 = vld [vmem:[%s16531_s9 + $0xe0] sm:$0xff]  ;;  %10677 = vmatpush3.msra.mxu0 %v9013_v54 }
 0x70a   : > { %10632 = vmatpush3.msra.mxu1 %v8986_v9  ;;  %9100 = vmatprep.mubr.f32.mxu1 %v8968_v41  ;;  %v9009_v9 = vld [vmem:[%s16531_s9 + $0x130] sm:$0xff]  ;;  %v9024_v41 = vld [vmem:[%s16531_s9 + $0x1a8] sm:$0xff] }
 0x70b   : > { %10633 = vmatprep.subr.mxu1 %v9001_v2  ;;  %10678 = vmatprep.subr.mxu0 %v9028_v37  ;;  %v9008_v2 = vld [vmem:[%s16531_s9 + $0x128] sm:$0xff] }
 0x70c   : > { %10634 = vmatpush3.msra.mxu1 %v8985_v39  ;;  %v9023_v39 = vld [vmem:[%s16531_s9 + $0x1a0] sm:$0xff] }
 0x70d   : > { %10635 = vmatprep.subr.mxu1 %v9000_v45  ;;  %v9007_v45 = vld [vmem:[%s16531_s9 + $0x120] sm:$0xff] }
 0x70e   : > { %10636 = vmatpush3.msra.mxu1 %v8984_v32  ;;  %v9022_v32 = vld [vmem:[%s16531_s9 + $0x198] sm:$0xff] }
 0x70f   : > { %10637 = vmatprep.subr.mxu1 %v8999_v13  ;;  %v9006_v13 = vld [vmem:[%s16531_s9 + $0x118] sm:$0xff] }
 0x710   : > { %10638 = vmatpush3.msra.mxu1 %v8983_v24  ;;  %v9021_v24 = vld [vmem:[%s16531_s9 + $0x190] sm:$0xff] }
 0x711   : > { %10639 = vmatprep.subr.mxu1 %v8998_v47  ;;  %v9005_v47 = vld [vmem:[%s16531_s9 + $0x110] sm:$0xff] }
 0x712   : > { %10640 = vmatpush3.msra.mxu1 %v8982_v44  ;;  %v9020_v44 = vld [vmem:[%s16531_s9 + $0x188] sm:$0xff] }
 0x713   : > { %10641 = vmatprep.subr.mxu1 %v8997_v61  ;;  %v9004_v61 = vld [vmem:[%s16531_s9 + $0x108] sm:$0xff] }
 0x714   : > { %10642 = vmatpush3.msra.mxu1 %v8981_v26  ;;  %v9019_v26 = vld [vmem:[%s16531_s9 + $0x180] sm:$0xff] }
 0x715   : > { %10643 = vmatprep.subr.mxu1 %v8996_v63  ;;  %v9003_v63 = vld [vmem:[%s16531_s9 + $0x100] sm:$0xff] }
 0x716   : > { %10644 = vmatpush3.msra.mxu1 %v8980_v53 }
 0x717   : > { %10645 = vmatprep.subr.mxu1 %v8995_v6 }
 0x718   : > { %10646 = vmatpush3.msra.mxu1 %v8979_v57 }
 0x719   : > { %10647 = vmatprep.subr.mxu1 %v8994_v52 }
 0x71a   : > { %10648 = vmatpush3.msra.mxu1 %v8978_v60 }
 0x71b   : > { %10649 = vmatprep.subr.mxu1 %v8993_v31 }
 0x71c   : > { %10650 = vmatpush3.msra.mxu1 %v8977_v42 }
 0x71d   : > { %10651 = vmatprep.subr.mxu1 %v8992_v46 }
 0x71e   : > { %10652 = vmatpush3.msra.mxu1 %v8976_v48 }
 0x71f   : > { %10653 = vmatprep.subr.mxu1 %v8991_v27 }
 0x720   : > { %10654 = vmatpush3.msra.mxu1 %v8975_v33 }
 0x721   : > { %10655 = vmatprep.subr.mxu1 %v8990_v50 }
 0x722   : > { %10656 = vmatpush3.msra.mxu1 %v8974_v36 }
 0x723   : > { %10657 = vmatprep.subr.mxu1 %v8989_v56 }
 0x724   : > { %10658 = vmatpush3.msra.mxu1 %v8973_v38 }
 0x725   : > { %10659 = vmatprep.subr.mxu1 %v8988_v55 }
 0x726   : > { %10660 = vmatpush3.msra.mxu1 %v8972_v3 }
 0x727   : > { %10661 = vmatprep.subr.mxu1 %v8987_v20 }
 0x728   : > { %10662 = vmatpush3.msra.mxu1 %v8971_v25 }
 0x729   : > { %9101 = vmatmul.mubr.f32.vlgmr.msra.gmra.mxu1 %v8967_v18 }
 0x72a   : > { %v8755_v22 = vpop.f32.mrf.mxu0 }
 0x72c   : > { %v8757_v59 = vpop.f32.mrf.mxu0 }
 0x72e   : > { %v8759_v40 = vpop.f32.mrf.mxu0 }
 0x730   : > { %v8760_v51 = vpop.f32.mrf.mxu0 }
 0x739   : > { %v8714_v23 = vpop.f32.mrf.mxu1 }
 0x73a   : > { %v8715_v58 = vadd.f32 %v8714_v23, %v16274_v49  ;;  %v9012_v49 = vld [vmem:[%s16531_s9 + $0x148] sm:$0xff] }
 0x73b   : > { %v8716_v34 = vpop.f32.mrf.mxu1  ;;  %10679 = vmatpush3.msra.mxu0 %v9012_v49 }
 0x73c   : > { %v8717_v28 = vadd.f32 %v8716_v34, %v16279_v43  ;;  %v8756_v30 = vadd.f32 %v8755_v22, %v8715_v58  ;;  %v9027_v43 = vld [vmem:[%s16531_s9 + $0x1c0] sm:$0xff] }
 0x73d   : > { %v8718_v17 = vpop.f32.mrf.mxu1  ;;  %10680 = vmatprep.subr.mxu0 %v9027_v43 }
 0x73e   : > { %v8758_v7 = vadd.f32 %v8757_v59, %v8717_v28  ;;  %10681 = vmatpush3.msra.mxu0 %v9011_v5 }
 0x73f   : > { %v8719_v0 = vpop.f32.mrf.mxu1  ;;  %10682 = vmatprep.subr.mxu0 %v9026_v15 }
 0x740   : > { %10683 = vmatpush3.msra.mxu0 %v9010_v14 }
 0x741   : > { %10684 = vmatprep.subr.mxu0 %v9025_v21 }
 0x742   : > { %10685 = vmatpush3.msra.mxu0 %v9009_v9 }
 0x743   : > { %10686 = vmatprep.subr.mxu0 %v9024_v41 }
 0x744   : > { %10687 = vmatpush3.msra.mxu0 %v9008_v2 }
 0x745   : > { %10688 = vmatprep.subr.mxu0 %v9023_v39 }
 0x746   : > { %10689 = vmatpush3.msra.mxu0 %v9007_v45 }
 0x747   : > { %10690 = vmatprep.subr.mxu0 %v9022_v32 }
 0x748   : > { %10691 = vmatpush3.msra.mxu0 %v9006_v13 }
 0x749   : > { %10692 = vmatprep.subr.mxu0 %v9021_v24 }
 0x74a   : > { %10693 = vmatpush3.msra.mxu0 %v9005_v47 }
 0x74b   : > { %10694 = vmatprep.subr.mxu0 %v9020_v44 }
 0x74c   : > { %10695 = vmatpush3.msra.mxu0 %v9004_v61 }
 0x74d   : > { %10696 = vmatprep.subr.mxu0 %v9019_v26 }
 0x74e   : > { %10697 = vmatpush3.msra.mxu0 %v9003_v63 }
 0x76a   : > { %v8837_v53 = vpop.f32.mrf.mxu0 }
 0x76c   : > { %v8839_v6 = vpop.f32.mrf.mxu0 }
 0x76e   : > { %v8841_v57 = vpop.f32.mrf.mxu0 }
 0x770   : > { %v8842_v52 = vpop.f32.mrf.mxu0 }
 0x779   : > { %v8796_v60 = vpop.f32.mrf.mxu1 }
 0x77a   : > { %v8797_v31 = vadd.f32 %v8796_v60, %v8756_v30 }
 0x77b   : > { %v8798_v42 = vpop.f32.mrf.mxu1 }
 0x77c   : > { %v8799_v46 = vadd.f32 %v8798_v42, %v8758_v7  ;;  %v8838_v48 = vadd.f32 %v8837_v53, %v8797_v31 }
 0x77d   : > { %v8800_v27 = vpop.f32.mrf.mxu1 }
 0x77e   : > { %v8840_v33 = vadd.f32 %v8839_v6, %v8799_v46 }
 0x77f   : > { %v8801_v50 = vpop.f32.mrf.mxu1 }
 0x7aa   : > { %v8919_v36 = vpop.f32.mrf.mxu0 }
 0x7ac   : > { %v8921_v56 = vpop.f32.mrf.mxu0 }
 0x7ae   : > { %v8923_v38 = vpop.f32.mrf.mxu0 }
 0x7b0   : > { %v8924_v55 = vpop.f32.mrf.mxu0 }
 0x7b9   : > { %v8878_v3 = vpop.f32.mrf.mxu1 }
 0x7ba   : > { %v8879_v22 = vadd.f32 %v8878_v3, %v8838_v48 }
 0x7bb   : > { %v8880_v20 = vpop.f32.mrf.mxu1 }
 0x7bc   : > { %v8881_v59 = vadd.f32 %v8880_v20, %v8840_v33  ;;  %v8920_v40 = vadd.f32 %v8919_v36, %v8879_v22 }
 0x7bd   : > { %v8882_v25 = vpop.f32.mrf.mxu1 }
 0x7be   : > { %v8922_v35 = vadd.f32 %v8921_v56, %v8881_v59 }
 0x7bf   : > { %v8883_v18 = vpop.f32.mrf.mxu1 }
 0x7c9   : > { %v8960_v51 = vpop.f32.mrf.mxu1 }
 0x7ca   : > { %v8961_v8 = vadd.f32 %v8960_v51, %v8920_v40 }
 0x7cb   : > { %v8962_v29 = vpop.f32.mrf.mxu1 }
 0x7cc   : > { %v8963_v12 = vadd.f32 %v8962_v29, %v8922_v35  ;;  %v8969_v10 = vmax.f32 %v8961_v8, 0.0 }
 0x7cd   : > { %v8964_v11 = vpop.f32.mrf.mxu1 }
 0x7ce   : > { %v8970_v4 = vmax.f32 %v8963_v12, 0.0 }
 0x7cf   : > { %v8965_v1 = vpop.f32.mrf.mxu1 }
 0x7d0   : > { %9170 = vmatprep.mubr.f32.mxu0 %v8970_v4 }
 0x7d1   : > { %9171 = vmatmul.mubr.f32.vlgmr.msra.gmra.mxu0 %v8969_v10 }
 0x7e9   : > { %v10663_v23 = vpop.f32.mrf.mxu1 }
 0x7eb   : > { %v10664_v58 = vpop.f32.mrf.mxu1 }
 0x7ec   : > { %v10665_v62 = vadd.f32 %v10664_v58, %v10663_v23 }
 0x7ee   : > { %v9103_v30 = vadd.f32 %v10665_v62, %v9035_v16 }
 0x891   : > { %v10698_v34 = vpop.f32.mrf.mxu0 }
 0x893   : > { %v10699_v28 = vpop.f32.mrf.mxu0 }
 0x894   : > { %v10700_v19 = vadd.f32 %v10699_v28, %v10698_v34 }
 0x896   : > { %v9173_v54 = vadd.f32 %v10700_v19, %v9103_v30 }
 0x898   : > { %9176 = vst [vmem:[%s378_s19] sm:$0x1] %v9173_v54 }
 0x899   : > { %11980 = shalt.err (!%p11977_p3)
}
 0x89a   : > { %s11981_s25 = scalar_lea.hbm %s9188_s14, 16  ;;  %s11985_s19 = scalar_lea.hbm %s16533_s11, 32 }
 0x89b   : > { %p11982_p4 = scmp.ne.s32.totalorder %s9188_s14, %s11981_s25  ;;  %p11986_p9 = scmp.lt.s32.totalorder %s9188_s14, %s16533_s11 }
 0x89c   : > { %p11987_p10 = scmp.lt.s32.totalorder %s11985_s19, %s11981_s25 }
 0x89d   : > { %p11983_p7 = pnand %p11982_p4, %p12133_p5 }
 0x89e   : > { %p11988_p11 = por %p11987_p10, %p11986_p9 }
 0x89f   : > { %p11984_p8 = pneg %p11983_p7 }
 0x8a1   : > { %p11989_p12 = pnand %p11988_p11, %p11984_p8 }
 0x8a3   : > { %11992 = shalt.err (!%p11989_p12)
}
 0x8a4   : > { %10745 = dma.vmem_to_hbm [thread:$0]  (%p12133_p5), %s9191_s22, 16, %s9188_s14, %s9178_s15  }
 0x8a5 PF: > { %p10751_p13 = scmp.ge.s32.totalorder %s12027_s20, 2  ;;  %s9202_s29 = sand.u32 1, %s12015_s17  }
 0x8a6   : > { %s9203_s16 = scalar_lea.sflag [#allocation9], %s9202_s29 }
 0x8a7   : > { %p10748_p0 = pnand %p10751_p13, %p12137_p6 }
 0x8a9   : > { %p10749_p1 = pneg %p10748_p0 }
 0x8ab   : > { %12010 = dma.done.wait (%p10749_p1), %s9203_s16, 16  }
 0x8ac   : > { %12012 = vsyncadd (%p10749_p1), %s9203_s16, 4294967280  ;;  %s16555_s26 = sld [smem:[#allocation11_spill]]  ;;  %p21_p2 = scmp.ge.s32.totalorder %s12120_s23, 4  }
 0x8ad   : > { %s16556_s19 = sld [smem:[#allocation12_spill]]  ;;  %s16557_s17 = smov %s12019_s18 }
 0x8ae   : > { %s16559_s20 = smov %s12120_s23  ;;  %23 = sbr.rel (!%p21_p2) target bundleno = 3 (0x3), region = 99 }
 0x8b2   : > { %s16558_s18 = smov %s16555_s26 }
 0x8b3   :  { %9207 = vsyncpa [#allocation9], 1 }
 0x8b4   :  { %9209 = vsyncpa [#allocation9 + $0x1], 1 }

</bundles_post_ra>
